<compile_context>
chip_gen: v7x
topology: tpu7x:2x2x1
jax: 0.10.0
libtpu: 0.0.40
codegen_flags: <defaults>
</compile_context>

<pallas_src>
import functools
import math

import jax
import jax.numpy as jnp
from jax import lax
from jax.experimental import pallas as pl
from jax.experimental.pallas import tpu as pltpu


def _convlstm_kernel(xhp_ref, c_ref, w_ref, b_ref, *rest,
                     H, W, K, Cin, Ch, bn, use_peephole):
    if use_peephole:
        wc_ref, ch_ref, cc_ref = rest
    else:
        ch_ref, cc_ref = rest

    C = Cin + Ch
    HW = H * W
    M = bn * HW

    # im2col by shifted windows: one fused matmul over all K*K taps and all
    # four gates:  (M, K*K*C) x (K*K*C, 4*Ch).  Column order (dy, dx, c)
    # matches the weight-slab row order built in the wrapper.
    cols = []
    for dy in range(K):
        for dx in range(K):
            cols.append(xhp_ref[:, dy:dy + H, dx:dx + W, :])
    col = jnp.concatenate(cols, axis=-1).reshape(M, K * K * C)

    # Bias is folded directly into the matmul epilogue (no zero-init acc).
    # NOTE: col/w may be bf16 (matmul_dtype option); accumulate in f32.
    gates = jnp.dot(col, w_ref[...], preferred_element_type=jnp.float32)
    gates = (gates + b_ref[...].astype(jnp.float32)).reshape(bn, HW, 4 * Ch)

    c_prev = c_ref[...].reshape(bn, HW, Ch).astype(jnp.float32)

    # GATE ORDER contract: (i, f, c, o) along the 4*Ch output-channel axis.
    gi = gates[..., 0 * Ch:1 * Ch]
    gf = gates[..., 1 * Ch:2 * Ch]
    gc = gates[..., 2 * Ch:3 * Ch]
    go = gates[..., 3 * Ch:4 * Ch]

    if use_peephole:
        # General peephole ConvLSTM update: ci = sigmoid(Wxi*x + Whi*h + c.Wci)
        wci = wc_ref[0].reshape(1, HW, Ch).astype(jnp.float32)
        wcf = wc_ref[1].reshape(1, HW, Ch).astype(jnp.float32)
        wco = wc_ref[2].reshape(1, HW, Ch).astype(jnp.float32)
        ci = jax.nn.sigmoid(gi + c_prev * wci)
        cf = jax.nn.sigmoid(gf + c_prev * wcf)
        cc = cf * c_prev + ci * jnp.tanh(gc)
        co = jax.nn.sigmoid(go + cc * wco)
    else:
        # init_hidden() case: Wci/Wcf/Wco are all zeros, so the peephole terms
        # vanish -- skip their DMA and the three full-tile multiplies.
        ci = jax.nn.sigmoid(gi)
        cf = jax.nn.sigmoid(gf)
        cc = cf * c_prev + ci * jnp.tanh(gc)
        co = jax.nn.sigmoid(go)
    ch = co * jnp.tanh(cc)

    ch_ref[...] = ch.reshape(bn, H, W, Ch).astype(ch_ref.dtype)
    cc_ref[...] = cc.reshape(bn, H, W, Ch).astype(cc_ref.dtype)


def _default_grid_blocks(N):
    """Batch split: 1 grid step on single-TC chips (v5e/v6e), N-split on v7x."""
    try:
        kind = jax.devices()[0].device_kind.lower()
    except Exception:
        kind = ""
    tc_per_chip = 2 if "v7" in kind else 1   # v7x has 2 TensorCores / chip
    return max(math.gcd(N, tc_per_chip), 1)


def conv_lstm_cell(x, h, c, wx, wh, b, wc=None, *, grid_blocks=None,
                   matmul_dtype=None):
    """x,h,c: NHWC. wx: [K,K,Cin,4*Ch], wh: [K,K,Ch,4*Ch], b: [4*Ch],
    wc: optional [3,H,W,Ch] peephole weights (Wci, Wcf, Wco); None means the
    init_hidden() all-zeros case and skips the peephole path statically.
    matmul_dtype: optionally cast conv operands (e.g. jnp.bfloat16) for a
    single-pass MXU matmul; default keeps f32 to match the f32 reference.
    Returns (ch, cc) in NHWC."""
    N, H, W, Cin = x.shape
    Ch = h.shape[-1]
    K = wx.shape[0]
    assert wx.shape == (K, K, Cin, 4 * Ch), "wx must be HWIO with 4 gates"
    assert wh.shape == (K, K, Ch, 4 * Ch), "wh must be HWIO with 4 gates"
    assert b.shape == (4 * Ch,)
    p = (K - 1) // 2
    Hp, Wp = H + 2 * p, W + 2 * p
    C = Cin + Ch
    KKC = K * K * C

    if grid_blocks is None:
        grid_blocks = _default_grid_blocks(N)
    assert N % grid_blocks == 0
    bn = N // grid_blocks

    # GATE ORDER contract: wx/wh columns are (i, f, c, o) concatenated; the
    # kernel slices gates in the same order.  Single weight slab with rows
    # ordered (dy, dx, [x-channels, h-channels]) to match the im2col columns.
    w_slab = jnp.concatenate([wx, wh], axis=2).reshape(KKC, 4 * Ch)
    b2 = b.reshape(1, 4 * Ch)

    # "Same" padding + x/h channel concat as cheap XLA glue (one pad total).
    # TODO(synk): fold the halo padding into the kernel via a zeroed VMEM
    # staging buffer to drop this HBM round trip in a recurrent deployment.
    xh = jnp.concatenate([x, h], axis=-1)
    xhp = jnp.pad(xh, ((0, 0), (p, p), (p, p), (0, 0)))

    if matmul_dtype is not None:
        xhp = xhp.astype(matmul_dtype)
        w_slab = w_slab.astype(matmul_dtype)

    use_peephole = wc is not None

    kernel = functools.partial(_convlstm_kernel, H=H, W=W, K=K, Cin=Cin,
                               Ch=Ch, bn=bn, use_peephole=use_peephole)

    in_specs = [
        pl.BlockSpec((bn, Hp, Wp, C), lambda g: (g, 0, 0, 0)),
        pl.BlockSpec((bn, H, W, Ch), lambda g: (g, 0, 0, 0)),
        pl.BlockSpec((KKC, 4 * Ch), lambda g: (0, 0)),
        pl.BlockSpec((1, 4 * Ch), lambda g: (0, 0)),
    ]
    inputs = [xhp, c, w_slab, b2]
    if use_peephole:
        assert wc.shape == (3, H, W, Ch)
        in_specs.append(pl.BlockSpec((3, H, W, Ch), lambda g: (0, 0, 0, 0)))
        inputs.append(wc)

    out_specs = [
        pl.BlockSpec((bn, H, W, Ch), lambda g: (g, 0, 0, 0)),
        pl.BlockSpec((bn, H, W, Ch), lambda g: (g, 0, 0, 0)),
    ]
    out_shape = (jax.ShapeDtypeStruct((N, H, W, Ch), x.dtype),
                 jax.ShapeDtypeStruct((N, H, W, Ch), x.dtype))

    grid_spec = pltpu.PrefetchScalarGridSpec(
        num_scalar_prefetch=0,
        grid=(grid_blocks,),
        in_specs=in_specs,
        out_specs=out_specs,
    )

    return pl.pallas_call(
        kernel,
        out_shape=out_shape,
        grid_spec=grid_spec,
        compiler_params=pltpu.CompilerParams(
            dimension_semantics=("parallel",)),
    )(*inputs)


def ref_conv_lstm_cell(x, h, c, wx, wh, b, wc):
    """Pure-JAX reference (NHWC convs), mirrors the PyTorch forward()."""
    dn = ('NHWC', 'HWIO', 'NHWC')
    gx = lax.conv_general_dilated(x, wx, (1, 1), 'SAME', dimension_numbers=dn,
                                  precision=lax.Precision.HIGHEST)
    gh = lax.conv_general_dilated(h, wh, (1, 1), 'SAME', dimension_numbers=dn,
                                  precision=lax.Precision.HIGHEST)
    g = gx + gh + b[None, None, None, :]
    gi, gf, gc, go = jnp.split(g, 4, axis=-1)
    wci, wcf, wco = wc[0], wc[1], wc[2]
    ci = jax.nn.sigmoid(gi + c * wci)
    cf = jax.nn.sigmoid(gf + c * wcf)
    cc = cf * c + ci * jnp.tanh(gc)
    co = jax.nn.sigmoid(go + cc * wco)
    ch = co * jnp.tanh(cc)
    return ch, cc


if __name__ == "__main__":
    # Small shapes consistent with the module: batch=2, input_channels=4,
    # hidden_channels=32 (even, as asserted), kernel_size=3, spatial=16x16.
    N, Cin, Ch, H, W, K = 2, 4, 32, 16, 16, 3
    key = jax.random.PRNGKey(0)
    k_x, k_h, k_c, k_wx, k_wh, k_b, k_wc = jax.random.split(key, 7)

    # Build activations in PyTorch NCHW, then transpose to the kernel's NHWC.
    x_nchw = jax.random.normal(k_x, (N, Cin, H, W), jnp.float32)
    h_nchw = jax.random.normal(k_h, (N, Ch, H, W), jnp.float32)
    c_nchw = jax.random.normal(k_c, (N, Ch, H, W), jnp.float32)
    x = jnp.transpose(x_nchw, (0, 2, 3, 1))
    h = jnp.transpose(h_nchw, (0, 2, 3, 1))
    c = jnp.transpose(c_nchw, (0, 2, 3, 1))

    # Conv weights in PyTorch OIHW layout [Cout, Cin, K, K] for the 4 gates
    # (Wxi, Wxf, Wxc, Wxo / Whi, Whf, Whc, Who) -> HWIO, gates concat on Cout.
    wx_oihw = 0.1 * jax.random.normal(k_wx, (4, Ch, Cin, K, K), jnp.float32)
    wh_oihw = 0.1 * jax.random.normal(k_wh, (4, Ch, Ch, K, K), jnp.float32)
    wx = jnp.concatenate(
        [jnp.transpose(wx_oihw[g], (2, 3, 1, 0)) for g in range(4)], axis=-1)
    wh = jnp.concatenate(
        [jnp.transpose(wh_oihw[g], (2, 3, 1, 0)) for g in range(4)], axis=-1)
    # Biases only on the Wx* convs (Wh* convs have bias=False).
    b = 0.1 * jax.random.normal(k_b, (4 * Ch,), jnp.float32)

    # --- Case 1: init_hidden() peephole weights (all zeros) -> static skip.
    ch_out, cc_out = jax.block_until_ready(
        conv_lstm_cell(x, h, c, wx, wh, b, wc=None))
    wc_zero = jnp.zeros((3, H, W, Ch), jnp.float32)
    ch_ref, cc_ref = ref_conv_lstm_cell(x, h, c, wx, wh, b, wc_zero)
    assert ch_out.shape == (N, H, W, Ch) and cc_out.shape == (N, H, W, Ch)
    assert jnp.allclose(ch_out, ch_ref, rtol=1e-2, atol=1e-2)
    assert jnp.allclose(cc_out, cc_ref, rtol=1e-2, atol=1e-2)

    # --- Case 2: general (non-zero) peephole weights exercise the full path.
    wc_rand = 0.1 * jax.random.normal(k_wc, (3, H, W, Ch), jnp.float32)
    ch_out2, cc_out2 = jax.block_until_ready(
        conv_lstm_cell(x, h, c, wx, wh, b, wc=wc_rand))
    ch_ref2, cc_ref2 = ref_conv_lstm_cell(x, h, c, wx, wh, b, wc_rand)
    assert jnp.allclose(ch_out2, ch_ref2, rtol=1e-2, atol=1e-2)
    assert jnp.allclose(cc_out2, cc_ref2, rtol=1e-2, atol=1e-2)

    print("KERNEL_OK")
</pallas_src>

<mosaic_0001>
module attributes {stable_mosaic.version = 11 : i64} {
  func.func @_convlstm_kernel(%arg0: i32, %arg1: memref<2x18x18x36xf32, #tpu.memory_space<vmem>>, %arg2: memref<2x16x16x32xf32, #tpu.memory_space<vmem>>, %arg3: memref<324x128xf32, #tpu.memory_space<vmem>>, %arg4: memref<1x128xf32, #tpu.memory_space<vmem>>, %arg5: memref<2x16x16x32xf32, #tpu.memory_space<vmem>>, %arg6: memref<2x16x16x32xf32, #tpu.memory_space<vmem>>) attributes {dimension_semantics = [#tpu.dimension_semantics<parallel>], iteration_bounds = array<i64: 1>, scalar_prefetch = 0 : i64, scratch_operands = 0 : i64, tpu.core_type = #tpu.core_type<tc>, window_params = [{transform_indices = @transform_0, window_bounds = array<i64: 2, 18, 18, 36>}, {transform_indices = @transform_1, window_bounds = array<i64: 2, 16, 16, 32>}, {pipeline_mode = #tpu.pipeline_mode<synchronous>, transform_indices = @transform_2, window_bounds = array<i64: 324, 128>}, {pipeline_mode = #tpu.pipeline_mode<synchronous>, transform_indices = @transform_3, window_bounds = array<i64: 1, 128>}, {transform_indices = @transform_4, window_bounds = array<i64: 2, 16, 16, 32>}, {transform_indices = @transform_5, window_bounds = array<i64: 2, 16, 16, 32>}]} {
    %c0 = arith.constant 0 : index
    %c0_0 = arith.constant 0 : index
    %c0_1 = arith.constant 0 : index
    %c0_2 = arith.constant 0 : index
    %0 = vector.load %arg1[%c0, %c0_0, %c0_1, %c0_2] : memref<2x18x18x36xf32, #tpu.memory_space<vmem>>, vector<2x16x16x36xf32>
    %c0_3 = arith.constant 0 : index
    %c0_4 = arith.constant 0 : index
    %c1 = arith.constant 1 : index
    %c0_5 = arith.constant 0 : index
    %1 = vector.load %arg1[%c0_3, %c0_4, %c1, %c0_5] : memref<2x18x18x36xf32, #tpu.memory_space<vmem>>, vector<2x16x16x36xf32>
    %c0_6 = arith.constant 0 : index
    %c0_7 = arith.constant 0 : index
    %c2 = arith.constant 2 : index
    %c0_8 = arith.constant 0 : index
    %2 = vector.load %arg1[%c0_6, %c0_7, %c2, %c0_8] : memref<2x18x18x36xf32, #tpu.memory_space<vmem>>, vector<2x16x16x36xf32>
    %c0_9 = arith.constant 0 : index
    %c1_10 = arith.constant 1 : index
    %c0_11 = arith.constant 0 : index
    %c0_12 = arith.constant 0 : index
    %3 = vector.load %arg1[%c0_9, %c1_10, %c0_11, %c0_12] : memref<2x18x18x36xf32, #tpu.memory_space<vmem>>, vector<2x16x16x36xf32>
    %c0_13 = arith.constant 0 : index
    %c1_14 = arith.constant 1 : index
    %c1_15 = arith.constant 1 : index
    %c0_16 = arith.constant 0 : index
    %4 = vector.load %arg1[%c0_13, %c1_14, %c1_15, %c0_16] : memref<2x18x18x36xf32, #tpu.memory_space<vmem>>, vector<2x16x16x36xf32>
    %c0_17 = arith.constant 0 : index
    %c1_18 = arith.constant 1 : index
    %c2_19 = arith.constant 2 : index
    %c0_20 = arith.constant 0 : index
    %5 = vector.load %arg1[%c0_17, %c1_18, %c2_19, %c0_20] : memref<2x18x18x36xf32, #tpu.memory_space<vmem>>, vector<2x16x16x36xf32>
    %c0_21 = arith.constant 0 : index
    %c2_22 = arith.constant 2 : index
    %c0_23 = arith.constant 0 : index
    %c0_24 = arith.constant 0 : index
    %6 = vector.load %arg1[%c0_21, %c2_22, %c0_23, %c0_24] : memref<2x18x18x36xf32, #tpu.memory_space<vmem>>, vector<2x16x16x36xf32>
    %c0_25 = arith.constant 0 : index
    %c2_26 = arith.constant 2 : index
    %c1_27 = arith.constant 1 : index
    %c0_28 = arith.constant 0 : index
    %7 = vector.load %arg1[%c0_25, %c2_26, %c1_27, %c0_28] : memref<2x18x18x36xf32, #tpu.memory_space<vmem>>, vector<2x16x16x36xf32>
    %c0_29 = arith.constant 0 : index
    %c2_30 = arith.constant 2 : index
    %c2_31 = arith.constant 2 : index
    %c0_32 = arith.constant 0 : index
    %8 = vector.load %arg1[%c0_29, %c2_30, %c2_31, %c0_32] : memref<2x18x18x36xf32, #tpu.memory_space<vmem>>, vector<2x16x16x36xf32>
    %9 = tpu.concatenate %0, %1, %2, %3, %4, %5, %6, %7, %8 in 3 : vector<2x16x16x36xf32>, vector<2x16x16x36xf32>, vector<2x16x16x36xf32>, vector<2x16x16x36xf32>, vector<2x16x16x36xf32>, vector<2x16x16x36xf32>, vector<2x16x16x36xf32>, vector<2x16x16x36xf32>, vector<2x16x16x36xf32> -> vector<2x16x16x324xf32>
    %10 = vector.shape_cast %9 : vector<2x16x16x324xf32> to vector<512x324xf32>
    %c0_33 = arith.constant 0 : index
    %c0_34 = arith.constant 0 : index
    %11 = vector.load %arg3[%c0_33, %c0_34] : memref<324x128xf32, #tpu.memory_space<vmem>>, vector<324x128xf32>
    %cst = arith.constant dense<0.000000e+00> : vector<512x128xf32>
    %12 = tpu.matmul %10, %11, %cst {dimension_numbers = #tpu.dot_dimension_numbers<[1], [0], [0], [1], [0, 0, 1, 1], [], []>} : vector<512x324xf32>, vector<324x128xf32>, vector<512x128xf32> -> vector<512x128xf32>
    %c0_35 = arith.constant 0 : index
    %c0_36 = arith.constant 0 : index
    %13 = vector.load %arg4[%c0_35, %c0_36] : memref<1x128xf32, #tpu.memory_space<vmem>>, vector<1x128xf32>
    %14 = vector.broadcast %13 : vector<1x128xf32> to vector<512x128xf32>
    %15 = arith.addf %12, %14 : vector<512x128xf32>
    %16 = vector.shape_cast %15 : vector<512x128xf32> to vector<2x256x128xf32>
    %c0_37 = arith.constant 0 : index
    %c0_38 = arith.constant 0 : index
    %c0_39 = arith.constant 0 : index
    %c0_40 = arith.constant 0 : index
    %17 = vector.load %arg2[%c0_37, %c0_38, %c0_39, %c0_40] : memref<2x16x16x32xf32, #tpu.memory_space<vmem>>, vector<2x16x16x32xf32>
    %18 = vector.shape_cast %17 : vector<2x16x16x32xf32> to vector<2x256x32xf32>
    %19 = vector.extract_strided_slice %16 {offsets = [0, 0, 0], sizes = [2, 256, 32], strides = [1, 1, 1]} : vector<2x256x128xf32> to vector<2x256x32xf32>
    %20 = vector.extract_strided_slice %16 {offsets = [0, 0, 32], sizes = [2, 256, 32], strides = [1, 1, 1]} : vector<2x256x128xf32> to vector<2x256x32xf32>
    %21 = vector.extract_strided_slice %16 {offsets = [0, 0, 64], sizes = [2, 256, 32], strides = [1, 1, 1]} : vector<2x256x128xf32> to vector<2x256x32xf32>
    %22 = vector.extract_strided_slice %16 {offsets = [0, 0, 96], sizes = [2, 256, 32], strides = [1, 1, 1]} : vector<2x256x128xf32> to vector<2x256x32xf32>
    %23 = arith.negf %19 : vector<2x256x32xf32>
    %24 = math.exp %23 : vector<2x256x32xf32>
    %cst_41 = arith.constant 1.000000e+00 : f32
    %25 = vector.broadcast %cst_41 : f32 to vector<2x256x32xf32>
    %26 = arith.addf %25, %24 : vector<2x256x32xf32>
    %27 = arith.divf %25, %26 : vector<2x256x32xf32>
    %28 = arith.negf %20 : vector<2x256x32xf32>
    %29 = math.exp %28 : vector<2x256x32xf32>
    %cst_42 = arith.constant 1.000000e+00 : f32
    %30 = vector.broadcast %cst_42 : f32 to vector<2x256x32xf32>
    %31 = arith.addf %30, %29 : vector<2x256x32xf32>
    %32 = arith.divf %30, %31 : vector<2x256x32xf32>
    %33 = arith.mulf %32, %18 : vector<2x256x32xf32>
    %34 = math.tanh %21 : vector<2x256x32xf32>
    %35 = arith.mulf %27, %34 : vector<2x256x32xf32>
    %36 = arith.addf %33, %35 : vector<2x256x32xf32>
    %37 = arith.negf %22 : vector<2x256x32xf32>
    %38 = math.exp %37 : vector<2x256x32xf32>
    %cst_43 = arith.constant 1.000000e+00 : f32
    %39 = vector.broadcast %cst_43 : f32 to vector<2x256x32xf32>
    %40 = arith.addf %39, %38 : vector<2x256x32xf32>
    %41 = arith.divf %39, %40 : vector<2x256x32xf32>
    %42 = math.tanh %36 : vector<2x256x32xf32>
    %43 = arith.mulf %41, %42 : vector<2x256x32xf32>
    %44 = vector.shape_cast %43 : vector<2x256x32xf32> to vector<2x16x16x32xf32>
    %c0_44 = arith.constant 0 : index
    %c0_45 = arith.constant 0 : index
    %c0_46 = arith.constant 0 : index
    %c0_47 = arith.constant 0 : index
    %45 = vector.load %arg5[%c0_44, %c0_45, %c0_46, %c0_47] : memref<2x16x16x32xf32, #tpu.memory_space<vmem>>, vector<2x16x16x32xf32>
    tpu.vector_store %arg5[%c0_44, %c0_45, %c0_46, %c0_47], %44 {strides = array<i32>} : memref<2x16x16x32xf32, #tpu.memory_space<vmem>>, vector<2x16x16x32xf32>,
    %46 = vector.shape_cast %36 : vector<2x256x32xf32> to vector<2x16x16x32xf32>
    %c0_48 = arith.constant 0 : index
    %c0_49 = arith.constant 0 : index
    %c0_50 = arith.constant 0 : index
    %c0_51 = arith.constant 0 : index
    %47 = vector.load %arg6[%c0_48, %c0_49, %c0_50, %c0_51] : memref<2x16x16x32xf32, #tpu.memory_space<vmem>>, vector<2x16x16x32xf32>
    tpu.vector_store %arg6[%c0_48, %c0_49, %c0_50, %c0_51], %46 {strides = array<i32>} : memref<2x16x16x32xf32, #tpu.memory_space<vmem>>, vector<2x16x16x32xf32>,
    return
  }
  func.func @transform_0(%arg0: i32) -> (i32, i32, i32, i32) {
    %c0_i32 = arith.constant 0 : i32
    %c0_i32_0 = arith.constant 0 : i32
    %c0_i32_1 = arith.constant 0 : i32
    %c0_i32_2 = arith.constant 0 : i32
    return %arg0, %c0_i32, %c0_i32_0, %c0_i32_1 : i32, i32, i32, i32
  }
  func.func @transform_1(%arg0: i32) -> (i32, i32, i32, i32) {
    %c0_i32 = arith.constant 0 : i32
    %c0_i32_0 = arith.constant 0 : i32
    %c0_i32_1 = arith.constant 0 : i32
    %c0_i32_2 = arith.constant 0 : i32
    return %arg0, %c0_i32, %c0_i32_0, %c0_i32_1 : i32, i32, i32, i32
  }
  func.func @transform_2(%arg0: i32) -> (i32, i32) {
    %c0_i32 = arith.constant 0 : i32
    %c0_i32_0 = arith.constant 0 : i32
    %c0_i32_1 = arith.constant 0 : i32
    return %c0_i32, %c0_i32_0 : i32, i32
  }
  func.func @transform_3(%arg0: i32) -> (i32, i32) {
    %c0_i32 = arith.constant 0 : i32
    %c0_i32_0 = arith.constant 0 : i32
    %c0_i32_1 = arith.constant 0 : i32
    return %c0_i32, %c0_i32_0 : i32, i32
  }
  func.func @transform_4(%arg0: i32) -> (i32, i32, i32, i32) {
    %c0_i32 = arith.constant 0 : i32
    %c0_i32_0 = arith.constant 0 : i32
    %c0_i32_1 = arith.constant 0 : i32
    %c0_i32_2 = arith.constant 0 : i32
    return %arg0, %c0_i32, %c0_i32_0, %c0_i32_1 : i32, i32, i32, i32
  }
  func.func @transform_5(%arg0: i32) -> (i32, i32, i32, i32) {
    %c0_i32 = arith.constant 0 : i32
    %c0_i32_0 = arith.constant 0 : i32
    %c0_i32_1 = arith.constant 0 : i32
    %c0_i32_2 = arith.constant 0 : i32
    return %arg0, %c0_i32, %c0_i32_0, %c0_i32_1 : i32, i32, i32, i32
  }
}

</mosaic_0001>

<bundles_post_ra>
// kernel: tpu_custom_call.1
= control target key start
LH: loop header
LB: loop body
LE: loop exit
PB: predicated region body
PF: predicated region fallthrough
CT: control target
= control target key end

     0   :  { %11 = vsyncpa [#allocation3], 0  ;;  %s9042_s9 = smov 36   ;;  %s9043_s18 = smov 72   ;;  %s15893_s0 = inlined_call_operand.vmem [shape: f32[2,18,18,36], index: 0, kind: input, shape index: {}]   ;;  %s15894_s1 = inlined_call_operand.vmem [shape: f32[2,16,16,32], index: 1, kind: input, shape index: {}]   ;;  %s15895_s2 = inlined_call_operand.vmem [shape: f32[324,128], index: 2, kind: input, shape index: {}]   ;;  %s15896_s3 = inlined_call_operand.vmem [shape: f32[1,128], index: 3, kind: input, shape index: {}]   ;;  %s15897_s4 = inlined_call_operand.hbm [shape: f32[2,16,16,32], index: 4, kind: output, shape index: {0}]   ;;  %s15898_s5 = inlined_call_operand.hbm [shape: f32[2,16,16,32], index: 5, kind: output, shape index: {1}]  }
   0x1   :  { %v89_v0 = vld [vmem:[%s15893_s0 + $0x31] sm:$0xff]  ;;  %v90_v1 = vld [vmem:[%s15893_s0 + $0x39] sm:$0xff]  ;;  %v85_v2 = vld [vmem:[%s15893_s0 + $0x1] sm:$0xff] }
   0x2   :  { %v9096_v3 = vpack.i.bf16 %v90_v1, %v89_v0  ;;  %v86_v4 = vld [vmem:[%s15893_s0 + $0x9] sm:$0xff]  ;;  %v92_v6 = vld [vmem:[%s15893_s0 + $0x51] sm:$0xff]  ;;  %v87_v8 = vld [vmem:[%s15893_s0 + $0x19] sm:$0xff] }
   0x3   :  { %v91_v5 = vld [vmem:[%s15893_s0 + $0x49] sm:$0xff]  ;;  %v7522_v7 = vpack.i.bf16 %v86_v4, %v85_v2  ;;  %v88_v9 = vld [vmem:[%s15893_s0 + $0x21] sm:$0xff]  ;;  %v95_v12 = vld [vmem:[%s15893_s0 + $0x79] sm:$0xff] }
   0x4   :  { %7533 = vrot.lane.b32.xlu1 %v9096_v3, %s9042_s9  ;;  %v7537_v10 = vpack.i.bf16 %v92_v6, %v91_v5  ;;  %v9116_v11 = vpack.i.bf16 %v88_v9, %v87_v8  ;;  %v96_v13 = vld [vmem:[%s15893_s0 + $0x81] sm:$0xff]  ;;  %v94_v15 = vld [vmem:[%s15893_s0 + $0x69] sm:$0xff]  ;;  %v100_v19 = vld [vmem:[%s15893_s0 + $0xb1] sm:$0xff] }
   0x5   :  { %7523 = vrot.lane.b32.xlu0 %v7522_v7, %s9042_s9  ;;  %v93_v14 = vld [vmem:[%s15893_s0 + $0x61] sm:$0xff]  ;;  %v7547_v16 = vpack.i.bf16 %v96_v13, %v95_v12  ;;  %v99_v18 = vld [vmem:[%s15893_s0 + $0xa9] sm:$0xff]  ;;  %v97_v20 = vld [vmem:[%s15893_s0 + $0x91] sm:$0xff] }
   0x6   :  { %v9133_v17 = vpack.i.bf16 %v94_v15, %v93_v14  ;;  %v98_v21 = vld [vmem:[%s15893_s0 + $0x99] sm:$0xff]  ;;  %v7557_v22 = vpack.i.bf16 %v100_v19, %v99_v18  ;;  %v104_v25 = vld [vmem:[%s15893_s0 + $0xe1] sm:$0xff]  ;;  %v102_v27 = vld [vmem:[%s15893_s0 + $0xc9] sm:$0xff] }
   0x7   :  { %v9150_v23 = vpack.i.bf16 %v98_v21, %v97_v20  ;;  %v103_v24 = vld [vmem:[%s15893_s0 + $0xd9] sm:$0xff]  ;;  %v101_v26 = vld [vmem:[%s15893_s0 + $0xc1] sm:$0xff]  ;;  %v107_v30 = vld [vmem:[%s15893_s0 + $0x109] sm:$0xff] }
   0x8   :  { %7538 = vrot.lane.b32.xlu1 %v7537_v10, %s9042_s9  ;;  %v7567_v28 = vpack.i.bf16 %v104_v25, %v103_v24  ;;  %v7562_v29 = vpack.i.bf16 %v102_v27, %v101_v26  ;;  %v108_v31 = vld [vmem:[%s15893_s0 + $0x111] sm:$0xff]  ;;  %v106_v33 = vld [vmem:[%s15893_s0 + $0xf9] sm:$0xff]  ;;  %v112_v37 = vld [vmem:[%s15893_s0 + $0x141] sm:$0xff] }
   0x9   :  { %7528 = vrot.lane.b32.xlu0 %v9116_v11, %s9042_s9  ;;  %v105_v32 = vld [vmem:[%s15893_s0 + $0xf1] sm:$0xff]  ;;  %v7577_v34 = vpack.i.bf16 %v108_v31, %v107_v30  ;;  %v111_v36 = vld [vmem:[%s15893_s0 + $0x139] sm:$0xff]  ;;  %v109_v38 = vld [vmem:[%s15893_s0 + $0x121] sm:$0xff] }
   0xa   :  { %v7572_v35 = vpack.i.bf16 %v106_v33, %v105_v32  ;;  %v110_v39 = vld [vmem:[%s15893_s0 + $0x129] sm:$0xff]  ;;  %v7587_v40 = vpack.i.bf16 %v112_v37, %v111_v36  ;;  %v116_v43 = vld [vmem:[%s15893_s0 + $0x171] sm:$0xff]  ;;  %v114_v45 = vld [vmem:[%s15893_s0 + $0x159] sm:$0xff] }
   0xb   :  { %v7582_v41 = vpack.i.bf16 %v110_v39, %v109_v38  ;;  %v115_v42 = vld [vmem:[%s15893_s0 + $0x169] sm:$0xff]  ;;  %v113_v44 = vld [vmem:[%s15893_s0 + $0x151] sm:$0xff]  ;;  %v118_v51 = vld [vmem:[%s15893_s0 + $0x1b9] sm:$0xff] }
   0xc   :  { %7548 = vrot.lane.b32.xlu1 %v7547_v16, %s9042_s9  ;;  %v7597_v46 = vpack.i.bf16 %v116_v43, %v115_v42  ;;  %v7592_v47 = vpack.i.bf16 %v114_v45, %v113_v44  ;;  %v119_v48 = vld [vmem:[%s15893_s0 + $0x1c9] sm:$0xff]  ;;  %v120_v49 = vld [vmem:[%s15893_s0 + $0x1d1] sm:$0xff]  ;;  %v123_v54 = vld [vmem:[%s15893_s0 + $0x1f9] sm:$0xff] }
   0xd   :  { %7543 = vrot.lane.b32.xlu0 %v9133_v17, %s9042_s9  ;;  %v117_v50 = vld [vmem:[%s15893_s0 + $0x1b1] sm:$0xff]  ;;  %v7607_v52 = vpack.i.bf16 %v120_v49, %v119_v48  ;;  %v124_v55 = vld [vmem:[%s15893_s0 + $0x201] sm:$0xff]  ;;  %v122_v57 = vld [vmem:[%s15893_s0 + $0x1e9] sm:$0xff] }
   0xe   :  { %v7602_v53 = vpack.i.bf16 %v118_v51, %v117_v50  ;;  %v121_v56 = vld [vmem:[%s15893_s0 + $0x1e1] sm:$0xff]  ;;  %v7617_v58 = vpack.i.bf16 %v124_v55, %v123_v54  ;;  %v127_v60 = vld [vmem:[%s15893_s0 + $0x229] sm:$0xff]  ;;  %v128_v61 = vld [vmem:[%s15893_s0 + $0x231] sm:$0xff] }
   0xf   :  { %v7612_v59 = vpack.i.bf16 %v122_v57, %v121_v56  ;;  %v125_v62 = vld [vmem:[%s15893_s0 + $0x211] sm:$0xff]  ;;  %v126_v63 = vld [vmem:[%s15893_s0 + $0x219] sm:$0xff]  ;;  %v7627_v0 = vpack.i.bf16 %v128_v61, %v127_v60  ;;  %v132_v4 = vld [vmem:[%s15893_s0 + $0x261] sm:$0xff] }
  0x10   :  { %7558 = vrot.lane.b32.xlu1 %v7557_v22, %s9042_s9  ;;  %v7622_v1 = vpack.i.bf16 %v126_v63, %v125_v62  ;;  %v131_v2 = vld [vmem:[%s15893_s0 + $0x259] sm:$0xff]  ;;  %v129_v5 = vld [vmem:[%s15893_s0 + $0x241] sm:$0xff]  ;;  %v130_v6 = vld [vmem:[%s15893_s0 + $0x249] sm:$0xff] }
  0x11   :  { %7553 = vrot.lane.b32.xlu0 %v9150_v23, %s9042_s9  ;;  %v7637_v7 = vpack.i.bf16 %v132_v4, %v131_v2  ;;  %v7632_v8 = vpack.i.bf16 %v130_v6, %v129_v5  ;;  %v135_v9 = vld [vmem:[%s15893_s0 + $0x289] sm:$0xff]  ;;  %v136_v10 = vld [vmem:[%s15893_s0 + $0x291] sm:$0xff]  ;;  %v134_v13 = vld [vmem:[%s15893_s0 + $0x279] sm:$0xff] }
  0x12   :  { %v133_v12 = vld [vmem:[%s15893_s0 + $0x271] sm:$0xff]  ;;  %v7647_v14 = vpack.i.bf16 %v136_v10, %v135_v9  ;;  %v139_v16 = vld [vmem:[%s15893_s0 + $0x2b9] sm:$0xff]  ;;  %v140_v18 = vld [vmem:[%s15893_s0 + $0x2c1] sm:$0xff] }
  0x13   :  { %v7642_v15 = vpack.i.bf16 %v134_v13, %v133_v12  ;;  %v137_v19 = vld [vmem:[%s15893_s0 + $0x2a1] sm:$0xff]  ;;  %v138_v20 = vld [vmem:[%s15893_s0 + $0x2a9] sm:$0xff]  ;;  %v7657_v21 = vpack.i.bf16 %v140_v18, %v139_v16  ;;  %v144_v25 = vld [vmem:[%s15893_s0 + $0x2f1] sm:$0xff] }
  0x14   :  { %7568 = vrot.lane.b32.xlu1 %v7567_v28, %s9042_s9  ;;  %v7652_v22 = vpack.i.bf16 %v138_v20, %v137_v19  ;;  %v143_v24 = vld [vmem:[%s15893_s0 + $0x2e9] sm:$0xff]  ;;  %v141_v26 = vld [vmem:[%s15893_s0 + $0x2d1] sm:$0xff]  ;;  %v142_v27 = vld [vmem:[%s15893_s0 + $0x2d9] sm:$0xff] }
  0x15   :  { %7563 = vrot.lane.b32.xlu0 %v7562_v29, %s9042_s9  ;;  %v7667_v28 = vpack.i.bf16 %v144_v25, %v143_v24  ;;  %v7662_v29 = vpack.i.bf16 %v142_v27, %v141_v26  ;;  %v147_v30 = vld [vmem:[%s15893_s0 + $0x319] sm:$0xff]  ;;  %v148_v31 = vld [vmem:[%s15893_s0 + $0x321] sm:$0xff]  ;;  %v146_v33 = vld [vmem:[%s15893_s0 + $0x309] sm:$0xff] }
  0x16   :  { %v145_v32 = vld [vmem:[%s15893_s0 + $0x301] sm:$0xff]  ;;  %v150_v39 = vld [vmem:[%s15893_s0 + $0xa] sm:$0xff]  ;;  %v156_v43 = vld [vmem:[%s15893_s0 + $0x52] sm:$0xff] }
  0x17   :  { %v151_v36 = vld [vmem:[%s15893_s0 + $0x1a] sm:$0xff]  ;;  %v152_v37 = vld [vmem:[%s15893_s0 + $0x22] sm:$0xff]  ;;  %v155_v42 = vld [vmem:[%s15893_s0 + $0x4a] sm:$0xff] }
  0x18   :  { %7578 = vrot.lane.b32.xlu1 %v7577_v34, %s9042_s9  ;;  %v7677_v34 = vpack.i.bf16 %v148_v31, %v147_v30  ;;  %v149_v38 = vld [vmem:[%s15893_s0 + $0x2] sm:$0xff]  ;;  %v153_v44 = vld [vmem:[%s15893_s0 + $0x32] sm:$0xff]  ;;  %v154_v45 = vld [vmem:[%s15893_s0 + $0x3a] sm:$0xff] }
  0x19   :  { %7573 = vrot.lane.b32.xlu0 %v7572_v35, %s9042_s9  ;;  %v7672_v35 = vpack.i.bf16 %v146_v33, %v145_v32  ;;  %v159_v48 = vld [vmem:[%s15893_s0 + $0x7a] sm:$0xff]  ;;  %v160_v49 = vld [vmem:[%s15893_s0 + $0x82] sm:$0xff]  ;;  %v158_v51 = vld [vmem:[%s15893_s0 + $0x6a] sm:$0xff] }
  0x1a   :  { %v157_v50 = vld [vmem:[%s15893_s0 + $0x62] sm:$0xff]  ;;  %v163_v54 = vld [vmem:[%s15893_s0 + $0xaa] sm:$0xff]  ;;  %v164_v55 = vld [vmem:[%s15893_s0 + $0xb2] sm:$0xff] }
  0x1b   :  { %v161_v56 = vld [vmem:[%s15893_s0 + $0x92] sm:$0xff]  ;;  %v162_v57 = vld [vmem:[%s15893_s0 + $0x9a] sm:$0xff]  ;;  %v168_v61 = vld [vmem:[%s15893_s0 + $0xe2] sm:$0xff] }
  0x1c   :  { %7588 = vrot.lane.b32.xlu1 %v7587_v40, %s9042_s9  ;;  %v7687_v40 = vpack.i.bf16 %v152_v37, %v151_v36  ;;  %v167_v60 = vld [vmem:[%s15893_s0 + $0xda] sm:$0xff]  ;;  %v165_v62 = vld [vmem:[%s15893_s0 + $0xc2] sm:$0xff]  ;;  %v166_v63 = vld [vmem:[%s15893_s0 + $0xca] sm:$0xff] }
  0x1d   :  { %7583 = vrot.lane.b32.xlu0 %v7582_v41, %s9042_s9  ;;  %v7682_v41 = vpack.i.bf16 %v150_v39, %v149_v38  ;;  %v171_v2 = vld [vmem:[%s15893_s0 + $0x10a] sm:$0xff]  ;;  %v172_v4 = vld [vmem:[%s15893_s0 + $0x112] sm:$0xff]  ;;  %v170_v6 = vld [vmem:[%s15893_s0 + $0xfa] sm:$0xff] }
  0x1e   :  { %v169_v5 = vld [vmem:[%s15893_s0 + $0xf2] sm:$0xff]  ;;  %v175_v9 = vld [vmem:[%s15893_s0 + $0x13a] sm:$0xff]  ;;  %v176_v10 = vld [vmem:[%s15893_s0 + $0x142] sm:$0xff] }
  0x1f   :  { %v173_v12 = vld [vmem:[%s15893_s0 + $0x122] sm:$0xff]  ;;  %v174_v13 = vld [vmem:[%s15893_s0 + $0x12a] sm:$0xff]  ;;  %v180_v18 = vld [vmem:[%s15893_s0 + $0x172] sm:$0xff] }
  0x20   :  { %7598 = vrot.lane.b32.xlu1 %v7597_v46, %s9042_s9  ;;  %v7697_v46 = vpack.i.bf16 %v156_v43, %v155_v42  ;;  %v179_v16 = vld [vmem:[%s15893_s0 + $0x16a] sm:$0xff]  ;;  %v177_v19 = vld [vmem:[%s15893_s0 + $0x152] sm:$0xff]  ;;  %v178_v20 = vld [vmem:[%s15893_s0 + $0x15a] sm:$0xff] }
  0x21   :  { %7593 = vrot.lane.b32.xlu0 %v7592_v47, %s9042_s9  ;;  %v7692_v47 = vpack.i.bf16 %v154_v45, %v153_v44  ;;  %v183_v24 = vld [vmem:[%s15893_s0 + $0x1ca] sm:$0xff]  ;;  %v184_v25 = vld [vmem:[%s15893_s0 + $0x1d2] sm:$0xff] }
  0x24   :  { %7608 = vrot.lane.b32.xlu1 %v7607_v52, %s9042_s9  ;;  %v7707_v52 = vpack.i.bf16 %v160_v49, %v159_v48 }
  0x25   :  { %7603 = vrot.lane.b32.xlu0 %v7602_v53, %s9042_s9  ;;  %v7702_v53 = vpack.i.bf16 %v158_v51, %v157_v50 }
  0x28   :  { %7618 = vrot.lane.b32.xlu1 %v7617_v58, %s9042_s9  ;;  %v7717_v58 = vpack.i.bf16 %v164_v55, %v163_v54 }
  0x29   :  { %7613 = vrot.lane.b32.xlu0 %v7612_v59, %s9042_s9  ;;  %v7712_v59 = vpack.i.bf16 %v162_v57, %v161_v56 }
  0x2c   :  { %7628 = vrot.lane.b32.xlu1 %v7627_v0, %s9042_s9  ;;  %v7727_v0 = vpack.i.bf16 %v168_v61, %v167_v60 }
  0x2d   :  { %7623 = vrot.lane.b32.xlu0 %v7622_v1, %s9042_s9  ;;  %v7722_v1 = vpack.i.bf16 %v166_v63, %v165_v62 }
  0x30   :  { %7638 = vrot.lane.b32.xlu1 %v7637_v7, %s9042_s9  ;;  %v7737_v7 = vpack.i.bf16 %v172_v4, %v171_v2 }
  0x31   :  { %7633 = vrot.lane.b32.xlu0 %v7632_v8, %s9042_s9  ;;  %v7732_v8 = vpack.i.bf16 %v170_v6, %v169_v5 }
  0x34   :  { %7648 = vrot.lane.b32.xlu1 %v7647_v14, %s9042_s9  ;;  %v7747_v14 = vpack.i.bf16 %v176_v10, %v175_v9 }
  0x35   :  { %7643 = vrot.lane.b32.xlu0 %v7642_v15, %s9042_s9  ;;  %v7742_v15 = vpack.i.bf16 %v174_v13, %v173_v12 }
  0x38   :  { %7658 = vrot.lane.b32.xlu1 %v7657_v21, %s9042_s9  ;;  %v7757_v21 = vpack.i.bf16 %v180_v18, %v179_v16 }
  0x39   :  { %7653 = vrot.lane.b32.xlu0 %v7652_v22, %s9042_s9  ;;  %v7752_v22 = vpack.i.bf16 %v178_v20, %v177_v19 }
  0x3c   :  { %7668 = vrot.lane.b32.xlu1 %v7667_v28, %s9042_s9 }
  0x3d   :  { %7663 = vrot.lane.b32.xlu0 %v7662_v29, %s9042_s9 }
  0x40   :  { %7678 = vrot.lane.b32.xlu1 %v7677_v34, %s9042_s9 }
  0x41   :  { %7673 = vrot.lane.b32.xlu0 %v7672_v35, %s9042_s9 }
  0x44   :  { %7688 = vrot.lane.b32.xlu1 %v7687_v40, %s9043_s18 }
  0x45   :  { %7683 = vrot.lane.b32.xlu0 %v7682_v41, %s9043_s18 }
  0x48   :  { %7698 = vrot.lane.b32.xlu1 %v7697_v46, %s9043_s18 }
  0x49   :  { %7693 = vrot.lane.b32.xlu0 %v7692_v47, %s9043_s18 }
  0x4c   :  { %7708 = vrot.lane.b32.xlu1 %v7707_v52, %s9043_s18 }
  0x4d   :  { %7703 = vrot.lane.b32.xlu0 %v7702_v53, %s9043_s18 }
  0x50   :  { %7718 = vrot.lane.b32.xlu1 %v7717_v58, %s9043_s18 }
  0x51   :  { %7713 = vrot.lane.b32.xlu0 %v7712_v59, %s9043_s18 }
  0x54   :  { %7728 = vrot.lane.b32.xlu1 %v7727_v0, %s9043_s18 }
  0x55   :  { %7723 = vrot.lane.b32.xlu0 %v7722_v1, %s9043_s18 }
  0x58   :  { %7738 = vrot.lane.b32.xlu1 %v7737_v7, %s9043_s18 }
  0x59   :  { %7733 = vrot.lane.b32.xlu0 %v7732_v8, %s9043_s18 }
  0x5c   :  { %7748 = vrot.lane.b32.xlu1 %v7747_v14, %s9043_s18 }
  0x5d   :  { %7743 = vrot.lane.b32.xlu0 %v7742_v15, %s9043_s18 }
  0x5e   :  { %12 = vsyncpa [#allocation5], 0  ;;  %v181_v26 = vld [vmem:[%s15893_s0 + $0x1b2] sm:$0xff]  ;;  %v182_v27 = vld [vmem:[%s15893_s0 + $0x1ba] sm:$0xff]  ;;  %v7767_v28 = vpack.i.bf16 %v184_v25, %v183_v24  ;;  %vm2647_vm0 = vcmask 293888   ;;  %vm2712_vm1 = vcmask 588800  }
  0x5f   :  { %v7762_v29 = vpack.i.bf16 %v182_v27, %v181_v26  ;;  %v187_v30 = vld [vmem:[%s15893_s0 + $0x1fa] sm:$0xff]  ;;  %v188_v31 = vld [vmem:[%s15893_s0 + $0x202] sm:$0xff]  ;;  %v186_v33 = vld [vmem:[%s15893_s0 + $0x1ea] sm:$0xff]  ;;  %s9045_s13 = smov 16   ;;  %vm2777_vm2 = vcmask 883712   ;;  %s9048_s20 = smov 88  }
  0x60   :  { %7758 = vrot.lane.b32.xlu1 %v7757_v21, %s9043_s18  ;;  %v185_v32 = vld [vmem:[%s15893_s0 + $0x1e2] sm:$0xff]  ;;  %v7777_v34 = vpack.i.bf16 %v188_v31, %v187_v30  ;;  %v191_v36 = vld [vmem:[%s15893_s0 + $0x22a] sm:$0xff]  ;;  %v192_v37 = vld [vmem:[%s15893_s0 + $0x232] sm:$0xff]  ;;  %s9049_s21 = smov 124   ;;  %vm2842_vm3 = vcmask 130048   ;;  %vm2907_vm4 = vcmask 424960  }
  0x61   :  { %7753 = vrot.lane.b32.xlu0 %v7752_v22, %s9043_s18  ;;  %v7772_v35 = vpack.i.bf16 %v186_v33, %v185_v32  ;;  %v189_v38 = vld [vmem:[%s15893_s0 + $0x212] sm:$0xff]  ;;  %v190_v39 = vld [vmem:[%s15893_s0 + $0x21a] sm:$0xff]  ;;  %v7787_v40 = vpack.i.bf16 %v192_v37, %v191_v36  ;;  %v196_v43 = vld [vmem:[%s15893_s0 + $0x262] sm:$0xff]  ;;  %vm2972_vm5 = vcmask 719872   ;;  %vm3037_vm6 = vcmask 1014784   ;;  %s9052_s8 = smov 96  }
  0x62   :  { %v7782_v41 = vpack.i.bf16 %v190_v39, %v189_v38  ;;  %v195_v42 = vld [vmem:[%s15893_s0 + $0x25a] sm:$0xff]  ;;  %v193_v44 = vld [vmem:[%s15893_s0 + $0x242] sm:$0xff]  ;;  %v194_v45 = vld [vmem:[%s15893_s0 + $0x24a] sm:$0xff]  ;;  %vm3408_vm7 = vcmask 1043456   ;;  %vm3102_vm8 = vcmask 261120   ;;  %vm3215_vm9 = vcmask 556032  }
  0x63   :  { %v7797_v46 = vpack.i.bf16 %v196_v43, %v195_v42  ;;  %v7792_v47 = vpack.i.bf16 %v194_v45, %v193_v44  ;;  %v199_v48 = vld [vmem:[%s15893_s0 + $0x28a] sm:$0xff]  ;;  %v200_v49 = vld [vmem:[%s15893_s0 + $0x292] sm:$0xff]  ;;  %v198_v51 = vld [vmem:[%s15893_s0 + $0x27a] sm:$0xff] }
  0x64   :  { %7768 = vrot.lane.b32.xlu1 %v7767_v28, %s9043_s18  ;;  %v197_v50 = vld [vmem:[%s15893_s0 + $0x272] sm:$0xff]  ;;  %v7807_v52 = vpack.i.bf16 %v200_v49, %v199_v48  ;;  %v203_v54 = vld [vmem:[%s15893_s0 + $0x2ba] sm:$0xff]  ;;  %v204_v55 = vld [vmem:[%s15893_s0 + $0x2c2] sm:$0xff] }
  0x65   :  { %7763 = vrot.lane.b32.xlu0 %v7762_v29, %s9043_s18  ;;  %v7802_v53 = vpack.i.bf16 %v198_v51, %v197_v50  ;;  %v201_v56 = vld [vmem:[%s15893_s0 + $0x2a2] sm:$0xff]  ;;  %v202_v57 = vld [vmem:[%s15893_s0 + $0x2aa] sm:$0xff]  ;;  %v7817_v58 = vpack.i.bf16 %v204_v55, %v203_v54  ;;  %v208_v61 = vld [vmem:[%s15893_s0 + $0x2f2] sm:$0xff] }
  0x66   :  { %v7812_v59 = vpack.i.bf16 %v202_v57, %v201_v56  ;;  %v207_v60 = vld [vmem:[%s15893_s0 + $0x2ea] sm:$0xff]  ;;  %v205_v63 = vld [vmem:[%s15893_s0 + $0x2d2] sm:$0xff]  ;;  %v206_v0 = vld [vmem:[%s15893_s0 + $0x2da] sm:$0xff] }
  0x67   :  { %v7827_v2 = vpack.i.bf16 %v208_v61, %v207_v60  ;;  %v7822_v4 = vpack.i.bf16 %v206_v0, %v205_v63  ;;  %v211_v5 = vld [vmem:[%s15893_s0 + $0x31a] sm:$0xff]  ;;  %v212_v6 = vld [vmem:[%s15893_s0 + $0x322] sm:$0xff]  ;;  %v210_v9 = vld [vmem:[%s15893_s0 + $0x30a] sm:$0xff] }
  0x68   :  { %7778 = vrot.lane.b32.xlu1 %v7777_v34, %s9043_s18  ;;  %v209_v8 = vld [vmem:[%s15893_s0 + $0x302] sm:$0xff]  ;;  %v7837_v12 = vpack.i.bf16 %v212_v6, %v211_v5  ;;  %v6712_v14 = vld [vmem:[%s15893_s0 + $0x30] sm:$0xff]  ;;  %v6713_v15 = vld [vmem:[%s15893_s0 + $0x38] sm:$0xff] }
  0x69   :  { %7773 = vrot.lane.b32.xlu0 %v7772_v35, %s9043_s18  ;;  %v7832_v13 = vpack.i.bf16 %v210_v9, %v209_v8  ;;  %v6710_v18 = vld [vmem:[%s15893_s0 + $0x18] sm:$0xff]  ;;  %v6711_v19 = vld [vmem:[%s15893_s0 + $0x20] sm:$0xff]  ;;  %v7847_v21 = vpack.i.bf16 %v6713_v15, %v6712_v14  ;;  %v6717_v25 = vld [vmem:[%s15893_s0 + $0x68] sm:$0xff] }
  0x6a   :  { %v7842_v22 = vpack.i.bf16 %v6711_v19, %v6710_v18  ;;  %v6716_v24 = vld [vmem:[%s15893_s0 + $0x60] sm:$0xff]  ;;  %v6714_v27 = vld [vmem:[%s15893_s0 + $0x48] sm:$0xff]  ;;  %v6715_v28 = vld [vmem:[%s15893_s0 + $0x50] sm:$0xff] }
  0x6b   :  { %v7857_v30 = vpack.i.bf16 %v6717_v25, %v6716_v24  ;;  %v7852_v31 = vpack.i.bf16 %v6715_v28, %v6714_v27  ;;  %v6720_v32 = vld [vmem:[%s15893_s0 + $0x90] sm:$0xff]  ;;  %v6721_v33 = vld [vmem:[%s15893_s0 + $0x98] sm:$0xff]  ;;  %v6719_v36 = vld [vmem:[%s15893_s0 + $0x80] sm:$0xff] }
  0x6c   :  { %7788 = vrot.lane.b32.xlu1 %v7787_v40, %s9043_s18  ;;  %v6718_v35 = vld [vmem:[%s15893_s0 + $0x78] sm:$0xff]  ;;  %v7867_v38 = vpack.i.bf16 %v6721_v33, %v6720_v32  ;;  %v6724_v40 = vld [vmem:[%s15893_s0 + $0xc0] sm:$0xff]  ;;  %v6722_v43 = vld [vmem:[%s15893_s0 + $0xa8] sm:$0xff] }
  0x6d   :  { %7783 = vrot.lane.b32.xlu0 %v7782_v41, %s9043_s18  ;;  %v7862_v39 = vpack.i.bf16 %v6719_v36, %v6718_v35  ;;  %v6725_v41 = vld [vmem:[%s15893_s0 + $0xc8] sm:$0xff]  ;;  %v6723_v44 = vld [vmem:[%s15893_s0 + $0xb0] sm:$0xff]  ;;  %v6729_v49 = vld [vmem:[%s15893_s0 + $0xf8] sm:$0xff] }
  0x6e   :  { %v6728_v48 = vld [vmem:[%s15893_s0 + $0xf0] sm:$0xff]  ;;  %v6726_v51 = vld [vmem:[%s15893_s0 + $0xd8] sm:$0xff]  ;;  %v6732_v56 = vld [vmem:[%s15893_s0 + $0x120] sm:$0xff] }
  0x6f   :  { %v7887_v54 = vpack.i.bf16 %v6729_v49, %v6728_v48  ;;  %v6733_v57 = vld [vmem:[%s15893_s0 + $0x128] sm:$0xff]  ;;  %v6731_v60 = vld [vmem:[%s15893_s0 + $0x110] sm:$0xff]  ;;  %v6734_v6 = vld [vmem:[%s15893_s0 + $0x138] sm:$0xff] }
  0x70   :  { %7798 = vrot.lane.b32.xlu1 %v7797_v46, %s9043_s18  ;;  %v7877_v46 = vpack.i.bf16 %v6725_v41, %v6724_v40  ;;  %v7897_v63 = vpack.i.bf16 %v6733_v57, %v6732_v56  ;;  %v6735_v8 = vld [vmem:[%s15893_s0 + $0x140] sm:$0xff]  ;;  %v6741_v15 = vld [vmem:[%s15893_s0 + $0x188] sm:$0xff]  ;;  %v6743_v32 = vld [vmem:[%s15893_s0 + $0x1d0] sm:$0xff] }
  0x71   :  { %7793 = vrot.lane.b32.xlu0 %v7792_v47, %s9043_s18  ;;  %v7872_v47 = vpack.i.bf16 %v6723_v44, %v6722_v43  ;;  %v6740_v14 = vld [vmem:[%s15893_s0 + $0x180] sm:$0xff]  ;;  %v6738_v19 = vld [vmem:[%s15893_s0 + $0x168] sm:$0xff]  ;;  %v6746_v41 = vld [vmem:[%s15893_s0 + $0x1f8] sm:$0xff] }
  0x72   :  { %v7917_v24 = vpack.i.bf16 %v6741_v15, %v6740_v14  ;;  %v6744_v27 = vld [vmem:[%s15893_s0 + $0x1e0] sm:$0xff]  ;;  %v6745_v28 = vld [vmem:[%s15893_s0 + $0x1e8] sm:$0xff] }
  0x73   :  { %v7927_v35 = vpack.i.bf16 %v6745_v28, %v6744_v27  ;;  %v6747_v43 = vld [vmem:[%s15893_s0 + $0x200] sm:$0xff]  ;;  %v6753_v49 = vld [vmem:[%s15893_s0 + $0x248] sm:$0xff]  ;;  %v6764_v27 = vld [vmem:[%s15893_s0 + $0x2d0] sm:$0xff] }
  0x74   :  { %7808 = vrot.lane.b32.xlu1 %v7807_v52, %s9043_s18  ;;  %v6727_v52 = vld [vmem:[%s15893_s0 + $0xe0] sm:$0xff]  ;;  %v6758_v15 = vld [vmem:[%s15893_s0 + $0x288] sm:$0xff]  ;;  %v6765_v28 = vld [vmem:[%s15893_s0 + $0x2d8] sm:$0xff] }
  0x75   :  { %7803 = vrot.lane.b32.xlu0 %v7802_v53, %s9043_s18  ;;  %v7882_v55 = vpack.i.bf16 %v6727_v52, %v6726_v51  ;;  %v6752_v48 = vld [vmem:[%s15893_s0 + $0x240] sm:$0xff]  ;;  %v6750_v52 = vld [vmem:[%s15893_s0 + $0x228] sm:$0xff] }
  0x76   :  { %v9523_v62 = vpop.permute.xlu1 %7533  ;;  %v7947_v56 = vpack.i.bf16 %v6753_v49, %v6752_v48  ;;  %v6767_v48 = vld [vmem:[%s15893_s0 + $0x2f0] sm:$0xff] }
  0x77   :  { %16168 = vst [vmem:[#allocation8_spill] sm:$0xff] %v9523_v62  ;;  %v9531_v1 = vpop.permute.xlu0 %7523  ;;  %v9993_v62 = vld [vmem:[%s15893_s0 + $0x219] sm:$0xff] }
  0x78   :  { %16169 = vst [vmem:[#allocation9_spill] sm:$0xff] %v9531_v1  ;;  %7818 = vrot.lane.b32.xlu1 %v7817_v58, %s9043_s18  ;;  %v10027_v1 = vld [vmem:[%s15893_s0 + $0x229] sm:$0xff] }
  0x79   :  { %7813 = vrot.lane.b32.xlu0 %v7812_v59, %s9043_s18  ;;  %v6730_v59 = vld [vmem:[%s15893_s0 + $0x108] sm:$0xff]  ;;  %16204 = vst [vmem:[#allocation44_spill] sm:$0xff] %v10027_v1 }
  0x7a   :  { %v9541_v7 = vpop.permute.xlu1 %7538  ;;  %v7892_v0 = vpack.i.bf16 %v6731_v60, %v6730_v59  ;;  %v6756_v59 = vld [vmem:[%s15893_s0 + $0x270] sm:$0xff]  ;;  %v6757_v60 = vld [vmem:[%s15893_s0 + $0x278] sm:$0xff] }
  0x7b   :  { %16170 = vst [vmem:[#allocation10_spill] sm:$0xff] %v9541_v7  ;;  %v9549_v10 = vpop.permute.xlu0 %7528  ;;  %v9978_v7 = vld [vmem:[%s15893_s0 + $0x1c9] sm:$0xff] }
  0x7c   :  { %16171 = vst [vmem:[#allocation11_spill] sm:$0xff] %v9549_v10  ;;  %7828 = vrot.lane.b32.xlu1 %v7827_v2, %s9043_s18  ;;  %v6736_v2 = vld [vmem:[%s15893_s0 + $0x150] sm:$0xff]  ;;  %v10003_v10 = vld [vmem:[%s15893_s0 + $0x201] sm:$0xff] }
  0x7d   :  { %7823 = vrot.lane.b32.xlu0 %v7822_v4, %s9043_s18  ;;  %v6737_v4 = vld [vmem:[%s15893_s0 + $0x158] sm:$0xff]  ;;  %16201 = vst [vmem:[#allocation41_spill] sm:$0xff] %v10003_v10 }
  0x7e   :  { %v9559_v16 = vpop.permute.xlu1 %7548 }
  0x7f   :  { %16172 = vst [vmem:[#allocation12_spill] sm:$0xff] %v9559_v16  ;;  %v9567_v20 = vpop.permute.xlu0 %7543  ;;  %v9961_v16 = vld [vmem:[%s15893_s0 + $0x171] sm:$0xff] }
  0x80   :  { %16173 = vst [vmem:[#allocation13_spill] sm:$0xff] %v9567_v20  ;;  %7838 = vrot.lane.b32.xlu1 %v7837_v12, %s9043_s18  ;;  %v7907_v12 = vpack.i.bf16 %v6737_v4, %v6736_v2  ;;  %v6755_v2 = vld [vmem:[%s15893_s0 + $0x260] sm:$0xff]  ;;  %16197 = vst [vmem:[#allocation37_spill] sm:$0xff] %v9961_v16 }
  0x81   :  { %7833 = vrot.lane.b32.xlu0 %v7832_v13, %s9043_s18  ;;  %s9044_s18 = smov 108   ;;  %v7902_v13 = vpack.i.bf16 %v6735_v8, %v6734_v6  ;;  %v7957_v6 = vpack.i.bf16 %v6757_v60, %v6756_v59  ;;  %v6770_v60 = vld [vmem:[%s15893_s0 + $0x318] sm:$0xff]  ;;  %v9968_v20 = vld [vmem:[%s15893_s0 + $0x1e1] sm:$0xff] }
  0x82   :  { %v9577_v26 = vpop.permute.xlu1 %7558  ;;  %v37_v16 = vld [vmem:[%s15893_s0 + $0xc0] sm:$0xff] }
  0x83   :  { %16174 = vst [vmem:[#allocation14_spill] sm:$0xff] %v9577_v26  ;;  %v9585_v29 = vpop.permute.xlu0 %7553  ;;  %v9951_v26 = vld [vmem:[%s15893_s0 + $0x189] sm:$0xff] }
  0x84   :  { %16175 = vst [vmem:[#allocation15_spill] sm:$0xff] %v9585_v29  ;;  %7848 = vrot.lane.b32.xlu1 %v7847_v21, %s9044_s18  ;;  %v6739_v21 = vld [vmem:[%s15893_s0 + $0x170] sm:$0xff] }
  0x85   :  { %7843 = vrot.lane.b32.xlu0 %v7842_v22, %s9044_s18  ;;  %v7912_v25 = vpack.i.bf16 %v6739_v21, %v6738_v19  ;;  %v6759_v19 = vld [vmem:[%s15893_s0 + $0x290] sm:$0xff] }
  0x86   :  { %v9595_v34 = vpop.permute.xlu1 %7568  ;;  %v9956_v29 = vld [vmem:[%s15893_s0 + $0x169] sm:$0xff] }
  0x87   :  { %v9603_v37 = vpop.permute.xlu0 %7563  ;;  %16196 = vst [vmem:[#allocation36_spill] sm:$0xff] %v9956_v29 }
  0x88   :  { %7858 = vrot.lane.b32.xlu1 %v7857_v30, %s9044_s18 }
  0x89   :  { %7853 = vrot.lane.b32.xlu0 %v7852_v31, %s9044_s18  ;;  %v6742_v31 = vld [vmem:[%s15893_s0 + $0x1c8] sm:$0xff] }
  0x8a   :  { %v9613_v42 = vpop.permute.xlu1 %7578  ;;  %v7922_v36 = vpack.i.bf16 %v6743_v32, %v6742_v31  ;;  %v6762_v32 = vld [vmem:[%s15893_s0 + $0x2b8] sm:$0xff] }
  0x8b   :  { %v9621_v45 = vpop.permute.xlu0 %7573 }
  0x8c   :  { %7868 = vrot.lane.b32.xlu1 %v7867_v38, %s9044_s18  ;;  %v6748_v38 = vld [vmem:[%s15893_s0 + $0x210] sm:$0xff] }
  0x8d   :  { %7863 = vrot.lane.b32.xlu0 %v7862_v39, %s9044_s18  ;;  %v6749_v39 = vld [vmem:[%s15893_s0 + $0x218] sm:$0xff] }
  0x8e   :  { %v9631_v50 = vpop.permute.xlu1 %7588 }
  0x8f   :  { %v9639_v53 = vpop.permute.xlu0 %7583 }
  0x90   :  { %7878 = vrot.lane.b32.xlu1 %v7877_v46, %s9044_s18  ;;  %v7937_v46 = vpack.i.bf16 %v6749_v39, %v6748_v38  ;;  %v7977_v38 = vpack.i.bf16 %v6765_v28, %v6764_v27  ;;  %v9883_v28 = vld [vmem:[%s15893_s0 + $0xf1] sm:$0xff] }
  0x91   :  { %7873 = vrot.lane.b32.xlu0 %v7872_v47, %s9044_s18  ;;  %v7932_v47 = vpack.i.bf16 %v6747_v43, %v6746_v41  ;;  %v6768_v41 = vld [vmem:[%s15893_s0 + $0x300] sm:$0xff]  ;;  %v6769_v43 = vld [vmem:[%s15893_s0 + $0x308] sm:$0xff] }
  0x92   :  { %v9649_v58 = vpop.permute.xlu1 %7598 }
  0x93   :  { %v9657_v61 = vpop.permute.xlu0 %7593 }
  0x94   :  { %7888 = vrot.lane.b32.xlu1 %v7887_v54, %s9044_s18  ;;  %v6751_v54 = vld [vmem:[%s15893_s0 + $0x230] sm:$0xff] }
  0x95   :  { %7883 = vrot.lane.b32.xlu0 %v7882_v55, %s9044_s18  ;;  %v7942_v57 = vpack.i.bf16 %v6751_v54, %v6750_v52  ;;  %v7987_v52 = vpack.i.bf16 %v6769_v43, %v6768_v41  ;;  %v9908_v41 = vld [vmem:[%s15893_s0 + $0x129] sm:$0xff] }
  0x96   :  { %v9667_v5 = vpop.permute.xlu1 %7608  ;;  %v9913_v43 = vld [vmem:[%s15893_s0 + $0x109] sm:$0xff] }
  0x97   :  { %v9675_v9 = vpop.permute.xlu0 %7603 }
  0x98   :  { %7898 = vrot.lane.b32.xlu1 %v7897_v63, %s9044_s18 }
  0x99   :  { %7893 = vrot.lane.b32.xlu0 %v7892_v0, %s9044_s18  ;;  %v6754_v0 = vld [vmem:[%s15893_s0 + $0x258] sm:$0xff] }
  0x9a   :  { %v9685_v18 = vpop.permute.xlu1 %7618  ;;  %v7952_v8 = vpack.i.bf16 %v6755_v2, %v6754_v0  ;;  %v6771_v0 = vld [vmem:[%s15893_s0 + $0x320] sm:$0xff] }
  0x9b   :  { %v9693_v22 = vpop.permute.xlu0 %7613 }
  0x9c   :  { %7908 = vrot.lane.b32.xlu1 %v7907_v12, %s9044_s18  ;;  %v6760_v12 = vld [vmem:[%s15893_s0 + $0x2a0] sm:$0xff] }
  0x9d   :  { %7903 = vrot.lane.b32.xlu0 %v7902_v13, %s9044_s18  ;;  %v6761_v13 = vld [vmem:[%s15893_s0 + $0x2a8] sm:$0xff] }
  0x9e   :  { %v9703_v30 = vpop.permute.xlu1 %7628 }
  0x9f   :  { %v9711_v33 = vpop.permute.xlu0 %7623 }
  0xa0   :  { %16176 = vst [vmem:[#allocation16_spill] sm:$0xff] %v9711_v33  ;;  %7918 = vrot.lane.b32.xlu1 %v7917_v24, %s9044_s18  ;;  %v7967_v24 = vpack.i.bf16 %v6761_v13, %v6760_v12  ;;  %v9852_v12 = vld [vmem:[%s15893_s0 + $0x79] sm:$0xff]  ;;  %v9857_v13 = vld [vmem:[%s15893_s0 + $0x81] sm:$0xff] }
  0xa1   :  { %7913 = vrot.lane.b32.xlu0 %v7912_v25, %s9044_s18  ;;  %v7962_v25 = vpack.i.bf16 %v6759_v19, %v6758_v15  ;;  %v9862_v15 = vld [vmem:[%s15893_s0 + $0xc1] sm:$0xff]  ;;  %v9867_v19 = vld [vmem:[%s15893_s0 + $0xc9] sm:$0xff] }
  0xa2   :  { %v9721_v40 = vpop.permute.xlu1 %7638  ;;  %v10075_v33 = vld [vmem:[%s15893_s0 + $0x261] sm:$0xff] }
  0xa3   :  { %16177 = vst [vmem:[#allocation17_spill] sm:$0xff] %v9721_v40  ;;  %v9729_v44 = vpop.permute.xlu0 %7633  ;;  %v10070_v40 = vld [vmem:[%s15893_s0 + $0x259] sm:$0xff]  ;;  %16207 = vst [vmem:[#allocation47_spill] sm:$0xff] %v10075_v33 }
  0xa4   :  { %16178 = vst [vmem:[#allocation18_spill] sm:$0xff] %v9729_v44  ;;  %7928 = vrot.lane.b32.xlu1 %v7927_v35, %s9044_s18  ;;  %v6763_v35 = vld [vmem:[%s15893_s0 + $0x2c0] sm:$0xff]  ;;  %16206 = vst [vmem:[#allocation46_spill] sm:$0xff] %v10070_v40  ;;  %v7580_v40 = vunpack.i.l.bf16 %v9613_v42 }
  0xa5   :  { %7923 = vrot.lane.b32.xlu0 %v7922_v36, %s9044_s18  ;;  %v7972_v39 = vpack.i.bf16 %v6763_v35, %v6762_v32  ;;  %v9888_v32 = vld [vmem:[%s15893_s0 + $0xf9] sm:$0xff] }
  0xa6   :  { %v9739_v51 = vpop.permute.xlu1 %7648  ;;  %v9893_v35 = vld [vmem:[%s15893_s0 + $0xd9] sm:$0xff] }
  0xa7   :  { %16179 = vst [vmem:[#allocation19_spill] sm:$0xff] %v9739_v51  ;;  %v9747_v55 = vpop.permute.xlu0 %7643  ;;  %v7566_v51 = vunpack.i.h.bf16 %v9603_v37 }
  0xa8   :  { %16180 = vst [vmem:[#allocation20_spill] sm:$0xff] %v9747_v55  ;;  %7938 = vrot.lane.b32.xlu1 %v7937_v46, %s9044_s18 }
  0xa9   :  { %7933 = vrot.lane.b32.xlu0 %v7932_v47, %s9044_s18  ;;  %v6766_v47 = vld [vmem:[%s15893_s0 + $0x2e8] sm:$0xff] }
  0xaa   :  { %v9757_v63 = vpop.permute.xlu1 %7658  ;;  %v7982_v54 = vpack.i.bf16 %v6767_v48, %v6766_v47  ;;  %v9918_v47 = vld [vmem:[%s15893_s0 + $0x111] sm:$0xff]  ;;  %v7992_v48 = vpack.i.bf16 %v6771_v0, %v6770_v60  ;;  %v9946_v0 = vld [vmem:[%s15893_s0 + $0x181] sm:$0xff] }
  0xab   :  { %16181 = vst [vmem:[#allocation21_spill] sm:$0xff] %v9757_v63  ;;  %v9765_v4 = vpop.permute.xlu0 %7653  ;;  %v7570_v63 = vunpack.i.l.bf16 %v9595_v34 }
  0xac   :  { %16182 = vst [vmem:[#allocation22_spill] sm:$0xff] %v9765_v4  ;;  %7948 = vrot.lane.b32.xlu1 %v7947_v56, %s9044_s18  ;;  %v6772_v56 = vld [vmem:[%s15893_s0 + $0x330] sm:$0xff] }
  0xad   :  { %7943 = vrot.lane.b32.xlu0 %v7942_v57, %s9044_s18  ;;  %v6773_v57 = vld [vmem:[%s15893_s0 + $0x338] sm:$0xff] }
  0xae   :  { %v9775_v14 = vpop.permute.xlu1 %7668  ;;  %v7997_v27 = vpack.i.bf16 %v6773_v57, %v6772_v56  ;;  %v9929_v56 = vld [vmem:[%s15893_s0 + $0x159] sm:$0xff]  ;;  %v10041_v4 = vld [vmem:[%s15893_s0 + $0x231] sm:$0xff] }
  0xaf   :  { %16183 = vst [vmem:[#allocation23_spill] sm:$0xff] %v9775_v14  ;;  %v9783_v21 = vpop.permute.xlu0 %7663  ;;  %16192 = vst [vmem:[#allocation32_spill] sm:$0xff] %v9929_v56  ;;  %v9934_v57 = vld [vmem:[%s15893_s0 + $0x139] sm:$0xff]  ;;  %v10098_v56 = vld [vmem:[%s15893_s0 + $0x289] sm:$0xff] }
  0xb0   :  { %16184 = vst [vmem:[#allocation24_spill] sm:$0xff] %v9783_v21  ;;  %7958 = vrot.lane.b32.xlu1 %v7957_v6, %s9044_s18  ;;  %v9842_v6 = vld [vmem:[%s15893_s0 + $0x49] sm:$0xff]  ;;  %16193 = vst [vmem:[#allocation33_spill] sm:$0xff] %v9934_v57  ;;  %v10017_v21 = vld [vmem:[%s15893_s0 + $0x241] sm:$0xff] }
  0xb1   :  { %7953 = vrot.lane.b32.xlu0 %v7952_v8, %s9044_s18  ;;  %v9847_v8 = vld [vmem:[%s15893_s0 + $0x51] sm:$0xff]  ;;  %16202 = vst [vmem:[#allocation42_spill] sm:$0xff] %v10017_v21  ;;  %v40_v14 = vld [vmem:[%s15893_s0 + $0xe0] sm:$0xff] }
  0xb2   :  { %v9793_v31 = vpop.permute.xlu1 %7678 }
  0xb3   :  { %16185 = vst [vmem:[#allocation25_spill] sm:$0xff] %v9793_v31  ;;  %v9801_v36 = vpop.permute.xlu0 %7673  ;;  %v7571_v31 = vunpack.i.h.bf16 %v9595_v34  ;;  %v10080_v34 = vld [vmem:[%s15893_s0 + $0x2a1] sm:$0xff] }
  0xb4   :  { %16186 = vst [vmem:[#allocation26_spill] sm:$0xff] %v9801_v36  ;;  %7968 = vrot.lane.b32.xlu1 %v7967_v24, %s9044_s18  ;;  %v9872_v24 = vld [vmem:[%s15893_s0 + $0xa9] sm:$0xff]  ;;  %v10051_v36 = vld [vmem:[%s15893_s0 + $0x279] sm:$0xff] }
  0xb5   :  { %7963 = vrot.lane.b32.xlu0 %v7962_v25, %s9044_s18  ;;  %v9877_v25 = vld [vmem:[%s15893_s0 + $0xb1] sm:$0xff]  ;;  %v2667_v57 = vsel %vm2647_vm0, %v40_v14, %v7571_v31  ;;  %v7575_v14 = vunpack.i.l.bf16 %v9621_v45  ;;  %v16209_v31 = vpack.i.bf16 %v9847_v8, %v9842_v6  ;;  %v7586_v8 = vunpack.i.h.bf16 %v9639_v53 }
  0xb6   :  { %v9811_v46 = vpop.permute.xlu1 %7688  ;;  %v42_v6 = vld [vmem:[%s15893_s0 + $0xf8] sm:$0xff] }
  0xb7   :  { %16187 = vst [vmem:[#allocation27_spill] sm:$0xff] %v9811_v46  ;;  %v9819_v49 = vpop.permute.xlu0 %7683  ;;  %v9998_v46 = vld [vmem:[%s15893_s0 + $0x1f9] sm:$0xff] }
  0xb8   :  { %16188 = vst [vmem:[#allocation28_spill] sm:$0xff] %v9819_v49  ;;  %7978 = vrot.lane.b32.xlu1 %v7977_v38, %s9044_s18  ;;  %v9898_v38 = vld [vmem:[%s15893_s0 + $0xe1] sm:$0xff]  ;;  %16200 = vst [vmem:[#allocation40_spill] sm:$0xff] %v9998_v46  ;;  %v39_v49 = vld [vmem:[%s15893_s0 + $0xd8] sm:$0xff] }
  0xb9   :  { %7973 = vrot.lane.b32.xlu0 %v7972_v39, %s9044_s18  ;;  %v9903_v39 = vld [vmem:[%s15893_s0 + $0x121] sm:$0xff] }
  0xba   :  { %v9829_v59 = vpop.permute.xlu1 %7698 }
  0xbb   :  { %16189 = vst [vmem:[#allocation29_spill] sm:$0xff] %v9829_v59  ;;  %v9837_v2 = vpop.permute.xlu0 %7693  ;;  %v9973_v59 = vld [vmem:[%s15893_s0 + $0x1e9] sm:$0xff] }
  0xbc   :  { %16190 = vst [vmem:[#allocation30_spill] sm:$0xff] %v9837_v2  ;;  %7988 = vrot.lane.b32.xlu1 %v7987_v52, %s9044_s18  ;;  %v9924_v52 = vld [vmem:[%s15893_s0 + $0x151] sm:$0xff] }
  0xbd   :  { %7983 = vrot.lane.b32.xlu0 %v7982_v54, %s9044_s18  ;;  %16191 = vst [vmem:[#allocation31_spill] sm:$0xff] %v9924_v52  ;;  %v9939_v54 = vld [vmem:[%s15893_s0 + $0x141] sm:$0xff]  ;;  %v9983_v2 = vld [vmem:[%s15893_s0 + $0x1d1] sm:$0xff]  ;;  %v10093_v52 = vld [vmem:[%s15893_s0 + $0x2a9] sm:$0xff] }
  0xbe   :  { %16194 = vst [vmem:[#allocation34_spill] sm:$0xff] %v9939_v54  ;;  %v9941_v60 = vpop.permute.xlu1 %7708  ;;  %v7581_v54 = vunpack.i.h.bf16 %v9613_v42  ;;  %v43_v42 = vld [vmem:[%s15893_s0 + $0x108] sm:$0xff] }
  0xbf   :  { %16195 = vst [vmem:[#allocation35_spill] sm:$0xff] %v9941_v60  ;;  %v9963_v60 = vpop.permute.xlu0 %7703 }
  0xc0   :  { %16198 = vst [vmem:[#allocation38_spill] sm:$0xff] %v9963_v60  ;;  %v9988_v60 = vld [vmem:[%s15893_s0 + $0x211] sm:$0xff]  ;;  %7998 = vrot.lane.b32.xlu1 %v7997_v27, %s9044_s18  ;;  %v10022_v27 = vld [vmem:[%s15893_s0 + $0x249] sm:$0xff] }
  0xc1   :  { %16199 = vst [vmem:[#allocation39_spill] sm:$0xff] %v9988_v60  ;;  %16203 = vst [vmem:[#allocation43_spill] sm:$0xff] %v10022_v27  ;;  %7993 = vrot.lane.b32.xlu0 %v7992_v48, %s9044_s18  ;;  %v10046_v48 = vld [vmem:[%s15893_s0 + $0x271] sm:$0xff]  ;;  %v16211_v60 = vpack.i.bf16 %v9857_v13, %v9852_v12 }
  0xc2   :  { %v10061_v55 = vpop.permute.xlu1 %7718 }
  0xc3   :  { %16205 = vst [vmem:[#allocation45_spill] sm:$0xff] %v10061_v55  ;;  %v7565_v55 = vunpack.i.l.bf16 %v9603_v37  ;;  %v10084_v44 = vpop.permute.xlu0 %7713  ;;  %v10103_v37 = vld [vmem:[%s15893_s0 + $0x291] sm:$0xff] }
  0xc4   :  { %16208 = vst [vmem:[#allocation48_spill] sm:$0xff] %v10084_v44  ;;  %8008 = vrot.lane.b32.xlu1 %v9096_v3, %s9045_s13  ;;  %v38_v3 = vld [vmem:[%s15893_s0 + $0xc8] sm:$0xff] }
  0xc5   :  { %8003 = vrot.lane.b32.xlu0 %v9116_v11, %s9045_s13  ;;  %v2666_v11 = vsel %vm2647_vm0, %v39_v49, %v7570_v63  ;;  %v2664_v1 = vsel %vm2647_vm0, %v37_v16, %v7565_v55  ;;  %v2665_v29 = vsel %vm2647_vm0, %v38_v3, %v7566_v51  ;;  %v7576_v63 = vunpack.i.h.bf16 %v9621_v45 }
  0xc6   :  { %v7729_v46 = vpop.permute.xlu1 %7728  ;;  %v7591_v45 = vunpack.i.h.bf16 %v9631_v50 }
  0xc7   :  { %v7731_v21 = vunpack.i.h.bf16 %v7729_v46  ;;  %v7730_v27 = vunpack.i.l.bf16 %v7729_v46  ;;  %v7724_v44 = vpop.permute.xlu0 %7723 }
  0xc8   :  { %v7726_v33 = vunpack.i.h.bf16 %v7724_v44  ;;  %v7725_v10 = vunpack.i.l.bf16 %v7724_v44  ;;  %8018 = vrot.lane.b32.xlu1 %v9133_v17, %s9045_s13  ;;  %v44_v17 = vld [vmem:[%s15893_s0 + $0x110] sm:$0xff]  ;;  %v7590_v44 = vunpack.i.l.bf16 %v9631_v50 }
  0xc9   :  { %8013 = vrot.lane.b32.xlu0 %v16209_v31, %s9045_s13  ;;  %v10150_v16 = vsel %vm2712_vm1, %v2666_v11, %v7730_v27  ;;  %v10153_v51 = vsel %vm2712_vm1, %v2667_v57, %v7731_v21  ;;  %v41_v21 = vld [vmem:[%s15893_s0 + $0xf0] sm:$0xff]  ;;  %v7585_v57 = vunpack.i.l.bf16 %v9639_v53  ;;  %v2670_v11 = vsel %vm2647_vm0, %v43_v42, %v7580_v40  ;;  %v45_v31 = vld [vmem:[%s15893_s0 + $0x120] sm:$0xff] }
  0xca   :  { %v7739_v55 = vpop.permute.xlu1 %7738  ;;  %v10164_v46 = vsel %vm2712_vm1, %v2664_v1, %v7725_v10  ;;  %v10167_v49 = vsel %vm2712_vm1, %v2665_v29, %v7726_v33  ;;  %v47_v1 = vld [vmem:[%s15893_s0 + $0x138] sm:$0xff]  ;;  %v48_v10 = vld [vmem:[%s15893_s0 + $0x140] sm:$0xff]  ;;  %v2671_v53 = vsel %vm2647_vm0, %v44_v17, %v7581_v54 }
  0xcb   :  { %16210 = vst [vmem:[#allocation49_spill] sm:$0xff] %v10167_v49  ;;  %v7741_v50 = vunpack.i.h.bf16 %v7739_v55  ;;  %v7740_v27 = vunpack.i.l.bf16 %v7739_v55  ;;  %v7734_v3 = vpop.permute.xlu0 %7733  ;;  %v46_v55 = vld [vmem:[%s15893_s0 + $0x128] sm:$0xff]  ;;  %v2674_v12 = vsel %vm2647_vm0, %v47_v1, %v7590_v44  ;;  %v2675_v13 = vsel %vm2647_vm0, %v48_v10, %v7591_v45 }
  0xcc   :  { %v7736_v29 = vunpack.i.h.bf16 %v7734_v3  ;;  %v7735_v33 = vunpack.i.l.bf16 %v7734_v3  ;;  %8028 = vrot.lane.b32.xlu1 %v9150_v23, %s9045_s13  ;;  %v2668_v3 = vsel %vm2647_vm0, %v41_v21, %v7575_v14  ;;  %v2669_v23 = vsel %vm2647_vm0, %v42_v6, %v7576_v63 }
  0xcd   :  { %8023 = vrot.lane.b32.xlu0 %v16211_v60, %s9045_s13  ;;  %v10200_v40 = vsel %vm2712_vm1, %v2670_v11, %v7740_v27  ;;  %v10203_v54 = vsel %vm2712_vm1, %v2671_v53, %v7741_v50  ;;  %v2672_v21 = vsel %vm2647_vm0, %v45_v31, %v7585_v57  ;;  %v2673_v6 = vsel %vm2647_vm0, %v46_v55, %v7586_v8  ;;  %v49_v53 = vld [vmem:[%s15893_s0 + $0x150] sm:$0xff]  ;;  %v50_v31 = vld [vmem:[%s15893_s0 + $0x158] sm:$0xff] }
  0xce   :  { %v7749_v42 = vpop.permute.xlu1 %7748  ;;  %v10206_v17 = vsel %vm2712_vm1, %v2668_v3, %v7735_v33  ;;  %v10209_v49 = vsel %vm2712_vm1, %v2669_v23, %v7736_v29  ;;  %v7601_v50 = vunpack.i.h.bf16 %v9649_v58  ;;  %v7600_v27 = vunpack.i.l.bf16 %v9649_v58 }
  0xcf   :  { %v7751_v60 = vunpack.i.h.bf16 %v7749_v42  ;;  %v7750_v14 = vunpack.i.l.bf16 %v7749_v42  ;;  %v7744_v63 = vpop.permute.xlu0 %7743  ;;  %v16212_v29 = vpack.i.bf16 %v9867_v19, %v9862_v15  ;;  %v7596_v45 = vunpack.i.h.bf16 %v9657_v61  ;;  %v51_v15 = vld [vmem:[%s15893_s0 + $0x168] sm:$0xff]  ;;  %v52_v19 = vld [vmem:[%s15893_s0 + $0x170] sm:$0xff] }
  0xd0   :  { %v7746_v33 = vunpack.i.h.bf16 %v7744_v63  ;;  %v7745_v11 = vunpack.i.l.bf16 %v7744_v63  ;;  %v7595_v44 = vunpack.i.l.bf16 %v9657_v61  ;;  %v16213_v57 = vpack.i.bf16 %v9877_v25, %v9872_v24 }
  0xd1   :  { %8038 = vrot.lane.b32.xlu1 %v16212_v29, %s9045_s13  ;;  %v10228_v8 = vsel %vm2712_vm1, %v2674_v12, %v7750_v14  ;;  %v10231_v58 = vsel %vm2712_vm1, %v2675_v13, %v7751_v60  ;;  %v7611_v61 = vunpack.i.h.bf16 %v9667_v5  ;;  %v7610_v1 = vunpack.i.l.bf16 %v9667_v5  ;;  %v55_v12 = vld [vmem:[%s15893_s0 + $0x1c8] sm:$0xff]  ;;  %v56_v13 = vld [vmem:[%s15893_s0 + $0x1d0] sm:$0xff] }
  0xd2   :  { %8033 = vrot.lane.b32.xlu0 %v16213_v57, %s9045_s13  ;;  %v7759_v24 = vpop.permute.xlu1 %7758  ;;  %v10242_v25 = vsel %vm2712_vm1, %v2672_v21, %v7745_v11  ;;  %v10245_v10 = vsel %vm2712_vm1, %v2673_v6, %v7746_v33  ;;  %v7606_v55 = vunpack.i.h.bf16 %v9675_v9  ;;  %v7605_v3 = vunpack.i.l.bf16 %v9675_v9  ;;  %v53_v6 = vld [vmem:[%s15893_s0 + $0x1b0] sm:$0xff]  ;;  %v54_v33 = vld [vmem:[%s15893_s0 + $0x1b8] sm:$0xff] }
  0xd3   :  { %v7761_v5 = vunpack.i.h.bf16 %v7759_v24  ;;  %v7760_v23 = vunpack.i.l.bf16 %v7759_v24  ;;  %v7754_v42 = vpop.permute.xlu0 %7753  ;;  %v16214_v63 = vpack.i.bf16 %v9888_v32, %v9883_v28  ;;  %v2678_v9 = vsel %vm2647_vm0, %v51_v15, %v7600_v27 }
  0xd4   :  { %v7756_v60 = vunpack.i.h.bf16 %v7754_v42  ;;  %v7755_v14 = vunpack.i.l.bf16 %v7754_v42  ;;  %v2679_v21 = vsel %vm2647_vm0, %v52_v19, %v7601_v50  ;;  %v16215_v11 = vpack.i.bf16 %v9898_v38, %v9893_v35 }
  0xd5   :  { %8048 = vrot.lane.b32.xlu1 %v16214_v63, %s9045_s13  ;;  %v2676_v28 = vsel %vm2647_vm0, %v49_v53, %v7595_v44  ;;  %v2677_v32 = vsel %vm2647_vm0, %v50_v31, %v7596_v45  ;;  %v10280_v27 = vsel %vm2712_vm1, %v2678_v9, %v7760_v23  ;;  %v10283_v50 = vsel %vm2712_vm1, %v2679_v21, %v7761_v5  ;;  %v58_v63 = vld [vmem:[%s15893_s0 + $0x1e8] sm:$0xff]  ;;  %v16218_v9 = vld [vmem:[#allocation16_spill] sm:$0xff] }
  0xd6   :  { %8043 = vrot.lane.b32.xlu0 %v16215_v11, %s9045_s13  ;;  %v7769_v29 = vpop.permute.xlu1 %7768  ;;  %v10286_v57 = vsel %vm2712_vm1, %v2676_v28, %v7755_v14  ;;  %v10289_v15 = vsel %vm2712_vm1, %v2677_v32, %v7756_v60  ;;  %v2682_v35 = vsel %vm2647_vm0, %v55_v12, %v7610_v1  ;;  %v2683_v38 = vsel %vm2647_vm0, %v56_v13, %v7611_v61  ;;  %v57_v14 = vld [vmem:[%s15893_s0 + $0x1e0] sm:$0xff]  ;;  %v63_v28 = vld [vmem:[%s15893_s0 + $0x228] sm:$0xff]  ;;  %v64_v32 = vld [vmem:[%s15893_s0 + $0x230] sm:$0xff] }
  0xd7   :  { %v7771_v44 = vunpack.i.h.bf16 %v7769_v29  ;;  %v7770_v19 = vunpack.i.l.bf16 %v7769_v29  ;;  %v7764_v45 = vpop.permute.xlu0 %7763  ;;  %v2680_v24 = vsel %vm2647_vm0, %v53_v6, %v7605_v3  ;;  %v2681_v53 = vsel %vm2647_vm0, %v54_v33, %v7606_v55 }
  0xd8   :  { %v7621_v31 = vunpack.i.h.bf16 %v9685_v18  ;;  %v7620_v5 = vunpack.i.l.bf16 %v9685_v18  ;;  %v7766_v23 = vunpack.i.h.bf16 %v7764_v45  ;;  %v7765_v42 = vunpack.i.l.bf16 %v7764_v45 }
  0xd9   :  { %v16216_v60 = vpack.i.bf16 %v9908_v41, %v9903_v39  ;;  %v7616_v61 = vunpack.i.h.bf16 %v9693_v22  ;;  %v7615_v1 = vunpack.i.l.bf16 %v9693_v22  ;;  %v16217_v3 = vpack.i.bf16 %v9918_v47, %v9913_v43  ;;  %v59_v39 = vld [vmem:[%s15893_s0 + $0x1f8] sm:$0xff]  ;;  %v60_v41 = vld [vmem:[%s15893_s0 + $0x200] sm:$0xff] }
  0xda   :  { %v10308_v55 = vsel %vm2712_vm1, %v2682_v35, %v7770_v19  ;;  %v10311_v18 = vsel %vm2712_vm1, %v2683_v38, %v7771_v44  ;;  %v7631_v22 = vunpack.i.h.bf16 %v9703_v30  ;;  %v7630_v12 = vunpack.i.l.bf16 %v9703_v30  ;;  %v7779_v43 = vpop.permute.xlu1 %7778  ;;  %v16219_v38 = vld [vmem:[#allocation32_spill] sm:$0xff]  ;;  %v16220_v44 = vld [vmem:[#allocation31_spill] sm:$0xff] }
  0xdb   :  { %8058 = vrot.lane.b32.xlu1 %v16216_v60, %s9045_s13  ;;  %8053 = vrot.lane.b32.xlu0 %v16217_v3, %s9045_s13  ;;  %v10322_v47 = vsel %vm2712_vm1, %v2680_v24, %v7765_v42  ;;  %v10325_v13 = vsel %vm2712_vm1, %v2681_v53, %v7766_v23  ;;  %v7626_v21 = vunpack.i.h.bf16 %v16218_v9  ;;  %v7625_v6 = vunpack.i.l.bf16 %v16218_v9  ;;  %v7774_v11 = vpop.permute.xlu0 %7773  ;;  %v61_v53 = vld [vmem:[%s15893_s0 + $0x210] sm:$0xff]  ;;  %v62_v23 = vld [vmem:[%s15893_s0 + $0x218] sm:$0xff]  ;;  %v16223_v60 = vld [vmem:[#allocation33_spill] sm:$0xff] }
  0xdc   :  { %v7781_v30 = vunpack.i.h.bf16 %v7779_v43  ;;  %v7780_v33 = vunpack.i.l.bf16 %v7779_v43  ;;  %v7776_v29 = vunpack.i.h.bf16 %v7774_v11  ;;  %v7775_v35 = vunpack.i.l.bf16 %v7774_v11  ;;  %v16222_v42 = vld [vmem:[#allocation34_spill] sm:$0xff] }
  0xdd   :  { %v16221_v19 = vpack.i.bf16 %v16219_v38, %v16220_v44  ;;  %v2686_v45 = vsel %vm2647_vm0, %v59_v39, %v7620_v5  ;;  %v2687_v24 = vsel %vm2647_vm0, %v60_v41, %v7621_v31  ;;  %v16224_v3 = vpack.i.bf16 %v16222_v42, %v16223_v60  ;;  %v16231_v42 = vld [vmem:[#allocation19_spill] sm:$0xff] }
  0xde   :  { %v2684_v43 = vsel %vm2647_vm0, %v57_v14, %v7615_v1  ;;  %v2685_v9 = vsel %vm2647_vm0, %v58_v63, %v7616_v61  ;;  %v10360_v5 = vsel %vm2712_vm1, %v2686_v45, %v7780_v33  ;;  %v10363_v31 = vsel %vm2712_vm1, %v2687_v24, %v7781_v30  ;;  %v7789_v39 = vpop.permute.xlu1 %7788  ;;  %v16225_v30 = vld [vmem:[#allocation17_spill] sm:$0xff] }
  0xdf   :  { %8068 = vrot.lane.b32.xlu1 %v16221_v19, %s9045_s13  ;;  %8063 = vrot.lane.b32.xlu0 %v16224_v3, %s9045_s13  ;;  %v10366_v41 = vsel %vm2712_vm1, %v2684_v43, %v7775_v35  ;;  %v10369_v11 = vsel %vm2712_vm1, %v2685_v9, %v7776_v29  ;;  %v2690_v38 = vsel %vm2647_vm0, %v63_v28, %v7630_v12  ;;  %v7791_v1 = vunpack.i.h.bf16 %v7789_v39  ;;  %v7784_v61 = vpop.permute.xlu0 %7783  ;;  %v16227_v12 = vld [vmem:[#allocation18_spill] sm:$0xff] }
  0xe0   :  { %v2691_v44 = vsel %vm2647_vm0, %v64_v32, %v7631_v22  ;;  %v7790_v14 = vunpack.i.l.bf16 %v7789_v39  ;;  %v2688_v63 = vsel %vm2647_vm0, %v61_v53, %v7625_v6  ;;  %v2689_v33 = vsel %vm2647_vm0, %v62_v23, %v7626_v21  ;;  %v16228_v32 = vld [vmem:[#allocation37_spill] sm:$0xff]  ;;  %v16229_v6 = vld [vmem:[#allocation36_spill] sm:$0xff] }
  0xe1   :  { %v7641_v19 = vunpack.i.h.bf16 %v16225_v30  ;;  %v7640_v45 = vunpack.i.l.bf16 %v16225_v30  ;;  %v7786_v35 = vunpack.i.h.bf16 %v7784_v61  ;;  %v7785_v24 = vunpack.i.l.bf16 %v7784_v61 }
  0xe2   :  { %v16226_v29 = vpack.i.bf16 %v9951_v26, %v9946_v0  ;;  %v7636_v22 = vunpack.i.h.bf16 %v16227_v12  ;;  %v7635_v28 = vunpack.i.l.bf16 %v16227_v12  ;;  %v16230_v53 = vpack.i.bf16 %v16228_v32, %v16229_v6  ;;  %v67_v26 = vld [vmem:[%s15893_s0 + $0x258] sm:$0xff]  ;;  %v68_v0 = vld [vmem:[%s15893_s0 + $0x260] sm:$0xff]  ;;  %v7799_v43 = vpop.permute.xlu1 %7798  ;;  %v69_v6 = vld [vmem:[%s15893_s0 + $0x270] sm:$0xff] }
  0xe3   :  { %v10388_v21 = vsel %vm2712_vm1, %v2690_v38, %v7790_v14  ;;  %v10391_v23 = vsel %vm2712_vm1, %v2691_v44, %v7791_v1  ;;  %v7651_v60 = vunpack.i.h.bf16 %v16231_v42  ;;  %v7650_v3 = vunpack.i.l.bf16 %v16231_v42  ;;  %v65_v38 = vld [vmem:[%s15893_s0 + $0x240] sm:$0xff]  ;;  %v66_v44 = vld [vmem:[%s15893_s0 + $0x248] sm:$0xff]  ;;  %v7794_v12 = vpop.permute.xlu0 %7793 }
  0xe4   :  { %8078 = vrot.lane.b32.xlu1 %v16226_v29, %s9045_s13  ;;  %8073 = vrot.lane.b32.xlu0 %v16230_v53, %s9045_s13  ;;  %v10402_v9 = vsel %vm2712_vm1, %v2688_v63, %v7785_v24  ;;  %v10405_v39 = vsel %vm2712_vm1, %v2689_v33, %v7786_v35  ;;  %v16233_v1 = vld [vmem:[#allocation20_spill] sm:$0xff]  ;;  %v7801_v30 = vunpack.i.h.bf16 %v7799_v43  ;;  %v7800_v29 = vunpack.i.l.bf16 %v7799_v43  ;;  %v71_v63 = vld [vmem:[%s15893_s0 + $0x288] sm:$0xff]  ;;  %v72_v33 = vld [vmem:[%s15893_s0 + $0x290] sm:$0xff] }
  0xe5   :  { %16232 = vst [vmem:[#allocation16_spill] sm:$0xff] %v10405_v39  ;;  %v7646_v14 = vunpack.i.h.bf16 %v16233_v1  ;;  %v7645_v61 = vunpack.i.l.bf16 %v16233_v1  ;;  %v7796_v35 = vunpack.i.h.bf16 %v7794_v12  ;;  %v7795_v24 = vunpack.i.l.bf16 %v7794_v12  ;;  %v70_v53 = vld [vmem:[%s15893_s0 + $0x278] sm:$0xff] }
  0xe6   :  { %v16234_v32 = vpack.i.bf16 %v9973_v59, %v9968_v20  ;;  %v2694_v42 = vsel %vm2647_vm0, %v67_v26, %v7640_v45  ;;  %v2695_v43 = vsel %vm2647_vm0, %v68_v0, %v7641_v19  ;;  %v16235_v1 = vpack.i.bf16 %v9983_v2, %v9978_v7  ;;  %v7809_v39 = vpop.permute.xlu1 %7808 }
  0xe7   :  { %v2692_v20 = vsel %vm2647_vm0, %v65_v38, %v7635_v28  ;;  %v2693_v59 = vsel %vm2647_vm0, %v66_v44, %v7636_v22  ;;  %v10440_v12 = vsel %vm2712_vm1, %v2694_v42, %v7800_v29  ;;  %v2698_v45 = vsel %vm2647_vm0, %v71_v63, %v7650_v3  ;;  %v7804_v22 = vpop.permute.xlu0 %7803  ;;  %v16236_v44 = vld [vmem:[#allocation21_spill] sm:$0xff] }
  0xe8   :  { %8088 = vrot.lane.b32.xlu1 %v16234_v32, %s9045_s13  ;;  %8083 = vrot.lane.b32.xlu0 %v16235_v1, %s9045_s13  ;;  %v10443_v32 = vsel %vm2712_vm1, %v2695_v43, %v7801_v30  ;;  %v2699_v19 = vsel %vm2647_vm0, %v72_v33, %v7651_v60  ;;  %v10448_v26 = vsel %vm2712_vm1, %v2692_v20, %v7795_v24  ;;  %v7811_v2 = vunpack.i.h.bf16 %v7809_v39  ;;  %v16237_v60 = vld [vmem:[#allocation39_spill] sm:$0xff]  ;;  %v16240_v42 = vld [vmem:[#allocation41_spill] sm:$0xff]  ;;  %v76_v43 = vld [vmem:[%s15893_s0 + $0x2c0] sm:$0xff] }
  0xe9   :  { %v10451_v7 = vsel %vm2712_vm1, %v2693_v59, %v7796_v35  ;;  %v7810_v28 = vunpack.i.l.bf16 %v7809_v39  ;;  %v2696_v0 = vsel %vm2647_vm0, %v69_v6, %v7645_v61  ;;  %v2697_v38 = vsel %vm2647_vm0, %v70_v53, %v7646_v14  ;;  %v16239_v35 = vld [vmem:[#allocation22_spill] sm:$0xff]  ;;  %v16241_v61 = vld [vmem:[#allocation40_spill] sm:$0xff]  ;;  %v16245_v1 = vld [vmem:[#allocation23_spill] sm:$0xff] }
  0xea   :  { %v7661_v30 = vunpack.i.h.bf16 %v16236_v44  ;;  %v7660_v29 = vunpack.i.l.bf16 %v16236_v44  ;;  %v7806_v3 = vunpack.i.h.bf16 %v7804_v22  ;;  %v7805_v63 = vunpack.i.l.bf16 %v7804_v22  ;;  %v7819_v22 = vpop.permute.xlu1 %7818 }
  0xeb   :  { %v16238_v33 = vpack.i.bf16 %v9993_v62, %v16237_v60  ;;  %v7656_v24 = vunpack.i.h.bf16 %v16239_v35  ;;  %v7655_v39 = vunpack.i.l.bf16 %v16239_v35  ;;  %v16242_v6 = vpack.i.bf16 %v16240_v42, %v16241_v61  ;;  %v75_v62 = vld [vmem:[%s15893_s0 + $0x2b8] sm:$0xff]  ;;  %v7814_v61 = vpop.permute.xlu0 %7813 }
  0xec   :  { %v10468_v14 = vsel %vm2712_vm1, %v2698_v45, %v7810_v28  ;;  %v10471_v53 = vsel %vm2712_vm1, %v2699_v19, %v7811_v2  ;;  %v7671_v20 = vunpack.i.h.bf16 %v16245_v1  ;;  %v7670_v59 = vunpack.i.l.bf16 %v16245_v1  ;;  %v73_v19 = vld [vmem:[%s15893_s0 + $0x2a0] sm:$0xff]  ;;  %v74_v2 = vld [vmem:[%s15893_s0 + $0x2a8] sm:$0xff]  ;;  %v16250_v1 = vld [vmem:[#allocation42_spill] sm:$0xff] }
  0xed   :  { %8098 = vrot.lane.b32.xlu1 %v16238_v33, %s9045_s13  ;;  %8093 = vrot.lane.b32.xlu0 %v16242_v6, %s9045_s13  ;;  %16243 = vst [vmem:[#allocation32_spill] sm:$0xff] %v10468_v14  ;;  %16244 = vst [vmem:[#allocation31_spill] sm:$0xff] %v10471_v53  ;;  %v10482_v44 = vsel %vm2712_vm1, %v2696_v0, %v7805_v63  ;;  %v10485_v45 = vsel %vm2712_vm1, %v2697_v38, %v7806_v3  ;;  %v16248_v28 = vld [vmem:[#allocation24_spill] sm:$0xff]  ;;  %v7821_v35 = vunpack.i.h.bf16 %v7819_v22  ;;  %v79_v0 = vld [vmem:[%s15893_s0 + $0x2e8] sm:$0xff] }
  0xee   :  { %16246 = vst [vmem:[#allocation34_spill] sm:$0xff] %v10482_v44  ;;  %16247 = vst [vmem:[#allocation33_spill] sm:$0xff] %v10485_v45  ;;  %v7666_v60 = vunpack.i.h.bf16 %v16248_v28  ;;  %v7665_v33 = vunpack.i.l.bf16 %v16248_v28  ;;  %v7820_v42 = vunpack.i.l.bf16 %v7819_v22  ;;  %v80_v38 = vld [vmem:[%s15893_s0 + $0x2f0] sm:$0xff]  ;;  %v7816_v3 = vunpack.i.h.bf16 %v7814_v61  ;;  %v16249_v6 = vld [vmem:[#allocation43_spill] sm:$0xff] }
  0xef   :  { %v7815_v63 = vunpack.i.l.bf16 %v7814_v61  ;;  %v16251_v45 = vpack.i.bf16 %v16249_v6, %v16250_v1  ;;  %v2702_v28 = vsel %vm2647_vm0, %v75_v62, %v7660_v29  ;;  %v2703_v22 = vsel %vm2647_vm0, %v76_v43, %v7661_v30  ;;  %v77_v44 = vld [vmem:[%s15893_s0 + $0x2d0] sm:$0xff]  ;;  %v78_v53 = vld [vmem:[%s15893_s0 + $0x2d8] sm:$0xff]  ;;  %v16252_v61 = vld [vmem:[#allocation44_spill] sm:$0xff]  ;;  %v7829_v62 = vpop.permute.xlu1 %7828 }
  0xf0   :  { %v16253_v14 = vpack.i.bf16 %v10041_v4, %v16252_v61  ;;  %v2700_v6 = vsel %vm2647_vm0, %v73_v19, %v7655_v39  ;;  %v10520_v29 = vsel %vm2712_vm1, %v2702_v28, %v7820_v42  ;;  %v10523_v30 = vsel %vm2712_vm1, %v2703_v22, %v7821_v35 }
  0xf1   :  { %8108 = vrot.lane.b32.xlu1 %v16251_v45, %s9045_s13  ;;  %v2701_v45 = vsel %vm2647_vm0, %v74_v2, %v7656_v24  ;;  %v10526_v43 = vsel %vm2712_vm1, %v2700_v6, %v7815_v63  ;;  %v2706_v4 = vsel %vm2647_vm0, %v79_v0, %v7670_v59  ;;  %v7831_v39 = vunpack.i.h.bf16 %v7829_v62  ;;  %v7824_v24 = vpop.permute.xlu0 %7823  ;;  %v6828_v2 = vld [vmem:[%s15893_s0 + $0x2d1] sm:$0xff]  ;;  %v16254_v63 = vld [vmem:[#allocation25_spill] sm:$0xff]  ;;  %v6829_v59 = vld [vmem:[%s15893_s0 + $0x2d9] sm:$0xff] }
  0xf2   :  { %8103 = vrot.lane.b32.xlu0 %v16253_v14, %s9045_s13  ;;  %v10529_v1 = vsel %vm2712_vm1, %v2701_v45, %v7816_v3  ;;  %v2707_v14 = vsel %vm2647_vm0, %v80_v38, %v7671_v20  ;;  %v7830_v19 = vunpack.i.l.bf16 %v7829_v62  ;;  %v2704_v35 = vsel %vm2647_vm0, %v77_v44, %v7665_v33  ;;  %v6826_v44 = vld [vmem:[%s15893_s0 + $0x2b9] sm:$0xff] }
  0xf3   :  { %v2705_v42 = vsel %vm2647_vm0, %v78_v53, %v7666_v60  ;;  %v7681_v28 = vunpack.i.h.bf16 %v16254_v63  ;;  %v7680_v3 = vunpack.i.l.bf16 %v16254_v63  ;;  %v7826_v22 = vunpack.i.h.bf16 %v7824_v24  ;;  %v6827_v53 = vld [vmem:[%s15893_s0 + $0x2c1] sm:$0xff]  ;;  %v16256_v60 = vld [vmem:[#allocation26_spill] sm:$0xff]  ;;  %v16257_v38 = vld [vmem:[#allocation47_spill] sm:$0xff]  ;;  %v7839_v63 = vpop.permute.xlu1 %7838 }
  0xf4   :  { %v7825_v61 = vunpack.i.l.bf16 %v7824_v24  ;;  %v16255_v20 = vpack.i.bf16 %v10051_v36, %v10046_v48  ;;  %v7676_v33 = vunpack.i.h.bf16 %v16256_v60  ;;  %v7675_v0 = vunpack.i.l.bf16 %v16256_v60  ;;  %v16258_v36 = vld [vmem:[#allocation46_spill] sm:$0xff]  ;;  %v83_v62 = vld [vmem:[%s15893_s0 + $0x318] sm:$0xff]  ;;  %v84_v24 = vld [vmem:[%s15893_s0 + $0x320] sm:$0xff] }
  0xf5   :  { %v16259_v48 = vpack.i.bf16 %v16257_v38, %v16258_v36  ;;  %v10560_v6 = vsel %vm2712_vm1, %v2706_v4, %v7830_v19  ;;  %v10563_v45 = vsel %vm2712_vm1, %v2707_v14, %v7831_v39  ;;  %v10575_v60 = vsel %vm2712_vm1, %v2705_v42, %v7826_v22  ;;  %v81_v4 = vld [vmem:[%s15893_s0 + $0x300] sm:$0xff]  ;;  %v82_v14 = vld [vmem:[%s15893_s0 + $0x308] sm:$0xff]  ;;  %v7834_v38 = vpop.permute.xlu0 %7833 }
  0xf6   :  { %8118 = vrot.lane.b32.xlu1 %v16255_v20, %s9045_s13  ;;  %16260 = vst [vmem:[#allocation17_spill] sm:$0xff] %v10560_v6  ;;  %16261 = vst [vmem:[#allocation18_spill] sm:$0xff] %v10563_v45  ;;  %v10572_v20 = vsel %vm2712_vm1, %v2704_v35, %v7825_v61  ;;  %v7841_v39 = vunpack.i.h.bf16 %v7839_v63  ;;  %v7840_v19 = vunpack.i.l.bf16 %v7839_v63  ;;  %v8137_v36 = vpack.i.bf16 %v6829_v59, %v6828_v2  ;;  %v6832_v2 = vld [vmem:[%s15893_s0 + $0x301] sm:$0xff]  ;;  %v6833_v59 = vld [vmem:[%s15893_s0 + $0x309] sm:$0xff] }
  0xf7   :  { %8113 = vrot.lane.b32.xlu0 %v16259_v48, %s9045_s13  ;;  %v8132_v48 = vpack.i.bf16 %v6827_v53, %v6826_v44  ;;  %v7836_v45 = vunpack.i.h.bf16 %v7834_v38  ;;  %v7835_v6 = vunpack.i.l.bf16 %v7834_v38  ;;  %v16262_v35 = vpack.i.bf16 %v10093_v52, %v10080_v34  ;;  %v6831_v44 = vld [vmem:[%s15893_s0 + $0x2f1] sm:$0xff] }
  0xf8   :  { %v2710_v42 = vsel %vm2647_vm0, %v83_v62, %v7680_v3  ;;  %v2711_v22 = vsel %vm2647_vm0, %v84_v24, %v7681_v28  ;;  %v16263_v61 = vpack.i.bf16 %v10103_v37, %v10098_v56  ;;  %v2708_v52 = vsel %vm2647_vm0, %v81_v4, %v7675_v0  ;;  %v10607_v56 = vpop.permute.xlu1 %7848  ;;  %v6830_v37 = vld [vmem:[%s15893_s0 + $0x2e9] sm:$0xff]  ;;  %v6836_v63 = vld [vmem:[%s15893_s0 + $0x331] sm:$0xff] }
  0xf9   :  { %v2709_v34 = vsel %vm2647_vm0, %v82_v14, %v7676_v33  ;;  %v10602_v3 = vsel %vm2712_vm1, %v2710_v42, %v7840_v19  ;;  %v10605_v28 = vsel %vm2712_vm1, %v2711_v22, %v7841_v39  ;;  %16264 = vst [vmem:[#allocation37_spill] sm:$0xff] %v10607_v56  ;;  %v10616_v53 = vsel %vm2712_vm1, %v2708_v52, %v7835_v6  ;;  %v10621_v0 = vpop.permute.xlu0 %7843  ;;  %v6837_v6 = vld [vmem:[%s15893_s0 + $0x339] sm:$0xff]  ;;  %v6835_v14 = vld [vmem:[%s15893_s0 + $0x321] sm:$0xff]  ;;  %v3197_v56 = vld [vmem:[%s15895_s2 + $0xf0] sm:$0xff] }
  0xfa   :  { %8128 = vrot.lane.b32.xlu1 %v16262_v35, %s9045_s13  ;;  %v10619_v33 = vsel %vm2712_vm1, %v2709_v34, %v7836_v45  ;;  %16265 = vst [vmem:[#allocation36_spill] sm:$0xff] %v10621_v0  ;;  %v8147_v62 = vpack.i.bf16 %v6833_v59, %v6832_v2  ;;  %v8142_v24 = vpack.i.bf16 %v6831_v44, %v6830_v37  ;;  %v6834_v45 = vld [vmem:[%s15893_s0 + $0x319] sm:$0xff]  ;;  %v6839_v22 = vld [vmem:[%s15893_s0 + $0x22] sm:$0xff]  ;;  %v6845_v34 = vld [vmem:[%s15893_s0 + $0x6a] sm:$0xff] }
  0xfb   :  { %8123 = vrot.lane.b32.xlu0 %v16263_v61, %s9045_s13  ;;  %v8157_v19 = vpack.i.bf16 %v6837_v6, %v6836_v63  ;;  %v8152_v38 = vpack.i.bf16 %v6835_v14, %v6834_v45  ;;  %v6838_v42 = vld [vmem:[%s15893_s0 + $0x1a] sm:$0xff]  ;;  %v6844_v52 = vld [vmem:[%s15893_s0 + $0x62] sm:$0xff]  ;;  %v6842_v44 = vld [vmem:[%s15893_s0 + $0x4a] sm:$0xff] }
  0xfc   :  { %v10631_v4 = vpop.permute.xlu1 %7858  ;;  %v8162_v59 = vpack.i.bf16 %v6839_v22, %v6838_v42  ;;  %v8177_v63 = vpack.i.bf16 %v6845_v34, %v6844_v52  ;;  %v6848_v45 = vld [vmem:[%s15893_s0 + $0x92] sm:$0xff]  ;;  %v6849_v14 = vld [vmem:[%s15893_s0 + $0x9a] sm:$0xff]  ;;  %v6964_v0 = vld [vmem:[%s15893_s0 + $0x348] sm:$0xff] }
  0xfd   :  { %16266 = vst [vmem:[#allocation19_spill] sm:$0xff] %v10631_v4  ;;  %v10639_v39 = vpop.permute.xlu0 %7853  ;;  %v8187_v52 = vpack.i.bf16 %v6849_v14, %v6848_v45  ;;  %v6850_v45 = vld [vmem:[%s15893_s0 + $0xaa] sm:$0xff]  ;;  %v6851_v14 = vld [vmem:[%s15893_s0 + $0xb2] sm:$0xff] }
  0xfe   :  { %8138 = vrot.lane.b32.xlu1 %v8137_v36, %s9045_s13  ;;  %16267 = vst [vmem:[#allocation20_spill] sm:$0xff] %v10639_v39  ;;  %v6840_v36 = vld [vmem:[%s15893_s0 + $0x32] sm:$0xff]  ;;  %v3195_v39 = vld [vmem:[%s15895_s2 + $0xe0] sm:$0xff] }
  0xff   :  { %8133 = vrot.lane.b32.xlu0 %v8132_v48, %s9045_s13  ;;  %v6841_v48 = vld [vmem:[%s15893_s0 + $0x3a] sm:$0xff]  ;;  %v3193_v4 = vld [vmem:[%s15895_s2 + $0xd0] sm:$0xff] }
 0x100   :  { %v10649_v35 = vpop.permute.xlu1 %7868  ;;  %v8167_v2 = vpack.i.bf16 %v6841_v48, %v6840_v36  ;;  %v6847_v36 = vld [vmem:[%s15893_s0 + $0x82] sm:$0xff] }
 0x101   :  { %16268 = vst [vmem:[#allocation21_spill] sm:$0xff] %v10649_v35  ;;  %v10657_v61 = vpop.permute.xlu0 %7863  ;;  %v3189_v35 = vld [vmem:[%s15895_s2 + $0xb0] sm:$0xff] }
 0x102   :  { %8148 = vrot.lane.b32.xlu1 %v8147_v62, %s9045_s13  ;;  %16269 = vst [vmem:[#allocation39_spill] sm:$0xff] %v10657_v61  ;;  %v6843_v62 = vld [vmem:[%s15893_s0 + $0x52] sm:$0xff]  ;;  %v3191_v61 = vld [vmem:[%s15895_s2 + $0xc0] sm:$0xff] }
 0x103   :  { %8143 = vrot.lane.b32.xlu0 %v8142_v24, %s9045_s13  ;;  %v8172_v6 = vpack.i.bf16 %v6843_v62, %v6842_v44  ;;  %v6852_v44 = vld [vmem:[%s15893_s0 + $0xc2] sm:$0xff]  ;;  %v6853_v62 = vld [vmem:[%s15893_s0 + $0xca] sm:$0xff] }
 0x104   :  { %v10667_v37 = vpop.permute.xlu1 %7878 }
 0x105   :  { %16270 = vst [vmem:[#allocation22_spill] sm:$0xff] %v10667_v37  ;;  %v10675_v24 = vpop.permute.xlu0 %7873 }
 0x106   :  { %8158 = vrot.lane.b32.xlu1 %v8157_v19, %s9045_s13  ;;  %16271 = vst [vmem:[#allocation41_spill] sm:$0xff] %v10675_v24  ;;  %v3187_v24 = vld [vmem:[%s15895_s2 + $0xa0] sm:$0xff] }
 0x107   :  { %8153 = vrot.lane.b32.xlu0 %v8152_v38, %s9045_s13  ;;  %s9046_s13 = smov 52   ;;  %v6846_v38 = vld [vmem:[%s15893_s0 + $0x7a] sm:$0xff] }
 0x108   :  { %v10685_v19 = vpop.permute.xlu1 %7888  ;;  %v8182_v34 = vpack.i.bf16 %v6847_v36, %v6846_v38 }
 0x109   :  { %v15940_v48 = vunpack.i.h.bf16 %v10685_v19  ;;  %v15941_v42 = vunpack.i.l.bf16 %v10685_v19  ;;  %v10695_v22 = vpop.permute.xlu0 %7883 }
 0x10a   :  { %8168 = vrot.lane.b32.xlu1 %v8167_v2, %s9046_s13  ;;  %16272 = vst [vmem:[#allocation40_spill] sm:$0xff] %v10695_v22  ;;  %v16276_v38 = vunpack.i.h.bf16 %v10695_v22 }
 0x10b   :  { %8163 = vrot.lane.b32.xlu0 %v8162_v59, %s9046_s13  ;;  %v15943_v59 = vunpack.i.l.bf16 %v10695_v22  ;;  %v10711_v2 = vsel %vm2777_vm2, %v10150_v16, %v15941_v42 }
 0x10c   :  { %16273 = vst [vmem:[#allocation23_spill] sm:$0xff] %v10711_v2 }
 0x10d   :  { %v10731_v16 = vsel %vm2777_vm2, %v10164_v46, %v15943_v59  ;;  %v8197_v46 = vpack.i.bf16 %v6853_v62, %v6852_v44  ;;  %v8192_v59 = vpack.i.bf16 %v6851_v14, %v6850_v45  ;;  %v6854_v44 = vld [vmem:[%s15893_s0 + $0xda] sm:$0xff]  ;;  %v6855_v62 = vld [vmem:[%s15893_s0 + $0xe2] sm:$0xff] }
 0x10e   :  { %8178 = vrot.lane.b32.xlu1 %v8177_v63, %s9046_s13  ;;  %v10717_v63 = vsel %vm2777_vm2, %v10153_v51, %v15940_v48  ;;  %16275 = vst [vmem:[#allocation43_spill] sm:$0xff] %v10731_v16  ;;  %v16277_v51 = vld [vmem:[#allocation49_spill] sm:$0xff]  ;;  %v3185_v16 = vld [vmem:[%s15895_s2 + $0x90] sm:$0xff] }
 0x10f   :  { %8173 = vrot.lane.b32.xlu0 %v8172_v6, %s9046_s13  ;;  %16274 = vst [vmem:[#allocation24_spill] sm:$0xff] %v10717_v63  ;;  %v10719_v6 = vpop.permute.xlu1 %7898  ;;  %v10737_v36 = vsel %vm2777_vm2, %v16277_v51, %v16276_v38  ;;  %v10741_v63 = vpop.permute.xlu0 %7893  ;;  %v6856_v38 = vld [vmem:[%s15893_s0 + $0xf2] sm:$0xff]  ;;  %v6857_v51 = vld [vmem:[%s15893_s0 + $0xfa] sm:$0xff] }
 0x110   :  { %16278 = vst [vmem:[#allocation42_spill] sm:$0xff] %v10737_v36  ;;  %v15944_v48 = vunpack.i.h.bf16 %v10719_v6  ;;  %v15945_v42 = vunpack.i.l.bf16 %v10719_v6  ;;  %v15946_v37 = vunpack.i.l.bf16 %v10741_v63  ;;  %v16282_v45 = vunpack.i.h.bf16 %v10741_v63 }
 0x112   :  { %8188 = vrot.lane.b32.xlu1 %v8187_v52, %s9046_s13  ;;  %v10757_v2 = vsel %vm2777_vm2, %v10200_v40, %v15945_v42  ;;  %v10763_v52 = vsel %vm2777_vm2, %v10203_v54, %v15944_v48  ;;  %v10777_v40 = vsel %vm2777_vm2, %v10206_v17, %v15946_v37  ;;  %v10783_v54 = vsel %vm2777_vm2, %v10209_v49, %v16282_v45  ;;  %v6860_v49 = vld [vmem:[%s15893_s0 + $0x122] sm:$0xff]  ;;  %v6861_v45 = vld [vmem:[%s15893_s0 + $0x12a] sm:$0xff] }
 0x113   :  { %8183 = vrot.lane.b32.xlu0 %v8182_v34, %s9046_s13  ;;  %16279 = vst [vmem:[#allocation44_spill] sm:$0xff] %v10757_v2  ;;  %16280 = vst [vmem:[#allocation25_spill] sm:$0xff] %v10763_v52  ;;  %v10765_v34 = vpop.permute.xlu1 %7908  ;;  %v10787_v42 = vpop.permute.xlu0 %7903  ;;  %v8207_v17 = vpack.i.bf16 %v6857_v51, %v6856_v38  ;;  %v8202_v37 = vpack.i.bf16 %v6855_v62, %v6854_v44  ;;  %v6858_v38 = vld [vmem:[%s15893_s0 + $0x10a] sm:$0xff]  ;;  %v6859_v51 = vld [vmem:[%s15893_s0 + $0x112] sm:$0xff] }
 0x114   :  { %16281 = vst [vmem:[#allocation26_spill] sm:$0xff] %v10777_v40  ;;  %16283 = vst [vmem:[#allocation47_spill] sm:$0xff] %v10783_v54  ;;  %v15947_v14 = vunpack.i.h.bf16 %v10765_v34  ;;  %v15948_v48 = vunpack.i.l.bf16 %v10765_v34  ;;  %v15949_v2 = vunpack.i.l.bf16 %v10787_v42  ;;  %v16287_v44 = vunpack.i.h.bf16 %v10787_v42  ;;  %v3183_v40 = vld [vmem:[%s15895_s2 + $0x80] sm:$0xff] }
 0x116   :  { %8198 = vrot.lane.b32.xlu1 %v8197_v46, %s9046_s13  ;;  %v10803_v52 = vsel %vm2777_vm2, %v10228_v8, %v15948_v48  ;;  %v10823_v8 = vsel %vm2777_vm2, %v10242_v25, %v15949_v2  ;;  %v8217_v25 = vpack.i.bf16 %v6861_v45, %v6860_v49  ;;  %v8212_v2 = vpack.i.bf16 %v6859_v51, %v6858_v38  ;;  %v6862_v49 = vld [vmem:[%s15893_s0 + $0x13a] sm:$0xff]  ;;  %v6863_v45 = vld [vmem:[%s15893_s0 + $0x142] sm:$0xff] }
 0x117   :  { %8193 = vrot.lane.b32.xlu0 %v8192_v59, %s9046_s13  ;;  %16284 = vst [vmem:[#allocation46_spill] sm:$0xff] %v10803_v52  ;;  %v10809_v59 = vsel %vm2777_vm2, %v10231_v58, %v15947_v14  ;;  %v10811_v46 = vpop.permute.xlu1 %7918  ;;  %16286 = vst [vmem:[#allocation50_spill] sm:$0xff] %v10823_v8  ;;  %v10829_v58 = vsel %vm2777_vm2, %v10245_v10, %v16287_v44  ;;  %v10833_v48 = vpop.permute.xlu0 %7913  ;;  %v6864_v10 = vld [vmem:[%s15893_s0 + $0x152] sm:$0xff]  ;;  %v6865_v44 = vld [vmem:[%s15893_s0 + $0x15a] sm:$0xff] }
 0x118   :  { %16285 = vst [vmem:[#allocation49_spill] sm:$0xff] %v10809_v59  ;;  %16288 = vst [vmem:[#allocation51_spill] sm:$0xff] %v10829_v58  ;;  %v15950_v62 = vunpack.i.h.bf16 %v10811_v46  ;;  %v15951_v14 = vunpack.i.l.bf16 %v10811_v46  ;;  %v15952_v52 = vunpack.i.l.bf16 %v10833_v48  ;;  %v16292_v38 = vunpack.i.h.bf16 %v10833_v48  ;;  %v3179_v58 = vld [vmem:[%s15895_s2 + $0x60] sm:$0xff]  ;;  %v3181_v8 = vld [vmem:[%s15895_s2 + $0x70] sm:$0xff] }
 0x11a   :  { %8208 = vrot.lane.b32.xlu1 %v8207_v17, %s9046_s13  ;;  %v10849_v59 = vsel %vm2777_vm2, %v10280_v27, %v15951_v14  ;;  %v10869_v27 = vsel %vm2777_vm2, %v10286_v57, %v15952_v52  ;;  %v8227_v57 = vpack.i.bf16 %v6865_v44, %v6864_v10  ;;  %v8222_v52 = vpack.i.bf16 %v6863_v45, %v6862_v49  ;;  %v6866_v10 = vld [vmem:[%s15893_s0 + $0x16a] sm:$0xff]  ;;  %v6867_v44 = vld [vmem:[%s15893_s0 + $0x172] sm:$0xff] }
 0x11b   :  { %8203 = vrot.lane.b32.xlu0 %v8202_v37, %s9046_s13  ;;  %16289 = vst [vmem:[#allocation52_spill] sm:$0xff] %v10849_v59  ;;  %v10855_v37 = vsel %vm2777_vm2, %v10283_v50, %v15950_v62  ;;  %v10857_v17 = vpop.permute.xlu1 %7928  ;;  %16291 = vst [vmem:[#allocation54_spill] sm:$0xff] %v10869_v27  ;;  %v10875_v50 = vsel %vm2777_vm2, %v10289_v15, %v16292_v38  ;;  %v10879_v14 = vpop.permute.xlu0 %7923  ;;  %v6868_v15 = vld [vmem:[%s15893_s0 + $0x182] sm:$0xff]  ;;  %v6869_v38 = vld [vmem:[%s15893_s0 + $0x18a] sm:$0xff] }
 0x11c   :  { %16290 = vst [vmem:[#allocation53_spill] sm:$0xff] %v10855_v37  ;;  %16293 = vst [vmem:[#allocation55_spill] sm:$0xff] %v10875_v50  ;;  %v15953_v51 = vunpack.i.h.bf16 %v10857_v17  ;;  %v15954_v62 = vunpack.i.l.bf16 %v10857_v17  ;;  %v15955_v59 = vunpack.i.l.bf16 %v10879_v14  ;;  %v16297_v49 = vunpack.i.h.bf16 %v10879_v14  ;;  %v3173_v50 = vld [vmem:[%s15895_s2 + $0x30] sm:$0xff]  ;;  %v3175_v27 = vld [vmem:[%s15895_s2 + $0x40] sm:$0xff] }
 0x11e   :  { %8218 = vrot.lane.b32.xlu1 %v8217_v25, %s9046_s13  ;;  %v10895_v37 = vsel %vm2777_vm2, %v10308_v55, %v15954_v62  ;;  %v10915_v55 = vsel %vm2777_vm2, %v10322_v47, %v15955_v59  ;;  %v8237_v47 = vpack.i.bf16 %v6869_v38, %v6868_v15  ;;  %v8232_v59 = vpack.i.bf16 %v6867_v44, %v6866_v10  ;;  %v6870_v15 = vld [vmem:[%s15893_s0 + $0x1ca] sm:$0xff]  ;;  %v6871_v38 = vld [vmem:[%s15893_s0 + $0x1d2] sm:$0xff] }
 0x11f   :  { %8213 = vrot.lane.b32.xlu0 %v8212_v2, %s9046_s13  ;;  %16294 = vst [vmem:[#allocation56_spill] sm:$0xff] %v10895_v37  ;;  %v10901_v2 = vsel %vm2777_vm2, %v10311_v18, %v15953_v51  ;;  %v10903_v25 = vpop.permute.xlu1 %7938  ;;  %16296 = vst [vmem:[#allocation58_spill] sm:$0xff] %v10915_v55  ;;  %v10921_v18 = vsel %vm2777_vm2, %v10325_v13, %v16297_v49  ;;  %v10925_v62 = vpop.permute.xlu0 %7933  ;;  %v6872_v13 = vld [vmem:[%s15893_s0 + $0x1e2] sm:$0xff]  ;;  %v6873_v49 = vld [vmem:[%s15893_s0 + $0x1ea] sm:$0xff] }
 0x120   :  { %16295 = vst [vmem:[#allocation57_spill] sm:$0xff] %v10901_v2  ;;  %16298 = vst [vmem:[#allocation59_spill] sm:$0xff] %v10921_v18  ;;  %v15956_v45 = vunpack.i.h.bf16 %v10903_v25  ;;  %v15957_v51 = vunpack.i.l.bf16 %v10903_v25  ;;  %v15958_v37 = vunpack.i.l.bf16 %v10925_v62  ;;  %v16302_v10 = vunpack.i.h.bf16 %v10925_v62 }
 0x122   :  { %8228 = vrot.lane.b32.xlu1 %v8227_v57, %s9046_s13  ;;  %v10941_v2 = vsel %vm2777_vm2, %v10360_v5, %v15957_v51  ;;  %v10961_v5 = vsel %vm2777_vm2, %v10366_v41, %v15958_v37  ;;  %v8247_v41 = vpack.i.bf16 %v6873_v49, %v6872_v13  ;;  %v8242_v37 = vpack.i.bf16 %v6871_v38, %v6870_v15  ;;  %v6874_v13 = vld [vmem:[%s15893_s0 + $0x1fa] sm:$0xff]  ;;  %v6875_v49 = vld [vmem:[%s15893_s0 + $0x202] sm:$0xff] }
 0x123   :  { %8223 = vrot.lane.b32.xlu0 %v8222_v52, %s9046_s13  ;;  %16299 = vst [vmem:[#allocation60_spill] sm:$0xff] %v10941_v2  ;;  %v10947_v52 = vsel %vm2777_vm2, %v10363_v31, %v15956_v45  ;;  %v10949_v57 = vpop.permute.xlu1 %7948  ;;  %16301 = vst [vmem:[#allocation62_spill] sm:$0xff] %v10961_v5  ;;  %v10967_v31 = vsel %vm2777_vm2, %v10369_v11, %v16302_v10  ;;  %v10971_v51 = vpop.permute.xlu0 %7943  ;;  %v6876_v11 = vld [vmem:[%s15893_s0 + $0x212] sm:$0xff]  ;;  %v6877_v10 = vld [vmem:[%s15893_s0 + $0x21a] sm:$0xff] }
 0x124   :  { %16300 = vst [vmem:[#allocation61_spill] sm:$0xff] %v10947_v52  ;;  %16303 = vst [vmem:[#allocation63_spill] sm:$0xff] %v10967_v31  ;;  %v15959_v44 = vunpack.i.h.bf16 %v10949_v57  ;;  %v15960_v45 = vunpack.i.l.bf16 %v10949_v57  ;;  %v15961_v2 = vunpack.i.l.bf16 %v10971_v51  ;;  %v16307_v15 = vunpack.i.h.bf16 %v10971_v51 }
 0x126   :  { %8238 = vrot.lane.b32.xlu1 %v8237_v47, %s9046_s13  ;;  %v10987_v52 = vsel %vm2777_vm2, %v10388_v21, %v15960_v45  ;;  %v11007_v21 = vsel %vm2777_vm2, %v10402_v9, %v15961_v2  ;;  %v8257_v9 = vpack.i.bf16 %v6877_v10, %v6876_v11  ;;  %v8252_v2 = vpack.i.bf16 %v6875_v49, %v6874_v13  ;;  %v6878_v11 = vld [vmem:[%s15893_s0 + $0x22a] sm:$0xff]  ;;  %v6879_v10 = vld [vmem:[%s15893_s0 + $0x232] sm:$0xff]  ;;  %v16315_v49 = vld [vmem:[#allocation32_spill] sm:$0xff] }
 0x127   :  { %8233 = vrot.lane.b32.xlu0 %v8232_v59, %s9046_s13  ;;  %16304 = vst [vmem:[#allocation64_spill] sm:$0xff] %v10987_v52  ;;  %v10993_v59 = vsel %vm2777_vm2, %v10391_v23, %v15959_v44  ;;  %v10995_v47 = vpop.permute.xlu1 %7958  ;;  %16306 = vst [vmem:[#allocation66_spill] sm:$0xff] %v11007_v21  ;;  %v16308_v23 = vld [vmem:[#allocation16_spill] sm:$0xff] }
 0x128   :  { %16305 = vst [vmem:[#allocation65_spill] sm:$0xff] %v10993_v59  ;;  %v11013_v38 = vsel %vm2777_vm2, %v16308_v23, %v16307_v15  ;;  %v15962_v44 = vunpack.i.h.bf16 %v10995_v47  ;;  %v15963_v45 = vunpack.i.l.bf16 %v10995_v47  ;;  %v11017_v59 = vpop.permute.xlu0 %7953  ;;  %v6880_v15 = vld [vmem:[%s15893_s0 + $0x242] sm:$0xff]  ;;  %v6881_v23 = vld [vmem:[%s15893_s0 + $0x24a] sm:$0xff] }
 0x129   :  { %16309 = vst [vmem:[#allocation16_spill] sm:$0xff] %v11013_v38  ;;  %v15964_v31 = vunpack.i.l.bf16 %v11017_v59  ;;  %v16313_v13 = vunpack.i.h.bf16 %v11017_v59 }
 0x12a   :  { %8248 = vrot.lane.b32.xlu1 %v8247_v41, %s9046_s13  ;;  %v11033_v52 = vsel %vm2777_vm2, %v10440_v12, %v15963_v45 }
 0x12b   :  { %8243 = vrot.lane.b32.xlu0 %v8242_v37, %s9046_s13  ;;  %16310 = vst [vmem:[#allocation67_spill] sm:$0xff] %v11033_v52  ;;  %v11039_v37 = vsel %vm2777_vm2, %v10443_v32, %v15962_v44  ;;  %v11041_v41 = vpop.permute.xlu1 %7968  ;;  %v11053_v12 = vsel %vm2777_vm2, %v10448_v26, %v15964_v31  ;;  %v11059_v32 = vsel %vm2777_vm2, %v10451_v7, %v16313_v13  ;;  %v6884_v7 = vld [vmem:[%s15893_s0 + $0x272] sm:$0xff]  ;;  %v6885_v13 = vld [vmem:[%s15893_s0 + $0x27a] sm:$0xff] }
 0x12c   :  { %16311 = vst [vmem:[#allocation68_spill] sm:$0xff] %v11039_v37  ;;  %16312 = vst [vmem:[#allocation69_spill] sm:$0xff] %v11053_v12  ;;  %v15965_v44 = vunpack.i.l.bf16 %v11041_v41  ;;  %v11063_v45 = vpop.permute.xlu0 %7963  ;;  %v8267_v26 = vpack.i.bf16 %v6881_v23, %v6880_v15  ;;  %v8262_v31 = vpack.i.bf16 %v6879_v10, %v6878_v11  ;;  %v16318_v15 = vld [vmem:[#allocation31_spill] sm:$0xff]  ;;  %v6883_v10 = vld [vmem:[%s15893_s0 + $0x262] sm:$0xff] }
 0x12d   :  { %16314 = vst [vmem:[#allocation70_spill] sm:$0xff] %v11059_v32  ;;  %v15966_v52 = vunpack.i.l.bf16 %v11063_v45  ;;  %v6882_v11 = vld [vmem:[%s15893_s0 + $0x25a] sm:$0xff]  ;;  %v16322_v32 = vunpack.i.h.bf16 %v11063_v45 }
 0x12e   :  { %8258 = vrot.lane.b32.xlu1 %v8257_v9, %s9046_s13  ;;  %v11079_v37 = vsel %vm2777_vm2, %v16315_v49, %v15965_v44  ;;  %v16317_v9 = vunpack.i.h.bf16 %v11041_v41  ;;  %v16320_v49 = vld [vmem:[#allocation34_spill] sm:$0xff] }
 0x12f   :  { %8253 = vrot.lane.b32.xlu0 %v8252_v2, %s9046_s13  ;;  %16316 = vst [vmem:[#allocation32_spill] sm:$0xff] %v11079_v37  ;;  %v11087_v23 = vpop.permute.xlu1 %7978  ;;  %v11099_v44 = vsel %vm2777_vm2, %v16320_v49, %v15966_v52  ;;  %v8277_v49 = vpack.i.bf16 %v6885_v13, %v6884_v7  ;;  %v8272_v52 = vpack.i.bf16 %v6883_v10, %v6882_v11  ;;  %v6886_v7 = vld [vmem:[%s15893_s0 + $0x28a] sm:$0xff]  ;;  %v6887_v13 = vld [vmem:[%s15893_s0 + $0x292] sm:$0xff] }
 0x130   :  { %v11085_v2 = vsel %vm2777_vm2, %v16318_v15, %v16317_v9  ;;  %16321 = vst [vmem:[#allocation34_spill] sm:$0xff] %v11099_v44  ;;  %v16323_v9 = vld [vmem:[#allocation33_spill] sm:$0xff]  ;;  %v15967_v12 = vunpack.i.h.bf16 %v11087_v23  ;;  %v15968_v38 = vunpack.i.l.bf16 %v11087_v23  ;;  %v11109_v21 = vpop.permute.xlu0 %7973  ;;  %v3177_v37 = vld [vmem:[%s15895_s2 + $0x50] sm:$0xff] }
 0x131   :  { %16319 = vst [vmem:[#allocation31_spill] sm:$0xff] %v11085_v2  ;;  %v11105_v15 = vsel %vm2777_vm2, %v16323_v9, %v16322_v32  ;;  %v15969_v18 = vunpack.i.l.bf16 %v11109_v21  ;;  %v6888_v32 = vld [vmem:[%s15893_s0 + $0x2a2] sm:$0xff]  ;;  %v6889_v9 = vld [vmem:[%s15893_s0 + $0x2aa] sm:$0xff]  ;;  %v16328_v11 = vunpack.i.h.bf16 %v11109_v21 }
 0x132   :  { %16324 = vst [vmem:[#allocation33_spill] sm:$0xff] %v11105_v15  ;;  %8268 = vrot.lane.b32.xlu1 %v8267_v26, %s9046_s13  ;;  %v11125_v5 = vsel %vm2777_vm2, %v10520_v29, %v15968_v38  ;;  %v16330_v10 = vld [vmem:[#allocation17_spill] sm:$0xff] }
 0x133   :  { %8263 = vrot.lane.b32.xlu0 %v8262_v31, %s9046_s13  ;;  %16325 = vst [vmem:[#allocation71_spill] sm:$0xff] %v11125_v5  ;;  %v11131_v31 = vsel %vm2777_vm2, %v10523_v30, %v15967_v12  ;;  %v11133_v26 = vpop.permute.xlu1 %7988  ;;  %v11145_v29 = vsel %vm2777_vm2, %v10526_v43, %v15969_v18  ;;  %v11151_v30 = vsel %vm2777_vm2, %v10529_v1, %v16328_v11  ;;  %v6892_v1 = vld [vmem:[%s15893_s0 + $0x2d2] sm:$0xff]  ;;  %v6893_v11 = vld [vmem:[%s15893_s0 + $0x2da] sm:$0xff] }
 0x134   :  { %16326 = vst [vmem:[#allocation72_spill] sm:$0xff] %v11131_v31  ;;  %16327 = vst [vmem:[#allocation73_spill] sm:$0xff] %v11145_v29  ;;  %v15970_v12 = vunpack.i.l.bf16 %v11133_v26  ;;  %v11155_v38 = vpop.permute.xlu0 %7983  ;;  %v8287_v43 = vpack.i.bf16 %v6889_v9, %v6888_v32  ;;  %v8282_v18 = vpack.i.bf16 %v6887_v13, %v6886_v7  ;;  %v16333_v32 = vld [vmem:[#allocation18_spill] sm:$0xff]  ;;  %v6890_v7 = vld [vmem:[%s15893_s0 + $0x2ba] sm:$0xff] }
 0x135   :  { %16329 = vst [vmem:[#allocation74_spill] sm:$0xff] %v11151_v30  ;;  %v15971_v31 = vunpack.i.l.bf16 %v11155_v38  ;;  %v6891_v13 = vld [vmem:[%s15893_s0 + $0x2c2] sm:$0xff] }
 0x136   :  { %8278 = vrot.lane.b32.xlu1 %v8277_v49, %s9046_s13  ;;  %v11171_v55 = vsel %vm2777_vm2, %v16330_v10, %v15970_v12  ;;  %v16332_v49 = vunpack.i.h.bf16 %v11133_v26  ;;  %v16336_v12 = vunpack.i.h.bf16 %v11155_v38 }
 0x137   :  { %8273 = vrot.lane.b32.xlu0 %v8272_v52, %s9046_s13  ;;  %16331 = vst [vmem:[#allocation17_spill] sm:$0xff] %v11171_v55  ;;  %v11179_v9 = vpop.permute.xlu1 %7998  ;;  %v11191_v10 = vsel %vm2777_vm2, %v10572_v20, %v15971_v31  ;;  %v8297_v20 = vpack.i.bf16 %v6893_v11, %v6892_v1  ;;  %v8292_v31 = vpack.i.bf16 %v6891_v13, %v6890_v7  ;;  %v6894_v1 = vld [vmem:[%s15893_s0 + $0x2ea] sm:$0xff]  ;;  %v6895_v11 = vld [vmem:[%s15893_s0 + $0x2f2] sm:$0xff] }
 0x138   :  { %v11177_v52 = vsel %vm2777_vm2, %v16333_v32, %v16332_v49  ;;  %16335 = vst [vmem:[#allocation75_spill] sm:$0xff] %v11191_v10  ;;  %v11197_v49 = vsel %vm2777_vm2, %v10575_v60, %v16336_v12  ;;  %v15972_v32 = vunpack.i.h.bf16 %v11179_v9  ;;  %v11201_v55 = vpop.permute.xlu0 %7993  ;;  %v6896_v60 = vld [vmem:[%s15893_s0 + $0x302] sm:$0xff]  ;;  %v6897_v12 = vld [vmem:[%s15893_s0 + $0x30a] sm:$0xff] }
 0x139   :  { %16334 = vst [vmem:[#allocation18_spill] sm:$0xff] %v11177_v52  ;;  %16337 = vst [vmem:[#allocation76_spill] sm:$0xff] %v11197_v49  ;;  %v15973_v52 = vunpack.i.l.bf16 %v11179_v9  ;;  %v15974_v30 = vunpack.i.l.bf16 %v11201_v55  ;;  %v16342_v7 = vunpack.i.h.bf16 %v11201_v55  ;;  %v3171_v49 = vld [vmem:[%s15895_s2 + $0x20] sm:$0xff] }
 0x13a   :  { %8288 = vrot.lane.b32.xlu1 %v8287_v43, %s9046_s13 }
 0x13b   :  { %8283 = vrot.lane.b32.xlu0 %v8282_v18, %s9046_s13  ;;  %v11217_v5 = vsel %vm2777_vm2, %v10602_v3, %v15973_v52  ;;  %v11223_v18 = vsel %vm2777_vm2, %v10605_v28, %v15972_v32  ;;  %v11225_v43 = vpop.permute.xlu1 %8008  ;;  %v11237_v3 = vsel %vm2777_vm2, %v10616_v53, %v15974_v30  ;;  %v11243_v28 = vsel %vm2777_vm2, %v10619_v33, %v16342_v7  ;;  %v3167_v52 = vld [vmem:[%s15895_s2] sm:$0xff]  ;;  %v6900_v53 = vld [vmem:[%s15893_s0 + $0x332] sm:$0xff] }
 0x13c   :  { %16338 = vst [vmem:[#allocation77_spill] sm:$0xff] %v11217_v5  ;;  %16339 = vst [vmem:[#allocation78_spill] sm:$0xff] %v11223_v18  ;;  %v11245_v13 = vpop.permute.xlu0 %8003  ;;  %v8307_v32 = vpack.i.bf16 %v6897_v12, %v6896_v60  ;;  %v8302_v18 = vpack.i.bf16 %v6895_v11, %v6894_v1  ;;  %v6901_v33 = vld [vmem:[%s15893_s0 + $0x33a] sm:$0xff]  ;;  %v9047_v1 = vmov 0.0|0.0   ;;  %v3169_v5 = vld [vmem:[%s15895_s2 + $0x10] sm:$0xff] }
 0x13d   :  { %16340 = vst [vmem:[#allocation79_spill] sm:$0xff] %v11225_v43  ;;  %16341 = vst [vmem:[#allocation80_spill] sm:$0xff] %v11237_v3  ;;  %v6898_v12 = vld [vmem:[%s15893_s0 + $0x31a] sm:$0xff]  ;;  %7411 = vmatprep.subr.bf16.mxu0 %v9047_v1  ;;  %7475 = vmatprep.subr.bf16.mxu1 %v9047_v1  ;;  %v8317_v30 = vpack.i.bf16 %v6901_v33, %v6900_v53  ;;  %v6904_v3 = vld [vmem:[%s15893_s0 + $0x48] sm:$0xff] }
 0x13e   :  { %16343 = vst [vmem:[#allocation81_spill] sm:$0xff] %v11243_v28  ;;  %16344 = vst [vmem:[#allocation82_spill] sm:$0xff] %v11245_v13  ;;  %8298 = vrot.lane.b32.xlu1 %v8297_v20, %s9046_s13  ;;  %v3168_v20 = vld [vmem:[%s15895_s2 + $0x8] sm:$0xff]  ;;  %v6903_v33 = vld [vmem:[%s15893_s0 + $0x38] sm:$0xff] }
 0x13f   :  { %8293 = vrot.lane.b32.xlu0 %v8292_v31, %s9046_s13  ;;  %v11261_v60 = vpop.permute.xlu1 %8018  ;;  %v6899_v31 = vld [vmem:[%s15893_s0 + $0x322] sm:$0xff]  ;;  %v7412_v11 = vpack.c.bf16 %v3168_v20, %v3167_v52  ;;  %v6905_v52 = vld [vmem:[%s15893_s0 + $0x50] sm:$0xff] }
 0x140   :  { %16345 = vst [vmem:[#allocation83_spill] sm:$0xff] %v11261_v60  ;;  %v11271_v7 = vpop.permute.xlu0 %8013  ;;  %v8312_v28 = vpack.i.bf16 %v6899_v31, %v6898_v12  ;;  %v8327_v31 = vpack.i.bf16 %v6905_v52, %v6904_v3  ;;  %v6907_v52 = vld [vmem:[%s15893_s0 + $0x68] sm:$0xff] }
 0x141   :  { %16346 = vst [vmem:[#allocation84_spill] sm:$0xff] %v11271_v7  ;;  %7413 = vmatpush1.bf16.msra.mxu0 %v7412_v11  ;;  %7491 = vmatpush1.bf16.msra.mxu1 %v7412_v11  ;;  %v6909_v11 = vld [vmem:[%s15893_s0 + $0x80] sm:$0xff] }
 0x142   :  { %8308 = vrot.lane.b32.xlu1 %v8307_v32, %s9046_s13  ;;  %7414 = vmatprep.subr.bf16.mxu0 %v9047_v1  ;;  %v3170_v32 = vld [vmem:[%s15895_s2 + $0x18] sm:$0xff] }
 0x143   :  { %8303 = vrot.lane.b32.xlu0 %v8302_v18, %s9046_s13  ;;  %v11288_v53 = vpop.permute.xlu1 %8028  ;;  %v6902_v18 = vld [vmem:[%s15893_s0 + $0x30] sm:$0xff]  ;;  %v7415_v20 = vpack.c.bf16 %v3170_v32, %v3169_v5  ;;  %7476 = vmatprep.subr.bf16.mxu1 %v9047_v1  ;;  %v6908_v5 = vld [vmem:[%s15893_s0 + $0x78] sm:$0xff] }
 0x144   :  { %16347 = vst [vmem:[#allocation85_spill] sm:$0xff] %v11288_v53  ;;  %v11296_v12 = vpop.permute.xlu0 %8023  ;;  %v8322_v10 = vpack.i.bf16 %v6903_v33, %v6902_v18  ;;  %v8337_v33 = vpack.i.bf16 %v6909_v11, %v6908_v5  ;;  %v6911_v11 = vld [vmem:[%s15893_s0 + $0x98] sm:$0xff] }
 0x145   :  { %16348 = vst [vmem:[#allocation86_spill] sm:$0xff] %v11296_v12  ;;  %7416 = vmatpush1.bf16.msra.mxu0 %v7415_v20  ;;  %7492 = vmatpush1.bf16.msra.mxu1 %v7415_v20  ;;  %v6913_v20 = vld [vmem:[%s15893_s0 + $0xb0] sm:$0xff] }
 0x146   :  { %8318 = vrot.lane.b32.xlu1 %v8317_v30, %s9046_s13  ;;  %7417 = vmatprep.subr.bf16.mxu0 %v9047_v1  ;;  %v3172_v30 = vld [vmem:[%s15895_s2 + $0x28] sm:$0xff] }
 0x147   :  { %8313 = vrot.lane.b32.xlu0 %v8312_v28, %s9046_s13  ;;  %v11314_v3 = vpop.permute.xlu1 %8038  ;;  %v6906_v28 = vld [vmem:[%s15893_s0 + $0x60] sm:$0xff]  ;;  %v7418_v32 = vpack.c.bf16 %v3172_v30, %v3171_v49  ;;  %7477 = vmatprep.subr.bf16.mxu1 %v9047_v1  ;;  %v6912_v49 = vld [vmem:[%s15893_s0 + $0xa8] sm:$0xff] }
 0x148   :  { %16349 = vst [vmem:[#allocation87_spill] sm:$0xff] %v11314_v3  ;;  %v11322_v18 = vpop.permute.xlu0 %8033  ;;  %v8332_v29 = vpack.i.bf16 %v6907_v52, %v6906_v28  ;;  %v8347_v52 = vpack.i.bf16 %v6913_v20, %v6912_v49  ;;  %v6915_v20 = vld [vmem:[%s15893_s0 + $0xc8] sm:$0xff] }
 0x149   :  { %16350 = vst [vmem:[#allocation88_spill] sm:$0xff] %v11322_v18  ;;  %7419 = vmatpush1.bf16.msra.mxu0 %v7418_v32  ;;  %7493 = vmatpush1.bf16.msra.mxu1 %v7418_v32  ;;  %v6917_v32 = vld [vmem:[%s15893_s0 + $0xe0] sm:$0xff] }
 0x14a   :  { %8328 = vrot.lane.b32.xlu1 %v8327_v31, %s9048_s20  ;;  %7420 = vmatprep.subr.bf16.mxu0 %v9047_v1  ;;  %v3174_v31 = vld [vmem:[%s15895_s2 + $0x38] sm:$0xff] }
 0x14b   :  { %8323 = vrot.lane.b32.xlu0 %v8322_v10, %s9048_s20  ;;  %v11340_v5 = vpop.permute.xlu1 %8048  ;;  %v6910_v10 = vld [vmem:[%s15893_s0 + $0x90] sm:$0xff]  ;;  %v7421_v30 = vpack.c.bf16 %v3174_v31, %v3173_v50  ;;  %7478 = vmatprep.subr.bf16.mxu1 %v9047_v1  ;;  %v6916_v50 = vld [vmem:[%s15893_s0 + $0xd8] sm:$0xff] }
 0x14c   :  { %v11348_v28 = vpop.permute.xlu0 %8043  ;;  %v8342_v2 = vpack.i.bf16 %v6911_v11, %v6910_v10  ;;  %v8357_v11 = vpack.i.bf16 %v6917_v32, %v6916_v50  ;;  %v6919_v32 = vld [vmem:[%s15893_s0 + $0xf8] sm:$0xff] }
 0x14d   :  { %16351 = vst [vmem:[#allocation89_spill] sm:$0xff] %v11348_v28  ;;  %7422 = vmatpush1.bf16.msra.mxu0 %v7421_v30  ;;  %7494 = vmatpush1.bf16.msra.mxu1 %v7421_v30  ;;  %v6921_v30 = vld [vmem:[%s15893_s0 + $0x110] sm:$0xff] }
 0x14e   :  { %8338 = vrot.lane.b32.xlu1 %v8337_v33, %s9048_s20  ;;  %7423 = vmatprep.subr.bf16.mxu0 %v9047_v1  ;;  %v3176_v33 = vld [vmem:[%s15895_s2 + $0x48] sm:$0xff] }
 0x14f   :  { %8333 = vrot.lane.b32.xlu0 %v8332_v29, %s9048_s20  ;;  %v11366_v49 = vpop.permute.xlu1 %8058  ;;  %v6914_v29 = vld [vmem:[%s15893_s0 + $0xc0] sm:$0xff]  ;;  %v7424_v31 = vpack.c.bf16 %v3176_v33, %v3175_v27  ;;  %7479 = vmatprep.subr.bf16.mxu1 %v9047_v1  ;;  %v6920_v27 = vld [vmem:[%s15893_s0 + $0x108] sm:$0xff] }
 0x150   :  { %v11374_v10 = vpop.permute.xlu0 %8053  ;;  %v8352_v15 = vpack.i.bf16 %v6915_v20, %v6914_v29  ;;  %v8367_v20 = vpack.i.bf16 %v6921_v30, %v6920_v27  ;;  %v6923_v30 = vld [vmem:[%s15893_s0 + $0x128] sm:$0xff] }
 0x151   :  { %7425 = vmatpush1.bf16.msra.mxu0 %v7424_v31  ;;  %7495 = vmatpush1.bf16.msra.mxu1 %v7424_v31  ;;  %v6925_v31 = vld [vmem:[%s15893_s0 + $0x140] sm:$0xff] }
 0x152   :  { %8348 = vrot.lane.b32.xlu1 %v8347_v52, %s9048_s20  ;;  %7426 = vmatprep.subr.bf16.mxu0 %v9047_v1  ;;  %v3178_v52 = vld [vmem:[%s15895_s2 + $0x58] sm:$0xff] }
 0x153   :  { %8343 = vrot.lane.b32.xlu0 %v8342_v2, %s9048_s20  ;;  %v11392_v50 = vpop.permute.xlu1 %8068  ;;  %v6918_v2 = vld [vmem:[%s15893_s0 + $0xf0] sm:$0xff]  ;;  %v7427_v33 = vpack.c.bf16 %v3178_v52, %v3177_v37  ;;  %7480 = vmatprep.subr.bf16.mxu1 %v9047_v1  ;;  %v6924_v37 = vld [vmem:[%s15893_s0 + $0x138] sm:$0xff] }
 0x154   :  { %v11400_v29 = vpop.permute.xlu0 %8063  ;;  %v8362_v44 = vpack.i.bf16 %v6919_v32, %v6918_v2  ;;  %v8377_v32 = vpack.i.bf16 %v6925_v31, %v6924_v37  ;;  %v6927_v31 = vld [vmem:[%s15893_s0 + $0x158] sm:$0xff] }
 0x155   :  { %7428 = vmatpush1.bf16.msra.mxu0 %v7427_v33  ;;  %7496 = vmatpush1.bf16.msra.mxu1 %v7427_v33  ;;  %v6929_v33 = vld [vmem:[%s15893_s0 + $0x170] sm:$0xff] }
 0x156   :  { %8358 = vrot.lane.b32.xlu1 %v8357_v11, %s9048_s20  ;;  %7429 = vmatprep.subr.bf16.mxu0 %v9047_v1  ;;  %v3180_v11 = vld [vmem:[%s15895_s2 + $0x68] sm:$0xff] }
 0x157   :  { %8353 = vrot.lane.b32.xlu0 %v8352_v15, %s9048_s20  ;;  %v11418_v27 = vpop.permute.xlu1 %8078  ;;  %v6922_v15 = vld [vmem:[%s15893_s0 + $0x120] sm:$0xff]  ;;  %v7430_v52 = vpack.c.bf16 %v3180_v11, %v3179_v58  ;;  %7481 = vmatprep.subr.bf16.mxu1 %v9047_v1  ;;  %v6928_v58 = vld [vmem:[%s15893_s0 + $0x168] sm:$0xff] }
 0x158   :  { %v11426_v2 = vpop.permute.xlu0 %8073  ;;  %v8372_v54 = vpack.i.bf16 %v6923_v30, %v6922_v15  ;;  %v8387_v30 = vpack.i.bf16 %v6929_v33, %v6928_v58  ;;  %v6931_v33 = vld [vmem:[%s15893_s0 + $0x188] sm:$0xff] }
 0x159   :  { %7431 = vmatpush1.bf16.msra.mxu0 %v7430_v52  ;;  %7497 = vmatpush1.bf16.msra.mxu1 %v7430_v52  ;;  %v6933_v52 = vld [vmem:[%s15893_s0 + $0x1a0] sm:$0xff] }
 0x15a   :  { %8368 = vrot.lane.b32.xlu1 %v8367_v20, %s9048_s20  ;;  %7432 = vmatprep.subr.bf16.mxu0 %v9047_v1  ;;  %v3182_v20 = vld [vmem:[%s15895_s2 + $0x78] sm:$0xff] }
 0x15b   :  { %8363 = vrot.lane.b32.xlu0 %v8362_v44, %s9048_s20  ;;  %v11444_v37 = vpop.permute.xlu1 %8088  ;;  %v6926_v44 = vld [vmem:[%s15893_s0 + $0x150] sm:$0xff]  ;;  %v7433_v11 = vpack.c.bf16 %v3182_v20, %v3181_v8  ;;  %7482 = vmatprep.subr.bf16.mxu1 %v9047_v1  ;;  %v6932_v8 = vld [vmem:[%s15893_s0 + $0x198] sm:$0xff] }
 0x15c   :  { %v11452_v15 = vpop.permute.xlu0 %8083  ;;  %v8382_v36 = vpack.i.bf16 %v6927_v31, %v6926_v44  ;;  %v8397_v31 = vpack.i.bf16 %v6933_v52, %v6932_v8  ;;  %v6935_v52 = vld [vmem:[%s15893_s0 + $0x1e8] sm:$0xff] }
 0x15d   :  { %7434 = vmatpush1.bf16.msra.mxu0 %v7433_v11  ;;  %7498 = vmatpush1.bf16.msra.mxu1 %v7433_v11  ;;  %v6937_v11 = vld [vmem:[%s15893_s0 + $0x200] sm:$0xff] }
 0x15e   :  { %8378 = vrot.lane.b32.xlu1 %v8377_v32, %s9048_s20  ;;  %7435 = vmatprep.subr.bf16.mxu0 %v9047_v1  ;;  %v3184_v32 = vld [vmem:[%s15895_s2 + $0x88] sm:$0xff] }
 0x15f   :  { %8373 = vrot.lane.b32.xlu0 %v8372_v54, %s9048_s20  ;;  %v11470_v58 = vpop.permute.xlu1 %8098  ;;  %v6930_v54 = vld [vmem:[%s15893_s0 + $0x180] sm:$0xff]  ;;  %v7436_v20 = vpack.c.bf16 %v3184_v32, %v3183_v40  ;;  %7483 = vmatprep.subr.bf16.mxu1 %v9047_v1  ;;  %v6936_v40 = vld [vmem:[%s15893_s0 + $0x1f8] sm:$0xff] }
 0x160   :  { %v11478_v44 = vpop.permute.xlu0 %8093  ;;  %v8392_v3 = vpack.i.bf16 %v6931_v33, %v6930_v54  ;;  %v8407_v33 = vpack.i.bf16 %v6937_v11, %v6936_v40  ;;  %v6939_v11 = vld [vmem:[%s15893_s0 + $0x218] sm:$0xff] }
 0x161   :  { %7437 = vmatpush1.bf16.msra.mxu0 %v7436_v20  ;;  %7499 = vmatpush1.bf16.msra.mxu1 %v7436_v20  ;;  %v6941_v20 = vld [vmem:[%s15893_s0 + $0x230] sm:$0xff] }
 0x162   :  { %8388 = vrot.lane.b32.xlu1 %v8387_v30, %s9048_s20  ;;  %7438 = vmatprep.subr.bf16.mxu0 %v9047_v1  ;;  %v3186_v30 = vld [vmem:[%s15895_s2 + $0x98] sm:$0xff] }
 0x163   :  { %8383 = vrot.lane.b32.xlu0 %v8382_v36, %s9048_s20  ;;  %v11496_v8 = vpop.permute.xlu1 %8108  ;;  %v6934_v36 = vld [vmem:[%s15893_s0 + $0x1e0] sm:$0xff]  ;;  %v7439_v32 = vpack.c.bf16 %v3186_v30, %v3185_v16  ;;  %7484 = vmatprep.subr.bf16.mxu1 %v9047_v1  ;;  %v6940_v16 = vld [vmem:[%s15893_s0 + $0x228] sm:$0xff] }
 0x164   :  { %v11504_v54 = vpop.permute.xlu0 %8103  ;;  %v8402_v18 = vpack.i.bf16 %v6935_v52, %v6934_v36  ;;  %v8417_v52 = vpack.i.bf16 %v6941_v20, %v6940_v16  ;;  %v6943_v20 = vld [vmem:[%s15893_s0 + $0x248] sm:$0xff] }
 0x165   :  { %7440 = vmatpush1.bf16.msra.mxu0 %v7439_v32  ;;  %7500 = vmatpush1.bf16.msra.mxu1 %v7439_v32  ;;  %v6945_v32 = vld [vmem:[%s15893_s0 + $0x260] sm:$0xff] }
 0x166   :  { %8398 = vrot.lane.b32.xlu1 %v8397_v31, %s9048_s20  ;;  %7441 = vmatprep.subr.bf16.mxu0 %v9047_v1  ;;  %v3188_v31 = vld [vmem:[%s15895_s2 + $0xa8] sm:$0xff] }
 0x167   :  { %8393 = vrot.lane.b32.xlu0 %v8392_v3, %s9048_s20  ;;  %v6938_v3 = vld [vmem:[%s15893_s0 + $0x210] sm:$0xff]  ;;  %v7442_v30 = vpack.c.bf16 %v3188_v31, %v3187_v24  ;;  %7485 = vmatprep.subr.bf16.mxu1 %v9047_v1  ;;  %v6944_v24 = vld [vmem:[%s15893_s0 + $0x258] sm:$0xff] }
 0x168   :  { %v11522_v40 = vpop.permute.xlu1 %8118  ;;  %v8412_v53 = vpack.i.bf16 %v6939_v11, %v6938_v3  ;;  %v8427_v11 = vpack.i.bf16 %v6945_v32, %v6944_v24  ;;  %v6947_v32 = vld [vmem:[%s15893_s0 + $0x278] sm:$0xff] }
 0x169   :  { %v11530_v36 = vpop.permute.xlu0 %8113  ;;  %7443 = vmatpush1.bf16.msra.mxu0 %v7442_v30  ;;  %7501 = vmatpush1.bf16.msra.mxu1 %v7442_v30  ;;  %v6949_v30 = vld [vmem:[%s15893_s0 + $0x290] sm:$0xff] }
 0x16a   :  { %8408 = vrot.lane.b32.xlu1 %v8407_v33, %s9048_s20  ;;  %7444 = vmatprep.subr.bf16.mxu0 %v9047_v1  ;;  %v3190_v33 = vld [vmem:[%s15895_s2 + $0xb8] sm:$0xff] }
 0x16b   :  { %8403 = vrot.lane.b32.xlu0 %v8402_v18, %s9048_s20  ;;  %v6942_v18 = vld [vmem:[%s15893_s0 + $0x240] sm:$0xff]  ;;  %v7445_v31 = vpack.c.bf16 %v3190_v33, %v3189_v35  ;;  %7486 = vmatprep.subr.bf16.mxu1 %v9047_v1  ;;  %v6948_v35 = vld [vmem:[%s15893_s0 + $0x288] sm:$0xff] }
 0x16c   :  { %v11548_v16 = vpop.permute.xlu1 %8128  ;;  %v8422_v12 = vpack.i.bf16 %v6943_v20, %v6942_v18  ;;  %v8437_v20 = vpack.i.bf16 %v6949_v30, %v6948_v35  ;;  %v6951_v30 = vld [vmem:[%s15893_s0 + $0x2a8] sm:$0xff] }
 0x16d   :  { %v11556_v3 = vpop.permute.xlu0 %8123  ;;  %7446 = vmatpush1.bf16.msra.mxu0 %v7445_v31  ;;  %7502 = vmatpush1.bf16.msra.mxu1 %v7445_v31  ;;  %v6953_v31 = vld [vmem:[%s15893_s0 + $0x2c0] sm:$0xff] }
 0x16e   :  { %8418 = vrot.lane.b32.xlu1 %v8417_v52, %s9048_s20  ;;  %7447 = vmatprep.subr.bf16.mxu0 %v9047_v1  ;;  %v3192_v52 = vld [vmem:[%s15895_s2 + $0xc8] sm:$0xff] }
 0x16f   :  { %8413 = vrot.lane.b32.xlu0 %v8412_v53, %s9048_s20  ;;  %v6946_v53 = vld [vmem:[%s15893_s0 + $0x270] sm:$0xff]  ;;  %v7448_v33 = vpack.c.bf16 %v3192_v52, %v3191_v61  ;;  %7487 = vmatprep.subr.bf16.mxu1 %v9047_v1  ;;  %v6952_v61 = vld [vmem:[%s15893_s0 + $0x2b8] sm:$0xff] }
 0x170   :  { %v11574_v24 = vpop.permute.xlu1 %8138  ;;  %v8432_v60 = vpack.i.bf16 %v6947_v32, %v6946_v53  ;;  %v8447_v32 = vpack.i.bf16 %v6953_v31, %v6952_v61  ;;  %v6955_v31 = vld [vmem:[%s15893_s0 + $0x2d8] sm:$0xff] }
 0x171   :  { %v11582_v18 = vpop.permute.xlu0 %8133  ;;  %7449 = vmatpush1.bf16.msra.mxu0 %v7448_v33  ;;  %7503 = vmatpush1.bf16.msra.mxu1 %v7448_v33  ;;  %v6957_v33 = vld [vmem:[%s15893_s0 + $0x2f0] sm:$0xff] }
 0x172   :  { %8428 = vrot.lane.b32.xlu1 %v8427_v11, %s9048_s20  ;;  %7450 = vmatprep.subr.bf16.mxu0 %v9047_v1  ;;  %v3194_v11 = vld [vmem:[%s15895_s2 + $0xd8] sm:$0xff] }
 0x173   :  { %8423 = vrot.lane.b32.xlu0 %v8422_v12, %s9048_s20  ;;  %v6950_v12 = vld [vmem:[%s15893_s0 + $0x2a0] sm:$0xff]  ;;  %v7451_v52 = vpack.c.bf16 %v3194_v11, %v3193_v4  ;;  %7488 = vmatprep.subr.bf16.mxu1 %v9047_v1  ;;  %v6956_v4 = vld [vmem:[%s15893_s0 + $0x2e8] sm:$0xff] }
 0x174   :  { %v11600_v35 = vpop.permute.xlu1 %8148  ;;  %v8442_v7 = vpack.i.bf16 %v6951_v30, %v6950_v12  ;;  %v8457_v30 = vpack.i.bf16 %v6957_v33, %v6956_v4  ;;  %v6959_v33 = vld [vmem:[%s15893_s0 + $0x308] sm:$0xff] }
 0x175   :  { %v11608_v53 = vpop.permute.xlu0 %8143  ;;  %7452 = vmatpush1.bf16.msra.mxu0 %v7451_v52  ;;  %7504 = vmatpush1.bf16.msra.mxu1 %v7451_v52  ;;  %v6961_v52 = vld [vmem:[%s15893_s0 + $0x320] sm:$0xff] }
 0x176   :  { %8438 = vrot.lane.b32.xlu1 %v8437_v20, %s9048_s20  ;;  %7453 = vmatprep.subr.bf16.mxu0 %v9047_v1  ;;  %v3196_v20 = vld [vmem:[%s15895_s2 + $0xe8] sm:$0xff] }
 0x177   :  { %8433 = vrot.lane.b32.xlu0 %v8432_v60, %s9048_s20  ;;  %v6954_v60 = vld [vmem:[%s15893_s0 + $0x2d0] sm:$0xff]  ;;  %v7454_v11 = vpack.c.bf16 %v3196_v20, %v3195_v39  ;;  %7489 = vmatprep.subr.bf16.mxu1 %v9047_v1  ;;  %v6960_v39 = vld [vmem:[%s15893_s0 + $0x318] sm:$0xff] }
 0x178   :  { %v11626_v61 = vpop.permute.xlu1 %8158  ;;  %v8452_v43 = vpack.i.bf16 %v6955_v31, %v6954_v60  ;;  %v8467_v31 = vpack.i.bf16 %v6961_v52, %v6960_v39 }
 0x179   :  { %v11634_v12 = vpop.permute.xlu0 %8153  ;;  %7455 = vmatpush1.bf16.msra.mxu0 %v7454_v11  ;;  %7505 = vmatpush1.bf16.msra.mxu1 %v7454_v11 }
 0x17a   :  { %8448 = vrot.lane.b32.xlu1 %v8447_v32, %s9048_s20  ;;  %7456 = vmatprep.subr.bf16.mxu0 %v9047_v1  ;;  %v3198_v32 = vld [vmem:[%s15895_s2 + $0xf8] sm:$0xff] }
 0x17b   :  { %8443 = vrot.lane.b32.xlu0 %v8442_v7, %s9048_s20  ;;  %v6958_v7 = vld [vmem:[%s15893_s0 + $0x300] sm:$0xff]  ;;  %v7457_v20 = vpack.c.bf16 %v3198_v32, %v3197_v56  ;;  %7490 = vmatprep.subr.bf16.mxu1 %v9047_v1  ;;  %v6965_v56 = vld [vmem:[%s15893_s0 + $0x350] sm:$0xff] }
 0x17c   :  { %v11652_v4 = vpop.permute.xlu1 %8168  ;;  %v6962_v1 = vld [vmem:[%s15893_s0 + $0x330] sm:$0xff]  ;;  %v8477_v39 = vpack.i.bf16 %v6965_v56, %v6964_v0 }
 0x17d   :  { %16352 = vst [vmem:[#allocation90_spill] sm:$0xff] %v11652_v4  ;;  %v11660_v60 = vpop.permute.xlu0 %8163  ;;  %7458 = vmatpush1.bf16.msra.mxu0 %v7457_v20  ;;  %v8462_v4 = vpack.i.bf16 %v6959_v33, %v6958_v7  ;;  %7506 = vmatpush1.bf16.msra.mxu1 %v7457_v20  ;;  %v6967_v33 = vld [vmem:[%s15893_s0 + $0x39] sm:$0xff]  ;;  %v6966_v0 = vld [vmem:[%s15893_s0 + $0x31] sm:$0xff] }
 0x17e   :  { %16353 = vst [vmem:[#allocation91_spill] sm:$0xff] %v11660_v60  ;;  %8458 = vrot.lane.b32.xlu1 %v8457_v30, %s9048_s20  ;;  %v6963_v30 = vld [vmem:[%s15893_s0 + $0x338] sm:$0xff]  ;;  %v8060_v60 = vunpack.i.l.bf16 %v11366_v49 }
 0x17f   :  { %8453 = vrot.lane.b32.xlu0 %v8452_v43, %s9048_s20  ;;  %v8472_v52 = vpack.i.bf16 %v6963_v30, %v6962_v1  ;;  %v8046_v1 = vunpack.i.h.bf16 %v11348_v28  ;;  %v6969_v30 = vld [vmem:[%s15893_s0 + $0x51] sm:$0xff] }
 0x180   :  { %v11671_v11 = vpop.permute.xlu1 %8178 }
 0x181   :  { %16354 = vst [vmem:[#allocation92_spill] sm:$0xff] %v11671_v11  ;;  %v11679_v43 = vpop.permute.xlu0 %8173 }
 0x182   :  { %16355 = vst [vmem:[#allocation93_spill] sm:$0xff] %v11679_v43  ;;  %8468 = vrot.lane.b32.xlu1 %v8467_v31, %s9048_s20  ;;  %v8050_v31 = vunpack.i.l.bf16 %v11340_v5  ;;  %v8061_v43 = vunpack.i.h.bf16 %v11366_v49  ;;  %v8071_v49 = vunpack.i.h.bf16 %v11392_v50 }
 0x183   :  { %8463 = vrot.lane.b32.xlu0 %v8462_v4, %s9048_s20  ;;  %v8051_v4 = vunpack.i.h.bf16 %v11340_v5  ;;  %v16360_v5 = vunpack.i.l.bf16 %v10685_v19 }
 0x184   :  { %v11683_v32 = vpop.permute.xlu1 %8188 }
 0x185   :  { %16356 = vst [vmem:[#allocation94_spill] sm:$0xff] %v11683_v32  ;;  %v11685_v7 = vpop.permute.xlu0 %8183  ;;  %v2861_v28 = vsel %vm2842_vm3, %v16360_v5, %v8050_v31 }
 0x186   :  { %16357 = vst [vmem:[#allocation95_spill] sm:$0xff] %v11685_v7  ;;  %8478 = vrot.lane.b32.xlu1 %v8477_v39, %s9048_s20  ;;  %v16363_v7 = vunpack.i.h.bf16 %v10695_v22 }
 0x187   :  { %8473 = vrot.lane.b32.xlu0 %v8472_v52, %s9048_s20  ;;  %v6968_v52 = vld [vmem:[%s15893_s0 + $0x49] sm:$0xff] }
 0x188   :  { %v11692_v20 = vpop.permute.xlu1 %8198  ;;  %v2860_v11 = vsel %vm2842_vm3, %v16363_v7, %v8046_v1  ;;  %v8070_v1 = vunpack.i.l.bf16 %v11392_v50  ;;  %v16367_v50 = vunpack.i.h.bf16 %v10719_v6 }
 0x189   :  { %16358 = vst [vmem:[#allocation96_spill] sm:$0xff] %v11692_v20  ;;  %v11699_v56 = vpop.permute.xlu0 %8193  ;;  %v16361_v20 = vunpack.i.h.bf16 %v10685_v19  ;;  %v8056_v19 = vunpack.i.h.bf16 %v11374_v10 }
 0x18a   :  { %16359 = vst [vmem:[#allocation97_spill] sm:$0xff] %v11699_v56  ;;  %2201 = vrot.lane.b32.xlu1 %v6967_v33, %s9049_s21 }
 0x18b   :  { %2199 = vrot.lane.b32.xlu0 %v6966_v0, %s9049_s21  ;;  %v2862_v33 = vsel %vm2842_vm3, %v16361_v20, %v8051_v4  ;;  %v8055_v20 = vunpack.i.l.bf16 %v11374_v10  ;;  %v6971_v4 = vld [vmem:[%s15893_s0 + $0x69] sm:$0xff]  ;;  %v6970_v10 = vld [vmem:[%s15893_s0 + $0x61] sm:$0xff] }
 0x18c   :  { %v8209_v39 = vpop.permute.xlu1 %8208 }
 0x18d   :  { %v8211_v0 = vunpack.i.h.bf16 %v8209_v39  ;;  %v8210_v56 = vunpack.i.l.bf16 %v8209_v39  ;;  %v11716_v32 = vpop.permute.xlu0 %8203 }
 0x18e   :  { %16362 = vst [vmem:[#allocation98_spill] sm:$0xff] %v11716_v32  ;;  %v8206_v13 = vunpack.i.h.bf16 %v11716_v32  ;;  %2205 = vrot.lane.b32.xlu1 %v6969_v30, %s9049_s21  ;;  %v2866_v32 = vsel %vm2842_vm3, %v16367_v50, %v8061_v43 }
 0x18f   :  { %2203 = vrot.lane.b32.xlu0 %v6968_v52, %s9049_s21  ;;  %v11732_v7 = vsel %vm2907_vm4, %v2861_v28, %v8210_v56  ;;  %v11735_v31 = vsel %vm2907_vm4, %v2862_v33, %v8211_v0  ;;  %v8066_v52 = vunpack.i.h.bf16 %v11400_v29  ;;  %v8065_v28 = vunpack.i.l.bf16 %v11400_v29 }
 0x190   :  { %16364 = vst [vmem:[#allocation99_spill] sm:$0xff] %v11732_v7  ;;  %16365 = vst [vmem:[#allocation100_spill] sm:$0xff] %v11735_v31  ;;  %v8219_v30 = vpop.permute.xlu1 %8218  ;;  %v11743_v39 = vsel %vm2907_vm4, %v2860_v11, %v8206_v13  ;;  %v16366_v0 = vunpack.i.l.bf16 %v10719_v6  ;;  %v16368_v13 = vunpack.i.l.bf16 %v10741_v63  ;;  %v16369_v29 = vunpack.i.h.bf16 %v10741_v63  ;;  %v6973_v6 = vld [vmem:[%s15893_s0 + $0x81] sm:$0xff] }
 0x191   :  { %v8221_v56 = vunpack.i.h.bf16 %v8219_v30  ;;  %v8220_v5 = vunpack.i.l.bf16 %v8219_v30  ;;  %v8214_v33 = vpop.permute.xlu0 %8213  ;;  %v16371_v63 = vunpack.i.h.bf16 %v10765_v34 }
 0x192   :  { %v2865_v22 = vsel %vm2842_vm3, %v16366_v0, %v8060_v60  ;;  %v8216_v31 = vunpack.i.h.bf16 %v8214_v33  ;;  %v8215_v7 = vunpack.i.l.bf16 %v8214_v33  ;;  %2209 = vrot.lane.b32.xlu1 %v6971_v4, %s9049_s21  ;;  %v2863_v11 = vsel %vm2842_vm3, %v16368_v13, %v8055_v20 }
 0x193   :  { %v2864_v30 = vsel %vm2842_vm3, %v16369_v29, %v8056_v19  ;;  %2207 = vrot.lane.b32.xlu0 %v6970_v10, %s9049_s21  ;;  %v11765_v60 = vsel %vm2907_vm4, %v2865_v22, %v8220_v5  ;;  %v11768_v43 = vsel %vm2907_vm4, %v2866_v32, %v8221_v56  ;;  %v16370_v4 = vunpack.i.l.bf16 %v10765_v34  ;;  %v6972_v10 = vld [vmem:[%s15893_s0 + $0x79] sm:$0xff] }
 0x194   :  { %v2870_v19 = vsel %vm2842_vm3, %v16371_v63, %v8071_v49  ;;  %v8229_v33 = vpop.permute.xlu1 %8228  ;;  %v11780_v0 = vsel %vm2907_vm4, %v2863_v11, %v8215_v7  ;;  %v11783_v22 = vsel %vm2907_vm4, %v2864_v30, %v8216_v31  ;;  %v16372_v32 = vunpack.i.l.bf16 %v10787_v42 }
 0x195   :  { %v2869_v20 = vsel %vm2842_vm3, %v16370_v4, %v8070_v1  ;;  %v16373_v1 = vunpack.i.h.bf16 %v10787_v42  ;;  %v8231_v49 = vunpack.i.h.bf16 %v8229_v33  ;;  %v8230_v5 = vunpack.i.l.bf16 %v8229_v33  ;;  %v8224_v50 = vpop.permute.xlu0 %8223  ;;  %v6975_v42 = vld [vmem:[%s15893_s0 + $0x99] sm:$0xff] }
 0x196   :  { %v2867_v56 = vsel %vm2842_vm3, %v16372_v32, %v8065_v28  ;;  %v8081_v13 = vunpack.i.h.bf16 %v11418_v27  ;;  %v8080_v29 = vunpack.i.l.bf16 %v11418_v27  ;;  %v8226_v7 = vunpack.i.h.bf16 %v8224_v50  ;;  %2213 = vrot.lane.b32.xlu1 %v6973_v6, %s9049_s21 }
 0x197   :  { %v2868_v34 = vsel %vm2842_vm3, %v16373_v1, %v8066_v52  ;;  %v8225_v11 = vunpack.i.l.bf16 %v8224_v50  ;;  %v8076_v31 = vunpack.i.h.bf16 %v11426_v2  ;;  %v8075_v30 = vunpack.i.l.bf16 %v11426_v2  ;;  %2211 = vrot.lane.b32.xlu0 %v6972_v10, %s9049_s21  ;;  %v6974_v2 = vld [vmem:[%s15893_s0 + $0x91] sm:$0xff] }
 0x198   :  { %v11801_v52 = vsel %vm2907_vm4, %v2869_v20, %v8230_v5  ;;  %v11804_v28 = vsel %vm2907_vm4, %v2870_v19, %v8231_v49  ;;  %v8091_v27 = vunpack.i.h.bf16 %v11444_v37  ;;  %v8090_v6 = vunpack.i.l.bf16 %v11444_v37  ;;  %v8239_v4 = vpop.permute.xlu1 %8238 }
 0x199   :  { %v11812_v63 = vsel %vm2907_vm4, %v2867_v56, %v8225_v11  ;;  %v11815_v33 = vsel %vm2907_vm4, %v2868_v34, %v8226_v7  ;;  %v8086_v20 = vunpack.i.h.bf16 %v11452_v15  ;;  %v8085_v19 = vunpack.i.l.bf16 %v11452_v15  ;;  %v8234_v1 = vpop.permute.xlu0 %8233 }
 0x19a   :  { %v8241_v10 = vunpack.i.h.bf16 %v8239_v4  ;;  %v8240_v32 = vunpack.i.l.bf16 %v8239_v4  ;;  %v16374_v37 = vunpack.i.l.bf16 %v10811_v46  ;;  %v16375_v5 = vunpack.i.h.bf16 %v10811_v46  ;;  %2217 = vrot.lane.b32.xlu1 %v6975_v42, %s9049_s21  ;;  %v6977_v46 = vld [vmem:[%s15893_s0 + $0xb1] sm:$0xff] }
 0x19b   :  { %v8236_v56 = vunpack.i.h.bf16 %v8234_v1  ;;  %v8235_v11 = vunpack.i.l.bf16 %v8234_v1  ;;  %v16376_v34 = vunpack.i.l.bf16 %v10833_v48  ;;  %v16377_v15 = vunpack.i.h.bf16 %v10833_v48  ;;  %2215 = vrot.lane.b32.xlu0 %v6974_v2, %s9049_s21  ;;  %v6976_v2 = vld [vmem:[%s15893_s0 + $0xa9] sm:$0xff] }
 0x19c   :  { %v2873_v49 = vsel %vm2842_vm3, %v16374_v37, %v8080_v29  ;;  %v2874_v50 = vsel %vm2842_vm3, %v16375_v5, %v8081_v13  ;;  %v16378_v42 = vunpack.i.l.bf16 %v10857_v17  ;;  %v16379_v48 = vunpack.i.h.bf16 %v10857_v17  ;;  %v8249_v1 = vpop.permute.xlu1 %8248 }
 0x19d   :  { %v2871_v7 = vsel %vm2842_vm3, %v16376_v34, %v8075_v30  ;;  %v2872_v4 = vsel %vm2842_vm3, %v16377_v15, %v8076_v31  ;;  %v11837_v13 = vsel %vm2907_vm4, %v2873_v49, %v8240_v32  ;;  %v11840_v29 = vsel %vm2907_vm4, %v2874_v50, %v8241_v10  ;;  %v8244_v50 = vpop.permute.xlu0 %8243 }
 0x19e   :  { %v2877_v30 = vsel %vm2842_vm3, %v16378_v42, %v8090_v6  ;;  %v2878_v31 = vsel %vm2842_vm3, %v16379_v48, %v8091_v27  ;;  %v11852_v37 = vsel %vm2907_vm4, %v2871_v7, %v8235_v11  ;;  %v11855_v32 = vsel %vm2907_vm4, %v2872_v4, %v8236_v56  ;;  %2221 = vrot.lane.b32.xlu1 %v6977_v46, %s9049_s21 }
 0x19f   :  { %v16380_v10 = vunpack.i.l.bf16 %v10879_v14  ;;  %v16381_v6 = vunpack.i.h.bf16 %v10879_v14  ;;  %v8251_v27 = vunpack.i.h.bf16 %v8249_v1  ;;  %v8250_v5 = vunpack.i.l.bf16 %v8249_v1  ;;  %2219 = vrot.lane.b32.xlu0 %v6976_v2, %s9049_s21  ;;  %v6979_v14 = vld [vmem:[%s15893_s0 + $0xc9] sm:$0xff] }
 0x1a0   :  { %v8101_v34 = vunpack.i.h.bf16 %v11470_v58  ;;  %v8100_v15 = vunpack.i.l.bf16 %v11470_v58  ;;  %v8246_v11 = vunpack.i.h.bf16 %v8244_v50  ;;  %v8245_v7 = vunpack.i.l.bf16 %v8244_v50  ;;  %v8259_v42 = vpop.permute.xlu1 %8258 }
 0x1a1   :  { %v2875_v49 = vsel %vm2842_vm3, %v16380_v10, %v8085_v19  ;;  %v2876_v17 = vsel %vm2842_vm3, %v16381_v6, %v8086_v20  ;;  %v8096_v56 = vunpack.i.h.bf16 %v11478_v44  ;;  %v8095_v4 = vunpack.i.l.bf16 %v11478_v44  ;;  %v6978_v44 = vld [vmem:[%s15893_s0 + $0xc1] sm:$0xff]  ;;  %v8254_v6 = vpop.permute.xlu0 %8253 }
 0x1a2   :  { %v11873_v20 = vsel %vm2907_vm4, %v2877_v30, %v8250_v5  ;;  %v11876_v19 = vsel %vm2907_vm4, %v2878_v31, %v8251_v27  ;;  %v8111_v58 = vunpack.i.h.bf16 %v11496_v8  ;;  %v8110_v46 = vunpack.i.l.bf16 %v11496_v8  ;;  %2225 = vrot.lane.b32.xlu1 %v6979_v14, %s9049_s21 }
 0x1a3   :  { %v11884_v48 = vsel %vm2907_vm4, %v2875_v49, %v8245_v7  ;;  %v11887_v1 = vsel %vm2907_vm4, %v2876_v17, %v8246_v11  ;;  %v8106_v30 = vunpack.i.h.bf16 %v11504_v54  ;;  %v8105_v31 = vunpack.i.l.bf16 %v11504_v54  ;;  %2223 = vrot.lane.b32.xlu0 %v6978_v44, %s9049_s21  ;;  %v6980_v44 = vld [vmem:[%s15893_s0 + $0xd9] sm:$0xff] }
 0x1a4   :  { %v8261_v2 = vunpack.i.h.bf16 %v8259_v42  ;;  %v8260_v10 = vunpack.i.l.bf16 %v8259_v42  ;;  %v16382_v8 = vunpack.i.l.bf16 %v10903_v25  ;;  %v16383_v5 = vunpack.i.h.bf16 %v10903_v25  ;;  %v6981_v25 = vld [vmem:[%s15893_s0 + $0xe1] sm:$0xff] }
 0x1a5   :  { %v8256_v49 = vunpack.i.h.bf16 %v8254_v6  ;;  %v8255_v7 = vunpack.i.l.bf16 %v8254_v6  ;;  %v16384_v17 = vunpack.i.l.bf16 %v10925_v62  ;;  %v16385_v54 = vunpack.i.h.bf16 %v10925_v62  ;;  %v8269_v6 = vpop.permute.xlu1 %8268 }
 0x1a6   :  { %v2881_v27 = vsel %vm2842_vm3, %v16382_v8, %v8100_v15  ;;  %v2882_v50 = vsel %vm2842_vm3, %v16383_v5, %v8101_v34  ;;  %v16386_v14 = vunpack.i.l.bf16 %v10949_v57  ;;  %v16387_v62 = vunpack.i.h.bf16 %v10949_v57  ;;  %2229 = vrot.lane.b32.xlu1 %v6981_v25, %s9049_s21 }
 0x1a7   :  { %v2879_v11 = vsel %vm2842_vm3, %v16384_v17, %v8095_v4  ;;  %v2880_v42 = vsel %vm2842_vm3, %v16385_v54, %v8096_v56  ;;  %v11909_v34 = vsel %vm2907_vm4, %v2881_v27, %v8260_v10  ;;  %v11912_v15 = vsel %vm2907_vm4, %v2882_v50, %v8261_v2  ;;  %v8264_v50 = vpop.permute.xlu0 %8263  ;;  %2227 = vrot.lane.b32.xlu0 %v6980_v44, %s9049_s21 }
 0x1a8   :  { %v2885_v4 = vsel %vm2842_vm3, %v16386_v14, %v8110_v46  ;;  %v2886_v56 = vsel %vm2842_vm3, %v16387_v62, %v8111_v58  ;;  %v11924_v8 = vsel %vm2907_vm4, %v2879_v11, %v8255_v7  ;;  %v11927_v10 = vsel %vm2907_vm4, %v2880_v42, %v8256_v49 }
 0x1a9   :  { %v16388_v2 = vunpack.i.l.bf16 %v10971_v51  ;;  %v16389_v46 = vunpack.i.h.bf16 %v10971_v51  ;;  %v8271_v58 = vunpack.i.h.bf16 %v8269_v6  ;;  %v8270_v5 = vunpack.i.l.bf16 %v8269_v6  ;;  %v6983_v51 = vld [vmem:[%s15893_s0 + $0xf9] sm:$0xff]  ;;  %v8279_v14 = vpop.permute.xlu1 %8278 }
 0x1aa   :  { %v8121_v17 = vunpack.i.h.bf16 %v11522_v40  ;;  %v8120_v54 = vunpack.i.l.bf16 %v11522_v40  ;;  %v8266_v7 = vunpack.i.h.bf16 %v8264_v50  ;;  %v8265_v11 = vunpack.i.l.bf16 %v8264_v50  ;;  %2233 = vrot.lane.b32.xlu1 %v6983_v51, %s9049_s21 }
 0x1ab   :  { %v2883_v27 = vsel %vm2842_vm3, %v16388_v2, %v8105_v31  ;;  %v2884_v57 = vsel %vm2842_vm3, %v16389_v46, %v8106_v30  ;;  %v8116_v49 = vunpack.i.h.bf16 %v11530_v36  ;;  %v8115_v42 = vunpack.i.l.bf16 %v11530_v36  ;;  %v6982_v36 = vld [vmem:[%s15893_s0 + $0xf1] sm:$0xff]  ;;  %v8274_v46 = vpop.permute.xlu0 %8273 }
 0x1ac   :  { %v11945_v30 = vsel %vm2907_vm4, %v2885_v4, %v8270_v5  ;;  %v11948_v31 = vsel %vm2907_vm4, %v2886_v56, %v8271_v58  ;;  %v8131_v40 = vunpack.i.h.bf16 %v11548_v16  ;;  %v8130_v25 = vunpack.i.l.bf16 %v11548_v16  ;;  %2231 = vrot.lane.b32.xlu0 %v6982_v36, %s9049_s21  ;;  %v6984_v36 = vld [vmem:[%s15893_s0 + $0x109] sm:$0xff] }
 0x1ad   :  { %v11956_v62 = vsel %vm2907_vm4, %v2883_v27, %v8265_v11  ;;  %v11959_v6 = vsel %vm2907_vm4, %v2884_v57, %v8266_v7  ;;  %v8126_v4 = vunpack.i.h.bf16 %v11556_v3  ;;  %v8125_v56 = vunpack.i.l.bf16 %v11556_v3 }
 0x1ae   :  { %v8281_v44 = vunpack.i.h.bf16 %v8279_v14  ;;  %v8280_v2 = vunpack.i.l.bf16 %v8279_v14  ;;  %v16390_v16 = vunpack.i.l.bf16 %v10995_v47  ;;  %v16391_v5 = vunpack.i.h.bf16 %v10995_v47  ;;  %v6985_v47 = vld [vmem:[%s15893_s0 + $0x111] sm:$0xff] }
 0x1af   :  { %v8276_v27 = vunpack.i.h.bf16 %v8274_v46  ;;  %v8275_v11 = vunpack.i.l.bf16 %v8274_v46  ;;  %v16392_v57 = vunpack.i.l.bf16 %v11017_v59  ;;  %v16393_v3 = vunpack.i.h.bf16 %v11017_v59  ;;  %v8289_v46 = vpop.permute.xlu1 %8288  ;;  %2237 = vrot.lane.b32.xlu1 %v6985_v47, %s9049_s21 }
 0x1b0   :  { %v2889_v58 = vsel %vm2842_vm3, %v16390_v16, %v8120_v54  ;;  %v2890_v50 = vsel %vm2842_vm3, %v16391_v5, %v8121_v17  ;;  %v16394_v51 = vunpack.i.l.bf16 %v11041_v41  ;;  %v16395_v59 = vunpack.i.h.bf16 %v11041_v41  ;;  %v8284_v41 = vpop.permute.xlu0 %8283  ;;  %2235 = vrot.lane.b32.xlu0 %v6984_v36, %s9049_s21 }
 0x1b1   :  { %v2887_v7 = vsel %vm2842_vm3, %v16392_v57, %v8115_v42  ;;  %v2888_v14 = vsel %vm2842_vm3, %v16393_v3, %v8116_v49  ;;  %v11981_v17 = vsel %vm2907_vm4, %v2889_v58, %v8280_v2  ;;  %v11984_v54 = vsel %vm2907_vm4, %v2890_v50, %v8281_v44 }
 0x1b2   :  { %v2893_v42 = vsel %vm2842_vm3, %v16394_v51, %v8130_v25  ;;  %v2894_v49 = vsel %vm2842_vm3, %v16395_v59, %v8131_v40  ;;  %v11996_v16 = vsel %vm2907_vm4, %v2887_v7, %v8275_v11  ;;  %v11999_v2 = vsel %vm2907_vm4, %v2888_v14, %v8276_v27 }
 0x1b3   :  { %v16396_v44 = vunpack.i.h.bf16 %v11063_v45  ;;  %v8291_v25 = vunpack.i.h.bf16 %v8289_v46  ;;  %v8290_v5 = vunpack.i.l.bf16 %v8289_v46  ;;  %v16397_v40 = vunpack.i.l.bf16 %v11063_v45  ;;  %v6987_v45 = vld [vmem:[%s15893_s0 + $0x129] sm:$0xff]  ;;  %v8299_v51 = vpop.permute.xlu1 %8298 }
 0x1b4   :  { %v8141_v57 = vunpack.i.h.bf16 %v11574_v24  ;;  %v8140_v3 = vunpack.i.l.bf16 %v11574_v24  ;;  %v8286_v11 = vunpack.i.h.bf16 %v8284_v41  ;;  %v8285_v7 = vunpack.i.l.bf16 %v8284_v41  ;;  %2241 = vrot.lane.b32.xlu1 %v6987_v45, %s9049_s21 }
 0x1b5   :  { %v2892_v58 = vsel %vm2842_vm3, %v16396_v44, %v8126_v4  ;;  %v2891_v50 = vsel %vm2842_vm3, %v16397_v40, %v8125_v56  ;;  %v8136_v27 = vunpack.i.h.bf16 %v11582_v18  ;;  %v8135_v14 = vunpack.i.l.bf16 %v11582_v18  ;;  %v6986_v18 = vld [vmem:[%s15893_s0 + $0x121] sm:$0xff] }
 0x1b6   :  { %v12017_v4 = vsel %vm2907_vm4, %v2893_v42, %v8290_v5  ;;  %v12020_v56 = vsel %vm2907_vm4, %v2894_v49, %v8291_v25  ;;  %v8151_v24 = vunpack.i.h.bf16 %v11600_v35  ;;  %v8150_v47 = vunpack.i.l.bf16 %v11600_v35  ;;  %v8294_v25 = vpop.permute.xlu0 %8293  ;;  %2239 = vrot.lane.b32.xlu0 %v6986_v18, %s9049_s21  ;;  %v6988_v18 = vld [vmem:[%s15893_s0 + $0x139] sm:$0xff] }
 0x1b7   :  { %v12028_v59 = vsel %vm2907_vm4, %v2891_v50, %v8285_v7  ;;  %v12031_v46 = vsel %vm2907_vm4, %v2892_v58, %v8286_v11  ;;  %v8146_v42 = vunpack.i.h.bf16 %v11608_v53  ;;  %v8145_v49 = vunpack.i.l.bf16 %v11608_v53 }
 0x1b8   :  { %v8301_v36 = vunpack.i.h.bf16 %v8299_v51  ;;  %v8300_v44 = vunpack.i.l.bf16 %v8299_v51  ;;  %v16398_v35 = vunpack.i.l.bf16 %v11087_v23  ;;  %v16399_v41 = vunpack.i.h.bf16 %v11087_v23  ;;  %v6989_v23 = vld [vmem:[%s15893_s0 + $0x141] sm:$0xff] }
 0x1b9   :  { %v8296_v50 = vunpack.i.h.bf16 %v8294_v25  ;;  %v8295_v7 = vunpack.i.l.bf16 %v8294_v25  ;;  %v16400_v58 = vunpack.i.l.bf16 %v11109_v21  ;;  %v16401_v53 = vunpack.i.h.bf16 %v11109_v21  ;;  %v8309_v25 = vpop.permute.xlu1 %8308  ;;  %2245 = vrot.lane.b32.xlu1 %v6989_v23, %s9049_s21  ;;  %v6990_v23 = vld [vmem:[%s15893_s0 + $0x151] sm:$0xff] }
 0x1ba   :  { %v2897_v5 = vsel %vm2842_vm3, %v16398_v35, %v8140_v3  ;;  %v2898_v40 = vsel %vm2842_vm3, %v16399_v41, %v8141_v57  ;;  %v16402_v45 = vunpack.i.l.bf16 %v11133_v26  ;;  %v16403_v21 = vunpack.i.h.bf16 %v11133_v26  ;;  %2243 = vrot.lane.b32.xlu0 %v6988_v18, %s9049_s21 }
 0x1bb   :  { %v2895_v11 = vsel %vm2842_vm3, %v16400_v58, %v8135_v14  ;;  %v2896_v51 = vsel %vm2842_vm3, %v16401_v53, %v8136_v27  ;;  %v12053_v57 = vsel %vm2907_vm4, %v2897_v5, %v8300_v44  ;;  %v12056_v3 = vsel %vm2907_vm4, %v2898_v40, %v8301_v36  ;;  %v8304_v40 = vpop.permute.xlu0 %8303 }
 0x1bc   :  { %v2901_v14 = vsel %vm2842_vm3, %v16402_v45, %v8150_v47  ;;  %v2902_v27 = vsel %vm2842_vm3, %v16403_v21, %v8151_v24  ;;  %v12068_v35 = vsel %vm2907_vm4, %v2895_v11, %v8295_v7  ;;  %v12071_v44 = vsel %vm2907_vm4, %v2896_v51, %v8296_v50 }
 0x1bd   :  { %v16404_v36 = vunpack.i.l.bf16 %v11155_v38  ;;  %v16405_v47 = vunpack.i.h.bf16 %v11155_v38  ;;  %v8311_v24 = vunpack.i.h.bf16 %v8309_v25  ;;  %v8310_v41 = vunpack.i.l.bf16 %v8309_v25  ;;  %v6991_v38 = vld [vmem:[%s15893_s0 + $0x159] sm:$0xff] }
 0x1be   :  { %v8161_v58 = vunpack.i.h.bf16 %v11626_v61  ;;  %v8160_v53 = vunpack.i.l.bf16 %v11626_v61  ;;  %v8306_v7 = vunpack.i.h.bf16 %v8304_v40  ;;  %v8305_v11 = vunpack.i.l.bf16 %v8304_v40  ;;  %v8319_v61 = vpop.permute.xlu1 %8318  ;;  %2249 = vrot.lane.b32.xlu1 %v6991_v38, %s9049_s21  ;;  %2247 = vrot.lane.b32.xlu0 %v6990_v23, %s9049_s21 }
 0x1bf   :  { %v2899_v5 = vsel %vm2842_vm3, %v16404_v36, %v8145_v49  ;;  %v2900_v26 = vsel %vm2842_vm3, %v16405_v47, %v8146_v42  ;;  %v8156_v50 = vunpack.i.h.bf16 %v11634_v12  ;;  %v8155_v51 = vunpack.i.l.bf16 %v11634_v12  ;;  %v8314_v18 = vpop.permute.xlu0 %8313 }
 0x1c0   :  { %v12089_v42 = vsel %vm2907_vm4, %v2901_v14, %v8310_v41  ;;  %v12092_v49 = vsel %vm2907_vm4, %v2902_v27, %v8311_v24  ;;  %v12098_v45 = vsel %vm2907_vm4, %v2899_v5, %v8305_v11  ;;  %v12101_v12 = vsel %vm2907_vm4, %v2900_v26, %v8306_v7 }
 0x1c1   :  { %v8321_v21 = vunpack.i.h.bf16 %v8319_v61  ;;  %v8320_v25 = vunpack.i.l.bf16 %v8319_v61  ;;  %v16406_v14 = vunpack.i.l.bf16 %v11179_v9  ;;  %v16407_v27 = vunpack.i.h.bf16 %v11179_v9  ;;  %v6993_v9 = vld [vmem:[%s15893_s0 + $0x171] sm:$0xff]  ;;  %v6995_v61 = vld [vmem:[%s15893_s0 + $0x189] sm:$0xff] }
 0x1c2   :  { %v8316_v24 = vunpack.i.h.bf16 %v8314_v18  ;;  %v8315_v41 = vunpack.i.l.bf16 %v8314_v18  ;;  %v16408_v5 = vunpack.i.l.bf16 %v11201_v55  ;;  %v16409_v40 = vunpack.i.h.bf16 %v11201_v55  ;;  %v12126_v11 = vpop.permute.xlu1 %8328  ;;  %v6992_v55 = vld [vmem:[%s15893_s0 + $0x169] sm:$0xff]  ;;  %2253 = vrot.lane.b32.xlu1 %v6993_v9, %s9049_s21  ;;  %v6997_v18 = vld [vmem:[%s15893_s0 + $0x1a1] sm:$0xff] }
 0x1c3   :  { %v2905_v36 = vsel %vm2842_vm3, %v16406_v14, %v8160_v53  ;;  %v2906_v47 = vsel %vm2842_vm3, %v16407_v27, %v8161_v58  ;;  %v12137_v38 = vpop.permute.xlu0 %8323  ;;  %2251 = vrot.lane.b32.xlu0 %v6992_v55, %s9049_s21 }
 0x1c4   :  { %v2903_v26 = vsel %vm2842_vm3, %v16408_v5, %v8155_v51  ;;  %v2904_v7 = vsel %vm2842_vm3, %v16409_v40, %v8156_v50  ;;  %v12121_v58 = vsel %vm2907_vm4, %v2905_v36, %v8320_v25  ;;  %v12124_v53 = vsel %vm2907_vm4, %v2906_v47, %v8321_v21  ;;  %v6994_v21 = vld [vmem:[%s15893_s0 + $0x181] sm:$0xff]  ;;  %v6996_v36 = vld [vmem:[%s15893_s0 + $0x199] sm:$0xff]  ;;  %v6999_v47 = vld [vmem:[%s15893_s0 + $0x1e9] sm:$0xff] }
 0x1c5   :  { %v12132_v50 = vsel %vm2907_vm4, %v2903_v26, %v8315_v41  ;;  %v12135_v51 = vsel %vm2907_vm4, %v2904_v7, %v8316_v24  ;;  %v6998_v41 = vld [vmem:[%s15893_s0 + $0x1e1] sm:$0xff]  ;;  %v7000_v7 = vld [vmem:[%s15893_s0 + $0x1f9] sm:$0xff] }
 0x1c6   :  { %v12144_v23 = vpop.permute.xlu1 %8338  ;;  %2257 = vrot.lane.b32.xlu1 %v6995_v61, %s9049_s21  ;;  %v7001_v26 = vld [vmem:[%s15893_s0 + $0x201] sm:$0xff] }
 0x1c7   :  { %16410 = vst [vmem:[#allocation101_spill] sm:$0xff] %v12144_v23  ;;  %v12149_v25 = vpop.permute.xlu0 %8333  ;;  %2255 = vrot.lane.b32.xlu0 %v6994_v21, %s9049_s21 }
 0x1ca   :  { %v12156_v14 = vpop.permute.xlu1 %8348  ;;  %2261 = vrot.lane.b32.xlu1 %v6997_v18, %s9049_s21  ;;  %v7003_v18 = vld [vmem:[%s15893_s0 + $0x219] sm:$0xff] }
 0x1cb   :  { %16411 = vst [vmem:[#allocation102_spill] sm:$0xff] %v12156_v14  ;;  %v12161_v27 = vpop.permute.xlu0 %8343  ;;  %2259 = vrot.lane.b32.xlu0 %v6996_v36, %s9049_s21  ;;  %v16416_v36 = vld [vmem:[#allocation99_spill] sm:$0xff] }
 0x1cc   :  { %16412 = vst [vmem:[#allocation103_spill] sm:$0xff] %v12161_v27 }
 0x1ce   :  { %v12168_v24 = vpop.permute.xlu1 %8358  ;;  %2265 = vrot.lane.b32.xlu1 %v6999_v47, %s9049_s21 }
 0x1cf   :  { %16413 = vst [vmem:[#allocation104_spill] sm:$0xff] %v12168_v24  ;;  %v12173_v5 = vpop.permute.xlu0 %8353  ;;  %2263 = vrot.lane.b32.xlu0 %v6998_v41, %s9049_s21  ;;  %v16417_v41 = vld [vmem:[#allocation100_spill] sm:$0xff] }
 0x1d0   :  { %16414 = vst [vmem:[#allocation105_spill] sm:$0xff] %v12173_v5 }
 0x1d2   :  { %v8369_v40 = vpop.permute.xlu1 %8368  ;;  %2269 = vrot.lane.b32.xlu1 %v7001_v26, %s9049_s21  ;;  %v7002_v26 = vld [vmem:[%s15893_s0 + $0x211] sm:$0xff] }
 0x1d3   :  { %v8371_v9 = vunpack.i.h.bf16 %v8369_v40  ;;  %v8370_v55 = vunpack.i.l.bf16 %v8369_v40  ;;  %v12183_v61 = vpop.permute.xlu0 %8363  ;;  %2267 = vrot.lane.b32.xlu0 %v7000_v7, %s9049_s21 }
 0x1d4   :  { %16415 = vst [vmem:[#allocation106_spill] sm:$0xff] %v12183_v61  ;;  %v8366_v21 = vunpack.i.h.bf16 %v12183_v61 }
 0x1d5   :  { %v12193_v47 = vsel %vm2972_vm5, %v16416_v36, %v8370_v55  ;;  %v12197_v40 = vsel %vm2972_vm5, %v16417_v41, %v8371_v9  ;;  %v7005_v9 = vld [vmem:[%s15893_s0 + $0x231] sm:$0xff] }
 0x1d6   :  { %v8379_v24 = vpop.permute.xlu1 %8378  ;;  %v12204_v7 = vsel %vm2972_vm5, %v11743_v39, %v8366_v21  ;;  %2273 = vrot.lane.b32.xlu1 %v7003_v18, %s9049_s21 }
 0x1d7   :  { %v8381_v61 = vunpack.i.h.bf16 %v8379_v24  ;;  %v8380_v5 = vunpack.i.l.bf16 %v8379_v24  ;;  %v8374_v14 = vpop.permute.xlu0 %8373  ;;  %2271 = vrot.lane.b32.xlu0 %v7002_v26, %s9049_s21 }
 0x1d8   :  { %v8376_v27 = vunpack.i.h.bf16 %v8374_v14  ;;  %v8375_v23 = vunpack.i.l.bf16 %v8374_v14  ;;  %v7004_v14 = vld [vmem:[%s15893_s0 + $0x229] sm:$0xff] }
 0x1d9   :  { %v12213_v55 = vsel %vm2972_vm5, %v11765_v60, %v8380_v5  ;;  %v12217_v39 = vsel %vm2972_vm5, %v11768_v43, %v8381_v61  ;;  %v7007_v43 = vld [vmem:[%s15893_s0 + $0x249] sm:$0xff] }
 0x1da   :  { %v8389_v24 = vpop.permute.xlu1 %8388  ;;  %v12224_v21 = vsel %vm2972_vm5, %v11780_v0, %v8375_v23  ;;  %v12228_v18 = vsel %vm2972_vm5, %v11783_v22, %v8376_v27  ;;  %2277 = vrot.lane.b32.xlu1 %v7005_v9, %s9049_s21  ;;  %v7006_v27 = vld [vmem:[%s15893_s0 + $0x241] sm:$0xff] }
 0x1db   :  { %v8391_v36 = vunpack.i.h.bf16 %v8389_v24  ;;  %v8390_v60 = vunpack.i.l.bf16 %v8389_v24  ;;  %v8384_v5 = vpop.permute.xlu0 %8383  ;;  %2275 = vrot.lane.b32.xlu0 %v7004_v14, %s9049_s21 }
 0x1dc   :  { %v8386_v41 = vunpack.i.h.bf16 %v8384_v5  ;;  %v8385_v26 = vunpack.i.l.bf16 %v8384_v5 }
 0x1dd   :  { %v12237_v0 = vsel %vm2972_vm5, %v11801_v52, %v8390_v60  ;;  %v12241_v22 = vsel %vm2972_vm5, %v11804_v28, %v8391_v36  ;;  %v7009_v28 = vld [vmem:[%s15893_s0 + $0x261] sm:$0xff] }
 0x1de   :  { %v8399_v23 = vpop.permute.xlu1 %8398  ;;  %v12248_v61 = vsel %vm2972_vm5, %v11812_v63, %v8385_v26  ;;  %v12252_v9 = vsel %vm2972_vm5, %v11815_v33, %v8386_v41  ;;  %2281 = vrot.lane.b32.xlu1 %v7007_v43, %s9049_s21  ;;  %v7008_v41 = vld [vmem:[%s15893_s0 + $0x259] sm:$0xff] }
 0x1df   :  { %v8401_v24 = vunpack.i.h.bf16 %v8399_v23  ;;  %v8400_v52 = vunpack.i.l.bf16 %v8399_v23  ;;  %v8394_v14 = vpop.permute.xlu0 %8393  ;;  %2279 = vrot.lane.b32.xlu0 %v7006_v27, %s9049_s21 }
 0x1e0   :  { %v8396_v60 = vunpack.i.h.bf16 %v8394_v14  ;;  %v8395_v5 = vunpack.i.l.bf16 %v8394_v14 }
 0x1e1   :  { %v12261_v63 = vsel %vm2972_vm5, %v11837_v13, %v8400_v52  ;;  %v12265_v33 = vsel %vm2972_vm5, %v11840_v29, %v8401_v24  ;;  %v3199_v29 = vld [vmem:[%s15895_s2 + $0x100] sm:$0xff]  ;;  %v3200_v24 = vld [vmem:[%s15895_s2 + $0x108] sm:$0xff] }
 0x1e2   :  { %v8409_v36 = vpop.permute.xlu1 %8408  ;;  %v12272_v26 = vsel %vm2972_vm5, %v11852_v37, %v8395_v5  ;;  %v12276_v43 = vsel %vm2972_vm5, %v11855_v32, %v8396_v60  ;;  %2285 = vrot.lane.b32.xlu1 %v7009_v28, %s9049_s21  ;;  %v12285_v37 = vpack.c.bf16 %v3200_v24, %v3199_v29  ;;  %v7011_v32 = vld [vmem:[%s15893_s0 + $0x279] sm:$0xff]  ;;  %v7010_v28 = vld [vmem:[%s15893_s0 + $0x271] sm:$0xff] }
 0x1e3   :  { %v8411_v23 = vunpack.i.h.bf16 %v8409_v36  ;;  %v8410_v13 = vunpack.i.l.bf16 %v8409_v36  ;;  %v8404_v27 = vpop.permute.xlu0 %8403  ;;  %2283 = vrot.lane.b32.xlu0 %v7008_v41, %s9049_s21  ;;  %v7013_v24 = vld [vmem:[%s15893_s0 + $0x291] sm:$0xff] }
 0x1e4   :  { %v8406_v52 = vunpack.i.h.bf16 %v8404_v27  ;;  %v8405_v14 = vunpack.i.l.bf16 %v8404_v27  ;;  %7460 = vmatprep.subr.bf16.mxu1 %v12285_v37 }
 0x1e5   :  { %v12293_v60 = vsel %vm2972_vm5, %v11873_v20, %v8410_v13  ;;  %v12297_v5 = vsel %vm2972_vm5, %v11876_v19, %v8411_v23 }
 0x1e6   :  { %16418 = vst [vmem:[#allocation99_spill] sm:$0xff] %v12293_v60  ;;  %16419 = vst [vmem:[#allocation100_spill] sm:$0xff] %v12297_v5  ;;  %v8419_v36 = vpop.permute.xlu1 %8418  ;;  %v12305_v41 = vsel %vm2972_vm5, %v11884_v48, %v8405_v14  ;;  %v12309_v27 = vsel %vm2972_vm5, %v11887_v1, %v8406_v52  ;;  %2289 = vrot.lane.b32.xlu1 %v7011_v32, %s9049_s21  ;;  %v7012_v14 = vld [vmem:[%s15893_s0 + $0x289] sm:$0xff] }
 0x1e7   :  { %16420 = vst [vmem:[#allocation107_spill] sm:$0xff] %v12309_v27  ;;  %v8421_v20 = vunpack.i.h.bf16 %v8419_v36  ;;  %v8420_v13 = vunpack.i.l.bf16 %v8419_v36  ;;  %v8414_v29 = vpop.permute.xlu0 %8413  ;;  %2287 = vrot.lane.b32.xlu0 %v7010_v28, %s9049_s21  ;;  %v16488_v5 = vld [vmem:[#allocation102_spill] sm:$0xff]  ;;  %v16494_v60 = vld [vmem:[#allocation105_spill] sm:$0xff]  ;;  %v16500_v27 = vld [vmem:[#allocation104_spill] sm:$0xff] }
 0x1e8   :  { %v8416_v19 = vunpack.i.h.bf16 %v8414_v29  ;;  %v8415_v23 = vunpack.i.l.bf16 %v8414_v29 }
 0x1e9   :  { %v12318_v48 = vsel %vm2972_vm5, %v11909_v34, %v8420_v13  ;;  %v12322_v1 = vsel %vm2972_vm5, %v11912_v15, %v8421_v20  ;;  %v7015_v15 = vld [vmem:[%s15893_s0 + $0x2a9] sm:$0xff] }
 0x1ea   :  { %16421 = vst [vmem:[#allocation108_spill] sm:$0xff] %v12318_v48  ;;  %16422 = vst [vmem:[#allocation109_spill] sm:$0xff] %v12322_v1  ;;  %v8429_v52 = vpop.permute.xlu1 %8428  ;;  %v12329_v32 = vsel %vm2972_vm5, %v11924_v8, %v8415_v23  ;;  %v12333_v36 = vsel %vm2972_vm5, %v11927_v10, %v8416_v19  ;;  %2293 = vrot.lane.b32.xlu1 %v7013_v24, %s9049_s21  ;;  %v7014_v19 = vld [vmem:[%s15893_s0 + $0x2a1] sm:$0xff] }
 0x1eb   :  { %16423 = vst [vmem:[#allocation110_spill] sm:$0xff] %v12329_v32  ;;  %16424 = vst [vmem:[#allocation111_spill] sm:$0xff] %v12333_v36  ;;  %v8431_v28 = vunpack.i.h.bf16 %v8429_v52  ;;  %v8430_v34 = vunpack.i.l.bf16 %v8429_v52  ;;  %v8424_v13 = vpop.permute.xlu0 %8423  ;;  %2291 = vrot.lane.b32.xlu0 %v7012_v14, %s9049_s21  ;;  %v21_v1 = vld [vmem:[%s15893_s0] sm:$0xff] }
 0x1ec   :  { %v8426_v29 = vunpack.i.h.bf16 %v8424_v13  ;;  %v8425_v48 = vunpack.i.l.bf16 %v8424_v13 }
 0x1ed   :  { %v12342_v8 = vsel %vm2972_vm5, %v11945_v30, %v8430_v34  ;;  %v12346_v10 = vsel %vm2972_vm5, %v11948_v31, %v8431_v28  ;;  %v7017_v31 = vld [vmem:[%s15893_s0 + $0x2c1] sm:$0xff]  ;;  %v7016_v28 = vld [vmem:[%s15893_s0 + $0x2b9] sm:$0xff] }
 0x1ee   :  { %16425 = vst [vmem:[#allocation112_spill] sm:$0xff] %v12342_v8  ;;  %16426 = vst [vmem:[#allocation113_spill] sm:$0xff] %v12346_v10  ;;  %v8439_v20 = vpop.permute.xlu1 %8438  ;;  %v12353_v23 = vsel %vm2972_vm5, %v11956_v62, %v8425_v48  ;;  %v12357_v24 = vsel %vm2972_vm5, %v11959_v6, %v8426_v29  ;;  %2297 = vrot.lane.b32.xlu1 %v7015_v15, %s9049_s21 }
 0x1ef   :  { %16427 = vst [vmem:[#allocation114_spill] sm:$0xff] %v12353_v23  ;;  %16428 = vst [vmem:[#allocation115_spill] sm:$0xff] %v12357_v24  ;;  %v8441_v52 = vunpack.i.h.bf16 %v8439_v20  ;;  %v8440_v30 = vunpack.i.l.bf16 %v8439_v20  ;;  %v8434_v14 = vpop.permute.xlu0 %8433  ;;  %2295 = vrot.lane.b32.xlu0 %v7014_v19, %s9049_s21 }
 0x1f0   :  { %v8436_v34 = vunpack.i.h.bf16 %v8434_v14  ;;  %v8435_v13 = vunpack.i.l.bf16 %v8434_v14 }
 0x1f1   :  { %v12366_v62 = vsel %vm2972_vm5, %v11981_v17, %v8440_v30  ;;  %v12370_v6 = vsel %vm2972_vm5, %v11984_v54, %v8441_v52  ;;  %v7019_v54 = vld [vmem:[%s15893_s0 + $0x2d9] sm:$0xff] }
 0x1f2   :  { %16429 = vst [vmem:[#allocation116_spill] sm:$0xff] %v12366_v62  ;;  %16430 = vst [vmem:[#allocation117_spill] sm:$0xff] %v12370_v6  ;;  %v8449_v48 = vpop.permute.xlu1 %8448  ;;  %v12377_v29 = vsel %vm2972_vm5, %v11996_v16, %v8435_v13  ;;  %v12381_v15 = vsel %vm2972_vm5, %v11999_v2, %v8436_v34  ;;  %2301 = vrot.lane.b32.xlu1 %v7017_v31, %s9049_s21  ;;  %v7018_v34 = vld [vmem:[%s15893_s0 + $0x2d1] sm:$0xff] }
 0x1f3   :  { %16431 = vst [vmem:[#allocation118_spill] sm:$0xff] %v12377_v29  ;;  %16432 = vst [vmem:[#allocation119_spill] sm:$0xff] %v12381_v15  ;;  %v8451_v20 = vunpack.i.h.bf16 %v8449_v48  ;;  %v8450_v17 = vunpack.i.l.bf16 %v8449_v48  ;;  %v8444_v19 = vpop.permute.xlu0 %8443  ;;  %2299 = vrot.lane.b32.xlu0 %v7016_v28, %s9049_s21  ;;  %v16435_v29 = vld [vmem:[#allocation28_spill] sm:$0xff] }
 0x1f4   :  { %v8446_v30 = vunpack.i.h.bf16 %v8444_v19  ;;  %v8445_v14 = vunpack.i.l.bf16 %v8444_v19 }
 0x1f5   :  { %v12390_v16 = vsel %vm2972_vm5, %v12017_v4, %v8450_v17  ;;  %v12394_v2 = vsel %vm2972_vm5, %v12020_v56, %v8451_v20  ;;  %v7021_v56 = vld [vmem:[%s15893_s0 + $0x2f1] sm:$0xff] }
 0x1f6   :  { %v8459_v52 = vpop.permute.xlu1 %8458  ;;  %v12401_v13 = vsel %vm2972_vm5, %v12028_v59, %v8445_v14  ;;  %v12405_v31 = vsel %vm2972_vm5, %v12031_v46, %v8446_v30  ;;  %2305 = vrot.lane.b32.xlu1 %v7019_v54, %s9049_s21  ;;  %v7020_v30 = vld [vmem:[%s15893_s0 + $0x2e9] sm:$0xff] }
 0x1f7   :  { %v8461_v48 = vunpack.i.h.bf16 %v8459_v52  ;;  %v8460_v4 = vunpack.i.l.bf16 %v8459_v52  ;;  %v8454_v28 = vpop.permute.xlu0 %8453  ;;  %2303 = vrot.lane.b32.xlu0 %v7018_v34, %s9049_s21  ;;  %v16433_v52 = vld [vmem:[#allocation9_spill] sm:$0xff] }
 0x1f8   :  { %v8456_v17 = vunpack.i.h.bf16 %v8454_v28  ;;  %v8455_v19 = vunpack.i.l.bf16 %v8454_v28 }
 0x1f9   :  { %v12414_v59 = vsel %vm2972_vm5, %v12053_v57, %v8460_v4  ;;  %v12418_v46 = vsel %vm2972_vm5, %v12056_v3, %v8461_v48  ;;  %v7525_v3 = vunpack.i.l.bf16 %v16433_v52  ;;  %v16434_v48 = vld [vmem:[#allocation82_spill] sm:$0xff] }
 0x1fa   :  { %v8469_v20 = vpop.permute.xlu1 %8468  ;;  %v12425_v14 = vsel %vm2972_vm5, %v12068_v35, %v8455_v19  ;;  %v12429_v54 = vsel %vm2972_vm5, %v12071_v44, %v8456_v17  ;;  %v8005_v6 = vunpack.i.l.bf16 %v16434_v48  ;;  %2309 = vrot.lane.b32.xlu1 %v7021_v56, %s9049_s21  ;;  %v7685_v35 = vunpack.i.l.bf16 %v16435_v29  ;;  %v16436_v19 = vld [vmem:[#allocation36_spill] sm:$0xff]  ;;  %v7023_v44 = vld [vmem:[%s15893_s0 + $0x309] sm:$0xff] }
 0x1fb   :  { %v8471_v34 = vunpack.i.h.bf16 %v8469_v20  ;;  %v8470_v4 = vunpack.i.l.bf16 %v8469_v20  ;;  %v8464_v28 = vpop.permute.xlu0 %8463  ;;  %2307 = vrot.lane.b32.xlu0 %v7020_v30, %s9049_s21  ;;  %v7845_v56 = vunpack.i.l.bf16 %v16436_v19  ;;  %v7022_v30 = vld [vmem:[%s15893_s0 + $0x301] sm:$0xff] }
 0x1fc   :  { %v8466_v62 = vunpack.i.h.bf16 %v8464_v28  ;;  %v8465_v15 = vunpack.i.l.bf16 %v8464_v28  ;;  %v16439_v28 = vld [vmem:[#allocation91_spill] sm:$0xff] }
 0x1fd   :  { %v12443_v17 = vsel %vm2972_vm5, %v12089_v42, %v8470_v4  ;;  %v12447_v20 = vsel %vm2972_vm5, %v12092_v49, %v8471_v34  ;;  %v8165_v57 = vunpack.i.l.bf16 %v16439_v28  ;;  %v8006_v49 = vunpack.i.h.bf16 %v16434_v48 }
 0x1fe   :  { %16437 = vst [vmem:[#allocation9_spill] sm:$0xff] %v12443_v17  ;;  %16438 = vst [vmem:[#allocation82_spill] sm:$0xff] %v12447_v20  ;;  %v8479_v8 = vpop.permute.xlu1 %8478  ;;  %v12456_v10 = vsel %vm2972_vm5, %v12098_v45, %v8465_v15  ;;  %v12460_v42 = vsel %vm2972_vm5, %v12101_v12, %v8466_v62  ;;  %v8325_v34 = vunpack.i.l.bf16 %v12137_v38  ;;  %v8166_v36 = vunpack.i.h.bf16 %v16439_v28  ;;  %2313 = vrot.lane.b32.xlu1 %v7023_v44, %s9049_s21 }
 0x1ff   :  { %16440 = vst [vmem:[#allocation28_spill] sm:$0xff] %v12456_v10  ;;  %16441 = vst [vmem:[#allocation36_spill] sm:$0xff] %v12460_v42  ;;  %v8481_v4 = vunpack.i.h.bf16 %v8479_v8  ;;  %v8480_v24 = vunpack.i.l.bf16 %v8479_v8  ;;  %v8474_v23 = vpop.permute.xlu0 %8473  ;;  %v2843_v12 = vsel %vm2842_vm3, %v7845_v56, %v8005_v6  ;;  %v8326_v62 = vunpack.i.h.bf16 %v12137_v38  ;;  %2311 = vrot.lane.b32.xlu0 %v7022_v30, %s9049_s21  ;;  %v7025_v8 = vld [vmem:[%s15893_s0 + $0x321] sm:$0xff]  ;;  %v7024_v38 = vld [vmem:[%s15893_s0 + $0x319] sm:$0xff] }
 0x200   :  { %v8476_v32 = vunpack.i.h.bf16 %v8474_v23  ;;  %v8475_v45 = vunpack.i.l.bf16 %v8474_v23  ;;  %v2908_v6 = vsel %vm2907_vm4, %v2843_v12, %v8165_v57  ;;  %v2648_v44 = vsel %vm2647_vm0, %v21_v1, %v7525_v3  ;;  %v16450_v57 = vld [vmem:[#allocation90_spill] sm:$0xff] }
 0x201   :  { %v12477_v15 = vsel %vm2972_vm5, %v12121_v58, %v8480_v24  ;;  %v12481_v23 = vsel %vm2972_vm5, %v12124_v53, %v8481_v4  ;;  %v7686_v53 = vunpack.i.h.bf16 %v16435_v29  ;;  %v16447_v24 = vld [vmem:[#allocation79_spill] sm:$0xff]  ;;  %v16448_v4 = vunpack.i.h.bf16 %v16436_v19  ;;  %v22_v29 = vld [vmem:[%s15893_s0 + $0x8] sm:$0xff] }
 0x202   :  { %16442 = vst [vmem:[#allocation91_spill] sm:$0xff] %v12477_v15  ;;  %16443 = vst [vmem:[#allocation120_spill] sm:$0xff] %v12481_v23  ;;  %v12483_v48 = vpop.permute.xlu1 %2201  ;;  %v12492_v28 = vsel %vm2972_vm5, %v12132_v50, %v8475_v45  ;;  %v12496_v58 = vsel %vm2972_vm5, %v12135_v51, %v8476_v32  ;;  %v8010_v30 = vunpack.i.l.bf16 %v16447_v24  ;;  %v2973_v1 = vsel %vm2972_vm5, %v2908_v6, %v8325_v34  ;;  %v7026_v6 = vld [vmem:[%s15893_s0 + $0x331] sm:$0xff] }
 0x203   :  { %16444 = vst [vmem:[#allocation121_spill] sm:$0xff] %v12483_v48  ;;  %16445 = vst [vmem:[#allocation122_spill] sm:$0xff] %v12492_v28  ;;  %v2844_v23 = vsel %vm2842_vm3, %v16448_v4, %v8006_v49  ;;  %v12503_v15 = vpop.permute.xlu0 %2199  ;;  %v8170_v3 = vunpack.i.l.bf16 %v16450_v57  ;;  %2317 = vrot.lane.b32.xlu1 %v7025_v8, %s9049_s21  ;;  %v2713_v51 = vsel %vm2712_vm1, %v2648_v44, %v7685_v35  ;;  %v16451_v49 = vld [vmem:[#allocation37_spill] sm:$0xff]  ;;  %v8330_v12 = vunpack.i.l.bf16 %v12126_v11  ;;  %v7027_v35 = vld [vmem:[%s15893_s0 + $0x339] sm:$0xff] }
 0x204   :  { %16446 = vst [vmem:[#allocation123_spill] sm:$0xff] %v12496_v58  ;;  %16449 = vst [vmem:[#allocation79_spill] sm:$0xff] %v12503_v15  ;;  %v3038_v50 = vsel %vm3037_vm6, %v2973_v1, %v12503_v15  ;;  %v2909_v32 = vsel %vm2907_vm4, %v2844_v23, %v8166_v36  ;;  %v7850_v45 = vunpack.i.l.bf16 %v16451_v49  ;;  %2315 = vrot.lane.b32.xlu0 %v7024_v38, %s9049_s21  ;;  %v16453_v38 = vld [vmem:[#allocation11_spill] sm:$0xff]  ;;  %v16455_v1 = vunpack.i.h.bf16 %v16433_v52  ;;  %v16472_v15 = vld [vmem:[#allocation101_spill] sm:$0xff] }
 0x205   :  { %3476 = vmatprep.mubr.f32.mxu0 %v3038_v50  ;;  %v2778_v34 = vsel %vm2777_vm2, %v2713_v51, %v7845_v56  ;;  %v2974_v8 = vsel %vm2972_vm5, %v2909_v32, %v8326_v62  ;;  %v7530_v44 = vunpack.i.l.bf16 %v16453_v38  ;;  %v8011_v56 = vunpack.i.h.bf16 %v16447_v24  ;;  %v16456_v51 = vld [vmem:[#allocation27_spill] sm:$0xff] }
 0x206   :  { %3477 = vmatmul.mubr.f32.vlgmr.msra.gmra.mrb[0].mxu0 %v2778_v34  ;;  %v12523_v36 = vpop.permute.xlu1 %2205  ;;  %v3039_v23 = vsel %vm3037_vm6, %v2974_v8, %v12483_v48  ;;  %v2845_v62 = vsel %vm2842_vm3, %v7850_v45, %v8010_v30  ;;  %v2649_v50 = vsel %vm2647_vm0, %v22_v29, %v16455_v1  ;;  %v7690_v32 = vunpack.i.l.bf16 %v16456_v51  ;;  %v23_v24 = vld [vmem:[%s15893_s0 + $0x18] sm:$0xff] }
 0x207   :  { %16452 = vst [vmem:[#allocation90_spill] sm:$0xff] %v12523_v36  ;;  %v12533_v4 = vpop.permute.xlu0 %2203  ;;  %3481 = vmatprep.mubr.f32.mxu0 %v3039_v23  ;;  %v8171_v34 = vunpack.i.h.bf16 %v16450_v57  ;;  %2321 = vrot.lane.b32.xlu1 %v7027_v35, %s9049_s21  ;;  %v2714_v8 = vsel %vm2712_vm1, %v2649_v50, %v7686_v53  ;;  %v2910_v48 = vsel %vm2907_vm4, %v2845_v62, %v8170_v3  ;;  %v7851_v30 = vunpack.i.h.bf16 %v16451_v49  ;;  %v7029_v53 = vld [vmem:[%s15893_s0 + $0x351] sm:$0xff]  ;;  %v16461_v50 = vld [vmem:[#allocation93_spill] sm:$0xff] }
 0x208   :  { %16454 = vst [vmem:[#allocation37_spill] sm:$0xff] %v12533_v4  ;;  %v8331_v52 = vunpack.i.h.bf16 %v12126_v11  ;;  %2319 = vrot.lane.b32.xlu0 %v7026_v6, %s9049_s21  ;;  %v16457_v29 = vunpack.i.h.bf16 %v16436_v19  ;;  %v2975_v35 = vsel %vm2972_vm5, %v2910_v48, %v8330_v12  ;;  %v7028_v11 = vld [vmem:[%s15893_s0 + $0x349] sm:$0xff]  ;;  %v7531_v19 = vunpack.i.h.bf16 %v16453_v38  ;;  %v16459_v6 = vld [vmem:[#allocation84_spill] sm:$0xff]  ;;  %v16482_v28 = vld [vmem:[#allocation103_spill] sm:$0xff] }
 0x209   :  { %v3040_v49 = vsel %vm3037_vm6, %v2975_v35, %v12533_v4  ;;  %v2846_v23 = vsel %vm2842_vm3, %v7851_v30, %v8011_v56  ;;  %v8015_v48 = vunpack.i.l.bf16 %v16459_v6  ;;  %v2650_v62 = vsel %vm2647_vm0, %v23_v24, %v7530_v44  ;;  %v24_v38 = vld [vmem:[%s15893_s0 + $0x20] sm:$0xff] }
 0x20a   :  { %v2779_v57 = vsel %vm2777_vm2, %v2714_v8, %v16457_v29  ;;  %v12556_v3 = vpop.permute.xlu1 %2209  ;;  %v7691_v1 = vunpack.i.h.bf16 %v16456_v51  ;;  %v8175_v8 = vunpack.i.l.bf16 %v16461_v50  ;;  %v2715_v29 = vsel %vm2712_vm1, %v2650_v62, %v7690_v32  ;;  %v16462_v56 = vld [vmem:[#allocation20_spill] sm:$0xff] }
 0x20b   :  { %3482 = vmatmul.mubr.f32.gmra.mrb[2].mxu0 %v2779_v57  ;;  %16458 = vst [vmem:[#allocation11_spill] sm:$0xff] %v12556_v3  ;;  %v12566_v12 = vpop.permute.xlu0 %2207  ;;  %2325 = vrot.lane.b32.xlu1 %v7029_v53, %s9049_s21  ;;  %v2911_v57 = vsel %vm2907_vm4, %v2846_v23, %v8171_v34  ;;  %v7855_v35 = vunpack.i.l.bf16 %v16462_v56  ;;  %v2780_v44 = vsel %vm2777_vm2, %v2715_v29, %v7850_v45  ;;  %v7031_v32 = vld [vmem:[%s15893_s0 + $0x3a] sm:$0xff]  ;;  %v7030_v53 = vld [vmem:[%s15893_s0 + $0x32] sm:$0xff]  ;;  %v8016_v45 = vunpack.i.h.bf16 %v16459_v6 }
 0x20c   :  { %16460 = vst [vmem:[#allocation27_spill] sm:$0xff] %v12566_v12  ;;  %3486 = vmatprep.mubr.f32.mxu0 %v3040_v49  ;;  %v8335_v49 = vunpack.i.l.bf16 %v12149_v25  ;;  %2323 = vrot.lane.b32.xlu0 %v7028_v11, %s9049_s21  ;;  %v2976_v51 = vsel %vm2972_vm5, %v2911_v57, %v8331_v52  ;;  %v16464_v23 = vld [vmem:[#allocation8_spill] sm:$0xff]  ;;  %v2651_v29 = vsel %vm2647_vm0, %v24_v38, %v7531_v19  ;;  %v16466_v57 = vld [vmem:[#allocation30_spill] sm:$0xff]  ;;  %v8176_v4 = vunpack.i.h.bf16 %v16461_v50  ;;  %s9050_s21 = smov 32  }
 0x20d   :  { %v3041_v24 = vsel %vm3037_vm6, %v2976_v51, %v12523_v36  ;;  %v7535_v11 = vunpack.i.l.bf16 %v16464_v23  ;;  %v2847_v52 = vsel %vm2842_vm3, %v7855_v35, %v8015_v48  ;;  %v2716_v51 = vsel %vm2712_vm1, %v2651_v29, %v7691_v1  ;;  %v25_v6 = vld [vmem:[%s15893_s0 + $0x30] sm:$0xff]  ;;  %v16470_v29 = vld [vmem:[#allocation92_spill] sm:$0xff] }
 0x20e   :  { %v12585_v34 = vpop.permute.xlu1 %2213  ;;  %v2912_v36 = vsel %vm2907_vm4, %v2847_v52, %v8175_v8  ;;  %v7856_v48 = vunpack.i.h.bf16 %v16462_v56  ;;  %v2781_v19 = vsel %vm2777_vm2, %v2716_v51, %v7851_v30  ;;  %v7033_v1 = vld [vmem:[%s15893_s0 + $0x52] sm:$0xff]  ;;  %v7536_v56 = vunpack.i.h.bf16 %v16464_v23 }
 0x20f   :  { %3487 = vmatmul.mubr.f32.gmra.mrb[4].mxu0 %v2780_v44  ;;  %16463 = vst [vmem:[#allocation84_spill] sm:$0xff] %v12585_v34  ;;  %v12595_v62 = vpop.permute.xlu0 %2211  ;;  %v7695_v44 = vunpack.i.l.bf16 %v16466_v57  ;;  %2457 = vrot.lane.b32.xlu1 %v7031_v32, %s9050_s21  ;;  %v2977_v50 = vsel %vm2972_vm5, %v2912_v36, %v8335_v49  ;;  %v16468_v32 = vld [vmem:[#allocation83_spill] sm:$0xff]  ;;  %v7696_v52 = vunpack.i.h.bf16 %v16466_v57  ;;  %v8180_v51 = vunpack.i.l.bf16 %v16470_v29 }
 0x210   :  { %16465 = vst [vmem:[#allocation93_spill] sm:$0xff] %v12595_v62  ;;  %3491 = vmatprep.mubr.f32.mxu0 %v3041_v24  ;;  %v8336_v24 = vunpack.i.h.bf16 %v12149_v25  ;;  %2455 = vrot.lane.b32.xlu0 %v7030_v53, %s9050_s21  ;;  %v3042_v38 = vsel %vm3037_vm6, %v2977_v50, %v12566_v12  ;;  %v7032_v25 = vld [vmem:[%s15893_s0 + $0x4a] sm:$0xff]  ;;  %v8020_v30 = vunpack.i.l.bf16 %v16468_v32  ;;  %v2848_v36 = vsel %vm2842_vm3, %v7856_v48, %v8016_v45  ;;  %v26_v23 = vld [vmem:[%s15893_s0 + $0x38] sm:$0xff] }
 0x211   :  { %v2652_v53 = vsel %vm2647_vm0, %v25_v6, %v7535_v11  ;;  %v2913_v50 = vsel %vm2907_vm4, %v2848_v36, %v8176_v4  ;;  %v16471_v45 = vld [vmem:[#allocation19_spill] sm:$0xff]  ;;  %v16474_v36 = vld [vmem:[#allocation10_spill] sm:$0xff]  ;;  %v8181_v58 = vunpack.i.h.bf16 %v16470_v29 }
 0x212   :  { %v12614_v8 = vpop.permute.xlu1 %2217  ;;  %v7860_v12 = vunpack.i.l.bf16 %v16471_v45  ;;  %v2978_v57 = vsel %vm2972_vm5, %v2913_v50, %v8336_v24  ;;  %v16476_v50 = vld [vmem:[#allocation29_spill] sm:$0xff] }
 0x213   :  { %3492 = vmatmul.mubr.f32.gmra.mrb[6].mxu0 %v2781_v19  ;;  %16467 = vst [vmem:[#allocation20_spill] sm:$0xff] %v12614_v8  ;;  %v12624_v49 = vpop.permute.xlu0 %2215  ;;  %2461 = vrot.lane.b32.xlu1 %v7033_v1, %s9050_s21  ;;  %v2717_v19 = vsel %vm2712_vm1, %v2652_v53, %v7695_v44  ;;  %v7035_v44 = vld [vmem:[%s15893_s0 + $0x6a] sm:$0xff]  ;;  %v3043_v6 = vsel %vm3037_vm6, %v2978_v57, %v12556_v3  ;;  %v7034_v1 = vld [vmem:[%s15893_s0 + $0x62] sm:$0xff] }
 0x214   :  { %16469 = vst [vmem:[#allocation8_spill] sm:$0xff] %v12624_v49  ;;  %3496 = vmatprep.mubr.f32.mxu0 %v3042_v38  ;;  %v8340_v38 = vunpack.i.l.bf16 %v16472_v15  ;;  %2459 = vrot.lane.b32.xlu0 %v7032_v25, %s9050_s21  ;;  %v2782_v11 = vsel %vm2777_vm2, %v2717_v19, %v7855_v35  ;;  %v7540_v25 = vunpack.i.l.bf16 %v16474_v36  ;;  %v8021_v35 = vunpack.i.h.bf16 %v16468_v32  ;;  %v27_v32 = vld [vmem:[%s15893_s0 + $0x48] sm:$0xff] }
 0x215   :  { %v2849_v24 = vsel %vm2842_vm3, %v7860_v12, %v8020_v30  ;;  %v2653_v19 = vsel %vm2647_vm0, %v26_v23, %v7536_v56  ;;  %v7861_v30 = vunpack.i.h.bf16 %v16471_v45  ;;  %v7541_v45 = vunpack.i.h.bf16 %v16474_v36  ;;  %v28_v36 = vld [vmem:[%s15893_s0 + $0x50] sm:$0xff] }
 0x216   :  { %v12643_v4 = vpop.permute.xlu1 %2221  ;;  %v2718_v57 = vsel %vm2712_vm1, %v2653_v19, %v7696_v52  ;;  %v2914_v3 = vsel %vm2907_vm4, %v2849_v24, %v8180_v51  ;;  %v7037_v52 = vld [vmem:[%s15893_s0 + $0x82] sm:$0xff]  ;;  %v7701_v24 = vunpack.i.h.bf16 %v16476_v50  ;;  %v16480_v19 = vld [vmem:[#allocation95_spill] sm:$0xff] }
 0x217   :  { %3497 = vmatmul.mubr.f32.gmra.mrb[8].mxu0 %v2782_v11  ;;  %16473 = vst [vmem:[#allocation30_spill] sm:$0xff] %v12643_v4  ;;  %v12653_v53 = vpop.permute.xlu0 %2219  ;;  %v7700_v11 = vunpack.i.l.bf16 %v16476_v50  ;;  %2465 = vrot.lane.b32.xlu1 %v7035_v44, %s9050_s21  ;;  %v2783_v56 = vsel %vm2777_vm2, %v2718_v57, %v7856_v48  ;;  %v2979_v29 = vsel %vm2972_vm5, %v2914_v3, %v8340_v38  ;;  %v16478_v44 = vld [vmem:[#allocation86_spill] sm:$0xff]  ;;  %v8185_v57 = vunpack.i.l.bf16 %v16480_v19 }
 0x218   :  { %16475 = vst [vmem:[#allocation83_spill] sm:$0xff] %v12653_v53  ;;  %3501 = vmatprep.mubr.f32.mxu0 %v3043_v6  ;;  %v8341_v6 = vunpack.i.h.bf16 %v16472_v15  ;;  %2463 = vrot.lane.b32.xlu0 %v7034_v1, %s9050_s21  ;;  %v3044_v23 = vsel %vm3037_vm6, %v2979_v29, %v12595_v62  ;;  %v7036_v15 = vld [vmem:[%s15893_s0 + $0x7a] sm:$0xff]  ;;  %v2850_v48 = vsel %vm2842_vm3, %v7861_v30, %v8021_v35  ;;  %v8025_v3 = vunpack.i.l.bf16 %v16478_v44 }
 0x219   :  { %v2654_v1 = vsel %vm2647_vm0, %v27_v32, %v7540_v25  ;;  %v2915_v29 = vsel %vm2907_vm4, %v2850_v48, %v8181_v58  ;;  %v16481_v35 = vld [vmem:[#allocation39_spill] sm:$0xff]  ;;  %v16483_v48 = vld [vmem:[#allocation13_spill] sm:$0xff]  ;;  %v8186_v20 = vunpack.i.h.bf16 %v16480_v19 }
 0x21a   :  { %v12672_v51 = vpop.permute.xlu1 %2225  ;;  %v7865_v62 = vunpack.i.l.bf16 %v16481_v35  ;;  %v2980_v50 = vsel %vm2972_vm5, %v2915_v29, %v8341_v6  ;;  %v16484_v29 = vld [vmem:[#allocation38_spill] sm:$0xff] }
 0x21b   :  { %3502 = vmatmul.mubr.f32.gmra.mrb[10].mxu0 %v2783_v56  ;;  %16477 = vst [vmem:[#allocation92_spill] sm:$0xff] %v12672_v51  ;;  %v12682_v38 = vpop.permute.xlu0 %2223  ;;  %2469 = vrot.lane.b32.xlu1 %v7037_v52, %s9050_s21  ;;  %v2719_v56 = vsel %vm2712_vm1, %v2654_v1, %v7700_v11  ;;  %v7039_v11 = vld [vmem:[%s15893_s0 + $0x9a] sm:$0xff]  ;;  %v3045_v32 = vsel %vm3037_vm6, %v2980_v50, %v12585_v34  ;;  %v7038_v52 = vld [vmem:[%s15893_s0 + $0x92] sm:$0xff] }
 0x21c   :  { %16479 = vst [vmem:[#allocation19_spill] sm:$0xff] %v12682_v38  ;;  %3506 = vmatprep.mubr.f32.mxu0 %v3044_v23  ;;  %v8345_v23 = vunpack.i.l.bf16 %v16482_v28  ;;  %2467 = vrot.lane.b32.xlu0 %v7036_v15, %s9050_s21  ;;  %v2784_v25 = vsel %vm2777_vm2, %v2719_v56, %v7860_v12  ;;  %v7545_v15 = vunpack.i.l.bf16 %v16483_v48  ;;  %v8026_v12 = vunpack.i.h.bf16 %v16478_v44  ;;  %v29_v44 = vld [vmem:[%s15893_s0 + $0x60] sm:$0xff] }
 0x21d   :  { %v2851_v6 = vsel %vm2842_vm3, %v7865_v62, %v8025_v3  ;;  %v2655_v56 = vsel %vm2647_vm0, %v28_v36, %v7541_v45  ;;  %v7866_v3 = vunpack.i.h.bf16 %v16481_v35  ;;  %v7546_v35 = vunpack.i.h.bf16 %v16483_v48  ;;  %v30_v48 = vld [vmem:[%s15893_s0 + $0x68] sm:$0xff] }
 0x21e   :  { %v12701_v58 = vpop.permute.xlu1 %2229  ;;  %v2720_v50 = vsel %vm2712_vm1, %v2655_v56, %v7701_v24  ;;  %v2916_v34 = vsel %vm2907_vm4, %v2851_v6, %v8185_v57  ;;  %v7041_v24 = vld [vmem:[%s15893_s0 + $0xb2] sm:$0xff]  ;;  %v7706_v6 = vunpack.i.h.bf16 %v16484_v29 }
 0x21f   :  { %3507 = vmatmul.mubr.f32.gmra.mrb[12].mxu0 %v2784_v25  ;;  %v12711_v1 = vpop.permute.xlu0 %2227  ;;  %v7705_v25 = vunpack.i.l.bf16 %v16484_v29  ;;  %2473 = vrot.lane.b32.xlu1 %v7039_v11, %s9050_s21  ;;  %v2785_v45 = vsel %vm2777_vm2, %v2720_v50, %v7861_v30  ;;  %v2981_v19 = vsel %vm2972_vm5, %v2916_v34, %v8345_v23  ;;  %v16485_v11 = vld [vmem:[#allocation85_spill] sm:$0xff]  ;;  %v2852_v34 = vsel %vm2842_vm3, %v7866_v3, %v8026_v12  ;;  %v16486_v56 = vld [vmem:[#allocation94_spill] sm:$0xff] }
 0x220   :  { %3511 = vmatprep.mubr.f32.mxu0 %v3045_v32  ;;  %v8346_v32 = vunpack.i.h.bf16 %v16482_v28  ;;  %2471 = vrot.lane.b32.xlu0 %v7038_v52, %s9050_s21  ;;  %v3046_v36 = vsel %vm3037_vm6, %v2981_v19, %v12624_v49  ;;  %v7040_v28 = vld [vmem:[%s15893_s0 + $0xaa] sm:$0xff]  ;;  %v8030_v30 = vunpack.i.l.bf16 %v16485_v11  ;;  %v2656_v52 = vsel %vm2647_vm0, %v29_v44, %v7545_v15 }
 0x221   :  { %v8190_v50 = vunpack.i.l.bf16 %v16486_v56  ;;  %v2917_v19 = vsel %vm2907_vm4, %v2852_v34, %v8186_v20  ;;  %v16487_v12 = vld [vmem:[#allocation21_spill] sm:$0xff]  ;;  %v16489_v34 = vld [vmem:[#allocation12_spill] sm:$0xff]  ;;  %v8191_v17 = vunpack.i.h.bf16 %v16486_v56 }
 0x222   :  { %v12730_v57 = vpop.permute.xlu1 %2233  ;;  %v7870_v49 = vunpack.i.l.bf16 %v16487_v12  ;;  %v2982_v29 = vsel %vm2972_vm5, %v2917_v19, %v8346_v32  ;;  %v16490_v19 = vld [vmem:[#allocation35_spill] sm:$0xff] }
 0x223   :  { %3512 = vmatmul.mubr.f32.gmra.mrb[14].mxu0 %v2785_v45  ;;  %v12740_v23 = vpop.permute.xlu0 %2231  ;;  %2477 = vrot.lane.b32.xlu1 %v7041_v24, %s9050_s21  ;;  %v2721_v45 = vsel %vm2712_vm1, %v2656_v52, %v7705_v25  ;;  %v7043_v25 = vld [vmem:[%s15893_s0 + $0xca] sm:$0xff]  ;;  %v3047_v44 = vsel %vm3037_vm6, %v2982_v29, %v12614_v8  ;;  %v7042_v24 = vld [vmem:[%s15893_s0 + $0xc2] sm:$0xff] }
 0x224   :  { %3516 = vmatprep.mubr.f32.mxu0 %v3046_v36  ;;  %v8350_v36 = vunpack.i.l.bf16 %v16488_v5  ;;  %2475 = vrot.lane.b32.xlu0 %v7040_v28, %s9050_s21  ;;  %v2786_v15 = vsel %vm2777_vm2, %v2721_v45, %v7865_v62  ;;  %v7550_v28 = vunpack.i.l.bf16 %v16489_v34  ;;  %v8031_v62 = vunpack.i.h.bf16 %v16485_v11  ;;  %v31_v11 = vld [vmem:[%s15893_s0 + $0x78] sm:$0xff] }
 0x225   :  { %v2853_v32 = vsel %vm2842_vm3, %v7870_v49, %v8030_v30  ;;  %v2657_v45 = vsel %vm2647_vm0, %v30_v48, %v7546_v35  ;;  %v7871_v30 = vunpack.i.h.bf16 %v16487_v12  ;;  %v7551_v12 = vunpack.i.h.bf16 %v16489_v34  ;;  %v32_v34 = vld [vmem:[%s15893_s0 + $0x80] sm:$0xff] }
 0x226   :  { %v12759_v20 = vpop.permute.xlu1 %2237  ;;  %v2722_v29 = vsel %vm2712_vm1, %v2657_v45, %v7706_v6  ;;  %v2918_v8 = vsel %vm2907_vm4, %v2853_v32, %v8190_v50  ;;  %v7045_v6 = vld [vmem:[%s15893_s0 + $0xe2] sm:$0xff]  ;;  %v7711_v32 = vunpack.i.h.bf16 %v16490_v19 }
 0x227   :  { %3517 = vmatmul.mubr.f32.gmra.mrb[16].mxu0 %v2786_v15  ;;  %v12769_v52 = vpop.permute.xlu0 %2235  ;;  %v7710_v15 = vunpack.i.l.bf16 %v16490_v19  ;;  %2481 = vrot.lane.b32.xlu1 %v7043_v25, %s9050_s21  ;;  %v2787_v35 = vsel %vm2777_vm2, %v2722_v29, %v7866_v3  ;;  %v2983_v56 = vsel %vm2972_vm5, %v2918_v8, %v8350_v36  ;;  %v2854_v3 = vsel %vm2842_vm3, %v7871_v30, %v8031_v62  ;;  %v16491_v25 = vld [vmem:[#allocation88_spill] sm:$0xff]  ;;  %v16492_v45 = vld [vmem:[#allocation97_spill] sm:$0xff] }
 0x228   :  { %3521 = vmatprep.mubr.f32.mxu0 %v3047_v44  ;;  %v8351_v44 = vunpack.i.h.bf16 %v16488_v5  ;;  %2479 = vrot.lane.b32.xlu0 %v7042_v24, %s9050_s21  ;;  %v3048_v48 = vsel %vm3037_vm6, %v2983_v56, %v12653_v53  ;;  %v7044_v5 = vld [vmem:[%s15893_s0 + $0xda] sm:$0xff]  ;;  %v8035_v8 = vunpack.i.l.bf16 %v16491_v25  ;;  %v2658_v24 = vsel %vm2647_vm0, %v31_v11, %v7550_v28  ;;  %v16493_v62 = vld [vmem:[#allocation41_spill] sm:$0xff] }
 0x229   :  { %v8195_v29 = vunpack.i.l.bf16 %v16492_v45  ;;  %v2919_v56 = vsel %vm2907_vm4, %v2854_v3, %v8191_v17  ;;  %v7875_v53 = vunpack.i.l.bf16 %v16493_v62  ;;  %v16495_v3 = vld [vmem:[#allocation15_spill] sm:$0xff]  ;;  %v8196_v42 = vunpack.i.h.bf16 %v16492_v45 }
 0x22a   :  { %v12788_v50 = vpop.permute.xlu1 %2241  ;;  %v2984_v19 = vsel %vm2972_vm5, %v2919_v56, %v8351_v44  ;;  %v16496_v56 = vld [vmem:[#allocation48_spill] sm:$0xff] }
 0x22b   :  { %3522 = vmatmul.mubr.f32.gmra.mrb[18].mxu0 %v2787_v35  ;;  %v12798_v36 = vpop.permute.xlu0 %2239  ;;  %2485 = vrot.lane.b32.xlu1 %v7045_v6, %s9050_s21  ;;  %v2723_v35 = vsel %vm2712_vm1, %v2658_v24, %v7710_v15  ;;  %v7047_v15 = vld [vmem:[%s15893_s0 + $0xfa] sm:$0xff]  ;;  %v3049_v11 = vsel %vm3037_vm6, %v2984_v19, %v12643_v4  ;;  %v7046_v6 = vld [vmem:[%s15893_s0 + $0xf2] sm:$0xff]  ;;  %v2855_v44 = vsel %vm2842_vm3, %v7875_v53, %v8035_v8  ;;  %v7876_v8 = vunpack.i.h.bf16 %v16493_v62 }
 0x22c   :  { %3526 = vmatprep.mubr.f32.mxu0 %v3048_v48  ;;  %v8355_v48 = vunpack.i.l.bf16 %v16494_v60  ;;  %2483 = vrot.lane.b32.xlu0 %v7044_v5, %s9050_s21  ;;  %v2788_v28 = vsel %vm2777_vm2, %v2723_v35, %v7870_v49  ;;  %v7555_v5 = vunpack.i.l.bf16 %v16495_v3  ;;  %v8036_v49 = vunpack.i.h.bf16 %v16491_v25  ;;  %v33_v25 = vld [vmem:[%s15893_s0 + $0x90] sm:$0xff] }
 0x22d   :  { %v2659_v35 = vsel %vm2647_vm0, %v32_v34, %v7551_v12  ;;  %v2920_v4 = vsel %vm2907_vm4, %v2855_v44, %v8195_v29  ;;  %v7556_v62 = vunpack.i.h.bf16 %v16495_v3  ;;  %v7716_v44 = vunpack.i.h.bf16 %v16496_v56  ;;  %v34_v3 = vld [vmem:[%s15893_s0 + $0x98] sm:$0xff] }
 0x22e   :  { %v12817_v17 = vpop.permute.xlu1 %2245  ;;  %v2724_v19 = vsel %vm2712_vm1, %v2659_v35, %v7711_v32  ;;  %v2985_v45 = vsel %vm2972_vm5, %v2920_v4, %v8355_v48  ;;  %v7049_v32 = vld [vmem:[%s15893_s0 + $0x112] sm:$0xff]  ;;  %v2856_v4 = vsel %vm2842_vm3, %v7876_v8, %v8036_v49  ;;  %v16498_v35 = vld [vmem:[#allocation96_spill] sm:$0xff] }
 0x22f   :  { %3527 = vmatmul.mubr.f32.gmra.mrb[20].mxu0 %v2788_v28  ;;  %v12827_v24 = vpop.permute.xlu0 %2243  ;;  %v7715_v28 = vunpack.i.l.bf16 %v16496_v56  ;;  %2489 = vrot.lane.b32.xlu1 %v7047_v15, %s9050_s21  ;;  %v2789_v12 = vsel %vm2777_vm2, %v2724_v19, %v7871_v30  ;;  %v3050_v34 = vsel %vm3037_vm6, %v2985_v45, %v12682_v38  ;;  %v16497_v15 = vld [vmem:[#allocation87_spill] sm:$0xff]  ;;  %v8200_v19 = vunpack.i.l.bf16 %v16498_v35  ;;  %v16499_v49 = vld [vmem:[#allocation22_spill] sm:$0xff] }
 0x230   :  { %3531 = vmatprep.mubr.f32.mxu0 %v3049_v11  ;;  %v8356_v11 = vunpack.i.h.bf16 %v16494_v60  ;;  %2487 = vrot.lane.b32.xlu0 %v7046_v6, %s9050_s21  ;;  %v7048_v60 = vld [vmem:[%s15893_s0 + $0x10a] sm:$0xff]  ;;  %v8040_v30 = vunpack.i.l.bf16 %v16497_v15  ;;  %v2660_v6 = vsel %vm2647_vm0, %v33_v25, %v7555_v5  ;;  %v2921_v45 = vsel %vm2907_vm4, %v2856_v4, %v8196_v42 }
 0x231   :  { %v7880_v38 = vunpack.i.l.bf16 %v16499_v49  ;;  %v16501_v4 = vld [vmem:[#allocation14_spill] sm:$0xff]  ;;  %v8201_v10 = vunpack.i.h.bf16 %v16498_v35 }
 0x232   :  { %v12846_v29 = vpop.permute.xlu1 %2249  ;;  %v2986_v56 = vsel %vm2972_vm5, %v2921_v45, %v8356_v11  ;;  %v16502_v45 = vld [vmem:[#allocation45_spill] sm:$0xff] }
 0x233   :  { %3532 = vmatmul.mubr.f32.gmra.mrb[22].mxu0 %v2789_v12  ;;  %v12856_v48 = vpop.permute.xlu0 %2247  ;;  %2493 = vrot.lane.b32.xlu1 %v7049_v32, %s9050_s21  ;;  %v2725_v12 = vsel %vm2712_vm1, %v2660_v6, %v7715_v28  ;;  %v7051_v28 = vld [vmem:[%s15893_s0 + $0x12a] sm:$0xff]  ;;  %v3051_v25 = vsel %vm3037_vm6, %v2986_v56, %v12672_v51  ;;  %v7050_v32 = vld [vmem:[%s15893_s0 + $0x122] sm:$0xff]  ;;  %v2857_v11 = vsel %vm2842_vm3, %v7880_v38, %v8040_v30  ;;  %v7881_v30 = vunpack.i.h.bf16 %v16499_v49 }
 0x234   :  { %3536 = vmatprep.mubr.f32.mxu0 %v3050_v34  ;;  %v8360_v34 = vunpack.i.l.bf16 %v16500_v27  ;;  %2491 = vrot.lane.b32.xlu0 %v7048_v60, %s9050_s21  ;;  %v2790_v5 = vsel %vm2777_vm2, %v2725_v12, %v7875_v53  ;;  %v7560_v60 = vunpack.i.l.bf16 %v16501_v4  ;;  %v8041_v53 = vunpack.i.h.bf16 %v16497_v15  ;;  %v35_v15 = vld [vmem:[%s15893_s0 + $0xa8] sm:$0xff] }
 0x235   :  { %v2661_v12 = vsel %vm2647_vm0, %v34_v3, %v7556_v62  ;;  %v2922_v51 = vsel %vm2907_vm4, %v2857_v11, %v8200_v19  ;;  %v7561_v49 = vunpack.i.h.bf16 %v16501_v4  ;;  %v7721_v11 = vunpack.i.h.bf16 %v16502_v45  ;;  %v36_v4 = vld [vmem:[%s15893_s0 + $0xb0] sm:$0xff] }
 0x236   :  { %v12875_v42 = vpop.permute.xlu1 %2253  ;;  %v2726_v56 = vsel %vm2712_vm1, %v2661_v12, %v7716_v44  ;;  %v2987_v35 = vsel %vm2972_vm5, %v2922_v51, %v8360_v34  ;;  %v7053_v44 = vld [vmem:[%s15893_s0 + $0x142] sm:$0xff]  ;;  %v16504_v12 = vld [vmem:[#allocation98_spill] sm:$0xff] }
 0x237   :  { %3537 = vmatmul.mubr.f32.gmra.mrb[24].mxu0 %v2790_v5  ;;  %v12885_v6 = vpop.permute.xlu0 %2251  ;;  %v7720_v5 = vunpack.i.l.bf16 %v16502_v45  ;;  %2497 = vrot.lane.b32.xlu1 %v7051_v28, %s9050_s21  ;;  %v2791_v62 = vsel %vm2777_vm2, %v2726_v56, %v7876_v8  ;;  %v3052_v3 = vsel %vm3037_vm6, %v2987_v35, %v12711_v1  ;;  %v2858_v8 = vsel %vm2842_vm3, %v7881_v30, %v8041_v53  ;;  %v16503_v28 = vld [vmem:[#allocation89_spill] sm:$0xff]  ;;  %v16505_v53 = vld [vmem:[#allocation106_spill] sm:$0xff] }
 0x238   :  { %3541 = vmatprep.mubr.f32.mxu0 %v3051_v25  ;;  %v8361_v25 = vunpack.i.h.bf16 %v16500_v27  ;;  %2495 = vrot.lane.b32.xlu0 %v7050_v32, %s9050_s21  ;;  %v7052_v27 = vld [vmem:[%s15893_s0 + $0x13a] sm:$0xff]  ;;  %v8045_v51 = vunpack.i.l.bf16 %v16503_v28  ;;  %v2662_v32 = vsel %vm2647_vm0, %v35_v15, %v7560_v60  ;;  %v8205_v56 = vunpack.i.l.bf16 %v16504_v12 }
 0x239   :  { %v2923_v35 = vsel %vm2907_vm4, %v2858_v8, %v8201_v10  ;;  %v8365_v28 = vunpack.i.l.bf16 %v16505_v53  ;;  %v7055_v15 = vld [vmem:[%s15893_s0 + $0x15a] sm:$0xff] }
 0x23a   :  { %v12904_v19 = vpop.permute.xlu1 %2257  ;;  %v2988_v45 = vsel %vm2972_vm5, %v2923_v35, %v8361_v25  ;;  %v2663_v25 = vsel %vm2647_vm0, %v36_v4, %v7561_v49  ;;  %v16508_v4 = vld [vmem:[#allocation43_spill] sm:$0xff] }
 0x23b   :  { %3542 = vmatmul.mubr.f32.gmra.mrb[26].mxu0 %v2791_v62  ;;  %v12914_v34 = vpop.permute.xlu0 %2255  ;;  %2501 = vrot.lane.b32.xlu1 %v7053_v44, %s9050_s21  ;;  %v2727_v62 = vsel %vm2712_vm1, %v2662_v32, %v7720_v5  ;;  %v3053_v10 = vsel %vm3037_vm6, %v2988_v45, %v12701_v58  ;;  %v7054_v44 = vld [vmem:[%s15893_s0 + $0x152] sm:$0xff]  ;;  %v2728_v32 = vsel %vm2712_vm1, %v2663_v25, %v7721_v11  ;;  %v7056_v11 = vld [vmem:[%s15893_s0 + $0x16a] sm:$0xff]  ;;  %v7058_v45 = vld [vmem:[%s15893_s0 + $0x182] sm:$0xff] }
 0x23c   :  { %3546 = vmatprep.mubr.f32.mxu0 %v3052_v3  ;;  %2499 = vrot.lane.b32.xlu0 %v7052_v27, %s9050_s21  ;;  %v2792_v60 = vsel %vm2777_vm2, %v2727_v62, %v7880_v38  ;;  %v16506_v3 = vld [vmem:[#allocation40_spill] sm:$0xff]  ;;  %v2793_v62 = vsel %vm2777_vm2, %v2728_v32, %v7881_v30  ;;  %v7059_v30 = vld [vmem:[%s15893_s0 + $0x18a] sm:$0xff]  ;;  %v16510_v32 = vld [vmem:[#allocation23_spill] sm:$0xff] }
 0x23d   :  { %v16507_v27 = vunpack.i.l.bf16 %v16506_v3  ;;  %v7063_v25 = vld [vmem:[%s15893_s0 + $0x1ea] sm:$0xff] }
 0x23e   :  { %v12932_v5 = vpop.permute.xlu1 %2261 }
 0x23f   :  { %3547 = vmatmul.mubr.f32.gmra.mrb[28].mxu0 %v2792_v60  ;;  %v2859_v38 = vsel %vm2842_vm3, %v16507_v27, %v8045_v51  ;;  %v12942_v8 = vpop.permute.xlu0 %2259  ;;  %2505 = vrot.lane.b32.xlu1 %v7055_v15, %s9050_s21  ;;  %v7057_v51 = vld [vmem:[%s15893_s0 + $0x172] sm:$0xff]  ;;  %v3055_v60 = vsel %vm3037_vm6, %v12204_v7, %v12730_v57  ;;  %v3056_v7 = vsel %vm3037_vm6, %v12193_v47, %v12769_v52  ;;  %v7060_v27 = vld [vmem:[%s15893_s0 + $0x19a] sm:$0xff] }
 0x240   :  { %3551 = vmatprep.mubr.f32.mxu0 %v3053_v10  ;;  %v2924_v12 = vsel %vm2907_vm4, %v2859_v38, %v8205_v56  ;;  %2503 = vrot.lane.b32.xlu0 %v7054_v44, %s9050_s21  ;;  %v7061_v10 = vld [vmem:[%s15893_s0 + $0x1a2] sm:$0xff]  ;;  %v16509_v44 = vld [vmem:[#allocation42_spill] sm:$0xff]  ;;  %v3057_v47 = vsel %vm3037_vm6, %v12197_v40, %v12759_v20  ;;  %v3058_v40 = vsel %vm3037_vm6, %v12224_v21, %v12798_v36 }
 0x241   :  { %v2989_v35 = vsel %vm2972_vm5, %v2924_v12, %v8365_v28  ;;  %v3059_v21 = vsel %vm3037_vm6, %v12228_v18, %v12788_v50  ;;  %v3060_v18 = vsel %vm3037_vm6, %v12213_v55, %v12827_v24  ;;  %v3061_v55 = vsel %vm3037_vm6, %v12217_v39, %v12817_v17 }
 0x242   :  { %v12954_v53 = vpop.permute.xlu1 %2265  ;;  %v3054_v49 = vsel %vm3037_vm6, %v2989_v35, %v12740_v23  ;;  %v3062_v39 = vsel %vm3037_vm6, %v12248_v61, %v12856_v48 }
 0x243   :  { %3552 = vmatmul.mubr.f32.gmra.mrb[30].mxu0 %v2793_v62  ;;  %v12961_v56 = vpop.permute.xlu0 %2263  ;;  %2509 = vrot.lane.b32.xlu1 %v7057_v51, %s9050_s21  ;;  %v7062_v62 = vld [vmem:[%s15893_s0 + $0x1e2] sm:$0xff] }
 0x244   :  { %3556 = vmatprep.mubr.f32.mxu0 %v3054_v49  ;;  %2507 = vrot.lane.b32.xlu0 %v7056_v11, %s9050_s21  ;;  %v7065_v51 = vld [vmem:[%s15893_s0 + $0x202] sm:$0xff] }
 0x245   :  { %v16511_v49 = vld [vmem:[#allocation24_spill] sm:$0xff] }
 0x246   :  { %v12969_v28 = vpop.permute.xlu1 %2269 }
 0x247   :  { %3557 = vmatmul.mubr.f32.gmra.mrb[32].mxu0 %v16508_v4  ;;  %v12977_v15 = vpop.permute.xlu0 %2267  ;;  %2513 = vrot.lane.b32.xlu1 %v7059_v30, %s9050_s21  ;;  %v7064_v30 = vld [vmem:[%s15893_s0 + $0x1fa] sm:$0xff] }
 0x248   :  { %3561 = vmatprep.mubr.f32.mxu0 %v3055_v60  ;;  %2511 = vrot.lane.b32.xlu0 %v7058_v45, %s9050_s21  ;;  %v7067_v60 = vld [vmem:[%s15893_s0 + $0x21a] sm:$0xff]  ;;  %v16512_v45 = vld [vmem:[#allocation26_spill] sm:$0xff] }
 0x24a   :  { %v12985_v3 = vpop.permute.xlu1 %2273 }
 0x24b   :  { %3562 = vmatmul.mubr.f32.gmra.mrb[34].mxu0 %v16509_v44  ;;  %v12993_v38 = vpop.permute.xlu0 %2271  ;;  %2517 = vrot.lane.b32.xlu1 %v7061_v10, %s9050_s21  ;;  %v7066_v44 = vld [vmem:[%s15893_s0 + $0x212] sm:$0xff] }
 0x24c   :  { %3566 = vmatprep.mubr.f32.mxu0 %v3056_v7  ;;  %2515 = vrot.lane.b32.xlu0 %v7060_v27, %s9050_s21  ;;  %v7069_v27 = vld [vmem:[%s15893_s0 + $0x232] sm:$0xff] }
 0x24e   :  { %v13001_v12 = vpop.permute.xlu1 %2277 }
 0x24f   :  { %3567 = vmatmul.mubr.f32.gmra.mrb[36].mxu0 %v16510_v32  ;;  %v13009_v35 = vpop.permute.xlu0 %2275  ;;  %2521 = vrot.lane.b32.xlu1 %v7063_v25, %s9050_s21  ;;  %v16513_v25 = vld [vmem:[#allocation47_spill] sm:$0xff] }
 0x250   :  { %3571 = vmatprep.mubr.f32.mxu0 %v3057_v47  ;;  %2519 = vrot.lane.b32.xlu0 %v7062_v62, %s9050_s21  ;;  %v7068_v47 = vld [vmem:[%s15893_s0 + $0x22a] sm:$0xff] }
 0x252   :  { %v13017_v11 = vpop.permute.xlu1 %2281 }
 0x253   :  { %3572 = vmatmul.mubr.f32.gmra.mrb[38].mxu0 %v16511_v49  ;;  %v13025_v4 = vpop.permute.xlu0 %2279  ;;  %2525 = vrot.lane.b32.xlu1 %v7065_v51, %s9050_s21  ;;  %v7071_v51 = vld [vmem:[%s15893_s0 + $0x24a] sm:$0xff]  ;;  %v16514_v49 = vld [vmem:[#allocation44_spill] sm:$0xff] }
 0x254   :  { %3576 = vmatprep.mubr.f32.mxu0 %v3058_v40  ;;  %2523 = vrot.lane.b32.xlu0 %v7064_v30, %s9050_s21  ;;  %v7070_v30 = vld [vmem:[%s15893_s0 + $0x242] sm:$0xff] }
 0x256   :  { %v13033_v10 = vpop.permute.xlu1 %2285 }
 0x257   :  { %3577 = vmatmul.mubr.f32.gmra.mrb[40].mxu0 %v16512_v45  ;;  %v13041_v7 = vpop.permute.xlu0 %2283  ;;  %2529 = vrot.lane.b32.xlu1 %v7067_v60, %s9050_s21  ;;  %v7073_v45 = vld [vmem:[%s15893_s0 + $0x262] sm:$0xff] }
 0x258   :  { %3581 = vmatprep.mubr.f32.mxu0 %v3059_v21  ;;  %2527 = vrot.lane.b32.xlu0 %v7066_v44, %s9050_s21  ;;  %v16515_v21 = vld [vmem:[#allocation25_spill] sm:$0xff] }
 0x25a   :  { %v13049_v32 = vpop.permute.xlu1 %2289 }
 0x25b   :  { %3582 = vmatmul.mubr.f32.gmra.mrb[42].mxu0 %v16513_v25  ;;  %v13057_v62 = vpop.permute.xlu0 %2287  ;;  %2533 = vrot.lane.b32.xlu1 %v7069_v27, %s9050_s21  ;;  %v7072_v27 = vld [vmem:[%s15893_s0 + $0x25a] sm:$0xff]  ;;  %v3201_v25 = vld [vmem:[%s15895_s2 + $0x110] sm:$0xff] }
 0x25c   :  { %3586 = vmatprep.mubr.f32.mxu0 %v3060_v18  ;;  %2531 = vrot.lane.b32.xlu0 %v7068_v47, %s9050_s21  ;;  %v3202_v18 = vld [vmem:[%s15895_s2 + $0x118] sm:$0xff] }
 0x25e   :  { %v13065_v40 = vpop.permute.xlu1 %2293 }
 0x25f   :  { %3587 = vmatmul.mubr.f32.gmra.mrb[44].mxu0 %v16514_v49  ;;  %v13073_v60 = vpop.permute.xlu0 %2291  ;;  %2537 = vrot.lane.b32.xlu1 %v7071_v51, %s9050_s21  ;;  %v7075_v51 = vld [vmem:[%s15893_s0 + $0x27a] sm:$0xff]  ;;  %v7463_v49 = vpack.c.bf16 %v3202_v18, %v3201_v25  ;;  %v7077_v18 = vld [vmem:[%s15893_s0 + $0x292] sm:$0xff] }
 0x260   :  { %3591 = vmatprep.mubr.f32.mxu0 %v3061_v55  ;;  %2535 = vrot.lane.b32.xlu0 %v7070_v30, %s9050_s21  ;;  %v16516_v55 = vld [vmem:[#allocation50_spill] sm:$0xff] }
 0x261   :  { %v16517_v30 = vld [vmem:[#allocation34_spill] sm:$0xff] }
 0x262   :  { %v13081_v44 = vpop.permute.xlu1 %2297 }
 0x263   :  { %3592 = vmatmul.mubr.f32.gmra.mrb[46].mxu0 %v16515_v21  ;;  %v13095_v47 = vpop.permute.xlu0 %2295  ;;  %2541 = vrot.lane.b32.xlu1 %v7073_v45, %s9050_s21  ;;  %v3063_v45 = vsel %vm3037_vm6, %v12252_v9, %v12846_v29  ;;  %v3087_v9 = vsel %vm3037_vm6, %v12405_v31, %v13081_v44  ;;  %v3064_v31 = vsel %vm3037_vm6, %v12237_v0, %v12885_v6  ;;  %v7079_v0 = vld [vmem:[%s15893_s0 + $0x2aa] sm:$0xff] }
 0x264   :  { %3596 = vmatprep.mubr.f32.mxu0 %v3062_v39  ;;  %v3086_v61 = vsel %vm3037_vm6, %v12401_v13, %v13095_v47  ;;  %2539 = vrot.lane.b32.xlu0 %v7072_v27, %s9050_s21  ;;  %v7074_v13 = vld [vmem:[%s15893_s0 + $0x272] sm:$0xff]  ;;  %v3203_v39 = vld [vmem:[%s15895_s2 + $0x120] sm:$0xff]  ;;  %v3204_v27 = vld [vmem:[%s15895_s2 + $0x128] sm:$0xff] }
 0x265   :  { %3716 = vmatprep.mubr.f32.mxu1 %v3086_v61  ;;  %v7467_v61 = vpack.c.bf16 %v3204_v27, %v3203_v39  ;;  %v3206_v39 = vld [vmem:[%s15895_s2 + $0x138] sm:$0xff] }
 0x266   :  { %3717 = vmatmul.mubr.f32.vlgmr.msra.gmra.mrb[0].mxu1 %v16517_v30  ;;  %v13107_v21 = vpop.permute.xlu1 %2301 }
 0x267   :  { %3597 = vmatmul.mubr.f32.gmra.mrb[48].mxu0 %v16516_v55  ;;  %16518 = vst [vmem:[#allocation101_spill] sm:$0xff] %v13107_v21  ;;  %7462 = vmatpush3.bf16.msra.mxu1 %v12285_v37  ;;  %v13122_v25 = vpop.permute.xlu0 %2299  ;;  %v16519_v55 = vld [vmem:[#allocation51_spill] sm:$0xff]  ;;  %v16520_v37 = vld [vmem:[#allocation33_spill] sm:$0xff] }
 0x268   :  { %3601 = vmatprep.mubr.f32.mxu0 %v3063_v45  ;;  %3721 = vmatprep.mubr.f32.mxu1 %v3087_v9  ;;  %v7076_v45 = vld [vmem:[%s15893_s0 + $0x28a] sm:$0xff] }
 0x269   :  { %2545 = vrot.lane.b32.xlu1 %v7075_v51, %s9050_s21  ;;  %2543 = vrot.lane.b32.xlu0 %v7074_v13, %s9050_s21  ;;  %v3088_v51 = vsel %vm3037_vm6, %v12390_v16, %v13122_v25  ;;  %v3205_v13 = vld [vmem:[%s15895_s2 + $0x130] sm:$0xff] }
 0x26a   :  { %7464 = vmatprep.subr.bf16.mxu1 %v7463_v49  ;;  %3722 = vmatmul.mubr.f32.gmra.mrb[2].mxu1 %v16520_v37  ;;  %v13134_v30 = vpop.permute.xlu1 %2305  ;;  %v7471_v16 = vpack.c.bf16 %v3206_v39, %v3205_v13  ;;  %v16523_v9 = vld [vmem:[#allocation46_spill] sm:$0xff]  ;;  %v3066_v39 = vsel %vm3037_vm6, %v12272_v26, %v12914_v34  ;;  %v7083_v26 = vld [vmem:[%s15893_s0 + $0x2da] sm:$0xff] }
 0x26b   :  { %3602 = vmatmul.mubr.f32.gmra.mrb[50].mxu0 %v16519_v55  ;;  %16521 = vst [vmem:[#allocation10_spill] sm:$0xff] %v13134_v30  ;;  %v13151_v27 = vpop.permute.xlu0 %2303  ;;  %3726 = vmatprep.mubr.f32.mxu1 %v3088_v51  ;;  %v16524_v55 = vld [vmem:[#allocation32_spill] sm:$0xff] }
 0x26c   :  { %16522 = vst [vmem:[#allocation29_spill] sm:$0xff] %v13151_v27  ;;  %3606 = vmatprep.mubr.f32.mxu0 %v3064_v31  ;;  %7466 = vmatpush3.bf16.msra.mxu1 %v7463_v49  ;;  %v3065_v31 = vsel %vm3037_vm6, %v12241_v22, %v12875_v42  ;;  %v3089_v49 = vsel %vm3037_vm6, %v12394_v2, %v13107_v21  ;;  %v7081_v22 = vld [vmem:[%s15893_s0 + $0x2c2] sm:$0xff]  ;;  %v16528_v2 = vld [vmem:[#allocation31_spill] sm:$0xff]  ;;  %v16580_v21 = vld [vmem:[#allocation66_spill] sm:$0xff] }
 0x26d   :  { %2549 = vrot.lane.b32.xlu1 %v7077_v18, %s9050_s21  ;;  %2547 = vrot.lane.b32.xlu0 %v7076_v45, %s9050_s21  ;;  %v7078_v18 = vld [vmem:[%s15893_s0 + $0x2a2] sm:$0xff] }
 0x26e   :  { %7468 = vmatprep.subr.bf16.mxu1 %v7467_v61  ;;  %3727 = vmatmul.mubr.f32.gmra.mrb[4].mxu1 %v16524_v55  ;;  %v13160_v37 = vpop.permute.xlu1 %2309  ;;  %v16527_v45 = vld [vmem:[#allocation49_spill] sm:$0xff] }
 0x26f   :  { %3607 = vmatmul.mubr.f32.gmra.mrb[52].mxu0 %v16523_v9  ;;  %16525 = vst [vmem:[#allocation86_spill] sm:$0xff] %v13160_v37  ;;  %v13171_v51 = vpop.permute.xlu0 %2307  ;;  %3731 = vmatprep.mubr.f32.mxu1 %v3089_v49  ;;  %v3207_v9 = vld [vmem:[%s15895_s2 + $0x140] sm:$0xf] }
 0x270   :  { %16526 = vst [vmem:[#allocation95_spill] sm:$0xff] %v13171_v51  ;;  %3611 = vmatprep.mubr.f32.mxu0 %v3065_v31  ;;  %7470 = vmatpush3.bf16.msra.mxu1 %v7467_v61  ;;  %v3090_v61 = vsel %vm3037_vm6, %v12425_v14, %v13151_v27  ;;  %v16531_v14 = vld [vmem:[#allocation54_spill] sm:$0xff]  ;;  %v16532_v31 = vld [vmem:[#allocation73_spill] sm:$0xff] }
 0x271   :  { %2553 = vrot.lane.b32.xlu1 %v7079_v0, %s9050_s21  ;;  %2551 = vrot.lane.b32.xlu0 %v7078_v18, %s9050_s21  ;;  %v7080_v0 = vld [vmem:[%s15893_s0 + $0x2ba] sm:$0xff]  ;;  %v3067_v18 = vsel %vm3037_vm6, %v12276_v43, %v12904_v19  ;;  %v7085_v43 = vld [vmem:[%s15893_s0 + $0x2f2] sm:$0xff] }
 0x272   :  { %7472 = vmatprep.subr.bf16.mxu1 %v7471_v16  ;;  %3732 = vmatmul.mubr.f32.gmra.mrb[6].mxu1 %v16528_v2  ;;  %v13180_v13 = vpop.permute.xlu1 %2313  ;;  %v16535_v2 = vld [vmem:[#allocation55_spill] sm:$0xff] }
 0x273   :  { %3612 = vmatmul.mubr.f32.gmra.mrb[54].mxu0 %v16527_v45  ;;  %16529 = vst [vmem:[#allocation39_spill] sm:$0xff] %v13180_v13  ;;  %v13194_v55 = vpop.permute.xlu0 %2311  ;;  %3736 = vmatprep.mubr.f32.mxu1 %v3090_v61  ;;  %v3068_v61 = vsel %vm3037_vm6, %v12261_v63, %v12942_v8  ;;  %v7087_v63 = vld [vmem:[%s15893_s0 + $0x30a] sm:$0xff] }
 0x274   :  { %16530 = vst [vmem:[#allocation103_spill] sm:$0xff] %v13194_v55  ;;  %3616 = vmatprep.mubr.f32.mxu0 %v3066_v39  ;;  %7474 = vmatpush3.bf16.msra.mxu1 %v7471_v16  ;;  %v3091_v16 = vsel %vm3037_vm6, %v12429_v54, %v13134_v30  ;;  %v16536_v54 = vld [vmem:[#allocation74_spill] sm:$0xff] }
 0x275   :  { %2557 = vrot.lane.b32.xlu1 %v7081_v22, %s9050_s21  ;;  %2555 = vrot.lane.b32.xlu0 %v7080_v0, %s9050_s21  ;;  %v7082_v22 = vld [vmem:[%s15893_s0 + $0x2d2] sm:$0xff]  ;;  %v3092_v0 = vsel %vm3037_vm6, %v12414_v59, %v13171_v51 }
 0x276   :  { %7313 = vmatprep.subr.msk.mxu1 %vm3408_vm7, %v3207_v9  ;;  %3737 = vmatmul.mubr.f32.gmra.mrb[8].mxu1 %v16532_v31  ;;  %v13204_v49 = vpop.permute.xlu1 %2317  ;;  %v16540_v31 = vld [vmem:[#allocation71_spill] sm:$0xff] }
 0x277   :  { %3617 = vmatmul.mubr.f32.gmra.mrb[56].mxu0 %v16531_v14  ;;  %16533 = vst [vmem:[#allocation13_spill] sm:$0xff] %v13204_v49  ;;  %v13215_v45 = vpop.permute.xlu0 %2315  ;;  %3741 = vmatprep.mubr.f32.mxu1 %v3091_v16  ;;  %v16539_v14 = vld [vmem:[#allocation52_spill] sm:$0xff]  ;;  %v3093_v16 = vsel %vm3037_vm6, %v12418_v46, %v13160_v37 }
 0x278   :  { %16534 = vst [vmem:[#allocation38_spill] sm:$0xff] %v13215_v45  ;;  %3621 = vmatprep.mubr.f32.mxu0 %v3067_v18  ;;  %7314 = vmatpush3.msk.msra.mxu1 %vm3408_vm7, %v3207_v9  ;;  %v7084_v9 = vld [vmem:[%s15893_s0 + $0x2ea] sm:$0xff]  ;;  %v3069_v18 = vsel %vm3037_vm6, %v12265_v33, %v12932_v5  ;;  %v7089_v33 = vld [vmem:[%s15893_s0 + $0x322] sm:$0xff] }
 0x279   :  { %2561 = vrot.lane.b32.xlu1 %v7083_v26, %s9050_s21  ;;  %2559 = vrot.lane.b32.xlu0 %v7082_v22, %s9050_s21  ;;  %v7086_v22 = vld [vmem:[%s15893_s0 + $0x302] sm:$0xff] }
 0x27a   :  { %3742 = vmatmul.mubr.f32.gmra.mrb[10].mxu1 %v16536_v54  ;;  %v13225_v39 = vpop.permute.xlu1 %2321  ;;  %v16544_v54 = vld [vmem:[#allocation72_spill] sm:$0xff] }
 0x27b   :  { %3622 = vmatmul.mubr.f32.gmra.mrb[58].mxu0 %v16535_v2  ;;  %16537 = vst [vmem:[#allocation85_spill] sm:$0xff] %v13225_v39  ;;  %v13236_v26 = vpop.permute.xlu0 %2319  ;;  %3746 = vmatprep.mubr.f32.mxu1 %v3092_v0  ;;  %v16543_v2 = vld [vmem:[#allocation53_spill] sm:$0xff]  ;;  %v16545_v0 = vld [vmem:[#allocation28_spill] sm:$0xff] }
 0x27c   :  { %16538 = vst [vmem:[#allocation94_spill] sm:$0xff] %v13236_v26  ;;  %3626 = vmatprep.mubr.f32.mxu0 %v3068_v61  ;;  %v3070_v61 = vsel %vm3037_vm6, %v12305_v41, %v12961_v56  ;;  %v7091_v41 = vld [vmem:[%s15893_s0 + $0x33a] sm:$0xff] }
 0x27d   :  { %2565 = vrot.lane.b32.xlu1 %v7085_v43, %s9050_s21  ;;  %2563 = vrot.lane.b32.xlu0 %v7084_v9, %s9050_s21  ;;  %v3094_v9 = vsel %vm3037_vm6, %v16545_v0, %v13194_v55 }
 0x27e   :  { %3747 = vmatmul.mubr.f32.gmra.mrb[12].mxu1 %v16540_v31  ;;  %v13245_v59 = vpop.permute.xlu1 %2325  ;;  %v16546_v31 = vld [vmem:[#allocation58_spill] sm:$0xff] }
 0x27f   :  { %3627 = vmatmul.mubr.f32.gmra.mrb[60].mxu0 %v16539_v14  ;;  %16541 = vst [vmem:[#allocation21_spill] sm:$0xff] %v13245_v59  ;;  %v13256_v43 = vpop.permute.xlu0 %2323  ;;  %3751 = vmatprep.mubr.f32.mxu1 %v3093_v16 }
 0x280   :  { %16542 = vst [vmem:[#allocation102_spill] sm:$0xff] %v13256_v43  ;;  %3631 = vmatprep.mubr.f32.mxu0 %v3069_v18  ;;  %v16547_v18 = vld [vmem:[#allocation75_spill] sm:$0xff] }
 0x281   :  { %2569 = vrot.lane.b32.xlu1 %v7087_v63, %s9050_s21  ;;  %2567 = vrot.lane.b32.xlu0 %v7086_v22, %s9050_s21  ;;  %v7088_v63 = vld [vmem:[%s15893_s0 + $0x31a] sm:$0xff] }
 0x282   :  { %3752 = vmatmul.mubr.f32.gmra.mrb[14].mxu1 %v16544_v54  ;;  %v13265_v46 = vpop.permute.xlu1 %2457  ;;  %v16548_v22 = vld [vmem:[#allocation107_spill] sm:$0xff]  ;;  %v16549_v54 = vld [vmem:[#allocation36_spill] sm:$0xff] }
 0x283   :  { %3632 = vmatmul.mubr.f32.gmra.mrb[62].mxu0 %v16543_v2  ;;  %v13276_v14 = vpop.permute.xlu0 %2455  ;;  %3756 = vmatprep.mubr.f32.mxu1 %v3094_v9  ;;  %v3071_v2 = vsel %vm3037_vm6, %v16548_v22, %v12954_v53  ;;  %v7093_v9 = vld [vmem:[%s15893_s0 + $0x352] sm:$0xff] }
 0x284   :  { %3636 = vmatprep.mubr.f32.mxu0 %v3070_v61  ;;  %v7090_v61 = vld [vmem:[%s15893_s0 + $0x332] sm:$0xff] }
 0x285   :  { %2573 = vrot.lane.b32.xlu1 %v7089_v33, %s9050_s21  ;;  %2571 = vrot.lane.b32.xlu0 %v7088_v63, %s9050_s21  ;;  %v3095_v33 = vsel %vm3037_vm6, %v16549_v54, %v13180_v13  ;;  %v16550_v63 = vld [vmem:[#allocation59_spill] sm:$0xff] }
 0x286   :  { %3757 = vmatmul.mubr.f32.gmra.mrb[16].mxu1 %v16547_v18  ;;  %v13285_v16 = vpop.permute.xlu1 %2461  ;;  %v16552_v22 = vld [vmem:[#allocation99_spill] sm:$0xff] }
 0x287   :  { %3637 = vmatmul.mubr.f32.gmra.mrb[64].mxu0 %v16546_v31  ;;  %v13296_v0 = vpop.permute.xlu0 %2459  ;;  %3761 = vmatprep.mubr.f32.mxu1 %v3095_v33  ;;  %v16551_v31 = vld [vmem:[#allocation76_spill] sm:$0xff]  ;;  %v3072_v54 = vsel %vm3037_vm6, %v16552_v22, %v12977_v15  ;;  %v7092_v33 = vld [vmem:[%s15893_s0 + $0x34a] sm:$0xff] }
 0x288   :  { %3641 = vmatprep.mubr.f32.mxu0 %v3071_v2  ;;  %v16553_v2 = vld [vmem:[#allocation9_spill] sm:$0xff] }
 0x289   :  { %2577 = vrot.lane.b32.xlu1 %v7091_v41, %s9050_s21  ;;  %2575 = vrot.lane.b32.xlu0 %v7090_v61, %s9050_s21  ;;  %v3096_v41 = vsel %vm3037_vm6, %v16553_v2, %v13215_v45  ;;  %v16555_v22 = vld [vmem:[#allocation17_spill] sm:$0xff]  ;;  %v16556_v45 = vld [vmem:[#allocation100_spill] sm:$0xff] }
 0x28a   :  { %3762 = vmatmul.mubr.f32.gmra.mrb[18].mxu1 %v16551_v31  ;;  %v13305_v18 = vpop.permute.xlu1 %2465  ;;  %v16554_v31 = vld [vmem:[#allocation56_spill] sm:$0xff]  ;;  %v3073_v13 = vsel %vm3037_vm6, %v16556_v45, %v12969_v28  ;;  %v4185_v45 = vld [vmem:[%s15894_s1 + $0x18] sm:$0xff] }
 0x28b   :  { %3642 = vmatmul.mubr.f32.gmra.mrb[66].mxu0 %v16550_v63  ;;  %v13316_v61 = vpop.permute.xlu0 %2463  ;;  %3766 = vmatprep.mubr.f32.mxu1 %v3096_v41  ;;  %v4183_v63 = vld [vmem:[%s15894_s1 + $0x8] sm:$0xff]  ;;  %v4182_v41 = vld [vmem:[%s15894_s1] sm:$0xff] }
 0x28c   :  { %3646 = vmatprep.mubr.f32.mxu0 %v3072_v54  ;;  %v16557_v54 = vld [vmem:[#allocation82_spill] sm:$0xff] }
 0x28d   :  { %2581 = vrot.lane.b32.xlu1 %v7093_v9, %s9050_s21  ;;  %2579 = vrot.lane.b32.xlu0 %v7092_v33, %s9050_s21  ;;  %v3097_v9 = vsel %vm3037_vm6, %v16557_v54, %v13204_v49  ;;  %v16560_v49 = vld [vmem:[#allocation110_spill] sm:$0xff] }
 0x28e   :  { %3767 = vmatmul.mubr.f32.gmra.mrb[20].mxu1 %v16555_v22  ;;  %v13325_v2 = vpop.permute.xlu1 %2469  ;;  %v16559_v22 = vld [vmem:[#allocation18_spill] sm:$0xff]  ;;  %v3074_v55 = vsel %vm3037_vm6, %v16560_v49, %v12993_v38  ;;  %v4187_v49 = vld [vmem:[%s15894_s1 + $0x28] sm:$0xff] }
 0x28f   :  { %3647 = vmatmul.mubr.f32.gmra.mrb[68].mxu0 %v16554_v31  ;;  %v13336_v33 = vpop.permute.xlu0 %2467  ;;  %3771 = vmatprep.mubr.f32.mxu1 %v3097_v9  ;;  %v16558_v31 = vld [vmem:[#allocation57_spill] sm:$0xff]  ;;  %v4184_v9 = vld [vmem:[%s15894_s1 + $0x10] sm:$0xff] }
 0x290   :  { %3651 = vmatprep.mubr.f32.mxu0 %v3073_v13  ;;  %v16561_v13 = vld [vmem:[#allocation122_spill] sm:$0xff] }
 0x291   :  { %4696 = vrot.lane.b32.xlu1 %v4183_v63, %s9050_s21  ;;  %4694 = vrot.lane.b32.xlu0 %v4182_v41, %s9050_s21  ;;  %v3098_v63 = vsel %vm3037_vm6, %v16561_v13, %v13236_v26  ;;  %v16564_v26 = vld [vmem:[#allocation111_spill] sm:$0xff] }
 0x292   :  { %3772 = vmatmul.mubr.f32.gmra.mrb[22].mxu1 %v16559_v22  ;;  %v13345_v54 = vpop.permute.xlu1 %2473  ;;  %v16563_v22 = vld [vmem:[#allocation80_spill] sm:$0xff]  ;;  %v3075_v37 = vsel %vm3037_vm6, %v16564_v26, %v12985_v3  ;;  %v4189_v26 = vld [vmem:[%s15894_s1 + $0x38] sm:$0xff] }
 0x293   :  { %3652 = vmatmul.mubr.f32.gmra.mrb[70].mxu0 %v16558_v31  ;;  %v13356_v41 = vpop.permute.xlu0 %2471  ;;  %3776 = vmatprep.mubr.f32.mxu1 %v3098_v63  ;;  %v16562_v31 = vld [vmem:[#allocation62_spill] sm:$0xff]  ;;  %v4186_v63 = vld [vmem:[%s15894_s1 + $0x20] sm:$0xff] }
 0x294   :  { %3656 = vmatprep.mubr.f32.mxu0 %v3074_v55  ;;  %v16565_v55 = vld [vmem:[#allocation123_spill] sm:$0xff] }
 0x295   :  { %4700 = vrot.lane.b32.xlu1 %v4185_v45, %s9050_s21  ;;  %4698 = vrot.lane.b32.xlu0 %v4184_v9, %s9050_s21  ;;  %v3099_v45 = vsel %vm3037_vm6, %v16565_v55, %v13225_v39  ;;  %v16568_v39 = vld [vmem:[#allocation108_spill] sm:$0xff] }
 0x296   :  { %3777 = vmatmul.mubr.f32.gmra.mrb[24].mxu1 %v16563_v22  ;;  %v13365_v13 = vpop.permute.xlu1 %2477  ;;  %v16567_v22 = vld [vmem:[#allocation81_spill] sm:$0xff]  ;;  %v3076_v51 = vsel %vm3037_vm6, %v16568_v39, %v13009_v35 }
 0x297   :  { %3657 = vmatmul.mubr.f32.gmra.mrb[72].mxu0 %v16562_v31  ;;  %v13376_v9 = vpop.permute.xlu0 %2475  ;;  %3781 = vmatprep.mubr.f32.mxu1 %v3099_v45  ;;  %v16566_v31 = vld [vmem:[#allocation63_spill] sm:$0xff]  ;;  %v4188_v45 = vld [vmem:[%s15894_s1 + $0x30] sm:$0xff]  ;;  %v4191_v39 = vld [vmem:[%s15894_s1 + $0x48] sm:$0xff] }
 0x298   :  { %3661 = vmatprep.mubr.f32.mxu0 %v3075_v37  ;;  %v16569_v37 = vld [vmem:[#allocation91_spill] sm:$0xff] }
 0x299   :  { %4704 = vrot.lane.b32.xlu1 %v4187_v49, %s9050_s21  ;;  %4702 = vrot.lane.b32.xlu0 %v4186_v63, %s9050_s21  ;;  %v3100_v49 = vsel %vm3037_vm6, %v16569_v37, %v13256_v43  ;;  %v16572_v43 = vld [vmem:[#allocation109_spill] sm:$0xff] }
 0x29a   :  { %3782 = vmatmul.mubr.f32.gmra.mrb[26].mxu1 %v16567_v22  ;;  %v13385_v55 = vpop.permute.xlu1 %2481  ;;  %v16571_v22 = vld [vmem:[#allocation77_spill] sm:$0xff]  ;;  %v3077_v30 = vsel %vm3037_vm6, %v16572_v43, %v13001_v12  ;;  %v4193_v43 = vld [vmem:[%s15894_s1 + $0x58] sm:$0xff] }
 0x29b   :  { %3662 = vmatmul.mubr.f32.gmra.mrb[74].mxu0 %v16566_v31  ;;  %v13396_v63 = vpop.permute.xlu0 %2479  ;;  %3786 = vmatprep.mubr.f32.mxu1 %v3100_v49  ;;  %v16570_v31 = vld [vmem:[#allocation60_spill] sm:$0xff] }
 0x29c   :  { %3666 = vmatprep.mubr.f32.mxu0 %v3076_v51  ;;  %v16573_v51 = vld [vmem:[#allocation120_spill] sm:$0xff] }
 0x29d   :  { %4708 = vrot.lane.b32.xlu1 %v4189_v26, %s9050_s21  ;;  %4706 = vrot.lane.b32.xlu0 %v4188_v45, %s9050_s21  ;;  %v3101_v26 = vsel %vm3037_vm6, %v16573_v51, %v13245_v59  ;;  %v4190_v49 = vld [vmem:[%s15894_s1 + $0x40] sm:$0xff]  ;;  %v16575_v51 = vld [vmem:[#allocation61_spill] sm:$0xff]  ;;  %v16576_v59 = vld [vmem:[#allocation78_spill] sm:$0xff] }
 0x29e   :  { %3787 = vmatmul.mubr.f32.gmra.mrb[28].mxu1 %v16571_v22  ;;  %v13405_v37 = vpop.permute.xlu1 %2485 }
 0x29f   :  { %3667 = vmatmul.mubr.f32.gmra.mrb[76].mxu0 %v16570_v31  ;;  %v13416_v45 = vpop.permute.xlu0 %2483  ;;  %3791 = vmatprep.mubr.f32.mxu1 %v3101_v26  ;;  %v16574_v31 = vld [vmem:[#allocation79_spill] sm:$0xff]  ;;  %v4192_v26 = vld [vmem:[%s15894_s1 + $0x50] sm:$0xff] }
 0x2a0   :  { %3671 = vmatprep.mubr.f32.mxu0 %v3077_v30  ;;  %v3103_v22 = vsel %vm3102_vm8, %v16574_v31, %v13276_v14  ;;  %v16577_v30 = vld [vmem:[#allocation114_spill] sm:$0xff]  ;;  %v16578_v14 = vld [vmem:[#allocation121_spill] sm:$0xff] }
 0x2a1   :  { %4712 = vrot.lane.b32.xlu1 %v4191_v39, %s9050_s21  ;;  %4710 = vrot.lane.b32.xlu0 %v4190_v49, %s9050_s21  ;;  %v3078_v39 = vsel %vm3037_vm6, %v16577_v30, %v13025_v4  ;;  %v4195_v31 = vld [vmem:[%s15894_s1 + $0x68] sm:$0xff] }
 0x2a2   :  { %3792 = vmatmul.mubr.f32.gmra.mrb[30].mxu1 %v16576_v59  ;;  %v13428_v27 = vpop.permute.xlu1 %2489  ;;  %v3104_v59 = vsel %vm3102_vm8, %v16578_v14, %v13265_v46  ;;  %v4197_v14 = vld [vmem:[%s15894_s1 + $0x78] sm:$0xff] }
 0x2a3   :  { %3672 = vmatmul.mubr.f32.gmra.mrb[78].mxu0 %v16575_v51  ;;  %v13436_v49 = vpop.permute.xlu0 %2487  ;;  %7315 = vmatprep.mubr.msk.f32.mxu1 %vm3215_vm9, %v3103_v22  ;;  %v16579_v51 = vld [vmem:[#allocation37_spill] sm:$0xff] }
 0x2a4   :  { %3676 = vmatprep.mubr.f32.mxu0 %v3078_v39  ;;  %v3105_v30 = vsel %vm3102_vm8, %v16579_v51, %v13296_v0  ;;  %v4194_v39 = vld [vmem:[%s15894_s1 + $0x60] sm:$0xff] }
 0x2a5   :  { %4716 = vrot.lane.b32.xlu1 %v4193_v43, %s9050_s21  ;;  %4714 = vrot.lane.b32.xlu0 %v4192_v26, %s9050_s21  ;;  %v16581_v43 = vld [vmem:[#allocation115_spill] sm:$0xff] }
 0x2a6   :  { %7316 = vmatmul.mubr.msk.f32.vlgmr.msra.gmra.mrb[32].mxu1 %vm3215_vm9, %v3104_v59  ;;  %v13452_v22 = vpop.permute.xlu1 %2493  ;;  %v3079_v46 = vsel %vm3037_vm6, %v16581_v43, %v13017_v11  ;;  %v16583_v59 = vld [vmem:[#allocation27_spill] sm:$0xff]  ;;  %v16584_v43 = vld [vmem:[#allocation16_spill] sm:$0xff] }
 0x2a7   :  { %3677 = vmatmul.mubr.f32.gmra.mrb[80].mxu0 %v16580_v21  ;;  %v13460_v26 = vpop.permute.xlu0 %2491  ;;  %7318 = vmatprep.mubr.msk.f32.mxu1 %vm3215_vm9, %v3105_v30  ;;  %v16582_v21 = vld [vmem:[#allocation90_spill] sm:$0xff]  ;;  %v3107_v51 = vsel %vm3102_vm8, %v16583_v59, %v13316_v61  ;;  %v16586_v61 = vld [vmem:[#allocation11_spill] sm:$0xff]  ;;  %v16587_v59 = vld [vmem:[#allocation93_spill] sm:$0xff] }
 0x2a8   :  { %3681 = vmatprep.mubr.f32.mxu0 %v3079_v46  ;;  %v3106_v0 = vsel %vm3102_vm8, %v16582_v21, %v13285_v16  ;;  %v4196_v46 = vld [vmem:[%s15894_s1 + $0x70] sm:$0xff]  ;;  %v3108_v21 = vsel %vm3102_vm8, %v16586_v61, %v13305_v18 }
 0x2a9   :  { %4720 = vrot.lane.b32.xlu1 %v4195_v31, %s9050_s21  ;;  %4718 = vrot.lane.b32.xlu0 %v4194_v39, %s9050_s21  ;;  %v16585_v31 = vld [vmem:[#allocation112_spill] sm:$0xff] }
 0x2aa   :  { %7319 = vmatmul.mubr.msk.f32.gmra.mrb[34].mxu1 %vm3215_vm9, %v3106_v0  ;;  %v13476_v30 = vpop.permute.xlu1 %2497  ;;  %v3080_v16 = vsel %vm3037_vm6, %v16585_v31, %v13041_v7  ;;  %v4199_v0 = vld [vmem:[%s15894_s1 + $0x88] sm:$0xff]  ;;  %v16588_v31 = vld [vmem:[#allocation64_spill] sm:$0xff] }
 0x2ab   :  { %3682 = vmatmul.mubr.f32.gmra.mrb[82].mxu0 %v16584_v43  ;;  %v13484_v39 = vpop.permute.xlu0 %2495  ;;  %7321 = vmatprep.mubr.msk.f32.mxu1 %vm3215_vm9, %v3107_v51  ;;  %v3109_v43 = vsel %vm3102_vm8, %v16587_v59, %v13336_v33  ;;  %v16590_v33 = vld [vmem:[#allocation84_spill] sm:$0xff] }
 0x2ac   :  { %3686 = vmatprep.mubr.f32.mxu0 %v3080_v16  ;;  %v4198_v16 = vld [vmem:[%s15894_s1 + $0x80] sm:$0xff]  ;;  %v3110_v61 = vsel %vm3102_vm8, %v16590_v33, %v13325_v2 }
 0x2ad   :  { %4724 = vrot.lane.b32.xlu1 %v4197_v14, %s9050_s21  ;;  %4722 = vrot.lane.b32.xlu0 %v4196_v46, %s9050_s21  ;;  %v16589_v14 = vld [vmem:[#allocation113_spill] sm:$0xff]  ;;  %v16591_v59 = vld [vmem:[#allocation8_spill] sm:$0xff] }
 0x2ae   :  { %7322 = vmatmul.mubr.msk.f32.gmra.mrb[36].mxu1 %vm3215_vm9, %v3108_v21  ;;  %v13500_v51 = vpop.permute.xlu1 %2501  ;;  %v3081_v18 = vsel %vm3037_vm6, %v16589_v14, %v13033_v10  ;;  %v4201_v21 = vld [vmem:[%s15894_s1 + $0x98] sm:$0xff]  ;;  %v16592_v14 = vld [vmem:[#allocation65_spill] sm:$0xff] }
 0x2af   :  { %3687 = vmatmul.mubr.f32.gmra.mrb[84].mxu0 %v16588_v31  ;;  %v13508_v46 = vpop.permute.xlu0 %2499  ;;  %7324 = vmatprep.mubr.msk.f32.mxu1 %vm3215_vm9, %v3109_v43  ;;  %v3111_v31 = vsel %vm3102_vm8, %v16591_v59, %v13356_v41  ;;  %v16594_v41 = vld [vmem:[#allocation20_spill] sm:$0xff]  ;;  %v16595_v59 = vld [vmem:[#allocation83_spill] sm:$0xff] }
 0x2b0   :  { %3691 = vmatprep.mubr.f32.mxu0 %v3081_v18  ;;  %v4200_v18 = vld [vmem:[%s15894_s1 + $0x90] sm:$0xff]  ;;  %v3112_v33 = vsel %vm3102_vm8, %v16594_v41, %v13345_v54 }
 0x2b1   :  { %4728 = vrot.lane.b32.xlu1 %v4199_v0, %s9050_s21  ;;  %4726 = vrot.lane.b32.xlu0 %v4198_v16, %s9050_s21  ;;  %v16593_v0 = vld [vmem:[#allocation118_spill] sm:$0xff] }
 0x2b2   :  { %7325 = vmatmul.mubr.msk.f32.gmra.mrb[38].mxu1 %vm3215_vm9, %v3110_v61  ;;  %v13524_v43 = vpop.permute.xlu1 %2505  ;;  %v3082_v2 = vsel %vm3037_vm6, %v16593_v0, %v13057_v62  ;;  %v4203_v61 = vld [vmem:[%s15894_s1 + $0xa8] sm:$0xff] }
 0x2b3   :  { %3692 = vmatmul.mubr.f32.gmra.mrb[86].mxu0 %v16592_v14  ;;  %v13532_v16 = vpop.permute.xlu0 %2503  ;;  %7327 = vmatprep.mubr.msk.f32.mxu1 %vm3215_vm9, %v3111_v31  ;;  %v3113_v14 = vsel %vm3102_vm8, %v16595_v59, %v13376_v9  ;;  %v16596_v0 = vld [vmem:[#allocation69_spill] sm:$0xff]  ;;  %v16598_v9 = vld [vmem:[#allocation30_spill] sm:$0xff]  ;;  %v16599_v59 = vld [vmem:[#allocation19_spill] sm:$0xff] }
 0x2b4   :  { %3696 = vmatprep.mubr.f32.mxu0 %v3082_v2  ;;  %v4202_v2 = vld [vmem:[%s15894_s1 + $0xa0] sm:$0xff]  ;;  %v3114_v41 = vsel %vm3102_vm8, %v16598_v9, %v13365_v13 }
 0x2b5   :  { %4732 = vrot.lane.b32.xlu1 %v4201_v21, %s9050_s21  ;;  %4730 = vrot.lane.b32.xlu0 %v4200_v18, %s9050_s21  ;;  %v16597_v21 = vld [vmem:[#allocation119_spill] sm:$0xff] }
 0x2b6   :  { %7328 = vmatmul.mubr.msk.f32.gmra.mrb[40].mxu1 %vm3215_vm9, %v3112_v33  ;;  %v13548_v31 = vpop.permute.xlu1 %2509  ;;  %v3083_v54 = vsel %vm3037_vm6, %v16597_v21, %v13049_v32  ;;  %v4205_v33 = vld [vmem:[%s15894_s1 + $0xb8] sm:$0xff]  ;;  %v16600_v21 = vld [vmem:[#allocation70_spill] sm:$0xff] }
 0x2b7   :  { %3697 = vmatmul.mubr.f32.gmra.mrb[88].mxu0 %v16596_v0  ;;  %v13556_v18 = vpop.permute.xlu0 %2507  ;;  %7330 = vmatprep.mubr.msk.f32.mxu1 %vm3215_vm9, %v3113_v14  ;;  %v3115_v0 = vsel %vm3102_vm8, %v16599_v59, %v13396_v63  ;;  %v16602_v63 = vld [vmem:[#allocation92_spill] sm:$0xff]  ;;  %v3117_v59 = vsel %vm3102_vm8, %v12711_v1, %v13416_v45  ;;  %v3118_v1 = vsel %vm3102_vm8, %v12701_v58, %v13405_v37  ;;  %v4209_v45 = vld [vmem:[%s15894_s1 + $0xd8] sm:$0xff]  ;;  %v4211_v37 = vld [vmem:[%s15894_s1 + $0xe8] sm:$0xff] }
 0x2b8   :  { %3701 = vmatprep.mubr.f32.mxu0 %v3083_v54  ;;  %v4204_v54 = vld [vmem:[%s15894_s1 + $0xb0] sm:$0xff]  ;;  %v3116_v9 = vsel %vm3102_vm8, %v16602_v63, %v13385_v55  ;;  %v16605_v63 = vld [vmem:[#allocation68_spill] sm:$0xff] }
 0x2b9   :  { %4736 = vrot.lane.b32.xlu1 %v4203_v61, %s9050_s21  ;;  %4734 = vrot.lane.b32.xlu0 %v4202_v2, %s9050_s21  ;;  %v16601_v61 = vld [vmem:[#allocation116_spill] sm:$0xff] }
 0x2ba   :  { %7331 = vmatmul.mubr.msk.f32.gmra.mrb[42].mxu1 %vm3215_vm9, %v3114_v41  ;;  %v13572_v14 = vpop.permute.xlu1 %2513  ;;  %v3084_v13 = vsel %vm3037_vm6, %v16601_v61, %v13073_v60  ;;  %v4207_v41 = vld [vmem:[%s15894_s1 + $0xc8] sm:$0xff]  ;;  %v4206_v61 = vld [vmem:[%s15894_s1 + $0xc0] sm:$0xff] }
 0x2bb   :  { %3702 = vmatmul.mubr.f32.gmra.mrb[90].mxu0 %v16600_v21  ;;  %v13580_v2 = vpop.permute.xlu0 %2511  ;;  %7333 = vmatprep.mubr.msk.f32.mxu1 %vm3215_vm9, %v3115_v0  ;;  %v16603_v21 = vld [vmem:[#allocation67_spill] sm:$0xff] }
 0x2bc   :  { %3706 = vmatprep.mubr.f32.mxu0 %v3084_v13 }
 0x2bd   :  { %4740 = vrot.lane.b32.xlu1 %v4205_v33, %s9050_s21  ;;  %4738 = vrot.lane.b32.xlu0 %v4204_v54, %s9050_s21  ;;  %v16604_v33 = vld [vmem:[#allocation117_spill] sm:$0xff]  ;;  %v3119_v54 = vsel %vm3102_vm8, %v12740_v23, %v13436_v49  ;;  %v3120_v23 = vsel %vm3102_vm8, %v12730_v57, %v13428_v27  ;;  %v3121_v49 = vsel %vm3102_vm8, %v12769_v52, %v13460_v26  ;;  %v4213_v52 = vld [vmem:[%s15894_s1 + $0xf8] sm:$0xff] }
 0x2be   :  { %7334 = vmatmul.mubr.msk.f32.gmra.mrb[44].mxu1 %vm3215_vm9, %v3116_v9  ;;  %v13596_v0 = vpop.permute.xlu1 %2517  ;;  %v3085_v55 = vsel %vm3037_vm6, %v16604_v33, %v13065_v40  ;;  %v4208_v9 = vld [vmem:[%s15894_s1 + $0xd0] sm:$0xff]  ;;  %v3122_v57 = vsel %vm3102_vm8, %v12759_v20, %v13452_v22  ;;  %v3123_v27 = vsel %vm3102_vm8, %v12798_v36, %v13484_v39  ;;  %v3124_v20 = vsel %vm3102_vm8, %v12788_v50, %v13476_v30  ;;  %v4215_v36 = vld [vmem:[%s15894_s1 + $0x108] sm:$0xff] }
 0x2bf   :  { %3707 = vmatmul.mubr.f32.gmra.mrb[92].mxu0 %v16603_v21  ;;  %v13604_v13 = vpop.permute.xlu0 %2515  ;;  %7336 = vmatprep.mubr.msk.f32.mxu1 %vm3215_vm9, %v3117_v59  ;;  %v4210_v59 = vld [vmem:[%s15894_s1 + $0xe0] sm:$0xff]  ;;  %v4212_v33 = vld [vmem:[%s15894_s1 + $0xf0] sm:$0xff]  ;;  %v3125_v39 = vsel %vm3102_vm8, %v12827_v24, %v13508_v46  ;;  %v3126_v30 = vsel %vm3102_vm8, %v12817_v17, %v13500_v51  ;;  %v4217_v24 = vld [vmem:[%s15894_s1 + $0x118] sm:$0xff]  ;;  %v3127_v46 = vsel %vm3102_vm8, %v12856_v48, %v13532_v16 }
 0x2c0   :  { %3711 = vmatprep.mubr.f32.mxu0 %v3085_v55  ;;  %v4214_v55 = vld [vmem:[%s15894_s1 + $0x100] sm:$0xff]  ;;  %v3128_v17 = vsel %vm3102_vm8, %v12846_v29, %v13524_v43  ;;  %v4219_v48 = vld [vmem:[%s15894_s1 + $0x128] sm:$0xff]  ;;  %v3129_v51 = vsel %vm3102_vm8, %v12885_v6, %v13556_v18  ;;  %v3130_v29 = vsel %vm3102_vm8, %v12875_v42, %v13548_v31  ;;  %v4221_v6 = vld [vmem:[%s15894_s1 + $0x138] sm:$0xff]  ;;  %v3131_v18 = vsel %vm3102_vm8, %v12914_v34, %v13580_v2 }
 0x2c1   :  { %4744 = vrot.lane.b32.xlu1 %v4207_v41, %s9050_s21  ;;  %4742 = vrot.lane.b32.xlu0 %v4206_v61, %s9050_s21  ;;  %v4216_v61 = vld [vmem:[%s15894_s1 + $0x110] sm:$0xff]  ;;  %v4223_v34 = vld [vmem:[%s15894_s1 + $0x148] sm:$0xff]  ;;  %v3133_v2 = vsel %vm3102_vm8, %v12942_v8, %v13604_v13 }
 0x2c2   :  { %7337 = vmatmul.mubr.msk.f32.gmra.mrb[46].mxu1 %vm3215_vm9, %v3118_v1  ;;  %v13626_v58 = vpop.permute.xlu1 %2521  ;;  %v4220_v42 = vld [vmem:[%s15894_s1 + $0x130] sm:$0xff]  ;;  %v4225_v8 = vld [vmem:[%s15894_s1 + $0x158] sm:$0xff] }
 0x2c3   :  { %3712 = vmatmul.mubr.f32.gmra.mrb[94].mxu0 %v16605_v63  ;;  %v13623_v41 = vpop.permute.xlu0 %2519  ;;  %7339 = vmatprep.mubr.msk.f32.mxu1 %vm3215_vm9, %v3119_v54 }
 0x2c4   :  { %v3135_v13 = vsel %vm3102_vm8, %v12961_v56, %v13623_v41  ;;  %v4227_v56 = vld [vmem:[%s15894_s1 + $0x168] sm:$0xff] }
 0x2c5   :  { %4748 = vrot.lane.b32.xlu1 %v4209_v45, %s9050_s21  ;;  %4746 = vrot.lane.b32.xlu0 %v4208_v9, %s9050_s21  ;;  %v4218_v45 = vld [vmem:[%s15894_s1 + $0x120] sm:$0xff]  ;;  %v3132_v9 = vsel %vm3102_vm8, %v12904_v19, %v13572_v14  ;;  %v3134_v14 = vsel %vm3102_vm8, %v12932_v5, %v13596_v0  ;;  %v4224_v5 = vld [vmem:[%s15894_s1 + $0x150] sm:$0xff]  ;;  %v3136_v0 = vsel %vm3102_vm8, %v12954_v53, %v13626_v58 }
 0x2c6   :  { %7340 = vmatmul.mubr.msk.f32.gmra.mrb[48].mxu1 %vm3215_vm9, %v3120_v23  ;;  %v13657_v26 = vpop.permute.xlu1 %2525  ;;  %v4226_v53 = vld [vmem:[%s15894_s1 + $0x160] sm:$0xff] }
 0x2c7   :  { %v13643_v21 = vpop.permute.xlu0 %2523  ;;  %7342 = vmatprep.mubr.msk.f32.mxu1 %vm3215_vm9, %v3121_v49  ;;  %v4222_v49 = vld [vmem:[%s15894_s1 + $0x140] sm:$0xff] }
 0x2c8   :  { %v3137_v41 = vsel %vm3102_vm8, %v12977_v15, %v13643_v21  ;;  %v4229_v15 = vld [vmem:[%s15894_s1 + $0x178] sm:$0xff] }
 0x2c9   :  { %4752 = vrot.lane.b32.xlu1 %v4211_v37, %s9050_s21  ;;  %4750 = vrot.lane.b32.xlu0 %v4210_v59, %s9050_s21 }
 0x2ca   :  { %7343 = vmatmul.mubr.msk.f32.gmra.mrb[50].mxu1 %vm3215_vm9, %v3122_v57  ;;  %v13682_v50 = vpop.permute.xlu1 %2529 }
 0x2cb   :  { %7345 = vmatprep.mubr.msk.f32.mxu1 %vm3215_vm9, %v3123_v27  ;;  %v13668_v22 = vpop.permute.xlu0 %2527 }
 0x2cc   :  { %v3139_v21 = vsel %vm3102_vm8, %v12993_v38, %v13668_v22  ;;  %v4231_v38 = vld [vmem:[%s15894_s1 + $0x188] sm:$0xff] }
 0x2cd   :  { %4756 = vrot.lane.b32.xlu1 %v4213_v52, %s9050_s21  ;;  %4754 = vrot.lane.b32.xlu0 %v4212_v33, %s9050_s21 }
 0x2ce   :  { %7346 = vmatmul.mubr.msk.f32.gmra.mrb[52].mxu1 %vm3215_vm9, %v3124_v20  ;;  %v13713_v16 = vpop.permute.xlu1 %2533 }
 0x2cf   :  { %7348 = vmatprep.mubr.msk.f32.mxu1 %vm3215_vm9, %v3125_v39  ;;  %v13699_v1 = vpop.permute.xlu0 %2531 }
 0x2d0   :  { %v3141_v22 = vsel %vm3102_vm8, %v13009_v35, %v13699_v1  ;;  %v4233_v35 = vld [vmem:[%s15894_s1 + $0x198] sm:$0xff] }
 0x2d1   :  { %4760 = vrot.lane.b32.xlu1 %v4215_v36, %s9050_s21  ;;  %4758 = vrot.lane.b32.xlu0 %v4214_v55, %s9050_s21  ;;  %v3138_v36 = vsel %vm3102_vm8, %v12969_v28, %v13657_v26  ;;  %v3140_v26 = vsel %vm3102_vm8, %v12985_v3, %v13682_v50  ;;  %v4230_v3 = vld [vmem:[%s15894_s1 + $0x180] sm:$0xff]  ;;  %v3142_v50 = vsel %vm3102_vm8, %v13001_v12, %v13713_v16  ;;  %v4232_v12 = vld [vmem:[%s15894_s1 + $0x190] sm:$0xff] }
 0x2d2   :  { %7349 = vmatmul.mubr.msk.f32.gmra.mrb[54].mxu1 %vm3215_vm9, %v3126_v30  ;;  %v13740_v31 = vpop.permute.xlu1 %2537  ;;  %v4228_v30 = vld [vmem:[%s15894_s1 + $0x170] sm:$0xff] }
 0x2d3   :  { %7351 = vmatprep.mubr.msk.f32.mxu1 %vm3215_vm9, %v3127_v46  ;;  %v13724_v43 = vpop.permute.xlu0 %2535 }
 0x2d4   :  { %v3143_v1 = vsel %vm3102_vm8, %v13025_v4, %v13724_v43  ;;  %v4235_v4 = vld [vmem:[%s15894_s1 + $0x1a8] sm:$0xff] }
 0x2d5   :  { %4764 = vrot.lane.b32.xlu1 %v4217_v24, %s9050_s21  ;;  %4762 = vrot.lane.b32.xlu0 %v4216_v61, %s9050_s21 }
 0x2d6   :  { %7352 = vmatmul.mubr.msk.f32.gmra.mrb[56].mxu1 %vm3215_vm9, %v3128_v17  ;;  %v13775_v57 = vpop.permute.xlu1 %2541 }
 0x2d7   :  { %7354 = vmatprep.mubr.msk.f32.mxu1 %vm3215_vm9, %v3129_v51  ;;  %v13759_v19 = vpop.permute.xlu0 %2539 }
 0x2d8   :  { %v3145_v43 = vsel %vm3102_vm8, %v13041_v7, %v13759_v19  ;;  %v4237_v7 = vld [vmem:[%s15894_s1 + $0x1b8] sm:$0xff] }
 0x2d9   :  { %4768 = vrot.lane.b32.xlu1 %v4219_v48, %s9050_s21  ;;  %v13726_v54 = vpop.f32.mrb[0].mxu0  ;;  %4766 = vrot.lane.b32.xlu0 %v4218_v45, %s9050_s21  ;;  %v3144_v45 = vsel %vm3102_vm8, %v13017_v11, %v13740_v31 }
 0x2da   :  { %v3480_v63 = vpop.f32.mrb[1].mxu0  ;;  %7355 = vmatmul.mubr.msk.f32.gmra.mrb[58].mxu1 %vm3215_vm9, %v3130_v29 }
 0x2db   :  { %7357 = vmatprep.mubr.msk.f32.mxu1 %vm3215_vm9, %v3131_v18  ;;  %v2544_v27 = vpop.permute.xlu0 %2543  ;;  %v2546_v58 = vpop.permute.xlu1 %2545  ;;  %v4234_v18 = vld [vmem:[%s15894_s1 + $0x1a0] sm:$0xff]  ;;  %v3146_v63 = vsel %vm3102_vm8, %v13033_v10, %v13775_v57 }
 0x2dc   :  { %v3147_v31 = vsel %vm3102_vm8, %v13057_v62, %v2544_v27  ;;  %v3148_v10 = vsel %vm3102_vm8, %v13049_v32, %v2546_v58  ;;  %v4239_v62 = vld [vmem:[%s15894_s1 + $0x1c8] sm:$0xff]  ;;  %v4242_v58 = vld [vmem:[%s15894_s1 + $0x1e0] sm:$0xff] }
 0x2dd   :  { %4772 = vrot.lane.b32.xlu1 %v4221_v6, %s9050_s21  ;;  %4770 = vrot.lane.b32.xlu0 %v4220_v42, %s9050_s21 }
 0x2de   :  { %v13746_v23 = vpop.f32.mrb[2].mxu0  ;;  %7358 = vmatmul.mubr.msk.f32.gmra.mrb[60].mxu1 %vm3215_vm9, %v3132_v9 }
 0x2df   :  { %v3485_v37 = vpop.f32.mrb[3].mxu0  ;;  %7360 = vmatprep.mubr.msk.f32.mxu1 %vm3215_vm9, %v3133_v2  ;;  %v2548_v28 = vpop.permute.xlu0 %2547  ;;  %v4236_v2 = vld [vmem:[%s15894_s1 + $0x1b0] sm:$0xff] }
 0x2e0   :  { %v2550_v46 = vpop.permute.xlu1 %2549  ;;  %v3149_v19 = vsel %vm3102_vm8, %v13073_v60, %v2548_v28  ;;  %v4241_v60 = vld [vmem:[%s15894_s1 + $0x1d8] sm:$0xff] }
 0x2e1   :  { %4776 = vrot.lane.b32.xlu1 %v4223_v34, %s9050_s21  ;;  %4774 = vrot.lane.b32.xlu0 %v4222_v49, %s9050_s21 }
 0x2e2   :  { %v13766_v59 = vpop.f32.mrb[4].mxu0  ;;  %7361 = vmatmul.mubr.msk.f32.gmra.mrb[62].mxu1 %vm3215_vm9, %v3134_v14 }
 0x2e3   :  { %v3490_v52 = vpop.f32.mrb[5].mxu0  ;;  %7363 = vmatprep.mubr.msk.f32.mxu1 %vm3215_vm9, %v3135_v13  ;;  %v2552_v17 = vpop.permute.xlu0 %2551  ;;  %v3150_v13 = vsel %vm3102_vm8, %v13065_v40, %v2550_v46 }
 0x2e4   :  { %v2554_v16 = vpop.permute.xlu1 %2553  ;;  %v3151_v52 = vsel %vm3102_vm8, %v13095_v47, %v2552_v17  ;;  %v4243_v47 = vld [vmem:[%s15894_s1 + $0x1e8] sm:$0xff] }
 0x2e5   :  { %4780 = vrot.lane.b32.xlu1 %v4225_v8, %s9050_s21  ;;  %4778 = vrot.lane.b32.xlu0 %v4224_v5, %s9050_s21  ;;  %v4238_v8 = vld [vmem:[%s15894_s1 + $0x1c0] sm:$0xff]  ;;  %v3152_v40 = vsel %vm3102_vm8, %v13081_v44, %v2554_v16  ;;  %v16606_v44 = vld [vmem:[#allocation101_spill] sm:$0xff]  ;;  %v16611_v16 = vld [vmem:[#allocation103_spill] sm:$0xff] }
 0x2e6   :  { %v13786_v33 = vpop.f32.mrb[6].mxu0  ;;  %7364 = vmatmul.mubr.msk.f32.gmra.mrb[64].mxu1 %vm3215_vm9, %v3136_v0  ;;  %v4240_v0 = vld [vmem:[%s15894_s1 + $0x1d0] sm:$0xff] }
 0x2e7   :  { %v3495_v20 = vpop.f32.mrb[7].mxu0  ;;  %7366 = vmatprep.mubr.msk.f32.mxu1 %vm3215_vm9, %v3137_v41  ;;  %v2556_v11 = vpop.permute.xlu0 %2555 }
 0x2e8   :  { %v2558_v9 = vpop.permute.xlu1 %2557  ;;  %v3153_v41 = vsel %vm3102_vm8, %v13122_v25, %v2556_v11  ;;  %v4245_v25 = vld [vmem:[%s15894_s1 + $0x1f8] sm:$0xff] }
 0x2e9   :  { %4784 = vrot.lane.b32.xlu1 %v4227_v56, %s9050_s21  ;;  %4782 = vrot.lane.b32.xlu0 %v4226_v53, %s9050_s21 }
 0x2ea   :  { %v13804_v39 = vpop.f32.mrb[8].mxu0  ;;  %7367 = vmatmul.mubr.msk.f32.gmra.mrb[66].mxu1 %vm3215_vm9, %v3138_v36  ;;  %v3154_v36 = vsel %vm3102_vm8, %v16606_v44, %v2558_v9 }
 0x2eb   :  { %v3500_v55 = vpop.f32.mrb[9].mxu0  ;;  %7369 = vmatprep.mubr.msk.f32.mxu1 %vm3215_vm9, %v3139_v21  ;;  %v2560_v37 = vpop.permute.xlu0 %2559 }
 0x2ec   :  { %v2562_v32 = vpop.permute.xlu1 %2561  ;;  %v16607_v55 = vld [vmem:[#allocation29_spill] sm:$0xff] }
 0x2ed   :  { %4788 = vrot.lane.b32.xlu1 %v4229_v15, %s9050_s21  ;;  %4786 = vrot.lane.b32.xlu0 %v4228_v30, %s9050_s21  ;;  %v3155_v30 = vsel %vm3102_vm8, %v16607_v55, %v2560_v37 }
 0x2ee   :  { %v13822_v24 = vpop.f32.mrb[10].mxu0  ;;  %7370 = vmatmul.mubr.msk.f32.gmra.mrb[68].mxu1 %vm3215_vm9, %v3140_v26  ;;  %v4244_v26 = vld [vmem:[%s15894_s1 + $0x1f0] sm:$0xff] }
 0x2ef   :  { %v3505_v61 = vpop.f32.mrb[11].mxu0  ;;  %7372 = vmatprep.mubr.msk.f32.mxu1 %vm3215_vm9, %v3141_v22  ;;  %v2564_v27 = vpop.permute.xlu0 %2563  ;;  %v16608_v22 = vld [vmem:[#allocation10_spill] sm:$0xff] }
 0x2f0   :  { %v2566_v20 = vpop.permute.xlu1 %2565  ;;  %v3156_v46 = vsel %vm3102_vm8, %v16608_v22, %v2562_v32  ;;  %v16616_v32 = vld [vmem:[#allocation85_spill] sm:$0xff] }
 0x2f1   :  { %4792 = vrot.lane.b32.xlu1 %v4231_v38, %s9050_s21  ;;  %4790 = vrot.lane.b32.xlu0 %v4230_v3, %s9050_s21  ;;  %v16609_v3 = vld [vmem:[#allocation95_spill] sm:$0xff] }
 0x2f2   :  { %v13840_v48 = vpop.f32.mrb[12].mxu0  ;;  %7373 = vmatmul.mubr.msk.f32.gmra.mrb[70].mxu1 %vm3215_vm9, %v3142_v50  ;;  %v3157_v50 = vsel %vm3102_vm8, %v16609_v3, %v2564_v27 }
 0x2f3   :  { %v3510_v51 = vpop.f32.mrb[13].mxu0  ;;  %7375 = vmatprep.mubr.msk.f32.mxu1 %vm3215_vm9, %v3143_v1  ;;  %v2568_v15 = vpop.permute.xlu0 %2567  ;;  %v16610_v1 = vld [vmem:[#allocation86_spill] sm:$0xff] }
 0x2f4   :  { %v2570_v38 = vpop.permute.xlu1 %2569  ;;  %v3158_v51 = vsel %vm3102_vm8, %v16610_v1, %v2566_v20 }
 0x2f5   :  { %4796 = vrot.lane.b32.xlu1 %v4233_v35, %s9050_s21  ;;  %4794 = vrot.lane.b32.xlu0 %v4232_v12, %s9050_s21 }
 0x2f6   :  { %v13858_v29 = vpop.f32.mrb[14].mxu0  ;;  %7376 = vmatmul.mubr.msk.f32.gmra.mrb[72].mxu1 %vm3215_vm9, %v3144_v45  ;;  %v3159_v45 = vsel %vm3102_vm8, %v16611_v16, %v2568_v15 }
 0x2f7   :  { %v3515_v6 = vpop.f32.mrb[15].mxu0  ;;  %7378 = vmatprep.mubr.msk.f32.mxu1 %vm3215_vm9, %v3145_v43  ;;  %v2572_v35 = vpop.permute.xlu0 %2571 }
 0x2f8   :  { %v16612_v6 = vld [vmem:[#allocation39_spill] sm:$0xff] }
 0x2f9   :  { %4800 = vrot.lane.b32.xlu1 %v4235_v4, %s9050_s21  ;;  %4798 = vrot.lane.b32.xlu0 %v4234_v18, %s9050_s21  ;;  %v2574_v4 = vpop.permute.xlu1 %2573  ;;  %v3160_v18 = vsel %vm3102_vm8, %v16612_v6, %v2570_v38 }
 0x2fa   :  { %v13876_v42 = vpop.f32.mrb[16].mxu0  ;;  %7379 = vmatmul.mubr.msk.f32.gmra.mrb[74].mxu1 %vm3215_vm9, %v3146_v63 }
 0x2fb   :  { %v3520_v34 = vpop.f32.mrb[17].mxu0  ;;  %7381 = vmatprep.mubr.msk.f32.mxu1 %vm3215_vm9, %v3147_v31  ;;  %v2576_v11 = vpop.permute.xlu0 %2575 }
 0x2fd   :  { %4804 = vrot.lane.b32.xlu1 %v4237_v7, %s9050_s21  ;;  %4802 = vrot.lane.b32.xlu0 %v4236_v2, %s9050_s21  ;;  %v16613_v7 = vld [vmem:[#allocation38_spill] sm:$0xff]  ;;  %v2578_v34 = vpop.permute.xlu1 %2577  ;;  %v16614_v2 = vld [vmem:[#allocation13_spill] sm:$0xff] }
 0x2fe   :  { %v13892_v49 = vpop.f32.mrb[18].mxu0  ;;  %7382 = vmatmul.mubr.msk.f32.gmra.mrb[76].mxu1 %vm3215_vm9, %v3148_v10  ;;  %v3161_v31 = vsel %vm3102_vm8, %v16613_v7, %v2572_v35  ;;  %v3162_v10 = vsel %vm3102_vm8, %v16614_v2, %v2574_v4 }
 0x2ff   :  { %v3525_v14 = vpop.f32.mrb[19].mxu0  ;;  %7384 = vmatprep.mubr.msk.f32.mxu1 %vm3215_vm9, %v3149_v19 }
 0x301   :  { %4808 = vrot.lane.b32.xlu1 %v4239_v62, %s9050_s21  ;;  %4806 = vrot.lane.b32.xlu0 %v4238_v8, %s9050_s21  ;;  %v16615_v62 = vld [vmem:[#allocation94_spill] sm:$0xff]  ;;  %v2580_v8 = vpop.permute.xlu0 %2579 }
 0x302   :  { %v13908_v57 = vpop.f32.mrb[20].mxu0  ;;  %7385 = vmatmul.mubr.msk.f32.gmra.mrb[78].mxu1 %vm3215_vm9, %v3150_v13  ;;  %v3163_v19 = vsel %vm3102_vm8, %v16615_v62, %v2576_v11  ;;  %v3164_v13 = vsel %vm3102_vm8, %v16616_v32, %v2578_v34 }
 0x303   :  { %v3530_v5 = vpop.f32.mrb[21].mxu0  ;;  %7387 = vmatprep.mubr.msk.f32.mxu1 %vm3215_vm9, %v3151_v52  ;;  %v2582_v52 = vpop.permute.xlu1 %2581 }
 0x304   :  { %v16617_v5 = vld [vmem:[#allocation102_spill] sm:$0xff] }
 0x305   :  { %4812 = vrot.lane.b32.xlu1 %v4241_v60, %s9050_s21  ;;  %4810 = vrot.lane.b32.xlu0 %v4240_v0, %s9050_s21  ;;  %v3165_v0 = vsel %vm3102_vm8, %v16617_v5, %v2580_v8 }
 0x306   :  { %v13924_v56 = vpop.f32.mrb[22].mxu0  ;;  %7388 = vmatmul.mubr.msk.f32.gmra.mrb[80].mxu1 %vm3215_vm9, %v3152_v40  ;;  %v16618_v40 = vld [vmem:[#allocation21_spill] sm:$0xff] }
 0x307   :  { %v3535_v53 = vpop.f32.mrb[23].mxu0  ;;  %7390 = vmatprep.mubr.msk.f32.mxu1 %vm3215_vm9, %v3153_v41 }
 0x308   :  { %v14000_v53 = vpop.permute.xlu1 %4696 }
 0x309   :  { %4816 = vrot.lane.b32.xlu1 %v4243_v47, %s9050_s21  ;;  %4814 = vrot.lane.b32.xlu0 %v4242_v58, %s9050_s21  ;;  %v3166_v47 = vsel %vm3102_vm8, %v16618_v40, %v2582_v52  ;;  %16619 = vst [vmem:[#allocation12_spill] sm:$0xff] %v14000_v53  ;;  %v14002_v58 = vpop.permute.xlu0 %4694 }
 0x30a   :  { %v13940_v21 = vpop.f32.mrb[24].mxu0  ;;  %7391 = vmatmul.mubr.msk.f32.gmra.mrb[82].mxu1 %vm3215_vm9, %v3154_v36  ;;  %16620 = vst [vmem:[#allocation35_spill] sm:$0xff] %v14002_v58 }
 0x30b   :  { %v3540_v28 = vpop.f32.mrb[25].mxu0  ;;  %7393 = vmatprep.mubr.msk.f32.mxu1 %vm3215_vm9, %v3155_v30 }
 0x30d   :  { %4820 = vrot.lane.b32.xlu1 %v4245_v25, %s9050_s21  ;;  %4818 = vrot.lane.b32.xlu0 %v4244_v26, %s9050_s21  ;;  %v14008_v25 = vpop.permute.xlu1 %4700  ;;  %v14010_v30 = vpop.permute.xlu0 %4698 }
 0x30e   :  { %v13956_v61 = vpop.f32.mrb[26].mxu0  ;;  %7394 = vmatmul.mubr.msk.f32.gmra.mrb[84].mxu1 %vm3215_vm9, %v3156_v46  ;;  %16621 = vst [vmem:[#allocation88_spill] sm:$0xff] %v14008_v25  ;;  %16622 = vst [vmem:[#allocation97_spill] sm:$0xff] %v14010_v30 }
 0x30f   :  { %v3545_v17 = vpop.f32.mrb[27].mxu0  ;;  %7396 = vmatprep.mubr.msk.f32.mxu1 %vm3215_vm9, %v3157_v50 }
 0x311   :  { %v14014_v38 = vpop.permute.xlu1 %4704  ;;  %v14016_v22 = vpop.permute.xlu0 %4702 }
 0x312   :  { %v13965_v12 = vpop.f32.mrb[28].mxu0  ;;  %7397 = vmatmul.mubr.msk.f32.gmra.mrb[86].mxu1 %vm3215_vm9, %v3158_v51  ;;  %16623 = vst [vmem:[#allocation41_spill] sm:$0xff] %v14014_v38  ;;  %16624 = vst [vmem:[#allocation105_spill] sm:$0xff] %v14016_v22 }
 0x313   :  { %v3550_v43 = vpop.f32.mrb[29].mxu0  ;;  %7399 = vmatprep.mubr.msk.f32.mxu1 %vm3215_vm9, %v3159_v45 }
 0x315   :  { %v14022_v17 = vpop.permute.xlu1 %4708  ;;  %v14024_v1 = vpop.permute.xlu0 %4706 }
 0x316   :  { %v13973_v63 = vpop.f32.mrb[30].mxu0  ;;  %7400 = vmatmul.mubr.msk.f32.gmra.mrb[88].mxu1 %vm3215_vm9, %v3160_v18  ;;  %16625 = vst [vmem:[#allocation15_spill] sm:$0xff] %v14022_v17  ;;  %16626 = vst [vmem:[#allocation48_spill] sm:$0xff] %v14024_v1 }
 0x317   :  { %v3555_v9 = vpop.f32.mrb[31].mxu0  ;;  %7402 = vmatprep.mubr.msk.f32.mxu1 %vm3215_vm9, %v3161_v31 }
 0x319   :  { %v14030_v43 = vpop.permute.xlu1 %4712  ;;  %v14032_v6 = vpop.permute.xlu0 %4710 }
 0x31a   :  { %v13981_v37 = vpop.f32.mrb[32].mxu0  ;;  %7403 = vmatmul.mubr.msk.f32.gmra.mrb[90].mxu1 %vm3215_vm9, %v3162_v10  ;;  %16627 = vst [vmem:[#allocation87_spill] sm:$0xff] %v14030_v43  ;;  %16628 = vst [vmem:[#allocation96_spill] sm:$0xff] %v14032_v6 }
 0x31b   :  { %v3560_v14 = vpop.f32.mrb[33].mxu0  ;;  %7405 = vmatprep.mubr.msk.f32.mxu1 %vm3215_vm9, %v3163_v19 }
 0x31d   :  { %v14042_v62 = vpop.permute.xlu1 %4716  ;;  %v14044_v19 = vpop.permute.xlu0 %4714 }
 0x31e   :  { %v13989_v60 = vpop.f32.mrb[34].mxu0  ;;  %7406 = vmatmul.mubr.msk.f32.gmra.mrb[92].mxu1 %vm3215_vm9, %v3164_v13  ;;  %16629 = vst [vmem:[#allocation22_spill] sm:$0xff] %v14042_v62  ;;  %16630 = vst [vmem:[#allocation104_spill] sm:$0xff] %v14044_v19 }
 0x31f   :  { %v3565_v27 = vpop.f32.mrb[35].mxu0  ;;  %7408 = vmatprep.mubr.msk.f32.mxu1 %vm3215_vm9, %v3165_v0 }
 0x321   :  { %v14054_v40 = vpop.permute.xlu1 %4720 }
 0x322   :  { %v13997_v41 = vpop.f32.mrb[36].mxu0  ;;  %7409 = vmatmul.mubr.msk.f32.gmra.mrb[94].mxu1 %vm3215_vm9, %v3166_v47  ;;  %16631 = vst [vmem:[#allocation14_spill] sm:$0xff] %v14054_v40  ;;  %v14056_v47 = vpop.permute.xlu0 %4718 }
 0x323   :  { %v3570_v20 = vpop.f32.mrb[37].mxu0  ;;  %16632 = vst [vmem:[#allocation45_spill] sm:$0xff] %v14056_v47 }
 0x326   :  { %v14004_v44 = vpop.f32.mrb[38].mxu0 }
 0x327   :  { %v3575_v36 = vpop.f32.mrb[39].mxu0 }
 0x32a   :  { %v14006_v15 = vpop.f32.mrb[40].mxu0 }
 0x32b   :  { %v3580_v55 = vpop.f32.mrb[41].mxu0 }
 0x32e   :  { %v14012_v28 = vpop.f32.mrb[42].mxu0 }
 0x32f   :  { %v3585_v26 = vpop.f32.mrb[43].mxu0 }
 0x332   :  { %v14018_v46 = vpop.f32.mrb[44].mxu0 }
 0x333   :  { %v3590_v3 = vpop.f32.mrb[45].mxu0 }
 0x336   :  { %v14020_v50 = vpop.f32.mrb[46].mxu0 }
 0x337   :  { %v3595_v35 = vpop.f32.mrb[47].mxu0 }
 0x339   :  { %v14028_v16 = vpop.f32.mrb[0].mxu1 }
 0x33a   :  { %v14026_v51 = vpop.f32.mrb[48].mxu0  ;;  %v3720_v4 = vpop.f32.mrb[1].mxu1 }
 0x33b   :  { %v3600_v45 = vpop.f32.mrb[49].mxu0 }
 0x33d   :  { %v14036_v11 = vpop.f32.mrb[2].mxu1 }
 0x33e   :  { %v14034_v18 = vpop.f32.mrb[50].mxu0  ;;  %v3725_v31 = vpop.f32.mrb[3].mxu1 }
 0x33f   :  { %v3605_v7 = vpop.f32.mrb[51].mxu0  ;;  %v14068_v31 = vpop.permute.xlu0 %4722 }
 0x340   :  { %v14066_v7 = vpop.permute.xlu1 %4724  ;;  %16634 = vst [vmem:[#allocation98_spill] sm:$0xff] %v14068_v31 }
 0x341   :  { %v14040_v34 = vpop.f32.mrb[4].mxu1  ;;  %16633 = vst [vmem:[#allocation89_spill] sm:$0xff] %v14066_v7 }
 0x342   :  { %v14038_v9 = vpop.f32.mrb[52].mxu0  ;;  %v3730_v10 = vpop.f32.mrb[5].mxu1 }
 0x343   :  { %v3610_v2 = vpop.f32.mrb[53].mxu0 }
 0x344   :  { %v14078_v47 = vpop.permute.xlu1 %4728 }
 0x345   :  { %v14048_v8 = vpop.f32.mrb[6].mxu1  ;;  %16635 = vst [vmem:[#allocation106_spill] sm:$0xff] %v14078_v47 }
 0x346   :  { %v14046_v14 = vpop.f32.mrb[54].mxu0  ;;  %v3735_v13 = vpop.f32.mrb[7].mxu1 }
 0x347   :  { %v3615_v32 = vpop.f32.mrb[55].mxu0 }
 0x348   :  { %v14090_v6 = vpop.permute.xlu1 %4732 }
 0x349   :  { %v14052_v5 = vpop.f32.mrb[8].mxu1  ;;  %16637 = vst [vmem:[#allocation43_spill] sm:$0xff] %v14090_v6 }
 0x34a   :  { %v14050_v52 = vpop.f32.mrb[56].mxu0  ;;  %v3740_v27 = vpop.f32.mrb[9].mxu1 }
 0x34b   :  { %v3620_v0 = vpop.f32.mrb[57].mxu0 }
 0x34c   :  { %v14102_v22 = vpop.permute.xlu1 %4736 }
 0x34d   :  { %v14060_v36 = vpop.f32.mrb[10].mxu1  ;;  %16640 = vst [vmem:[#allocation24_spill] sm:$0xff] %v14102_v22 }
 0x34e   :  { %v14058_v20 = vpop.f32.mrb[58].mxu0  ;;  %v3745_v26 = vpop.f32.mrb[11].mxu1 }
 0x34f   :  { %v3625_v55 = vpop.f32.mrb[59].mxu0 }
 0x350   :  { %v14114_v58 = vpop.permute.xlu1 %4740 }
 0x351   :  { %v14064_v35 = vpop.f32.mrb[12].mxu1  ;;  %16644 = vst [vmem:[#allocation25_spill] sm:$0xff] %v14114_v58 }
 0x352   :  { %v14062_v3 = vpop.f32.mrb[60].mxu0  ;;  %v3750_v4 = vpop.f32.mrb[13].mxu1 }
 0x353   :  { %v3630_v45 = vpop.f32.mrb[61].mxu0 }
 0x354   :  { %v14080_v45 = vpop.permute.xlu0 %4726 }
 0x355   :  { %v14072_v10 = vpop.f32.mrb[14].mxu1  ;;  %16636 = vst [vmem:[#allocation40_spill] sm:$0xff] %v14080_v45 }
 0x356   :  { %v14070_v2 = vpop.f32.mrb[62].mxu0  ;;  %v3755_v13 = vpop.f32.mrb[15].mxu1 }
 0x357   :  { %v3635_v32 = vpop.f32.mrb[63].mxu0 }
 0x359   :  { %v14076_v27 = vpop.f32.mrb[16].mxu1 }
 0x35a   :  { %v14074_v0 = vpop.f32.mrb[64].mxu0  ;;  %v3760_v26 = vpop.f32.mrb[17].mxu1 }
 0x35b   :  { %v3640_v55 = vpop.f32.mrb[65].mxu0 }
 0x35c   :  { %v14092_v55 = vpop.permute.xlu0 %4730 }
 0x35d   :  { %v14084_v7 = vpop.f32.mrb[18].mxu1  ;;  %16638 = vst [vmem:[#allocation42_spill] sm:$0xff] %v14092_v55 }
 0x35e   :  { %v14082_v4 = vpop.f32.mrb[66].mxu0  ;;  %v3765_v40 = vpop.f32.mrb[19].mxu1 }
 0x35f   :  { %v3645_v31 = vpop.f32.mrb[67].mxu0 }
 0x361   :  { %v14088_v32 = vpop.f32.mrb[20].mxu1 }
 0x362   :  { %v14086_v19 = vpop.f32.mrb[68].mxu0  ;;  %v3770_v62 = vpop.f32.mrb[21].mxu1 }
 0x363   :  { %v3650_v13 = vpop.f32.mrb[69].mxu0 }
 0x364   :  { %v14104_v13 = vpop.permute.xlu0 %4734 }
 0x365   :  { %v14096_v47 = vpop.f32.mrb[22].mxu1  ;;  %16641 = vst [vmem:[#allocation26_spill] sm:$0xff] %v14104_v13  ;;  %v14125_v13 = vld [vmem:[%s15896_s3] ss:$0 sm:$0xff]  ;;  %s9051_s3 = smov 64  }
 0x366   :  { %v14094_v26 = vpop.f32.mrb[70].mxu0  ;;  %v3775_v43 = vpop.f32.mrb[23].mxu1  ;;  %v3484_v53 = vadd.f32 %v14125_v13, %v13746_v23 }
 0x367   :  { %v3655_v45 = vpop.f32.mrb[71].mxu0 }
 0x369   :  { %v14100_v31 = vpop.f32.mrb[24].mxu1 }
 0x36a   :  { %v14098_v1 = vpop.f32.mrb[72].mxu0  ;;  %16639 = vst [vmem:[#allocation23_spill] sm:$0xff] %v14100_v31  ;;  %v3780_v17 = vpop.f32.mrb[25].mxu1 }
 0x36b   :  { %v3660_v40 = vpop.f32.mrb[73].mxu0 }
 0x36c   :  { %v14116_v40 = vpop.permute.xlu0 %4738 }
 0x36d   :  { %v14108_v6 = vpop.f32.mrb[26].mxu1  ;;  %16645 = vst [vmem:[#allocation50_spill] sm:$0xff] %v14116_v40 }
 0x36e   :  { %v14106_v62 = vpop.f32.mrb[74].mxu0  ;;  %16642 = vst [vmem:[#allocation47_spill] sm:$0xff] %v14108_v6  ;;  %v3785_v38 = vpop.f32.mrb[27].mxu1  ;;  %v3494_v6 = vadd.f32 %v14125_v13, %v13786_v33  ;;  %v3504_v33 = vadd.f32 %v14125_v13, %v13822_v24 }
 0x36f   :  { %v3665_v55 = vpop.f32.mrb[75].mxu0 }
 0x370   :  { %v14142_v23 = vpop.permute.xlu0 %4742 }
 0x371   :  { %v14112_v45 = vpop.f32.mrb[28].mxu1  ;;  %16649 = vst [vmem:[#allocation46_spill] sm:$0xff] %v14142_v23  ;;  %v3499_v23 = vadd.f32 %v14125_v13, %v13804_v39  ;;  %v3509_v39 = vadd.f32 %v14125_v13, %v13840_v48  ;;  %v3519_v48 = vadd.f32 %v14125_v13, %v13876_v42 }
 0x372   :  { %v14110_v30 = vpop.f32.mrb[76].mxu0  ;;  %16643 = vst [vmem:[#allocation44_spill] sm:$0xff] %v14112_v45  ;;  %v3790_v25 = vpop.f32.mrb[29].mxu1 }
 0x373   :  { %v3670_v43 = vpop.f32.mrb[77].mxu0  ;;  %v3479_v25 = vadd.f32 %v14125_v13, %v13726_v54  ;;  %v3489_v54 = vadd.f32 %v14125_v13, %v13766_v59 }
 0x375   :  { %v14120_v22 = vpop.f32.mrb[30].mxu1 }
 0x376   :  { %v14118_v17 = vpop.f32.mrb[78].mxu0  ;;  %16646 = vst [vmem:[#allocation34_spill] sm:$0xff] %v14120_v22  ;;  %v3795_v55 = vpop.f32.mrb[31].mxu1 }
 0x377   :  { %v3675_v38 = vpop.f32.mrb[79].mxu0 }
 0x378   :  { %v14140_v38 = vpop.permute.xlu1 %4744 }
 0x379   :  { %v7317_v40 = vpop.f32.mrb[32].mxu1  ;;  %16648 = vst [vmem:[#allocation33_spill] sm:$0xff] %v14140_v38 }
 0x37a   :  { %v14131_v43 = vpop.f32.mrb[80].mxu0  ;;  %v14133_v58 = vadd.f32 %v7317_v40, %v3484_v53  ;;  %v3863_v22 = vpop.f32.mrb[33].mxu1 }
 0x37b   :  { %v3680_v45 = vpop.f32.mrb[81].mxu0  ;;  %v14135_v31 = vadd.f32 %v3863_v22, %v3479_v25 }
 0x37c   :  { %8482 = vtanh.f32 %v14133_v58  ;;  %v14168_v24 = vpop.permute.xlu1 %4748 }
 0x37d   :  { %16647 = vst [vmem:[#allocation51_spill] sm:$0xff] %v14135_v31  ;;  %8484 = vtanh.f32 %v14135_v31  ;;  %v7320_v45 = vpop.f32.mrb[34].mxu1  ;;  %16654 = vst [vmem:[#allocation73_spill] sm:$0xff] %v14168_v24 }
 0x37e   :  { %v14147_v53 = vpop.f32.mrb[82].mxu0  ;;  %v14149_v40 = vadd.f32 %v7320_v45, %v3494_v6  ;;  %v3873_v55 = vpop.f32.mrb[35].mxu1 }
 0x37f   :  { %v3685_v22 = vpop.f32.mrb[83].mxu0  ;;  %v14151_v25 = vadd.f32 %v3873_v55, %v3489_v54  ;;  %v3514_v54 = vadd.f32 %v14125_v13, %v13858_v29  ;;  %v14170_v55 = vpop.permute.xlu0 %4746 }
 0x380   :  { %16650 = vst [vmem:[#allocation32_spill] sm:$0xff] %v14149_v40  ;;  %8486 = vtanh.f32 %v14149_v40  ;;  %16655 = vst [vmem:[#allocation55_spill] sm:$0xff] %v14170_v55  ;;  %v3524_v55 = vadd.f32 %v14125_v13, %v13892_v49  ;;  %v3534_v49 = vadd.f32 %v14125_v13, %v13924_v56  ;;  %v14199_v42 = vpop.permute.xlu1 %4752  ;;  %v3544_v56 = vadd.f32 %v14125_v13, %v13956_v61 }
 0x381   :  { %16651 = vst [vmem:[#allocation49_spill] sm:$0xff] %v14151_v25  ;;  %8488 = vtanh.f32 %v14151_v25  ;;  %v7323_v38 = vpop.f32.mrb[36].mxu1  ;;  %16659 = vst [vmem:[#allocation53_spill] sm:$0xff] %v14199_v42 }
 0x382   :  { %v14159_v59 = vpop.f32.mrb[84].mxu0  ;;  %v14161_v31 = vadd.f32 %v7323_v38, %v3504_v33  ;;  %v3883_v45 = vpop.f32.mrb[37].mxu1 }
 0x383   :  { %v3690_v6 = vpop.f32.mrb[85].mxu0  ;;  %v14163_v22 = vadd.f32 %v3883_v45, %v3499_v23 }
 0x384   :  { %16652 = vst [vmem:[#allocation31_spill] sm:$0xff] %v14161_v31  ;;  %8490 = vtanh.f32 %v14161_v31  ;;  %v14225_v61 = vpop.permute.xlu1 %4756 }
 0x385   :  { %16653 = vst [vmem:[#allocation54_spill] sm:$0xff] %v14163_v22  ;;  %8492 = vtanh.f32 %v14163_v22  ;;  %v7326_v33 = vpop.f32.mrb[38].mxu1  ;;  %16661 = vst [vmem:[#allocation28_spill] sm:$0xff] %v14225_v61 }
 0x386   :  { %v14175_v38 = vpop.f32.mrb[86].mxu0  ;;  %v8483_v6 = vpop.eup %8482  ;;  %v14177_v23 = vadd.f32 %v7326_v33, %v3514_v54 }
 0x387   :  { %v3695_v45 = vpop.f32.mrb[87].mxu0  ;;  %v3893_v25 = vpop.f32.mrb[39].mxu1  ;;  %5080 = vrot.lane.b32.xlu1 %v8483_v6, %s9051_s3 }
 0x388   :  { %16656 = vst [vmem:[#allocation74_spill] sm:$0xff] %v14177_v23  ;;  %v8485_v29 = vpop.eup %8484  ;;  %v14179_v40 = vadd.f32 %v3893_v25, %v3509_v39  ;;  %8494 = vtanh.f32 %v14177_v23 }
 0x389   :  { %5078 = vrot.lane.b32.xlu0 %v8485_v29, %s9051_s3  ;;  %v7329_v33 = vpop.f32.mrb[40].mxu1  ;;  %v14201_v29 = vpop.permute.xlu0 %4750 }
 0x38a   :  { %16657 = vst [vmem:[#allocation52_spill] sm:$0xff] %v14179_v40  ;;  %8496 = vtanh.f32 %v14179_v40  ;;  %v14189_v54 = vpop.f32.mrb[88].mxu0  ;;  %v8487_v25 = vpop.eup %8486  ;;  %v14191_v39 = vadd.f32 %v7329_v33, %v3524_v55  ;;  %16660 = vst [vmem:[#allocation72_spill] sm:$0xff] %v14201_v29  ;;  %v3529_v55 = vadd.f32 %v14125_v13, %v13908_v57  ;;  %v3539_v57 = vadd.f32 %v14125_v13, %v13940_v21 }
 0x38b   :  { %v3700_v45 = vpop.f32.mrb[89].mxu0  ;;  %v3903_v6 = vpop.f32.mrb[41].mxu1  ;;  %5084 = vrot.lane.b32.xlu1 %v8487_v25, %s9051_s3  ;;  %v3554_v21 = vadd.f32 %v14125_v13, %v13973_v63  ;;  %v3564_v63 = vadd.f32 %v14125_v13, %v13989_v60 }
 0x38c   :  { %v8489_v24 = vpop.eup %8488  ;;  %v14193_v22 = vadd.f32 %v3903_v6, %v3519_v48  ;;  %8498 = vtanh.f32 %v14191_v39 }
 0x38d   :  { %5082 = vrot.lane.b32.xlu0 %v8489_v24, %s9051_s3  ;;  %v7332_v45 = vpop.f32.mrb[42].mxu1 }
 0x38e   :  { %16658 = vst [vmem:[#allocation71_spill] sm:$0xff] %v14193_v22  ;;  %v14205_v33 = vpop.f32.mrb[90].mxu0  ;;  %v8491_v40 = vpop.eup %8490  ;;  %v14207_v48 = vadd.f32 %v7332_v45, %v3534_v49  ;;  %8500 = vtanh.f32 %v14193_v22 }
 0x38f   :  { %v3705_v6 = vpop.f32.mrb[91].mxu0  ;;  %v3913_v25 = vpop.f32.mrb[43].mxu1  ;;  %5088 = vrot.lane.b32.xlu1 %v8491_v40, %s9051_s3 }
 0x390   :  { %v8493_v23 = vpop.eup %8492  ;;  %v14209_v31 = vadd.f32 %v3913_v25, %v3529_v55  ;;  %8502 = vtanh.f32 %v14207_v48 }
 0x391   :  { %5086 = vrot.lane.b32.xlu0 %v8493_v23, %s9051_s3  ;;  %v7335_v49 = vpop.f32.mrb[44].mxu1  ;;  %v14230_v23 = vpop.permute.xlu0 %4754 }
 0x392   :  { %v14218_v24 = vpop.f32.mrb[92].mxu0  ;;  %v8495_v45 = vpop.eup %8494  ;;  %v14220_v6 = vadd.f32 %v7335_v49, %v3544_v56  ;;  %16662 = vst [vmem:[#allocation58_spill] sm:$0xff] %v14230_v23  ;;  %v3549_v56 = vadd.f32 %v14125_v13, %v13965_v12  ;;  %8504 = vtanh.f32 %v14209_v31 }
 0x393   :  { %v3710_v55 = vpop.f32.mrb[93].mxu0  ;;  %v3923_v25 = vpop.f32.mrb[45].mxu1  ;;  %5092 = vrot.lane.b32.xlu1 %v8495_v45, %s9051_s3 }
 0x394   :  { %v8497_v29 = vpop.eup %8496  ;;  %v14222_v40 = vadd.f32 %v3923_v25, %v3539_v57  ;;  %v14246_v23 = vpop.permute.xlu1 %4760  ;;  %8506 = vtanh.f32 %v14220_v6 }
 0x395   :  { %5090 = vrot.lane.b32.xlu0 %v8497_v29, %s9051_s3  ;;  %v7338_v57 = vpop.f32.mrb[46].mxu1  ;;  %v3559_v29 = vadd.f32 %v14125_v13, %v13981_v37  ;;  %16663 = vst [vmem:[#allocation75_spill] sm:$0xff] %v14246_v23  ;;  %v3569_v37 = vadd.f32 %v14125_v13, %v13997_v41 }
 0x396   :  { %v14235_v49 = vpop.f32.mrb[94].mxu0  ;;  %v14237_v55 = vadd.f32 %v7338_v57, %v3554_v21  ;;  %v3933_v25 = vpop.f32.mrb[47].mxu1  ;;  %8508 = vtanh.f32 %v14222_v40 }
 0x397   :  { %v3715_v45 = vpop.f32.mrb[95].mxu0  ;;  %v14239_v61 = vadd.f32 %v3933_v25, %v3549_v56  ;;  %v8499_v21 = vpop.eup %8498  ;;  %v3574_v56 = vadd.f32 %v14125_v13, %v14004_v44  ;;  %v3584_v44 = vadd.f32 %v14125_v13, %v14012_v28  ;;  %v3594_v28 = vadd.f32 %v14125_v13, %v14020_v50 }
 0x398   :  { %v14252_v45 = vpop.permute.xlu0 %4758  ;;  %5096 = vrot.lane.b32.xlu1 %v8499_v21, %s9051_s3  ;;  %v3579_v21 = vadd.f32 %v14125_v13, %v14006_v15  ;;  %8510 = vtanh.f32 %v14237_v55  ;;  %v3589_v15 = vadd.f32 %v14125_v13, %v14018_v46  ;;  %v3599_v46 = vadd.f32 %v14125_v13, %v14026_v51 }
 0x399   :  { %v7341_v12 = vpop.f32.mrb[48].mxu1  ;;  %16664 = vst [vmem:[#allocation107_spill] sm:$0xff] %v14252_v45  ;;  %8512 = vtanh.f32 %v14239_v61  ;;  %v3609_v51 = vadd.f32 %v14125_v13, %v14038_v9  ;;  %v3619_v9 = vadd.f32 %v14125_v13, %v14050_v52  ;;  %v3629_v52 = vadd.f32 %v14125_v13, %v14062_v3 }
 0x39a   :  { %v14248_v42 = vadd.f32 %v7341_v12, %v3564_v63  ;;  %v3943_v22 = vpop.f32.mrb[49].mxu1  ;;  %v14265_v12 = vpop.permute.xlu1 %4764 }
 0x39b   :  { %v14250_v57 = vadd.f32 %v3943_v22, %v3559_v29  ;;  %v8501_v22 = vpop.eup %8500  ;;  %16665 = vst [vmem:[#allocation36_spill] sm:$0xff] %v14265_v12 }
 0x39c   :  { %5094 = vrot.lane.b32.xlu0 %v8501_v22, %s9051_s3  ;;  %v14273_v45 = vpop.permute.xlu0 %4762  ;;  %8514 = vtanh.f32 %v14248_v42 }
 0x39d   :  { %v7344_v60 = vpop.f32.mrb[50].mxu1  ;;  %16666 = vst [vmem:[#allocation59_spill] sm:$0xff] %v14273_v45  ;;  %8516 = vtanh.f32 %v14250_v57 }
 0x39e   :  { %v14261_v25 = vadd.f32 %v7344_v60, %v3574_v56  ;;  %v3953_v63 = vpop.f32.mrb[51].mxu1  ;;  %v8503_v56 = vpop.eup %8502 }
 0x39f   :  { %v14263_v29 = vadd.f32 %v3953_v63, %v3569_v37  ;;  %5100 = vrot.lane.b32.xlu1 %v8503_v56, %s9051_s3  ;;  %v14285_v12 = vpop.permute.xlu1 %4768  ;;  %v8505_v45 = vpop.eup %8504  ;;  %v3604_v56 = vadd.f32 %v14125_v13, %v14034_v18 }
 0x3a0   :  { %16667 = vst [vmem:[#allocation76_spill] sm:$0xff] %v14285_v12  ;;  %5098 = vrot.lane.b32.xlu0 %v8505_v45, %s9051_s3  ;;  %v8507_v50 = vpop.eup %8506  ;;  %8518 = vtanh.f32 %v14261_v25 }
 0x3a1   :  { %v7347_v41 = vpop.f32.mrb[52].mxu1  ;;  %v8509_v45 = vpop.eup %8508  ;;  %8520 = vtanh.f32 %v14263_v29 }
 0x3a2   :  { %v14275_v60 = vadd.f32 %v7347_v41, %v3584_v44  ;;  %v3963_v37 = vpop.f32.mrb[53].mxu1  ;;  %v14293_v41 = vpop.permute.xlu0 %4766 }
 0x3a3   :  { %v14278_v63 = vadd.f32 %v3963_v37, %v3579_v21  ;;  %16668 = vst [vmem:[#allocation99_spill] sm:$0xff] %v14293_v41  ;;  %5104 = vrot.lane.b32.xlu1 %v8507_v50, %s9051_s3  ;;  %v3614_v41 = vadd.f32 %v14125_v13, %v14046_v14  ;;  %v3624_v14 = vadd.f32 %v14125_v13, %v14058_v20 }
 0x3a4   :  { %5102 = vrot.lane.b32.xlu0 %v8509_v45, %s9051_s3  ;;  %8522 = vtanh.f32 %v14275_v60 }
 0x3a5   :  { %v7350_v22 = vpop.f32.mrb[54].mxu1  ;;  %8524 = vtanh.f32 %v14278_v63 }
 0x3a6   :  { %v14287_v23 = vadd.f32 %v7350_v22, %v3594_v28  ;;  %v3973_v44 = vpop.f32.mrb[55].mxu1  ;;  %v14313_v50 = vpop.permute.xlu0 %4770 }
 0x3a7   :  { %v14291_v21 = vadd.f32 %v3973_v44, %v3589_v15  ;;  %v14305_v44 = vpop.permute.xlu1 %4772  ;;  %16670 = vst [vmem:[#allocation56_spill] sm:$0xff] %v14313_v50 }
 0x3a8   :  { %16669 = vst [vmem:[#allocation9_spill] sm:$0xff] %v14305_v44  ;;  %8526 = vtanh.f32 %v14287_v23 }
 0x3a9   :  { %v7353_v37 = vpop.f32.mrb[56].mxu1  ;;  %8528 = vtanh.f32 %v14291_v21 }
 0x3aa   :  { %v14301_v28 = vadd.f32 %v7353_v37, %v3604_v56  ;;  %v3983_v22 = vpop.f32.mrb[57].mxu1  ;;  %v8511_v56 = vpop.eup %8510 }
 0x3ab   :  { %v14303_v15 = vadd.f32 %v3983_v22, %v3599_v46  ;;  %5108 = vrot.lane.b32.xlu1 %v8511_v56, %s9051_s3  ;;  %v8513_v45 = vpop.eup %8512  ;;  %v14325_v12 = vpop.permute.xlu1 %4776 }
 0x3ac   :  { %16671 = vst [vmem:[#allocation17_spill] sm:$0xff] %v14325_v12  ;;  %5106 = vrot.lane.b32.xlu0 %v8513_v45, %s9051_s3  ;;  %v8515_v56 = vpop.eup %8514  ;;  %v14333_v20 = vpop.permute.xlu0 %4774  ;;  %8530 = vtanh.f32 %v14301_v28 }
 0x3ad   :  { %v7356_v18 = vpop.f32.mrb[58].mxu1  ;;  %16672 = vst [vmem:[#allocation100_spill] sm:$0xff] %v14333_v20  ;;  %v8517_v45 = vpop.eup %8516  ;;  %8532 = vtanh.f32 %v14303_v15 }
 0x3ae   :  { %v14315_v37 = vadd.f32 %v7356_v18, %v3614_v41  ;;  %v3993_v46 = vpop.f32.mrb[59].mxu1 }
 0x3af   :  { %v14318_v22 = vadd.f32 %v3993_v46, %v3609_v51  ;;  %v3634_v46 = vadd.f32 %v14125_v13, %v14070_v2  ;;  %5112 = vrot.lane.b32.xlu1 %v8515_v56, %s9051_s3  ;;  %v3644_v2 = vadd.f32 %v14125_v13, %v14082_v4  ;;  %v3639_v56 = vadd.f32 %v14125_v13, %v14074_v0 }
 0x3b0   :  { %5110 = vrot.lane.b32.xlu0 %v8517_v45, %s9051_s3  ;;  %v14353_v20 = vpop.permute.xlu0 %4778  ;;  %v3654_v45 = vadd.f32 %v14125_v13, %v14094_v26  ;;  %v3649_v0 = vadd.f32 %v14125_v13, %v14086_v19  ;;  %v3659_v19 = vadd.f32 %v14125_v13, %v14098_v1  ;;  %v3669_v1 = vadd.f32 %v14125_v13, %v14110_v30 }
 0x3b1   :  { %v7359_v44 = vpop.f32.mrb[60].mxu1  ;;  %16674 = vst [vmem:[#allocation57_spill] sm:$0xff] %v14353_v20  ;;  %8534 = vtanh.f32 %v14315_v37  ;;  %v3679_v30 = vadd.f32 %v14125_v13, %v14131_v43  ;;  %v3689_v43 = vadd.f32 %v14125_v13, %v14159_v59  ;;  %v3699_v59 = vadd.f32 %v14125_v13, %v14189_v54 }
 0x3b2   :  { %v14328_v41 = vadd.f32 %v7359_v44, %v3624_v14  ;;  %v4003_v18 = vpop.f32.mrb[61].mxu1  ;;  %8536 = vtanh.f32 %v14318_v22  ;;  %v3709_v54 = vadd.f32 %v14125_v13, %v14218_v24  ;;  %v3719_v24 = vadd.f32 %v14125_v13, %v14028_v16 }
 0x3b3   :  { %v14331_v51 = vadd.f32 %v4003_v18, %v3619_v9  ;;  %v14346_v18 = vpop.permute.xlu1 %4780  ;;  %v3729_v16 = vadd.f32 %v14125_v13, %v14040_v34  ;;  %v3739_v34 = vadd.f32 %v14125_v13, %v14052_v5  ;;  %v3749_v5 = vadd.f32 %v14125_v13, %v14064_v35 }
 0x3b4   :  { %16673 = vst [vmem:[#allocation82_spill] sm:$0xff] %v14346_v18  ;;  %8538 = vtanh.f32 %v14328_v41  ;;  %v3759_v35 = vadd.f32 %v14125_v13, %v14076_v27  ;;  %v3769_v27 = vadd.f32 %v14125_v13, %v14088_v32 }
 0x3b5   :  { %v7362_v12 = vpop.f32.mrb[62].mxu1  ;;  %8540 = vtanh.f32 %v14331_v51 }
 0x3b6   :  { %v14341_v44 = vadd.f32 %v7362_v12, %v3634_v46  ;;  %v4013_v14 = vpop.f32.mrb[63].mxu1  ;;  %v8519_v12 = vpop.eup %8518 }
 0x3b7   :  { %v14344_v9 = vadd.f32 %v4013_v14, %v3629_v52  ;;  %5116 = vrot.lane.b32.xlu1 %v8519_v12, %s9051_s3  ;;  %v8521_v4 = vpop.eup %8520  ;;  %v14365_v18 = vpop.permute.xlu1 %4784  ;;  %v3664_v12 = vadd.f32 %v14125_v13, %v14106_v62 }
 0x3b8   :  { %16675 = vst [vmem:[#allocation18_spill] sm:$0xff] %v14365_v18  ;;  %5114 = vrot.lane.b32.xlu0 %v8521_v4, %s9051_s3  ;;  %v8523_v26 = vpop.eup %8522  ;;  %8542 = vtanh.f32 %v14341_v44 }
 0x3b9   :  { %v7365_v3 = vpop.f32.mrb[64].mxu1  ;;  %8544 = vtanh.f32 %v14344_v9 }
 0x3ba   :  { %v14355_v46 = vadd.f32 %v7365_v3, %v3644_v2  ;;  %v4023_v50 = vpop.f32.mrb[65].mxu1 }
 0x3bb   :  { %v14358_v52 = vadd.f32 %v4023_v50, %v3639_v56  ;;  %v14373_v56 = vpop.permute.xlu0 %4782  ;;  %5120 = vrot.lane.b32.xlu1 %v8523_v26, %s9051_s3 }
 0x3bc   :  { %16676 = vst [vmem:[#allocation110_spill] sm:$0xff] %v14373_v56  ;;  %v3674_v56 = vadd.f32 %v14125_v13, %v14118_v17  ;;  %v3684_v17 = vadd.f32 %v14125_v13, %v14147_v53  ;;  %8546 = vtanh.f32 %v14355_v46 }
 0x3bd   :  { %v7368_v14 = vpop.f32.mrb[66].mxu1  ;;  %8548 = vtanh.f32 %v14358_v52 }
 0x3be   :  { %v14368_v2 = vadd.f32 %v7368_v14, %v3654_v45  ;;  %v4033_v3 = vpop.f32.mrb[67].mxu1  ;;  %v8525_v14 = vpop.eup %8524 }
 0x3bf   :  { %v14371_v50 = vadd.f32 %v4033_v3, %v3649_v0  ;;  %v14385_v3 = vpop.permute.xlu1 %4788  ;;  %5118 = vrot.lane.b32.xlu0 %v8525_v14, %s9051_s3  ;;  %v14393_v26 = vpop.permute.xlu0 %4786 }
 0x3c0   :  { %16678 = vst [vmem:[#allocation62_spill] sm:$0xff] %v14385_v3  ;;  %16679 = vst [vmem:[#allocation80_spill] sm:$0xff] %v14393_v26  ;;  %8550 = vtanh.f32 %v14368_v2 }
 0x3c1   :  { %v7371_v18 = vpop.f32.mrb[68].mxu1  ;;  %8552 = vtanh.f32 %v14371_v50 }
 0x3c2   :  { %v14381_v45 = vadd.f32 %v7371_v18, %v3664_v12  ;;  %v4043_v4 = vpop.f32.mrb[69].mxu1  ;;  %v8527_v18 = vpop.eup %8526 }
 0x3c3   :  { %v14383_v0 = vadd.f32 %v4043_v4, %v3659_v19  ;;  %5124 = vrot.lane.b32.xlu1 %v8527_v18, %s9051_s3  ;;  %v8529_v14 = vpop.eup %8528  ;;  %v14405_v20 = vpop.permute.xlu1 %4792 }
 0x3c4   :  { %16682 = vst [vmem:[#allocation63_spill] sm:$0xff] %v14405_v20  ;;  %5122 = vrot.lane.b32.xlu0 %v8529_v14, %s9051_s3  ;;  %v14413_v18 = vpop.permute.xlu0 %4790  ;;  %v8531_v53 = vpop.eup %8530  ;;  %8554 = vtanh.f32 %v14381_v45 }
 0x3c5   :  { %16677 = vst [vmem:[#allocation122_spill] sm:$0xff] %v14383_v0  ;;  %v7374_v62 = vpop.f32.mrb[70].mxu1  ;;  %16685 = vst [vmem:[#allocation91_spill] sm:$0xff] %v14413_v18  ;;  %v8533_v14 = vpop.eup %8532  ;;  %v3704_v18 = vadd.f32 %v14125_v13, %v14205_v33  ;;  %v3714_v33 = vadd.f32 %v14125_v13, %v14235_v49  ;;  %8556 = vtanh.f32 %v14383_v0 }
 0x3c6   :  { %v14395_v12 = vadd.f32 %v7374_v62, %v3674_v56  ;;  %v4053_v19 = vpop.f32.mrb[71].mxu1 }
 0x3c7   :  { %v14398_v4 = vadd.f32 %v4053_v19, %v3669_v1  ;;  %v3694_v19 = vadd.f32 %v14125_v13, %v14175_v38  ;;  %5128 = vrot.lane.b32.xlu1 %v8531_v53, %s9051_s3 }
 0x3c8   :  { %16680 = vst [vmem:[#allocation111_spill] sm:$0xff] %v14395_v12  ;;  %5126 = vrot.lane.b32.xlu0 %v8533_v14, %s9051_s3  ;;  %v14433_v53 = vpop.permute.xlu0 %4794  ;;  %8558 = vtanh.f32 %v14395_v12  ;;  %v16717_v12 = vld [vmem:[#allocation23_spill] sm:$0xff] }
 0x3c9   :  { %16681 = vst [vmem:[#allocation123_spill] sm:$0xff] %v14398_v4  ;;  %v7377_v3 = vpop.f32.mrb[72].mxu1  ;;  %16689 = vst [vmem:[#allocation120_spill] sm:$0xff] %v14433_v53  ;;  %8560 = vtanh.f32 %v14398_v4  ;;  %v3779_v32 = vadd.f32 %v14125_v13, %v16717_v12 }
 0x3ca   :  { %v14408_v56 = vadd.f32 %v7377_v3, %v3684_v17  ;;  %v4063_v62 = vpop.f32.mrb[73].mxu1 }
 0x3cb   :  { %v14411_v1 = vadd.f32 %v4063_v62, %v3679_v30  ;;  %v14425_v62 = vpop.permute.xlu1 %4796 }
 0x3cc   :  { %16683 = vst [vmem:[#allocation81_spill] sm:$0xff] %v14408_v56  ;;  %16688 = vst [vmem:[#allocation109_spill] sm:$0xff] %v14425_v62  ;;  %8562 = vtanh.f32 %v14408_v56 }
 0x3cd   :  { %16684 = vst [vmem:[#allocation108_spill] sm:$0xff] %v14411_v1  ;;  %v7380_v20 = vpop.f32.mrb[74].mxu1  ;;  %8564 = vtanh.f32 %v14411_v1 }
 0x3ce   :  { %v14421_v3 = vadd.f32 %v7380_v20, %v3694_v19  ;;  %v4073_v17 = vpop.f32.mrb[75].mxu1  ;;  %v8535_v20 = vpop.eup %8534 }
 0x3cf   :  { %v14423_v30 = vadd.f32 %v4073_v17, %v3689_v43  ;;  %5132 = vrot.lane.b32.xlu1 %v8535_v20, %s9051_s3  ;;  %v8537_v14 = vpop.eup %8536  ;;  %v14445_v26 = vpop.permute.xlu1 %4800 }
 0x3d0   :  { %16686 = vst [vmem:[#allocation60_spill] sm:$0xff] %v14421_v3  ;;  %16692 = vst [vmem:[#allocation78_spill] sm:$0xff] %v14445_v26  ;;  %5130 = vrot.lane.b32.xlu0 %v8537_v14, %s9051_s3  ;;  %v14453_v20 = vpop.permute.xlu0 %4798  ;;  %v8539_v49 = vpop.eup %8538  ;;  %8566 = vtanh.f32 %v14421_v3 }
 0x3d1   :  { %16687 = vst [vmem:[#allocation77_spill] sm:$0xff] %v14423_v30  ;;  %v7383_v38 = vpop.f32.mrb[76].mxu1  ;;  %16695 = vst [vmem:[#allocation37_spill] sm:$0xff] %v14453_v20  ;;  %v8541_v14 = vpop.eup %8540  ;;  %v3734_v20 = vadd.f32 %v14125_v13, %v14048_v8  ;;  %v3744_v8 = vadd.f32 %v14125_v13, %v14060_v36  ;;  %8568 = vtanh.f32 %v14423_v30 }
 0x3d2   :  { %v14435_v19 = vadd.f32 %v7383_v38, %v3704_v18  ;;  %v4083_v43 = vpop.f32.mrb[77].mxu1 }
 0x3d3   :  { %v14438_v17 = vadd.f32 %v4083_v43, %v3699_v59  ;;  %v3724_v43 = vadd.f32 %v14125_v13, %v14036_v11  ;;  %5136 = vrot.lane.b32.xlu1 %v8539_v49, %s9051_s3 }
 0x3d4   :  { %16690 = vst [vmem:[#allocation79_spill] sm:$0xff] %v14435_v19  ;;  %5134 = vrot.lane.b32.xlu0 %v8541_v14, %s9051_s3  ;;  %v14473_v49 = vpop.permute.xlu0 %4802  ;;  %8570 = vtanh.f32 %v14435_v19  ;;  %v16727_v19 = vld [vmem:[#allocation32_spill] sm:$0xff] }
 0x3d5   :  { %16691 = vst [vmem:[#allocation61_spill] sm:$0xff] %v14438_v17  ;;  %v7386_v62 = vpop.f32.mrb[78].mxu1  ;;  %16699 = vst [vmem:[#allocation27_spill] sm:$0xff] %v14473_v49  ;;  %8572 = vtanh.f32 %v14438_v17 }
 0x3d6   :  { %v14448_v18 = vadd.f32 %v7386_v62, %v3714_v33  ;;  %v4093_v38 = vpop.f32.mrb[79].mxu1 }
 0x3d7   :  { %v14451_v59 = vadd.f32 %v4093_v38, %v3709_v54  ;;  %v14465_v38 = vpop.permute.xlu1 %4804 }
 0x3d8   :  { %16693 = vst [vmem:[#allocation114_spill] sm:$0xff] %v14448_v18  ;;  %16698 = vst [vmem:[#allocation90_spill] sm:$0xff] %v14465_v38 }
 0x3d9   :  { %16694 = vst [vmem:[#allocation121_spill] sm:$0xff] %v14451_v59  ;;  %v7389_v26 = vpop.f32.mrb[80].mxu1 }
 0x3da   :  { %v14461_v62 = vadd.f32 %v7389_v26, %v3724_v43  ;;  %v4103_v33 = vpop.f32.mrb[81].mxu1  ;;  %v8543_v26 = vpop.eup %8542  ;;  %8574 = vtanh.f32 %v14448_v18 }
 0x3db   :  { %v14463_v54 = vadd.f32 %v4103_v33, %v3719_v24  ;;  %5140 = vrot.lane.b32.xlu1 %v8543_v26, %s9051_s3  ;;  %v8545_v14 = vpop.eup %8544  ;;  %v14485_v53 = vpop.permute.xlu1 %4808  ;;  %8576 = vtanh.f32 %v14451_v59 }
 0x3dc   :  { %16696 = vst [vmem:[#allocation66_spill] sm:$0xff] %v14461_v62  ;;  %16702 = vst [vmem:[#allocation11_spill] sm:$0xff] %v14485_v53  ;;  %5138 = vrot.lane.b32.xlu0 %v8545_v14, %s9051_s3  ;;  %v14493_v26 = vpop.permute.xlu0 %4806  ;;  %v8547_v36 = vpop.eup %8546  ;;  %8578 = vtanh.f32 %v14461_v62 }
 0x3dd   :  { %16697 = vst [vmem:[#allocation115_spill] sm:$0xff] %v14463_v54  ;;  %v7392_v11 = vpop.f32.mrb[82].mxu1  ;;  %16705 = vst [vmem:[#allocation113_spill] sm:$0xff] %v14493_v26  ;;  %v8549_v14 = vpop.eup %8548  ;;  %v3764_v26 = vadd.f32 %v14125_v13, %v14084_v7  ;;  %v3774_v7 = vadd.f32 %v14125_v13, %v14096_v47  ;;  %8580 = vtanh.f32 %v14463_v54 }
 0x3de   :  { %v14475_v43 = vadd.f32 %v7392_v11, %v3734_v20  ;;  %v4113_v24 = vpop.f32.mrb[83].mxu1 }
 0x3df   :  { %v14478_v33 = vadd.f32 %v4113_v24, %v3729_v16  ;;  %v3754_v24 = vadd.f32 %v14125_v13, %v14072_v10  ;;  %5144 = vrot.lane.b32.xlu1 %v8547_v36, %s9051_s3 }
 0x3e0   :  { %16700 = vst [vmem:[#allocation16_spill] sm:$0xff] %v14475_v43  ;;  %5142 = vrot.lane.b32.xlu0 %v8549_v14, %s9051_s3  ;;  %v14513_v36 = vpop.permute.xlu0 %4810 }
 0x3e1   :  { %16701 = vst [vmem:[#allocation112_spill] sm:$0xff] %v14478_v33  ;;  %v7395_v38 = vpop.f32.mrb[84].mxu1  ;;  %16709 = vst [vmem:[#allocation118_spill] sm:$0xff] %v14513_v36 }
 0x3e2   :  { %v14488_v20 = vadd.f32 %v7395_v38, %v3744_v8  ;;  %v4123_v11 = vpop.f32.mrb[85].mxu1 }
 0x3e3   :  { %v14491_v16 = vadd.f32 %v4123_v11, %v3739_v34  ;;  %v14505_v11 = vpop.permute.xlu1 %4812 }
 0x3e4   :  { %16703 = vst [vmem:[#allocation93_spill] sm:$0xff] %v14488_v20  ;;  %16708 = vst [vmem:[#allocation65_spill] sm:$0xff] %v14505_v11 }
 0x3e5   :  { %16704 = vst [vmem:[#allocation64_spill] sm:$0xff] %v14491_v16  ;;  %v7398_v53 = vpop.f32.mrb[86].mxu1 }
 0x3e6   :  { %v14501_v38 = vadd.f32 %v7398_v53, %v3754_v24  ;;  %v4133_v8 = vpop.f32.mrb[87].mxu1  ;;  %v8551_v53 = vpop.eup %8550  ;;  %8582 = vtanh.f32 %v14475_v43 }
 0x3e7   :  { %v14503_v34 = vadd.f32 %v4133_v8, %v3749_v5  ;;  %5148 = vrot.lane.b32.xlu1 %v8551_v53, %s9051_s3  ;;  %v8553_v14 = vpop.eup %8552  ;;  %v14525_v49 = vpop.permute.xlu1 %4816  ;;  %8584 = vtanh.f32 %v14478_v33 }
 0x3e8   :  { %16706 = vst [vmem:[#allocation84_spill] sm:$0xff] %v14501_v38  ;;  %16712 = vst [vmem:[#allocation69_spill] sm:$0xff] %v14525_v49  ;;  %5146 = vrot.lane.b32.xlu0 %v8553_v14, %s9051_s3  ;;  %v14533_v53 = vpop.permute.xlu0 %4814  ;;  %v8555_v47 = vpop.eup %8554  ;;  %8586 = vtanh.f32 %v14488_v20 }
 0x3e9   :  { %16707 = vst [vmem:[#allocation8_spill] sm:$0xff] %v14503_v34  ;;  %v7401_v10 = vpop.f32.mrb[88].mxu1  ;;  %16715 = vst [vmem:[#allocation19_spill] sm:$0xff] %v14533_v53  ;;  %v8557_v14 = vpop.eup %8556  ;;  %v16721_v53 = vld [vmem:[#allocation34_spill] sm:$0xff]  ;;  %8588 = vtanh.f32 %v14491_v16 }
 0x3ea   :  { %v14515_v24 = vadd.f32 %v7401_v10, %v3764_v26  ;;  %v4143_v5 = vpop.f32.mrb[89].mxu1  ;;  %v3794_v4 = vadd.f32 %v14125_v13, %v16721_v53 }
 0x3eb   :  { %v14518_v8 = vadd.f32 %v4143_v5, %v3759_v35  ;;  %v16716_v5 = vld [vmem:[#allocation47_spill] sm:$0xff]  ;;  %5152 = vrot.lane.b32.xlu1 %v8555_v47, %s9051_s3 }
 0x3ec   :  { %16710 = vst [vmem:[#allocation20_spill] sm:$0xff] %v14515_v24  ;;  %v3784_v36 = vadd.f32 %v14125_v13, %v16716_v5  ;;  %5150 = vrot.lane.b32.xlu0 %v8557_v14, %s9051_s3  ;;  %v16722_v5 = vld [vmem:[#allocation44_spill] sm:$0xff]  ;;  %v14553_v56 = vpop.permute.xlu0 %4818 }
 0x3ed   :  { %16711 = vst [vmem:[#allocation83_spill] sm:$0xff] %v14518_v8  ;;  %v7404_v11 = vpop.f32.mrb[90].mxu1  ;;  %v3789_v12 = vadd.f32 %v14125_v13, %v16722_v5  ;;  %16723 = vst [vmem:[#allocation67_spill] sm:$0xff] %v14553_v56 }
 0x3ee   :  { %v14528_v26 = vadd.f32 %v7404_v11, %v3774_v7  ;;  %v4153_v10 = vpop.f32.mrb[91].mxu1 }
 0x3ef   :  { %v14531_v35 = vadd.f32 %v4153_v10, %v3769_v27  ;;  %v14545_v10 = vpop.permute.xlu1 %4820 }
 0x3f0   :  { %16713 = vst [vmem:[#allocation119_spill] sm:$0xff] %v14528_v26  ;;  %16720 = vst [vmem:[#allocation92_spill] sm:$0xff] %v14545_v10 }
 0x3f1   :  { %16714 = vst [vmem:[#allocation30_spill] sm:$0xff] %v14531_v35  ;;  %v7407_v49 = vpop.f32.mrb[92].mxu1 }
 0x3f2   :  { %v14541_v11 = vadd.f32 %v7407_v49, %v3784_v36  ;;  %v4163_v7 = vpop.f32.mrb[93].mxu1  ;;  %v8559_v49 = vpop.eup %8558  ;;  %8590 = vtanh.f32 %v14501_v38  ;;  %v7163_v38 = vmul.f32 -1.442695, %v16727_v19 }
 0x3f3   :  { %v14543_v27 = vadd.f32 %v4163_v7, %v3779_v32  ;;  %5156 = vrot.lane.b32.xlu1 %v8559_v49, %s9051_s3  ;;  %v8561_v53 = vpop.eup %8560 }
 0x3f4   :  { %16718 = vst [vmem:[#allocation70_spill] sm:$0xff] %v14541_v11  ;;  %5154 = vrot.lane.b32.xlu0 %v8561_v53, %s9051_s3  ;;  %v8563_v5 = vpop.eup %8562 }
 0x3f5   :  { %16719 = vst [vmem:[#allocation116_spill] sm:$0xff] %v14543_v27  ;;  %v7410_v47 = vpop.f32.mrb[94].mxu1 }
 0x3f6   :  { %v14555_v36 = vadd.f32 %v7410_v47, %v3794_v4  ;;  %v4173_v32 = vpop.f32.mrb[95].mxu1 }
 0x3f7   :  { %v14558_v7 = vadd.f32 %v4173_v32, %v3789_v12  ;;  %5160 = vrot.lane.b32.xlu1 %v8563_v5, %s9051_s3  ;;  %v8565_v12 = vpop.eup %8564 }
 0x3f8   :  { %16724 = vst [vmem:[#allocation117_spill] sm:$0xff] %v14555_v36  ;;  %5158 = vrot.lane.b32.xlu0 %v8565_v12, %s9051_s3  ;;  %v8567_v49 = vpop.eup %8566 }
 0x3f9   :  { %16725 = vst [vmem:[#allocation68_spill] sm:$0xff] %v14558_v7  ;;  %v14561_v14 = vpop.permute.xlu1 %5080  ;;  %v8569_v53 = vpop.eup %8568 }
 0x3fa   :  { %v8571_v56 = vpop.eup %8570 }
 0x3fb   :  { %v14565_v13 = vpop.permute.xlu0 %5078  ;;  %5164 = vrot.lane.b32.xlu1 %v8567_v49, %s9051_s3  ;;  %v8573_v10 = vpop.eup %8572 }
 0x3fc   :  { %5162 = vrot.lane.b32.xlu0 %v8569_v53, %s9051_s3  ;;  %v8575_v18 = vpop.eup %8574 }
 0x3fd   :  { %v14568_v4 = vpop.permute.xlu1 %5084  ;;  %v8577_v59 = vpop.eup %8576 }
 0x3fe   :  { %v8579_v62 = vpop.eup %8578 }
 0x3ff   :  { %v14573_v47 = vpop.permute.xlu0 %5082  ;;  %5168 = vrot.lane.b32.xlu1 %v8571_v56, %s9051_s3  ;;  %v8581_v54 = vpop.eup %8580 }
 0x400   :  { %5166 = vrot.lane.b32.xlu0 %v8573_v10, %s9051_s3  ;;  %v8583_v43 = vpop.eup %8582 }
 0x401   :  { %v14576_v32 = vpop.permute.xlu1 %5088 }
 0x403   :  { %v14581_v5 = vpop.permute.xlu0 %5086  ;;  %5172 = vrot.lane.b32.xlu1 %v8575_v18, %s9051_s3 }
 0x404   :  { %5170 = vrot.lane.b32.xlu0 %v8577_v59, %s9051_s3  ;;  %v7161_v59 = vmul.f32 -1.442695, %v14133_v58  ;;  %v16726_v58 = vld [vmem:[#allocation51_spill] sm:$0xff] }
 0x405   :  { %v14584_v12 = vpop.permute.xlu1 %5092  ;;  %v7160_v17 = vmul.f32 -1.442695, %v16726_v58 }
 0x406   :  { %8592 = vpow2.f32 %v7161_v59 }
 0x407   :  { %v14589_v49 = vpop.permute.xlu0 %5090  ;;  %5176 = vrot.lane.b32.xlu1 %v8579_v62, %s9051_s3  ;;  %v8585_v62 = vpop.eup %8584  ;;  %8594 = vtanh.f32 %v14503_v34 }
 0x408   :  { %5174 = vrot.lane.b32.xlu0 %v8581_v54, %s9051_s3  ;;  %v8587_v54 = vpop.eup %8586  ;;  %8596 = vtanh.f32 %v14515_v24 }
 0x409   :  { %8598 = vtanh.f32 %v14518_v8 }
 0x40a   :  { %v14592_v53 = vpop.permute.xlu1 %5096  ;;  %8600 = vpow2.f32 %v7160_v17  ;;  %v16731_v17 = vld [vmem:[#allocation74_spill] sm:$0xff] }
 0x40b   :  { %5180 = vrot.lane.b32.xlu1 %v8583_v43, %s9051_s3  ;;  %v8589_v43 = vpop.eup %8588  ;;  %8602 = vpow2.f32 %v7163_v38  ;;  %v7167_v8 = vmul.f32 -1.442695, %v16731_v17 }
 0x40c   :  { %5178 = vrot.lane.b32.xlu0 %v8585_v62, %s9051_s3  ;;  %v16728_v62 = vld [vmem:[#allocation49_spill] sm:$0xff]  ;;  %v8591_v34 = vpop.eup %8590  ;;  %8604 = vtanh.f32 %v14528_v26  ;;  %v16732_v26 = vld [vmem:[#allocation52_spill] sm:$0xff] }
 0x40d   :  { %v7162_v30 = vmul.f32 -1.442695, %v16728_v62 }
 0x40e   :  { %v14597_v56 = vpop.permute.xlu0 %5094 }
 0x40f   :  { %5184 = vrot.lane.b32.xlu1 %v8587_v54, %s9051_s3  ;;  %v16729_v54 = vld [vmem:[#allocation31_spill] sm:$0xff]  ;;  %8606 = vpow2.f32 %v7162_v30  ;;  %v7166_v30 = vmul.f32 -1.442695, %v16732_v26  ;;  %v7171_v26 = vmul.f32 -1.442695, %v14207_v48 }
 0x410   :  { %5182 = vrot.lane.b32.xlu0 %v8589_v43, %s9051_s3  ;;  %v7165_v3 = vmul.f32 -1.442695, %v16729_v54  ;;  %v8593_v24 = vpop.eup %8592  ;;  %v16730_v43 = vld [vmem:[#allocation54_spill] sm:$0xff] }
 0x411   :  { %v14600_v10 = vpop.permute.xlu1 %5100  ;;  %v8595_v19 = vpop.eup %8594  ;;  %v7164_v1 = vmul.f32 -1.442695, %v16730_v43 }
 0x412   :  { %v14605_v18 = vpop.permute.xlu0 %5098  ;;  %8608 = vpow2.f32 %v7165_v3  ;;  %v8597_v38 = vpop.eup %8596 }
 0x413   :  { %5188 = vrot.lane.b32.xlu1 %v8591_v34, %s9051_s3  ;;  %8610 = vtanh.f32 %v14531_v35  ;;  %v4439_v34 = vadd.f32 1.0, %v8593_v24  ;;  %v8599_v3 = vpop.eup %8598 }
 0x414   :  { %5186 = vrot.lane.b32.xlu0 %v8595_v19, %s9051_s3  ;;  %8612 = vpow2.f32 %v7164_v1  ;;  %v7169_v19 = vmul.f32 -1.442695, %v14191_v39  ;;  %v8601_v43 = vpop.eup %8600  ;;  %v16733_v1 = vld [vmem:[#allocation71_spill] sm:$0xff] }
 0x415   :  { %v14609_v33 = vpop.permute.xlu1 %5104  ;;  %8614 = vtanh.f32 %v14541_v11  ;;  %v8603_v24 = vpop.eup %8602  ;;  %v7168_v35 = vmul.f32 -1.442695, %v16733_v1 }
 0x416   :  { %v14613_v20 = vpop.permute.xlu0 %5102  ;;  %8616 = vpow2.f32 %v7167_v8  ;;  %v4441_v0 = vadd.f32 1.0, %v8603_v24  ;;  %v7172_v24 = vmul.f32 -1.442695, %v14222_v40 }
 0x417   :  { %5192 = vrot.lane.b32.xlu1 %v8597_v38, %s9051_s3  ;;  %8618 = vrcp.f32 %v4439_v34  ;;  %v8605_v38 = vpop.eup %8604  ;;  %v4438_v34 = vadd.f32 1.0, %v8601_v43 }
 0x418   :  { %5190 = vrot.lane.b32.xlu0 %v8599_v3, %s9051_s3  ;;  %8620 = vtanh.f32 %v14543_v27 }
 0x419   :  { %8622 = vpow2.f32 %v7166_v30  ;;  %v8607_v11 = vpop.eup %8606 }
 0x41a   :  { %8624 = vpow2.f32 %v7169_v19  ;;  %v4440_v1 = vadd.f32 1.0, %v8607_v11  ;;  %v7170_v19 = vmul.f32 -1.442695, %v14209_v31 }
 0x41b   :  { %5196 = vrot.lane.b32.xlu1 %v8605_v38, %s9051_s3  ;;  %8626 = vtanh.f32 %v14555_v36  ;;  %v7173_v36 = vmul.f32 -1.442695, %v14220_v6 }
 0x41c   :  { %v8609_v8 = vpop.eup %8608  ;;  %8628 = vpow2.f32 %v7168_v35 }
 0x41d   :  { %v14617_v16 = vpop.permute.xlu1 %5108  ;;  %v8611_v3 = vpop.eup %8610  ;;  %8630 = vpow2.f32 %v7171_v26  ;;  %v4443_v27 = vadd.f32 1.0, %v8609_v8  ;;  %v7175_v8 = vmul.f32 -1.442695, %v14237_v55 }
 0x41e   :  { %v14623_v59 = vpop.permute.xlu0 %5106  ;;  %5194 = vrot.lane.b32.xlu0 %v8611_v3, %s9051_s3  ;;  %v8613_v48 = vpop.eup %8612  ;;  %8632 = vtanh.f32 %v14558_v7 }
 0x41f   :  { %v8615_v38 = vpop.eup %8614  ;;  %8634 = vrcp.f32 %v4438_v34  ;;  %v4442_v31 = vadd.f32 1.0, %v8613_v48 }
 0x420   :  { %v8617_v43 = vpop.eup %8616  ;;  %8636 = vrcp.f32 %v4441_v0  ;;  %5200 = vrot.lane.b32.xlu1 %v8615_v38, %s9051_s3 }
 0x421   :  { %v14629_v58 = vpop.permute.xlu1 %5112  ;;  %v14663_v11 = vpop.eup %8618  ;;  %8638 = vrcp.f32 %v4440_v1  ;;  %v4445_v34 = vadd.f32 1.0, %v8617_v43  ;;  %v7174_v1 = vmul.f32 -1.442695, %v14239_v61  ;;  %v7176_v61 = vmul.f32 -1.442695, %v14250_v57 }
 0x422   :  { %v14634_v62 = vpop.permute.xlu0 %5110  ;;  %v8621_v26 = vpop.eup %8620  ;;  %8640 = vpow2.f32 %v7170_v19  ;;  %v5271_v55 = vmul.f32 %v14663_v11, %v14561_v14  ;;  %v7179_v57 = vmul.f32 -1.442695, %v14261_v25 }
 0x423   :  { %v8623_v3 = vpop.eup %8622  ;;  %8642 = vrcp.f32 %v4443_v27  ;;  %5198 = vrot.lane.b32.xlu0 %v8621_v26, %s9051_s3 }
 0x424   :  { %v8625_v6 = vpop.eup %8624  ;;  %8644 = vpow2.f32 %v7173_v36  ;;  %v4444_v40 = vadd.f32 1.0, %v8623_v3  ;;  %v7177_v36 = vmul.f32 -1.442695, %v14248_v42 }
 0x425   :  { %v8627_v38 = vpop.eup %8626  ;;  %8646 = vpow2.f32 %v7172_v24  ;;  %v4447_v19 = vadd.f32 1.0, %v8625_v6 }
 0x426   :  { %v8629_v7 = vpop.eup %8628  ;;  %8648 = vrcp.f32 %v4442_v31  ;;  %5204 = vrot.lane.b32.xlu1 %v8627_v38, %s9051_s3 }
 0x427   :  { %v8631_v27 = vpop.eup %8630  ;;  %8650 = vrcp.f32 %v4445_v34  ;;  %v4446_v3 = vadd.f32 1.0, %v8629_v7  ;;  %v7178_v7 = vmul.f32 -1.442695, %v14263_v29  ;;  %v7180_v29 = vmul.f32 -1.442695, %v14278_v63 }
 0x428   :  { %v8633_v43 = vpop.eup %8632  ;;  %8652 = vpow2.f32 %v7175_v8  ;;  %v4449_v42 = vadd.f32 1.0, %v8631_v27  ;;  %v7183_v63 = vmul.f32 -1.442695, %v14287_v23 }
 0x429   :  { %v14639_v54 = vpop.permute.xlu1 %5116  ;;  %v14677_v24 = vpop.eup %8634  ;;  %8654 = vpow2.f32 %v7174_v1  ;;  %5202 = vrot.lane.b32.xlu0 %v8633_v43, %s9051_s3 }
 0x42a   :  { %v14645_v17 = vpop.permute.xlu0 %5114  ;;  %16734 = vst [vmem:[#allocation101_spill] sm:$0xff] %v14677_v24  ;;  %v14683_v31 = vpop.eup %8636  ;;  %8656 = vrcp.f32 %v4444_v40  ;;  %5400 = vrot.lane.b32.xlu1 %v5271_v55, %s9050_s21  ;;  %v5270_v14 = vmul.f32 %v14677_v24, %v14565_v13  ;;  %v7181_v13 = vmul.f32 -1.442695, %v14275_v60 }
 0x42b   :  { %v14686_v34 = vpop.eup %8638  ;;  %8658 = vrcp.f32 %v4447_v19  ;;  %v5273_v8 = vmul.f32 %v14683_v31, %v14568_v4 }
 0x42c   :  { %v8641_v6 = vpop.eup %8640  ;;  %8660 = vpow2.f32 %v7177_v36  ;;  %v5272_v4 = vmul.f32 %v14686_v34, %v14573_v47 }
 0x42d   :  { %v14651_v39 = vpop.permute.xlu1 %5120  ;;  %v14695_v1 = vpop.eup %8642  ;;  %8662 = vpow2.f32 %v7176_v61  ;;  %5398 = vrot.lane.b32.xlu0 %v5270_v14, %s9050_s21  ;;  %v4448_v25 = vadd.f32 1.0, %v8641_v6  ;;  %v7182_v6 = vmul.f32 -1.442695, %v14291_v21  ;;  %v7185_v21 = vmul.f32 -1.442695, %v14301_v28 }
 0x42e   :  { %v8645_v40 = vpop.eup %8644  ;;  %8664 = vrcp.f32 %v4446_v3  ;;  %5404 = vrot.lane.b32.xlu1 %v5273_v8, %s9050_s21  ;;  %v5275_v36 = vmul.f32 %v14695_v1, %v14576_v32 }
 0x42f   :  { %v8647_v27 = vpop.eup %8646  ;;  %8666 = vrcp.f32 %v4449_v42  ;;  %v4451_v60 = vadd.f32 1.0, %v8645_v40 }
 0x430   :  { %v14705_v43 = vpop.eup %8648  ;;  %8668 = vpow2.f32 %v7179_v57  ;;  %v4450_v3 = vadd.f32 1.0, %v8647_v27 }
 0x431   :  { %v14655_v30 = vpop.permute.xlu0 %5118  ;;  %v14710_v55 = vpop.eup %8650  ;;  %8670 = vpow2.f32 %v7178_v7  ;;  %5402 = vrot.lane.b32.xlu0 %v5272_v4, %s9050_s21  ;;  %v5274_v32 = vmul.f32 %v14705_v43, %v14581_v5 }
 0x432   :  { %v8653_v61 = vpop.eup %8652  ;;  %8672 = vpow2.f32 %v7181_v13  ;;  %5408 = vrot.lane.b32.xlu1 %v5275_v36, %s9050_s21  ;;  %v5277_v57 = vmul.f32 %v14710_v55, %v14584_v12 }
 0x433   :  { %v8655_v42 = vpop.eup %8654  ;;  %8674 = vrcp.f32 %v4448_v25  ;;  %v4453_v7 = vadd.f32 1.0, %v8653_v61  ;;  %v7184_v25 = vmul.f32 -1.442695, %v14303_v15  ;;  %v7187_v15 = vmul.f32 -1.442695, %v14315_v37 }
 0x434   :  { %v14719_v14 = vpop.eup %8656  ;;  %8676 = vpow2.f32 %v7180_v29  ;;  %v4452_v13 = vadd.f32 1.0, %v8655_v42 }
 0x435   :  { %v14661_v35 = vpop.permute.xlu1 %5124  ;;  %v14724_v8 = vpop.eup %8658  ;;  %8678 = vrcp.f32 %v4451_v60  ;;  %5406 = vrot.lane.b32.xlu0 %v5274_v32, %s9050_s21  ;;  %v5276_v12 = vmul.f32 %v14719_v14, %v14589_v49 }
 0x436   :  { %v14667_v0 = vpop.permute.xlu0 %5122  ;;  %v8661_v23 = vpop.eup %8660  ;;  %8680 = vrcp.f32 %v4450_v3  ;;  %5412 = vrot.lane.b32.xlu1 %v5277_v57, %s9050_s21  ;;  %v5279_v4 = vmul.f32 %v14724_v8, %v14592_v53 }
 0x437   :  { %v8663_v5 = vpop.eup %8662  ;;  %8682 = vpow2.f32 %v7183_v63  ;;  %v4455_v60 = vadd.f32 1.0, %v8661_v23  ;;  %v7186_v63 = vmul.f32 -1.442695, %v14318_v22 }
 0x438   :  { %v14733_v27 = vpop.eup %8664  ;;  %8684 = vpow2.f32 %v7182_v6  ;;  %v4454_v61 = vadd.f32 1.0, %v8663_v5  ;;  %v7189_v5 = vmul.f32 -1.442695, %v14328_v41  ;;  %v7191_v41 = vmul.f32 -1.442695, %v14341_v44 }
 0x439   :  { %v14672_v48 = vpop.permute.xlu1 %5128  ;;  %v14740_v36 = vpop.eup %8666  ;;  %8686 = vrcp.f32 %v4453_v7  ;;  %5410 = vrot.lane.b32.xlu0 %v5276_v12, %s9050_s21  ;;  %v5278_v53 = vmul.f32 %v14733_v27, %v14597_v56  ;;  %v7190_v44 = vmul.f32 -1.442695, %v14344_v9 }
 0x43a   :  { %v14681_v26 = vpop.permute.xlu0 %5126  ;;  %v8669_v28 = vpop.eup %8668  ;;  %8688 = vrcp.f32 %v4452_v13  ;;  %5416 = vrot.lane.b32.xlu1 %v5279_v4, %s9050_s21  ;;  %v5281_v32 = vmul.f32 %v14740_v36, %v14600_v10 }
 0x43b   :  { %v8671_v49 = vpop.eup %8670  ;;  %8690 = vpow2.f32 %v7185_v21  ;;  %v4457_v57 = vadd.f32 1.0, %v8669_v28  ;;  %v7188_v28 = vmul.f32 -1.442695, %v14331_v51 }
 0x43c   :  { %v8673_v42 = vpop.eup %8672  ;;  %8692 = vpow2.f32 %v7184_v25  ;;  %v4456_v37 = vadd.f32 1.0, %v8671_v49 }
 0x43d   :  { %v14752_v6 = vpop.eup %8674  ;;  %8694 = vrcp.f32 %v4455_v60  ;;  %5414 = vrot.lane.b32.xlu0 %v5278_v53, %s9050_s21  ;;  %v4459_v13 = vadd.f32 1.0, %v8673_v42 }
 0x43e   :  { %v8677_v7 = vpop.eup %8676  ;;  %8696 = vrcp.f32 %v4454_v61  ;;  %5420 = vrot.lane.b32.xlu1 %v5281_v32, %s9050_s21  ;;  %v5280_v22 = vmul.f32 %v14752_v6, %v14605_v18  ;;  %v7193_v32 = vmul.f32 -1.442695, %v14355_v46  ;;  %v7192_v46 = vmul.f32 -1.442695, %v14358_v52 }
 0x43f   :  { %v14758_v23 = vpop.eup %8678  ;;  %8698 = vpow2.f32 %v7187_v15  ;;  %v4458_v25 = vadd.f32 1.0, %v8677_v7 }
 0x440   :  { %v14762_v10 = vpop.eup %8680  ;;  %8700 = vpow2.f32 %v7186_v63  ;;  %v5283_v21 = vmul.f32 %v14758_v23, %v14609_v33 }
 0x441   :  { %v14693_v38 = vpop.permute.xlu1 %5132  ;;  %v8683_v12 = vpop.eup %8682  ;;  %8702 = vrcp.f32 %v4457_v57  ;;  %5418 = vrot.lane.b32.xlu0 %v5280_v22, %s9050_s21  ;;  %v5282_v33 = vmul.f32 %v14762_v10, %v14613_v20 }
 0x442   :  { %v14703_v19 = vpop.permute.xlu0 %5130  ;;  %v8685_v60 = vpop.eup %8684  ;;  %8704 = vrcp.f32 %v4456_v37  ;;  %5424 = vrot.lane.b32.xlu1 %v5283_v21, %s9050_s21  ;;  %v4461_v49 = vadd.f32 1.0, %v8683_v12  ;;  %v7195_v12 = vmul.f32 -1.442695, %v14368_v2  ;;  %v7194_v2 = vmul.f32 -1.442695, %v14371_v50 }
 0x443   :  { %v14772_v18 = vpop.eup %8686  ;;  %8706 = vrcp.f32 %v4459_v13  ;;  %v4460_v42 = vadd.f32 1.0, %v8685_v60 }
 0x444   :  { %v14777_v61 = vpop.eup %8688  ;;  %8708 = vpow2.f32 %v7189_v5  ;;  %v5285_v15 = vmul.f32 %v14772_v18, %v14617_v16 }
 0x445   :  { %v14714_v47 = vpop.permute.xlu1 %5136  ;;  %v8691_v51 = vpop.eup %8690  ;;  %8710 = vrcp.f32 %v4458_v25  ;;  %5422 = vrot.lane.b32.xlu0 %v5282_v33, %s9050_s21  ;;  %v5284_v16 = vmul.f32 %v14777_v61, %v14623_v59 }
 0x446   :  { %v14727_v40 = vpop.permute.xlu0 %5134  ;;  %v8693_v63 = vpop.eup %8692  ;;  %8712 = vpow2.f32 %v7188_v28  ;;  %5428 = vrot.lane.b32.xlu1 %v5285_v15, %s9050_s21  ;;  %v4463_v37 = vadd.f32 1.0, %v8691_v51  ;;  %v7197_v15 = vmul.f32 -1.442695, %v14381_v45  ;;  %v16736_v45 = vld [vmem:[#allocation111_spill] sm:$0xff] }
 0x447   :  { %v14786_v20 = vpop.eup %8694  ;;  %8714 = vpow2.f32 %v7191_v41  ;;  %v4462_v22 = vadd.f32 1.0, %v8693_v63 }
 0x448   :  { %v14793_v7 = vpop.eup %8696  ;;  %8716 = vrcp.f32 %v4461_v49  ;;  %v5287_v13 = vmul.f32 %v14786_v20, %v14629_v58 }
 0x449   :  { %v8699_v9 = vpop.eup %8698  ;;  %8718 = vrcp.f32 %v4460_v42  ;;  %5426 = vrot.lane.b32.xlu0 %v5284_v16, %s9050_s21  ;;  %v5286_v58 = vmul.f32 %v14793_v7, %v14634_v62  ;;  %v16735_v42 = vld [vmem:[#allocation122_spill] sm:$0xff] }
 0x44a   :  { %v8701_v5 = vpop.eup %8700  ;;  %8720 = vpow2.f32 %v7190_v44  ;;  %5432 = vrot.lane.b32.xlu1 %v5287_v13, %s9050_s21  ;;  %v4465_v60 = vadd.f32 1.0, %v8699_v9  ;;  %v7196_v63 = vmul.f32 -1.442695, %v16735_v42  ;;  %v7199_v13 = vmul.f32 -1.442695, %v16736_v45 }
 0x44b   :  { %v14802_v21 = vpop.eup %8702  ;;  %8722 = vpow2.f32 %v7193_v32  ;;  %v4464_v41 = vadd.f32 1.0, %v8701_v5 }
 0x44c   :  { %v14807_v25 = vpop.eup %8704  ;;  %8724 = vrcp.f32 %v4463_v37  ;;  %v5289_v28 = vmul.f32 %v14802_v21, %v14639_v54 }
 0x44d   :  { %v14738_v29 = vpop.permute.xlu1 %5140  ;;  %v14811_v52 = vpop.eup %8706  ;;  %8726 = vrcp.f32 %v4462_v22  ;;  %5430 = vrot.lane.b32.xlu0 %v5286_v58, %s9050_s21  ;;  %v5288_v54 = vmul.f32 %v14807_v25, %v14645_v17 }
 0x44e   :  { %v14747_v3 = vpop.permute.xlu0 %5138  ;;  %v8709_v49 = vpop.eup %8708  ;;  %8728 = vpow2.f32 %v7192_v46  ;;  %5436 = vrot.lane.b32.xlu1 %v5289_v28, %s9050_s21  ;;  %v5291_v44 = vmul.f32 %v14811_v52, %v14651_v39 }
 0x44f   :  { %v14818_v62 = vpop.eup %8710  ;;  %8730 = vpow2.f32 %v7195_v12  ;;  %v4467_v16 = vadd.f32 1.0, %v8709_v49  ;;  %v16738_v49 = vld [vmem:[#allocation81_spill] sm:$0xff] }
 0x450   :  { %v8713_v51 = vpop.eup %8712  ;;  %8732 = vrcp.f32 %v4465_v60  ;;  %v5290_v39 = vmul.f32 %v14818_v62, %v14655_v30  ;;  %v16737_v60 = vld [vmem:[#allocation123_spill] sm:$0xff] }
 0x451   :  { %v14756_v56 = vpop.permute.xlu1 %5144  ;;  %v8715_v50 = vpop.eup %8714  ;;  %8734 = vrcp.f32 %v4464_v41  ;;  %5434 = vrot.lane.b32.xlu0 %v5288_v54, %s9050_s21  ;;  %v4466_v9 = vadd.f32 1.0, %v8713_v51  ;;  %v7198_v28 = vmul.f32 -1.442695, %v16737_v60 }
 0x452   :  { %v14768_v4 = vpop.permute.xlu0 %5142  ;;  %v14829_v37 = vpop.eup %8716  ;;  %8736 = vpow2.f32 %v7194_v2  ;;  %5440 = vrot.lane.b32.xlu1 %v5291_v44, %s9050_s21  ;;  %v4469_v46 = vadd.f32 1.0, %v8715_v50  ;;  %v7201_v2 = vmul.f32 -1.442695, %v16738_v49  ;;  %v16739_v50 = vld [vmem:[#allocation108_spill] sm:$0xff]  ;;  %v16741_v49 = vld [vmem:[#allocation77_spill] sm:$0xff] }
 0x453   :  { %v14833_v17 = vpop.eup %8718  ;;  %8738 = vpow2.f32 %v7197_v15  ;;  %v5293_v12 = vmul.f32 %v14829_v37, %v14661_v35 }
 0x454   :  { %v8721_v5 = vpop.eup %8720  ;;  %8740 = vpow2.f32 %v7196_v63  ;;  %v5292_v35 = vmul.f32 %v14833_v17, %v14667_v0 }
 0x455   :  { %v8723_v58 = vpop.eup %8722  ;;  %8742 = vrcp.f32 %v4467_v16  ;;  %5438 = vrot.lane.b32.xlu0 %v5290_v39, %s9050_s21  ;;  %v4468_v54 = vadd.f32 1.0, %v8721_v5  ;;  %v7200_v16 = vmul.f32 -1.442695, %v16739_v50 }
 0x456   :  { %v14843_v41 = vpop.eup %8724  ;;  %8744 = vpow2.f32 %v7199_v13  ;;  %5444 = vrot.lane.b32.xlu1 %v5293_v12, %s9050_s21  ;;  %v4471_v42 = vadd.f32 1.0, %v8723_v58 }
 0x457   :  { %v14849_v15 = vpop.eup %8726  ;;  %8746 = vrcp.f32 %v4466_v9  ;;  %v5295_v63 = vmul.f32 %v14843_v41, %v14672_v48  ;;  %v16740_v9 = vld [vmem:[#allocation60_spill] sm:$0xff] }
 0x458   :  { %v8729_v51 = vpop.eup %8728  ;;  %8748 = vrcp.f32 %v4469_v46  ;;  %v7203_v39 = vmul.f32 -1.442695, %v16740_v9  ;;  %v5294_v48 = vmul.f32 %v14849_v15, %v14681_v26 }
 0x459   :  { %v14781_v53 = vpop.permute.xlu1 %5148  ;;  %v8731_v44 = vpop.eup %8730  ;;  %8750 = vpow2.f32 %v7198_v28  ;;  %5442 = vrot.lane.b32.xlu0 %v5292_v35, %s9050_s21  ;;  %v4470_v5 = vadd.f32 1.0, %v8729_v51 }
 0x45a   :  { %v14791_v57 = vpop.permute.xlu0 %5146  ;;  %v14859_v13 = vpop.eup %8732  ;;  %8752 = vpow2.f32 %v7201_v2  ;;  %5448 = vrot.lane.b32.xlu1 %v5295_v63, %s9050_s21  ;;  %v4473_v12 = vadd.f32 1.0, %v8731_v44  ;;  %v7202_v2 = vmul.f32 -1.442695, %v16741_v49  ;;  %v16746_v49 = vld [vmem:[#allocation114_spill] sm:$0xff] }
 0x45b   :  { %v14863_v0 = vpop.eup %8734  ;;  %8754 = vrcp.f32 %v4468_v54  ;;  %v5297_v58 = vmul.f32 %v14859_v13, %v14693_v38  ;;  %v16742_v54 = vld [vmem:[#allocation79_spill] sm:$0xff] }
 0x45c   :  { %v8737_v46 = vpop.eup %8736  ;;  %8756 = vrcp.f32 %v4471_v42  ;;  %v7205_v51 = vmul.f32 -1.442695, %v16742_v54  ;;  %v5296_v38 = vmul.f32 %v14863_v0, %v14703_v19 }
 0x45d   :  { %v14800_v59 = vpop.permute.xlu1 %5152  ;;  %v8739_v28 = vpop.eup %8738  ;;  %8758 = vpow2.f32 %v7200_v16  ;;  %5446 = vrot.lane.b32.xlu0 %v5294_v48, %s9050_s21  ;;  %v4472_v42 = vadd.f32 1.0, %v8737_v46 }
 0x45e   :  { %v14814_v33 = vpop.permute.xlu0 %5150  ;;  %v8741_v35 = vpop.eup %8740  ;;  %8760 = vpow2.f32 %v7203_v39  ;;  %5452 = vrot.lane.b32.xlu1 %v5297_v58, %s9050_s21  ;;  %v4475_v50 = vadd.f32 1.0, %v8739_v28 }
 0x45f   :  { %v14875_v26 = vpop.eup %8742  ;;  %8762 = vrcp.f32 %v4470_v5  ;;  %v4474_v39 = vadd.f32 1.0, %v8741_v35  ;;  %v16745_v5 = vld [vmem:[#allocation61_spill] sm:$0xff] }
 0x460   :  { %16743 = vst [vmem:[#allocation29_spill] sm:$0xff] %v14875_v26  ;;  %v8745_v44 = vpop.eup %8744  ;;  %8764 = vrcp.f32 %v4473_v12  ;;  %v5299_v16 = vmul.f32 %v14875_v26, %v14714_v47  ;;  %v7204_v46 = vmul.f32 -1.442695, %v16745_v5 }
 0x461   :  { %v14883_v9 = vpop.eup %8746  ;;  %8766 = vpow2.f32 %v7202_v2  ;;  %5450 = vrot.lane.b32.xlu0 %v5296_v38, %s9050_s21  ;;  %v4477_v58 = vadd.f32 1.0, %v8745_v44  ;;  %v7207_v2 = vmul.f32 -1.442695, %v16746_v49 }
 0x462   :  { %v14886_v48 = vpop.eup %8748  ;;  %8768 = vpow2.f32 %v7205_v51  ;;  %5456 = vrot.lane.b32.xlu1 %v5299_v16, %s9050_s21  ;;  %v5298_v47 = vmul.f32 %v14883_v9, %v14727_v40  ;;  %v16747_v51 = vld [vmem:[#allocation121_spill] sm:$0xff] }
 0x463   :  { %16744 = vst [vmem:[#allocation10_spill] sm:$0xff] %v14886_v48  ;;  %v8751_v12 = vpop.eup %8750  ;;  %8770 = vrcp.f32 %v4472_v42  ;;  %v5301_v35 = vmul.f32 %v14886_v48, %v14738_v29  ;;  %v7206_v38 = vmul.f32 -1.442695, %v16747_v51 }
 0x464   :  { %v8753_v28 = vpop.eup %8752  ;;  %8772 = vrcp.f32 %v4475_v50  ;;  %v4476_v44 = vadd.f32 1.0, %v8751_v12 }
 0x465   :  { %v14826_v32 = vpop.permute.xlu1 %5156  ;;  %v14897_v54 = vpop.eup %8754  ;;  %8774 = vrcp.f32 %v4474_v39  ;;  %5454 = vrot.lane.b32.xlu0 %v5298_v47, %s9050_s21  ;;  %v4479_v50 = vadd.f32 1.0, %v8753_v28  ;;  %v16749_v39 = vld [vmem:[#allocation66_spill] sm:$0xff] }
 0x466   :  { %v14837_v22 = vpop.permute.xlu0 %5154  ;;  %v14903_v42 = vpop.eup %8756  ;;  %8776 = vpow2.f32 %v7204_v46  ;;  %5460 = vrot.lane.b32.xlu1 %v5301_v35, %s9050_s21  ;;  %v5300_v29 = vmul.f32 %v14897_v54, %v14747_v3  ;;  %v7209_v49 = vmul.f32 -1.442695, %v16749_v39  ;;  %v16750_v46 = vld [vmem:[#allocation115_spill] sm:$0xff] }
 0x467   :  { %16748 = vst [vmem:[#allocation95_spill] sm:$0xff] %v14903_v42  ;;  %v8759_v40 = vpop.eup %8758  ;;  %8778 = vrcp.f32 %v4477_v58  ;;  %v5303_v47 = vmul.f32 %v14903_v42, %v14756_v56  ;;  %v7208_v12 = vmul.f32 -1.442695, %v16750_v46 }
 0x468   :  { %v8761_v5 = vpop.eup %8760  ;;  %8780 = vpow2.f32 %v7207_v2  ;;  %v4478_v3 = vadd.f32 1.0, %v8759_v40 }
 0x469   :  { %v14847_v30 = vpop.permute.xlu1 %5160  ;;  %v14913_v48 = vpop.eup %8762  ;;  %8782 = vpow2.f32 %v7206_v38  ;;  %5458 = vrot.lane.b32.xlu0 %v5300_v29, %s9050_s21  ;;  %v4481_v2 = vadd.f32 1.0, %v8761_v5  ;;  %v16752_v38 = vld [vmem:[#allocation16_spill] sm:$0xff] }
 0x46a   :  { %v14857_v45 = vpop.permute.xlu0 %5158  ;;  %v14917_v58 = vpop.eup %8764  ;;  %8784 = vrcp.f32 %v4476_v44  ;;  %5464 = vrot.lane.b32.xlu1 %v5303_v47, %s9050_s21  ;;  %v5302_v56 = vmul.f32 %v14913_v48, %v14768_v4  ;;  %v7211_v46 = vmul.f32 -1.442695, %v16752_v38  ;;  %v16753_v44 = vld [vmem:[#allocation112_spill] sm:$0xff]  ;;  %v16756_v38 = vld [vmem:[#allocation93_spill] sm:$0xff] }
 0x46b   :  { %16751 = vst [vmem:[#allocation86_spill] sm:$0xff] %v14917_v58  ;;  %v8767_v28 = vpop.eup %8766  ;;  %8786 = vrcp.f32 %v4479_v50  ;;  %v5305_v29 = vmul.f32 %v14917_v58, %v14781_v53  ;;  %v7210_v40 = vmul.f32 -1.442695, %v16753_v44  ;;  %v7213_v44 = vmul.f32 -1.442695, %v16756_v38 }
 0x46c   :  { %v8769_v39 = vpop.eup %8768  ;;  %8788 = vpow2.f32 %v7209_v49  ;;  %v4480_v4 = vadd.f32 1.0, %v8767_v28  ;;  %v16758_v28 = vld [vmem:[#allocation64_spill] sm:$0xff] }
 0x46d   :  { %v14869_v60 = vpop.permute.xlu1 %5164  ;;  %v14927_v42 = vpop.eup %8770  ;;  %8790 = vpow2.f32 %v7208_v12  ;;  %5462 = vrot.lane.b32.xlu0 %v5302_v56, %s9050_s21  ;;  %v4483_v47 = vadd.f32 1.0, %v8769_v39 }
 0x46e   :  { %v14879_v63 = vpop.permute.xlu0 %5162  ;;  %v14931_v50 = vpop.eup %8772  ;;  %8792 = vrcp.f32 %v4478_v3  ;;  %5468 = vrot.lane.b32.xlu1 %v5305_v29, %s9050_s21  ;;  %v5304_v53 = vmul.f32 %v14927_v42, %v14791_v57  ;;  %v7212_v29 = vmul.f32 -1.442695, %v16758_v28 }
 0x46f   :  { %16754 = vst [vmem:[#allocation103_spill] sm:$0xff] %v14931_v50  ;;  %v14936_v49 = vpop.eup %8774  ;;  %8794 = vrcp.f32 %v4481_v2  ;;  %v5307_v56 = vmul.f32 %v14931_v50, %v14800_v59 }
 0x470   :  { %16755 = vst [vmem:[#allocation39_spill] sm:$0xff] %v14936_v49  ;;  %v8777_v12 = vpop.eup %8776  ;;  %8796 = vpow2.f32 %v7211_v46  ;;  %v5306_v46 = vmul.f32 %v14936_v49, %v14814_v33 }
 0x471   :  { %v14890_v19 = vpop.permute.xlu1 %5168  ;;  %v14943_v3 = vpop.eup %8778  ;;  %8798 = vpow2.f32 %v7210_v40  ;;  %5466 = vrot.lane.b32.xlu0 %v5304_v53, %s9050_s21  ;;  %v4482_v39 = vadd.f32 1.0, %v8777_v12  ;;  %v16760_v40 = vld [vmem:[#allocation84_spill] sm:$0xff] }
 0x472   :  { %v14901_v16 = vpop.permute.xlu0 %5166  ;;  %16757 = vst [vmem:[#allocation38_spill] sm:$0xff] %v14943_v3  ;;  %v8781_v2 = vpop.eup %8780  ;;  %8800 = vrcp.f32 %v4480_v4  ;;  %5472 = vrot.lane.b32.xlu1 %v5307_v56, %s9050_s21  ;;  %v7215_v38 = vmul.f32 -1.442695, %v16760_v40  ;;  %v5309_v53 = vmul.f32 %v14943_v3, %v14826_v32 }
 0x473   :  { %v8783_v57 = vpop.eup %8782  ;;  %8802 = vrcp.f32 %v4483_v47  ;;  %v4485_v4 = vadd.f32 1.0, %v8781_v2  ;;  %v16764_v2 = vld [vmem:[#allocation20_spill] sm:$0xff] }
 0x474   :  { %v14952_v59 = vpop.eup %8784  ;;  %8804 = vpow2.f32 %v7213_v44  ;;  %v4484_v12 = vadd.f32 1.0, %v8783_v57  ;;  %v16762_v44 = vld [vmem:[#allocation8_spill] sm:$0xff] }
 0x475   :  { %v14911_v51 = vpop.permute.xlu1 %5172  ;;  %16759 = vst [vmem:[#allocation13_spill] sm:$0xff] %v14952_v59  ;;  %v14959_v50 = vpop.eup %8786  ;;  %8806 = vpow2.f32 %v7212_v29  ;;  %5470 = vrot.lane.b32.xlu0 %v5306_v46, %s9050_s21  ;;  %v7214_v56 = vmul.f32 -1.442695, %v16762_v44  ;;  %v5308_v40 = vmul.f32 %v14952_v59, %v14837_v22  ;;  %v7217_v29 = vmul.f32 -1.442695, %v16764_v2 }
 0x476   :  { %v14922_v35 = vpop.permute.xlu0 %5170  ;;  %16761 = vst [vmem:[#allocation94_spill] sm:$0xff] %v14959_v50  ;;  %v8789_v47 = vpop.eup %8788  ;;  %5476 = vrot.lane.b32.xlu1 %v5309_v53, %s9050_s21  ;;  %8808 = vrcp.f32 %v4482_v39  ;;  %v5311_v46 = vmul.f32 %v14959_v50, %v14847_v30 }
 0x477   :  { %v8791_v33 = vpop.eup %8790  ;;  %8810 = vpow2.f32 %v7215_v38  ;;  %v4487_v53 = vadd.f32 1.0, %v8789_v47  ;;  %v16766_v38 = vld [vmem:[#allocation83_spill] sm:$0xff] }
 0x478   :  { %v14968_v3 = vpop.eup %8792  ;;  %8812 = vrcp.f32 %v4485_v4  ;;  %v4486_v44 = vadd.f32 1.0, %v8791_v33  ;;  %v7216_v2 = vmul.f32 -1.442695, %v16766_v38  ;;  %v16767_v4 = vld [vmem:[#allocation119_spill] sm:$0xff] }
 0x479   :  { %v14934_v5 = vpop.permute.xlu1 %5176  ;;  %16763 = vst [vmem:[#allocation85_spill] sm:$0xff] %v14968_v3  ;;  %v14973_v57 = vpop.eup %8794  ;;  %5474 = vrot.lane.b32.xlu0 %v5308_v40, %s9050_s21  ;;  %8814 = vrcp.f32 %v4484_v12  ;;  %v5310_v30 = vmul.f32 %v14968_v3, %v14857_v45  ;;  %v7219_v47 = vmul.f32 -1.442695, %v16767_v4 }
 0x47a   :  { %v14947_v58 = vpop.permute.xlu0 %5174  ;;  %16765 = vst [vmem:[#allocation102_spill] sm:$0xff] %v14973_v57  ;;  %v8797_v39 = vpop.eup %8796  ;;  %5480 = vrot.lane.b32.xlu1 %v5311_v46, %s9050_s21  ;;  %8816 = vpow2.f32 %v7214_v56  ;;  %v5313_v12 = vmul.f32 %v14973_v57, %v14869_v60  ;;  %v16770_v57 = vld [vmem:[#allocation70_spill] sm:$0xff] }
 0x47b   :  { %v8799_v59 = vpop.eup %8798  ;;  %8818 = vpow2.f32 %v7217_v29  ;;  %v4489_v40 = vadd.f32 1.0, %v8797_v39  ;;  %v16769_v29 = vld [vmem:[#allocation30_spill] sm:$0xff] }
 0x47c   :  { %v14982_v50 = vpop.eup %8800  ;;  %8820 = vrcp.f32 %v4487_v53  ;;  %v4488_v38 = vadd.f32 1.0, %v8799_v59  ;;  %v7218_v4 = vmul.f32 -1.442695, %v16769_v29  ;;  %v7221_v53 = vmul.f32 -1.442695, %v16770_v57  ;;  %v16772_v57 = vld [vmem:[#allocation116_spill] sm:$0xff] }
 0x47d   :  { %v14957_v28 = vpop.permute.xlu1 %5180  ;;  %v14987_v33 = vpop.eup %8802  ;;  %5478 = vrot.lane.b32.xlu0 %v5310_v30, %s9050_s21  ;;  %8822 = vrcp.f32 %v4486_v44  ;;  %v5312_v60 = vmul.f32 %v14982_v50, %v14879_v63 }
 0x47e   :  { %v14966_v32 = vpop.permute.xlu0 %5178  ;;  %16768 = vst [vmem:[#allocation21_spill] sm:$0xff] %v14987_v33  ;;  %v8805_v46 = vpop.eup %8804  ;;  %5484 = vrot.lane.b32.xlu1 %v5313_v12, %s9050_s21  ;;  %8824 = vpow2.f32 %v7216_v2  ;;  %v5315_v39 = vmul.f32 %v14987_v33, %v14890_v19 }
 0x47f   :  { %v8807_v45 = vpop.eup %8806  ;;  %8826 = vpow2.f32 %v7219_v47  ;;  %v4491_v59 = vadd.f32 1.0, %v8805_v46  ;;  %v7220_v47 = vmul.f32 -1.442695, %v16772_v57  ;;  %v16775_v57 = vld [vmem:[#allocation68_spill] sm:$0xff] }
 0x480   :  { %v15001_v3 = vpop.eup %8808  ;;  %8828 = vrcp.f32 %v4489_v40  ;;  %v4490_v2 = vadd.f32 1.0, %v8807_v45  ;;  %v16773_v40 = vld [vmem:[#allocation117_spill] sm:$0xff] }
 0x481   :  { %v14977_v22 = vpop.permute.xlu1 %5184  ;;  %16771 = vst [vmem:[#allocation47_spill] sm:$0xff] %v15001_v3  ;;  %5482 = vrot.lane.b32.xlu0 %v5312_v60, %s9050_s21  ;;  %v8811_v44 = vpop.eup %8810  ;;  %8830 = vrcp.f32 %v4488_v38  ;;  %v5314_v19 = vmul.f32 %v15001_v3, %v14901_v16  ;;  %v7223_v46 = vmul.f32 -1.442695, %v16773_v40 }
 0x482   :  { %v14990_v56 = vpop.permute.xlu0 %5182  ;;  %5488 = vrot.lane.b32.xlu1 %v5315_v39, %s9050_s21  ;;  %v15005_v63 = vpop.eup %8812  ;;  %8832 = vpow2.f32 %v7218_v4  ;;  %v4493_v60 = vadd.f32 1.0, %v8811_v44 }
 0x483   :  { %v15012_v29 = vpop.eup %8814  ;;  %8834 = vpow2.f32 %v7221_v53  ;;  %v5317_v38 = vmul.f32 %v15005_v63, %v14911_v51  ;;  %v7222_v53 = vmul.f32 -1.442695, %v16775_v57 }
 0x484   :  { %v8817_v45 = vpop.eup %8816  ;;  %8836 = vrcp.f32 %v4491_v59  ;;  %v5316_v40 = vmul.f32 %v15012_v29, %v14922_v35 }
 0x485   :  { %v14999_v30 = vpop.permute.xlu1 %5188  ;;  %5486 = vrot.lane.b32.xlu0 %v5314_v19, %s9050_s21  ;;  %v8819_v4 = vpop.eup %8818  ;;  %8838 = vrcp.f32 %v4490_v2  ;;  %v4492_v51 = vadd.f32 1.0, %v8817_v45 }
 0x486   :  { %v15010_v12 = vpop.permute.xlu0 %5186  ;;  %5492 = vrot.lane.b32.xlu1 %v5317_v38, %s9050_s21  ;;  %v15019_v39 = vpop.eup %8820  ;;  %8840 = vpow2.f32 %v7220_v47  ;;  %v4495_v2 = vadd.f32 1.0, %v8819_v4 }
 0x487   :  { %16774 = vst [vmem:[#allocation23_spill] sm:$0xff] %v15019_v39  ;;  %v15024_v3 = vpop.eup %8822  ;;  %8842 = vpow2.f32 %v7223_v46  ;;  %v5319_v59 = vmul.f32 %v15019_v39, %v14934_v5 }
 0x488   :  { %v8825_v44 = vpop.eup %8824  ;;  %8844 = vrcp.f32 %v4493_v60  ;;  %v5318_v35 = vmul.f32 %v15024_v3, %v14947_v58 }
 0x489   :  { %v5193_v16 = vpop.permute.xlu1 %5192  ;;  %5490 = vrot.lane.b32.xlu0 %v5316_v40, %s9050_s21  ;;  %v8827_v38 = vpop.eup %8826  ;;  %8846 = vpow2.f32 %v7222_v53  ;;  %v4494_v46 = vadd.f32 1.0, %v8825_v44 }
 0x48a   :  { %v5191_v19 = vpop.permute.xlu0 %5190  ;;  %5496 = vrot.lane.b32.xlu1 %v5319_v59, %s9050_s21  ;;  %v15030_v47 = vpop.eup %8828  ;;  %8848 = vrcp.f32 %v4492_v51  ;;  %v4497_v57 = vadd.f32 1.0, %v8827_v38 }
 0x48b   :  { %16776 = vst [vmem:[#allocation34_spill] sm:$0xff] %v15030_v47  ;;  %v15034_v45 = vpop.eup %8830  ;;  %v5321_v5 = vmul.f32 %v15030_v47, %v14957_v28  ;;  %8850 = vrcp.f32 %v4495_v2 }
 0x48c   :  { %v8833_v4 = vpop.eup %8832  ;;  %v5320_v58 = vmul.f32 %v15034_v45, %v14966_v32  ;;  %8852 = vrcp.f32 %v4494_v46 }
 0x48d   :  { %v5197_v60 = vpop.permute.xlu1 %5196  ;;  %5494 = vrot.lane.b32.xlu0 %v5318_v35, %s9050_s21  ;;  %v8835_v40 = vpop.eup %8834  ;;  %v4496_v44 = vadd.f32 1.0, %v8833_v4  ;;  %8854 = vrcp.f32 %v4497_v57 }
 0x48e   :  { %5500 = vrot.lane.b32.xlu1 %v5321_v5, %s9050_s21  ;;  %v15040_v53 = vpop.eup %8836  ;;  %v4499_v38 = vadd.f32 1.0, %v8835_v40 }
 0x48f   :  { %16777 = vst [vmem:[#allocation44_spill] sm:$0xff] %v15040_v53  ;;  %v15044_v51 = vpop.eup %8838  ;;  %v5323_v28 = vmul.f32 %v15040_v53, %v14977_v22  ;;  %8856 = vrcp.f32 %v4496_v44 }
 0x490   :  { %v5195_v59 = vpop.permute.xlu0 %5194  ;;  %v8841_v2 = vpop.eup %8840  ;;  %v5322_v32 = vmul.f32 %v15044_v51, %v14990_v56  ;;  %8858 = vrcp.f32 %v4499_v38 }
 0x491   :  { %5498 = vrot.lane.b32.xlu0 %v5320_v58, %s9050_s21  ;;  %v8843_v35 = vpop.eup %8842  ;;  %v4498_v46 = vadd.f32 1.0, %v8841_v2 }
 0x492   :  { %5504 = vrot.lane.b32.xlu1 %v5323_v28, %s9050_s21  ;;  %v5201_v5 = vpop.permute.xlu1 %5200  ;;  %v15050_v47 = vpop.eup %8844  ;;  %v4501_v57 = vadd.f32 1.0, %v8843_v35 }
 0x493   :  { %16778 = vst [vmem:[#allocation51_spill] sm:$0xff] %v15050_v47  ;;  %v5325_v4 = vmul.f32 %v15050_v47, %v14999_v30  ;;  %v8847_v22 = vpop.eup %8846  ;;  %8860 = vrcp.f32 %v4498_v46  ;;  %v16781_v47 = vld [vmem:[#allocation12_spill] sm:$0xff] }
 0x494   :  { %v15057_v58 = vpop.eup %8848  ;;  %v4500_v44 = vadd.f32 1.0, %v8847_v22  ;;  %8862 = vrcp.f32 %v4501_v57 }
 0x495   :  { %5502 = vrot.lane.b32.xlu0 %v5322_v32, %s9050_s21  ;;  %v5199_v40 = vpop.permute.xlu0 %5198  ;;  %v15060_v28 = vpop.eup %8850  ;;  %v5324_v56 = vmul.f32 %v15057_v58, %v15010_v12  ;;  %v4887_v12 = vmul.f32 %v14663_v11, %v16781_v47 }
 0x496   :  { %5508 = vrot.lane.b32.xlu1 %v5325_v4, %s9050_s21  ;;  %16779 = vst [vmem:[#allocation32_spill] sm:$0xff] %v15060_v28  ;;  %v5327_v2 = vmul.f32 %v15060_v28, %v5193_v16  ;;  %v15066_v38 = vpop.eup %8852  ;;  %8864 = vrcp.f32 %v4500_v44 }
 0x497   :  { %16780 = vst [vmem:[#allocation49_spill] sm:$0xff] %v15066_v38  ;;  %v15069_v35 = vpop.eup %8854  ;;  %v5326_v32 = vmul.f32 %v15066_v38, %v5191_v19 }
 0x498   :  { %v5205_v30 = vpop.permute.xlu1 %5204  ;;  %v5329_v46 = vmul.f32 %v15069_v35, %v5197_v60  ;;  %v16784_v60 = vld [vmem:[#allocation88_spill] sm:$0xff] }
 0x499   :  { %5506 = vrot.lane.b32.xlu0 %v5324_v56, %s9050_s21  ;;  %v15078_v57 = vpop.eup %8856  ;;  %v16783_v56 = vld [vmem:[#allocation35_spill] sm:$0xff]  ;;  %v4889_v44 = vmul.f32 %v14683_v31, %v16784_v60 }
 0x49a   :  { %5512 = vrot.lane.b32.xlu1 %v5327_v2, %s9050_s21  ;;  %v4886_v2 = vmul.f32 %v14677_v24, %v16783_v56  ;;  %v15083_v19 = vpop.eup %8858  ;;  %v5328_v38 = vmul.f32 %v15078_v57, %v5195_v59  ;;  %v16787_v59 = vld [vmem:[#allocation97_spill] sm:$0xff] }
 0x49b   :  { %v5203_v4 = vpop.permute.xlu0 %5202 }
 0x49c   :  { %v5401_v16 = vpop.permute.xlu1 %5400 }
 0x49d   :  { %5510 = vrot.lane.b32.xlu0 %v5326_v32, %s9050_s21  ;;  %v15076_v22 = vadd.f32 %v5401_v16, %v4887_v12  ;;  %v5331_v32 = vmul.f32 %v15083_v19, %v5201_v5 }
 0x49e   :  { %5516 = vrot.lane.b32.xlu1 %v5329_v46, %s9050_s21  ;;  %v15095_v46 = vpop.eup %8860 }
 0x49f   :  { %16782 = vst [vmem:[#allocation31_spill] sm:$0xff] %v15076_v22  ;;  %8866 = vtanh.f32 %v15076_v22  ;;  %v5399_v47 = vpop.permute.xlu0 %5398  ;;  %v4888_v22 = vmul.f32 %v14686_v34, %v16787_v59  ;;  %v15101_v24 = vpop.eup %8862  ;;  %v5330_v5 = vmul.f32 %v15095_v46, %v5199_v40  ;;  %v16793_v40 = vld [vmem:[#allocation105_spill] sm:$0xff] }
 0x4a0   :  { %v15090_v12 = vadd.f32 %v5399_v47, %v4886_v2  ;;  %v5405_v16 = vpop.permute.xlu1 %5404  ;;  %16788 = vst [vmem:[#allocation52_spill] sm:$0xff] %v15101_v24  ;;  %v16789_v47 = vld [vmem:[#allocation41_spill] sm:$0xff]  ;;  %v5333_v60 = vmul.f32 %v15101_v24, %v5205_v30 }
 0x4a1   :  { %5514 = vrot.lane.b32.xlu0 %v5328_v38, %s9050_s21  ;;  %v15093_v56 = vadd.f32 %v5405_v16, %v4889_v44  ;;  %v4891_v38 = vmul.f32 %v14695_v1, %v16789_v47 }
 0x4a2   :  { %16785 = vst [vmem:[#allocation54_spill] sm:$0xff] %v15090_v12  ;;  %8868 = vtanh.f32 %v15090_v12  ;;  %5520 = vrot.lane.b32.xlu1 %v5331_v32, %s9050_s21  ;;  %v15113_v32 = vpop.eup %8864 }
 0x4a3   :  { %16786 = vst [vmem:[#allocation74_spill] sm:$0xff] %v15093_v56  ;;  %8870 = vtanh.f32 %v15093_v56  ;;  %v5403_v2 = vpop.permute.xlu0 %5402  ;;  %16792 = vst [vmem:[#allocation111_spill] sm:$0xff] %v15113_v32  ;;  %v4890_v56 = vmul.f32 %v14705_v43, %v16793_v40  ;;  %v5332_v47 = vmul.f32 %v15113_v32, %v5203_v4  ;;  %v16797_v40 = vld [vmem:[#allocation48_spill] sm:$0xff] }
 0x4a4   :  { %v15108_v44 = vadd.f32 %v5403_v2, %v4888_v22  ;;  %v5409_v16 = vpop.permute.xlu1 %5408  ;;  %v16794_v22 = vld [vmem:[#allocation15_spill] sm:$0xff] }
 0x4a5   :  { %5518 = vrot.lane.b32.xlu0 %v5330_v5, %s9050_s21  ;;  %v15111_v59 = vadd.f32 %v5409_v16, %v4891_v38  ;;  %v4893_v2 = vmul.f32 %v14710_v55, %v16794_v22 }
 0x4a6   :  { %16790 = vst [vmem:[#allocation71_spill] sm:$0xff] %v15108_v44  ;;  %8872 = vtanh.f32 %v15108_v44  ;;  %5524 = vrot.lane.b32.xlu1 %v5333_v60, %s9050_s21  ;;  %v4892_v60 = vmul.f32 %v14719_v14, %v16797_v40 }
 0x4a7   :  { %16791 = vst [vmem:[#allocation122_spill] sm:$0xff] %v15111_v59  ;;  %8874 = vtanh.f32 %v15111_v59  ;;  %v5407_v30 = vpop.permute.xlu0 %5406  ;;  %v16798_v59 = vld [vmem:[#allocation87_spill] sm:$0xff] }
 0x4a8   :  { %v15123_v5 = vadd.f32 %v5407_v30, %v4890_v56  ;;  %v5413_v38 = vpop.permute.xlu1 %5412  ;;  %v4895_v56 = vmul.f32 %v14724_v8, %v16798_v59  ;;  %v16802_v59 = vld [vmem:[#allocation22_spill] sm:$0xff] }
 0x4a9   :  { %v8867_v16 = vpop.eup %8866  ;;  %5522 = vrot.lane.b32.xlu0 %v5332_v47, %s9050_s21  ;;  %v15126_v44 = vadd.f32 %v5413_v38, %v4893_v2  ;;  %v16801_v38 = vld [vmem:[#allocation96_spill] sm:$0xff] }
 0x4aa   :  { %16795 = vst [vmem:[#allocation123_spill] sm:$0xff] %v15123_v5  ;;  %8876 = vtanh.f32 %v15123_v5  ;;  %5784 = vrot.lane.b32.xlu1 %v8867_v16, %s9051_s3  ;;  %v4894_v16 = vmul.f32 %v14733_v27, %v16801_v38 }
 0x4ab   :  { %16796 = vst [vmem:[#allocation81_spill] sm:$0xff] %v15126_v44  ;;  %8878 = vtanh.f32 %v15126_v44  ;;  %v5411_v4 = vpop.permute.xlu0 %5410 }
 0x4ac   :  { %v8869_v30 = vpop.eup %8868  ;;  %v15135_v22 = vadd.f32 %v5411_v4, %v4892_v60  ;;  %v5417_v12 = vpop.permute.xlu1 %5416  ;;  %v4897_v60 = vmul.f32 %v14740_v36, %v16802_v59  ;;  %v16806_v59 = vld [vmem:[#allocation14_spill] sm:$0xff] }
 0x4ad   :  { %v8871_v47 = vpop.eup %8870  ;;  %5782 = vrot.lane.b32.xlu0 %v8869_v30, %s9051_s3  ;;  %v15138_v2 = vadd.f32 %v5417_v12, %v4895_v56  ;;  %v16805_v56 = vld [vmem:[#allocation104_spill] sm:$0xff] }
 0x4ae   :  { %16799 = vst [vmem:[#allocation108_spill] sm:$0xff] %v15135_v22  ;;  %8880 = vtanh.f32 %v15135_v22  ;;  %5788 = vrot.lane.b32.xlu1 %v8871_v47, %s9051_s3  ;;  %v4896_v47 = vmul.f32 %v14752_v6, %v16805_v56 }
 0x4af   :  { %16800 = vst [vmem:[#allocation60_spill] sm:$0xff] %v15138_v2  ;;  %8882 = vtanh.f32 %v15138_v2  ;;  %v5415_v40 = vpop.permute.xlu0 %5414 }
 0x4b0   :  { %v8873_v4 = vpop.eup %8872  ;;  %v15147_v44 = vadd.f32 %v5415_v40, %v4894_v16  ;;  %v5421_v5 = vpop.permute.xlu1 %5420  ;;  %v4899_v16 = vmul.f32 %v14758_v23, %v16806_v59  ;;  %v16810_v59 = vld [vmem:[#allocation89_spill] sm:$0xff] }
 0x4b1   :  { %v8875_v30 = vpop.eup %8874  ;;  %5786 = vrot.lane.b32.xlu0 %v8873_v4, %s9051_s3  ;;  %v15150_v12 = vadd.f32 %v5421_v5, %v4897_v60  ;;  %v16809_v60 = vld [vmem:[#allocation45_spill] sm:$0xff] }
 0x4b2   :  { %16803 = vst [vmem:[#allocation77_spill] sm:$0xff] %v15147_v44  ;;  %8884 = vtanh.f32 %v15147_v44  ;;  %5792 = vrot.lane.b32.xlu1 %v8875_v30, %s9051_s3  ;;  %v4898_v30 = vmul.f32 %v14762_v10, %v16809_v60 }
 0x4b3   :  { %16804 = vst [vmem:[#allocation79_spill] sm:$0xff] %v15150_v12  ;;  %8886 = vtanh.f32 %v15150_v12  ;;  %v5419_v38 = vpop.permute.xlu0 %5418 }
 0x4b4   :  { %v8877_v40 = vpop.eup %8876  ;;  %v15159_v2 = vadd.f32 %v5419_v38, %v4896_v47  ;;  %v5425_v22 = vpop.permute.xlu1 %5424  ;;  %v4901_v47 = vmul.f32 %v14772_v18, %v16810_v59  ;;  %v16814_v59 = vld [vmem:[#allocation106_spill] sm:$0xff] }
 0x4b5   :  { %v8879_v4 = vpop.eup %8878  ;;  %5790 = vrot.lane.b32.xlu0 %v8877_v40, %s9051_s3  ;;  %v15162_v5 = vadd.f32 %v5425_v22, %v4899_v16  ;;  %v16813_v16 = vld [vmem:[#allocation98_spill] sm:$0xff] }
 0x4b6   :  { %16807 = vst [vmem:[#allocation61_spill] sm:$0xff] %v15159_v2  ;;  %8888 = vtanh.f32 %v15159_v2  ;;  %5796 = vrot.lane.b32.xlu1 %v8879_v4, %s9051_s3  ;;  %v4900_v4 = vmul.f32 %v14777_v61, %v16813_v16 }
 0x4b7   :  { %16808 = vst [vmem:[#allocation114_spill] sm:$0xff] %v15162_v5  ;;  %8890 = vtanh.f32 %v15162_v5  ;;  %v5423_v56 = vpop.permute.xlu0 %5422 }
 0x4b8   :  { %v8881_v38 = vpop.eup %8880  ;;  %v15171_v12 = vadd.f32 %v5423_v56, %v4898_v30  ;;  %v5429_v44 = vpop.permute.xlu1 %5428  ;;  %v4903_v30 = vmul.f32 %v14786_v20, %v16814_v59  ;;  %v16818_v59 = vld [vmem:[#allocation43_spill] sm:$0xff] }
 0x4b9   :  { %v8883_v40 = vpop.eup %8882  ;;  %5794 = vrot.lane.b32.xlu0 %v8881_v38, %s9051_s3  ;;  %v15174_v22 = vadd.f32 %v5429_v44, %v4901_v47  ;;  %v16817_v47 = vld [vmem:[#allocation40_spill] sm:$0xff] }
 0x4ba   :  { %16811 = vst [vmem:[#allocation121_spill] sm:$0xff] %v15171_v12  ;;  %8892 = vtanh.f32 %v15171_v12  ;;  %5800 = vrot.lane.b32.xlu1 %v8883_v40, %s9051_s3  ;;  %v4902_v40 = vmul.f32 %v14793_v7, %v16817_v47 }
 0x4bb   :  { %16812 = vst [vmem:[#allocation66_spill] sm:$0xff] %v15174_v22  ;;  %8894 = vtanh.f32 %v15174_v22  ;;  %v5427_v60 = vpop.permute.xlu0 %5426 }
 0x4bc   :  { %v8885_v56 = vpop.eup %8884  ;;  %v15183_v5 = vadd.f32 %v5427_v60, %v4900_v4  ;;  %v5433_v2 = vpop.permute.xlu1 %5432  ;;  %v4905_v4 = vmul.f32 %v14802_v21, %v16818_v59  ;;  %v16822_v59 = vld [vmem:[#allocation24_spill] sm:$0xff] }
 0x4bd   :  { %v8887_v38 = vpop.eup %8886  ;;  %5798 = vrot.lane.b32.xlu0 %v8885_v56, %s9051_s3  ;;  %v15186_v44 = vadd.f32 %v5433_v2, %v4903_v30  ;;  %v16821_v30 = vld [vmem:[#allocation42_spill] sm:$0xff] }
 0x4be   :  { %16815 = vst [vmem:[#allocation115_spill] sm:$0xff] %v15183_v5  ;;  %8896 = vtanh.f32 %v15183_v5  ;;  %5804 = vrot.lane.b32.xlu1 %v8887_v38, %s9051_s3  ;;  %v4904_v38 = vmul.f32 %v14807_v25, %v16821_v30 }
 0x4bf   :  { %16816 = vst [vmem:[#allocation16_spill] sm:$0xff] %v15186_v44  ;;  %8898 = vtanh.f32 %v15186_v44  ;;  %v5431_v16 = vpop.permute.xlu0 %5430 }
 0x4c0   :  { %v8889_v60 = vpop.eup %8888  ;;  %v15195_v22 = vadd.f32 %v5431_v16, %v4902_v40  ;;  %v5437_v12 = vpop.permute.xlu1 %5436  ;;  %v4907_v40 = vmul.f32 %v14811_v52, %v16822_v59  ;;  %v16826_v59 = vld [vmem:[#allocation25_spill] sm:$0xff] }
 0x4c1   :  { %v8891_v56 = vpop.eup %8890  ;;  %5802 = vrot.lane.b32.xlu0 %v8889_v60, %s9051_s3  ;;  %v15198_v2 = vadd.f32 %v5437_v12, %v4905_v4  ;;  %v16825_v4 = vld [vmem:[#allocation26_spill] sm:$0xff] }
 0x4c2   :  { %16819 = vst [vmem:[#allocation112_spill] sm:$0xff] %v15195_v22  ;;  %8900 = vtanh.f32 %v15195_v22  ;;  %5808 = vrot.lane.b32.xlu1 %v8891_v56, %s9051_s3  ;;  %v4906_v56 = vmul.f32 %v14818_v62, %v16825_v4 }
 0x4c3   :  { %16820 = vst [vmem:[#allocation93_spill] sm:$0xff] %v15198_v2  ;;  %8902 = vtanh.f32 %v15198_v2  ;;  %v5435_v47 = vpop.permute.xlu0 %5434 }
 0x4c4   :  { %v8893_v16 = vpop.eup %8892  ;;  %v15207_v44 = vadd.f32 %v5435_v47, %v4904_v38  ;;  %v5441_v5 = vpop.permute.xlu1 %5440  ;;  %v4909_v38 = vmul.f32 %v14829_v37, %v16826_v59  ;;  %v16830_v59 = vld [vmem:[#allocation33_spill] sm:$0xff] }
 0x4c5   :  { %v8895_v60 = vpop.eup %8894  ;;  %5806 = vrot.lane.b32.xlu0 %v8893_v16, %s9051_s3  ;;  %v15210_v12 = vadd.f32 %v5441_v5, %v4907_v40  ;;  %v16829_v40 = vld [vmem:[#allocation50_spill] sm:$0xff] }
 0x4c6   :  { %16823 = vst [vmem:[#allocation64_spill] sm:$0xff] %v15207_v44  ;;  %8904 = vtanh.f32 %v15207_v44  ;;  %5812 = vrot.lane.b32.xlu1 %v8895_v60, %s9051_s3  ;;  %v4908_v60 = vmul.f32 %v14833_v17, %v16829_v40 }
 0x4c7   :  { %16824 = vst [vmem:[#allocation84_spill] sm:$0xff] %v15210_v12  ;;  %8906 = vtanh.f32 %v15210_v12  ;;  %v5439_v30 = vpop.permute.xlu0 %5438 }
 0x4c8   :  { %v8897_v47 = vpop.eup %8896  ;;  %v15219_v2 = vadd.f32 %v5439_v30, %v4906_v56  ;;  %v5445_v22 = vpop.permute.xlu1 %5444  ;;  %v4911_v56 = vmul.f32 %v14843_v41, %v16830_v59  ;;  %v16834_v59 = vld [vmem:[#allocation73_spill] sm:$0xff] }
 0x4c9   :  { %v8899_v16 = vpop.eup %8898  ;;  %5810 = vrot.lane.b32.xlu0 %v8897_v47, %s9051_s3  ;;  %v15222_v5 = vadd.f32 %v5445_v22, %v4909_v38  ;;  %v16833_v38 = vld [vmem:[#allocation46_spill] sm:$0xff] }
 0x4ca   :  { %16827 = vst [vmem:[#allocation8_spill] sm:$0xff] %v15219_v2  ;;  %8908 = vtanh.f32 %v15219_v2  ;;  %5816 = vrot.lane.b32.xlu1 %v8899_v16, %s9051_s3  ;;  %v4910_v16 = vmul.f32 %v14849_v15, %v16833_v38 }
 0x4cb   :  { %16828 = vst [vmem:[#allocation20_spill] sm:$0xff] %v15222_v5  ;;  %8910 = vtanh.f32 %v15222_v5  ;;  %v5443_v4 = vpop.permute.xlu0 %5442 }
 0x4cc   :  { %v8901_v30 = vpop.eup %8900  ;;  %v15231_v12 = vadd.f32 %v5443_v4, %v4908_v60  ;;  %v5449_v44 = vpop.permute.xlu1 %5448  ;;  %v4913_v60 = vmul.f32 %v14859_v13, %v16834_v59  ;;  %v16838_v59 = vld [vmem:[#allocation53_spill] sm:$0xff] }
 0x4cd   :  { %v8903_v47 = vpop.eup %8902  ;;  %5814 = vrot.lane.b32.xlu0 %v8901_v30, %s9051_s3  ;;  %v15234_v22 = vadd.f32 %v5449_v44, %v4911_v56  ;;  %v16837_v56 = vld [vmem:[#allocation55_spill] sm:$0xff] }
 0x4ce   :  { %16831 = vst [vmem:[#allocation83_spill] sm:$0xff] %v15231_v12  ;;  %8912 = vtanh.f32 %v15231_v12  ;;  %5820 = vrot.lane.b32.xlu1 %v8903_v47, %s9051_s3  ;;  %v4912_v47 = vmul.f32 %v14863_v0, %v16837_v56 }
 0x4cf   :  { %16832 = vst [vmem:[#allocation119_spill] sm:$0xff] %v15234_v22  ;;  %8914 = vtanh.f32 %v15234_v22  ;;  %v5447_v40 = vpop.permute.xlu0 %5446 }
 0x4d0   :  { %v8905_v4 = vpop.eup %8904  ;;  %v15243_v5 = vadd.f32 %v5447_v40, %v4910_v16  ;;  %v5453_v2 = vpop.permute.xlu1 %5452  ;;  %v4915_v16 = vmul.f32 %v14875_v26, %v16838_v59  ;;  %v16842_v59 = vld [vmem:[#allocation28_spill] sm:$0xff] }
 0x4d1   :  { %v8907_v30 = vpop.eup %8906  ;;  %5818 = vrot.lane.b32.xlu0 %v8905_v4, %s9051_s3  ;;  %v15246_v44 = vadd.f32 %v5453_v2, %v4913_v60  ;;  %v16841_v60 = vld [vmem:[#allocation72_spill] sm:$0xff] }
 0x4d2   :  { %16835 = vst [vmem:[#allocation30_spill] sm:$0xff] %v15243_v5  ;;  %8916 = vtanh.f32 %v15243_v5  ;;  %5824 = vrot.lane.b32.xlu1 %v8907_v30, %s9051_s3  ;;  %v4914_v30 = vmul.f32 %v14883_v9, %v16841_v60 }
 0x4d3   :  { %16836 = vst [vmem:[#allocation70_spill] sm:$0xff] %v15246_v44  ;;  %8918 = vtanh.f32 %v15246_v44  ;;  %v5451_v38 = vpop.permute.xlu0 %5450  ;;  %v16843_v44 = vld [vmem:[#allocation10_spill] sm:$0xff] }
 0x4d4   :  { %v8909_v40 = vpop.eup %8908  ;;  %v15255_v22 = vadd.f32 %v5451_v38, %v4912_v47  ;;  %v5457_v12 = vpop.permute.xlu1 %5456  ;;  %v4917_v47 = vmul.f32 %v16843_v44, %v16842_v59  ;;  %v16847_v59 = vld [vmem:[#allocation75_spill] sm:$0xff] }
 0x4d5   :  { %v8911_v4 = vpop.eup %8910  ;;  %5822 = vrot.lane.b32.xlu0 %v8909_v40, %s9051_s3  ;;  %v15258_v2 = vadd.f32 %v5457_v12, %v4915_v16  ;;  %v16846_v16 = vld [vmem:[#allocation58_spill] sm:$0xff] }
 0x4d6   :  { %16839 = vst [vmem:[#allocation116_spill] sm:$0xff] %v15255_v22  ;;  %8920 = vtanh.f32 %v15255_v22  ;;  %5828 = vrot.lane.b32.xlu1 %v8911_v4, %s9051_s3  ;;  %v4916_v4 = vmul.f32 %v14897_v54, %v16846_v16 }
 0x4d7   :  { %16840 = vst [vmem:[#allocation117_spill] sm:$0xff] %v15258_v2  ;;  %8922 = vtanh.f32 %v15258_v2  ;;  %v5455_v56 = vpop.permute.xlu0 %5454  ;;  %v16848_v2 = vld [vmem:[#allocation95_spill] sm:$0xff] }
 0x4d8   :  { %v8913_v38 = vpop.eup %8912  ;;  %v15267_v5 = vadd.f32 %v5455_v56, %v4914_v30  ;;  %v5461_v26 = vpop.permute.xlu1 %5460  ;;  %v4919_v30 = vmul.f32 %v16848_v2, %v16847_v59  ;;  %v16852_v59 = vld [vmem:[#allocation36_spill] sm:$0xff] }
 0x4d9   :  { %v8915_v40 = vpop.eup %8914  ;;  %5826 = vrot.lane.b32.xlu0 %v8913_v38, %s9051_s3  ;;  %v15270_v12 = vadd.f32 %v5461_v26, %v4917_v47  ;;  %v16851_v47 = vld [vmem:[#allocation107_spill] sm:$0xff] }
 0x4da   :  { %16844 = vst [vmem:[#allocation68_spill] sm:$0xff] %v15267_v5  ;;  %8924 = vtanh.f32 %v15267_v5  ;;  %5832 = vrot.lane.b32.xlu1 %v8915_v40, %s9051_s3  ;;  %v4918_v40 = vmul.f32 %v14913_v48, %v16851_v47 }
 0x4db   :  { %16845 = vst [vmem:[#allocation12_spill] sm:$0xff] %v15270_v12  ;;  %8926 = vtanh.f32 %v15270_v12  ;;  %v5459_v60 = vpop.permute.xlu0 %5458  ;;  %v16853_v12 = vld [vmem:[#allocation86_spill] sm:$0xff] }
 0x4dc   :  { %v8917_v56 = vpop.eup %8916  ;;  %v15279_v22 = vadd.f32 %v5459_v60, %v4916_v4  ;;  %v5465_v44 = vpop.permute.xlu1 %5464  ;;  %v4921_v4 = vmul.f32 %v16853_v12, %v16852_v59  ;;  %v16857_v59 = vld [vmem:[#allocation76_spill] sm:$0xff] }
 0x4dd   :  { %v8919_v38 = vpop.eup %8918  ;;  %5830 = vrot.lane.b32.xlu0 %v8917_v56, %s9051_s3  ;;  %v15282_v26 = vadd.f32 %v5465_v44, %v4919_v30  ;;  %v16856_v30 = vld [vmem:[#allocation59_spill] sm:$0xff] }
 0x4de   :  { %16849 = vst [vmem:[#allocation35_spill] sm:$0xff] %v15279_v22  ;;  %8928 = vtanh.f32 %v15279_v22  ;;  %5836 = vrot.lane.b32.xlu1 %v8919_v38, %s9051_s3  ;;  %v4920_v38 = vmul.f32 %v14927_v42, %v16856_v30 }
 0x4df   :  { %16850 = vst [vmem:[#allocation88_spill] sm:$0xff] %v15282_v26  ;;  %8930 = vtanh.f32 %v15282_v26  ;;  %v5463_v16 = vpop.permute.xlu0 %5462  ;;  %v16858_v26 = vld [vmem:[#allocation103_spill] sm:$0xff] }
 0x4e0   :  { %v8921_v60 = vpop.eup %8920  ;;  %v15291_v5 = vadd.f32 %v5463_v16, %v4918_v40  ;;  %v5469_v2 = vpop.permute.xlu1 %5468  ;;  %v4923_v40 = vmul.f32 %v16858_v26, %v16857_v59  ;;  %v16862_v59 = vld [vmem:[#allocation9_spill] sm:$0xff] }
 0x4e1   :  { %v8923_v56 = vpop.eup %8922  ;;  %5834 = vrot.lane.b32.xlu0 %v8921_v60, %s9051_s3  ;;  %v15294_v44 = vadd.f32 %v5469_v2, %v4921_v4  ;;  %v16861_v4 = vld [vmem:[#allocation99_spill] sm:$0xff] }
 0x4e2   :  { %16854 = vst [vmem:[#allocation97_spill] sm:$0xff] %v15291_v5  ;;  %8932 = vtanh.f32 %v15291_v5  ;;  %5840 = vrot.lane.b32.xlu1 %v8923_v56, %s9051_s3  ;;  %v4922_v56 = vmul.f32 %v14936_v49, %v16861_v4  ;;  %v16867_v4 = vld [vmem:[#allocation13_spill] sm:$0xff] }
 0x4e3   :  { %16855 = vst [vmem:[#allocation41_spill] sm:$0xff] %v15294_v44  ;;  %8934 = vtanh.f32 %v15294_v44  ;;  %v5467_v47 = vpop.permute.xlu0 %5466  ;;  %v16863_v44 = vld [vmem:[#allocation38_spill] sm:$0xff] }
 0x4e4   :  { %v8925_v16 = vpop.eup %8924  ;;  %v15303_v22 = vadd.f32 %v5467_v47, %v4920_v38  ;;  %v5473_v12 = vpop.permute.xlu1 %5472  ;;  %v4925_v38 = vmul.f32 %v16863_v44, %v16862_v59  ;;  %v16868_v59 = vld [vmem:[#allocation17_spill] sm:$0xff] }
 0x4e5   :  { %v8927_v60 = vpop.eup %8926  ;;  %5838 = vrot.lane.b32.xlu0 %v8925_v16, %s9051_s3  ;;  %v15306_v2 = vadd.f32 %v5473_v12, %v4923_v40  ;;  %v16866_v40 = vld [vmem:[#allocation56_spill] sm:$0xff] }
 0x4e6   :  { %16859 = vst [vmem:[#allocation105_spill] sm:$0xff] %v15303_v22  ;;  %8936 = vtanh.f32 %v15303_v22  ;;  %5844 = vrot.lane.b32.xlu1 %v8927_v60, %s9051_s3  ;;  %v4924_v60 = vmul.f32 %v16867_v4, %v16866_v40  ;;  %v16869_v22 = vld [vmem:[#allocation94_spill] sm:$0xff]  ;;  %v16873_v40 = vld [vmem:[#allocation85_spill] sm:$0xff] }
 0x4e7   :  { %16860 = vst [vmem:[#allocation15_spill] sm:$0xff] %v15306_v2  ;;  %8938 = vtanh.f32 %v15306_v2  ;;  %v5471_v30 = vpop.permute.xlu0 %5470 }
 0x4e8   :  { %v8929_v47 = vpop.eup %8928  ;;  %v15315_v5 = vadd.f32 %v5471_v30, %v4922_v56  ;;  %v5477_v26 = vpop.permute.xlu1 %5476  ;;  %v4927_v56 = vmul.f32 %v16869_v22, %v16868_v59  ;;  %v16874_v59 = vld [vmem:[#allocation82_spill] sm:$0xff] }
 0x4e9   :  { %v8931_v16 = vpop.eup %8930  ;;  %5842 = vrot.lane.b32.xlu0 %v8929_v47, %s9051_s3  ;;  %v15318_v12 = vadd.f32 %v5477_v26, %v4925_v38  ;;  %v16872_v38 = vld [vmem:[#allocation100_spill] sm:$0xff] }
 0x4ea   :  { %16864 = vst [vmem:[#allocation48_spill] sm:$0xff] %v15315_v5  ;;  %8940 = vtanh.f32 %v15315_v5  ;;  %5848 = vrot.lane.b32.xlu1 %v8931_v16, %s9051_s3  ;;  %v4926_v16 = vmul.f32 %v16873_v40, %v16872_v38  ;;  %v16875_v5 = vld [vmem:[#allocation102_spill] sm:$0xff] }
 0x4eb   :  { %16865 = vst [vmem:[#allocation87_spill] sm:$0xff] %v15318_v12  ;;  %8942 = vtanh.f32 %v15318_v12  ;;  %v5475_v2 = vpop.permute.xlu0 %5474 }
 0x4ec   :  { %v8933_v30 = vpop.eup %8932  ;;  %v15327_v44 = vadd.f32 %v5475_v2, %v4924_v60  ;;  %v5481_v49 = vpop.permute.xlu1 %5480  ;;  %v4929_v2 = vmul.f32 %v16875_v5, %v16874_v59  ;;  %v16879_v59 = vld [vmem:[#allocation18_spill] sm:$0xff] }
 0x4ed   :  { %v8935_v47 = vpop.eup %8934  ;;  %5846 = vrot.lane.b32.xlu0 %v8933_v30, %s9051_s3  ;;  %v15330_v26 = vadd.f32 %v5481_v49, %v4927_v56  ;;  %v16878_v56 = vld [vmem:[#allocation57_spill] sm:$0xff] }
 0x4ee   :  { %16870 = vst [vmem:[#allocation96_spill] sm:$0xff] %v15327_v44  ;;  %8944 = vtanh.f32 %v15327_v44  ;;  %5852 = vrot.lane.b32.xlu1 %v8935_v47, %s9051_s3  ;;  %v4928_v47 = vmul.f32 %v14982_v50, %v16878_v56  ;;  %v16883_v56 = vld [vmem:[#allocation47_spill] sm:$0xff] }
 0x4ef   :  { %16871 = vst [vmem:[#allocation22_spill] sm:$0xff] %v15330_v26  ;;  %8946 = vtanh.f32 %v15330_v26  ;;  %v5479_v12 = vpop.permute.xlu0 %5478 }
 0x4f0   :  { %v8937_v60 = vpop.eup %8936  ;;  %v15339_v22 = vadd.f32 %v5479_v12, %v4926_v16  ;;  %v5485_v4 = vpop.permute.xlu1 %5484  ;;  %v4931_v12 = vmul.f32 %v14987_v33, %v16879_v59  ;;  %v16884_v59 = vld [vmem:[#allocation62_spill] sm:$0xff] }
 0x4f1   :  { %v8939_v30 = vpop.eup %8938  ;;  %5850 = vrot.lane.b32.xlu0 %v8937_v60, %s9051_s3  ;;  %v15342_v49 = vadd.f32 %v5485_v4, %v4929_v2  ;;  %v16882_v2 = vld [vmem:[#allocation110_spill] sm:$0xff] }
 0x4f2   :  { %16876 = vst [vmem:[#allocation104_spill] sm:$0xff] %v15339_v22  ;;  %8948 = vtanh.f32 %v15339_v22  ;;  %5856 = vrot.lane.b32.xlu1 %v8939_v30, %s9051_s3  ;;  %v4930_v30 = vmul.f32 %v16883_v56, %v16882_v2 }
 0x4f3   :  { %16877 = vst [vmem:[#allocation14_spill] sm:$0xff] %v15342_v49  ;;  %8950 = vtanh.f32 %v15342_v49  ;;  %v5483_v38 = vpop.permute.xlu0 %5482 }
 0x4f4   :  { %v8941_v16 = vpop.eup %8940  ;;  %v15351_v26 = vadd.f32 %v5483_v38, %v4928_v47  ;;  %v5489_v44 = vpop.permute.xlu1 %5488  ;;  %v4933_v47 = vmul.f32 %v15005_v63, %v16884_v59  ;;  %v16888_v59 = vld [vmem:[#allocation63_spill] sm:$0xff] }
 0x4f5   :  { %v8943_v60 = vpop.eup %8942  ;;  %5854 = vrot.lane.b32.xlu0 %v8941_v16, %s9051_s3  ;;  %v15354_v4 = vadd.f32 %v5489_v44, %v4931_v12  ;;  %v16887_v12 = vld [vmem:[#allocation80_spill] sm:$0xff] }
 0x4f6   :  { %16880 = vst [vmem:[#allocation45_spill] sm:$0xff] %v15351_v26  ;;  %8952 = vtanh.f32 %v15351_v26  ;;  %5860 = vrot.lane.b32.xlu1 %v8943_v60, %s9051_s3  ;;  %v4932_v60 = vmul.f32 %v15012_v29, %v16887_v12 }
 0x4f7   :  { %16881 = vst [vmem:[#allocation89_spill] sm:$0xff] %v15354_v4  ;;  %8954 = vtanh.f32 %v15354_v4  ;;  %v5487_v49 = vpop.permute.xlu0 %5486 }
 0x4f8   :  { %v8945_v38 = vpop.eup %8944  ;;  %v15363_v22 = vadd.f32 %v5487_v49, %v4930_v30  ;;  %v5493_v33 = vpop.permute.xlu1 %5492  ;;  %v4935_v49 = vmul.f32 %v15019_v39, %v16888_v59  ;;  %v16892_v59 = vld [vmem:[#allocation109_spill] sm:$0xff] }
 0x4f9   :  { %v8947_v16 = vpop.eup %8946  ;;  %5858 = vrot.lane.b32.xlu0 %v8945_v38, %s9051_s3  ;;  %v15366_v44 = vadd.f32 %v5493_v33, %v4933_v47  ;;  %v16891_v47 = vld [vmem:[#allocation91_spill] sm:$0xff] }
 0x4fa   :  { %16885 = vst [vmem:[#allocation98_spill] sm:$0xff] %v15363_v22  ;;  %8956 = vtanh.f32 %v15363_v22  ;;  %5864 = vrot.lane.b32.xlu1 %v8947_v16, %s9051_s3  ;;  %v4934_v16 = vmul.f32 %v15024_v3, %v16891_v47 }
 0x4fb   :  { %16886 = vst [vmem:[#allocation106_spill] sm:$0xff] %v15366_v44  ;;  %8958 = vtanh.f32 %v15366_v44  ;;  %v5491_v2 = vpop.permute.xlu0 %5490  ;;  %v16893_v44 = vld [vmem:[#allocation34_spill] sm:$0xff] }
 0x4fc   :  { %v8949_v30 = vpop.eup %8948  ;;  %v15375_v4 = vadd.f32 %v5491_v2, %v4932_v60  ;;  %v5497_v26 = vpop.permute.xlu1 %5496  ;;  %v4937_v60 = vmul.f32 %v16893_v44, %v16892_v59  ;;  %v16897_v59 = vld [vmem:[#allocation78_spill] sm:$0xff] }
 0x4fd   :  { %v8951_v38 = vpop.eup %8950  ;;  %5862 = vrot.lane.b32.xlu0 %v8949_v30, %s9051_s3  ;;  %v15378_v33 = vadd.f32 %v5497_v26, %v4935_v49  ;;  %v16896_v49 = vld [vmem:[#allocation120_spill] sm:$0xff] }
 0x4fe   :  { %16889 = vst [vmem:[#allocation40_spill] sm:$0xff] %v15375_v4  ;;  %8960 = vtanh.f32 %v15375_v4  ;;  %5868 = vrot.lane.b32.xlu1 %v8951_v38, %s9051_s3  ;;  %v4936_v38 = vmul.f32 %v15034_v45, %v16896_v49 }
 0x4ff   :  { %16890 = vst [vmem:[#allocation43_spill] sm:$0xff] %v15378_v33  ;;  %8962 = vtanh.f32 %v15378_v33  ;;  %v5495_v12 = vpop.permute.xlu0 %5494 }
 0x500   :  { %v8953_v2 = vpop.eup %8952  ;;  %v15387_v22 = vadd.f32 %v5495_v12, %v4934_v16  ;;  %v5501_v39 = vpop.permute.xlu1 %5500  ;;  %v4939_v16 = vmul.f32 %v15040_v53, %v16897_v59  ;;  %v16901_v59 = vld [vmem:[#allocation90_spill] sm:$0xff] }
 0x501   :  { %v8955_v30 = vpop.eup %8954  ;;  %5866 = vrot.lane.b32.xlu0 %v8953_v2, %s9051_s3  ;;  %v15390_v26 = vadd.f32 %v5501_v39, %v4937_v60  ;;  %v16900_v60 = vld [vmem:[#allocation37_spill] sm:$0xff] }
 0x502   :  { %16894 = vst [vmem:[#allocation42_spill] sm:$0xff] %v15387_v22  ;;  %8964 = vtanh.f32 %v15387_v22  ;;  %5872 = vrot.lane.b32.xlu1 %v8955_v30, %s9051_s3  ;;  %v4938_v30 = vmul.f32 %v15044_v51, %v16900_v60 }
 0x503   :  { %16895 = vst [vmem:[#allocation24_spill] sm:$0xff] %v15390_v26  ;;  %8966 = vtanh.f32 %v15390_v26  ;;  %v5499_v47 = vpop.permute.xlu0 %5498  ;;  %v16902_v26 = vld [vmem:[#allocation51_spill] sm:$0xff] }
 0x504   :  { %v8957_v12 = vpop.eup %8956  ;;  %v15399_v33 = vadd.f32 %v5499_v47, %v4936_v38  ;;  %v5505_v4 = vpop.permute.xlu1 %5504  ;;  %v4941_v38 = vmul.f32 %v16902_v26, %v16901_v59  ;;  %v16906_v59 = vld [vmem:[#allocation11_spill] sm:$0xff] }
 0x505   :  { %v8959_v2 = vpop.eup %8958  ;;  %5870 = vrot.lane.b32.xlu0 %v8957_v12, %s9051_s3  ;;  %v15402_v39 = vadd.f32 %v5505_v4, %v4939_v16  ;;  %v16905_v16 = vld [vmem:[#allocation27_spill] sm:$0xff] }
 0x506   :  { %16898 = vst [vmem:[#allocation26_spill] sm:$0xff] %v15399_v33  ;;  %8968 = vtanh.f32 %v15399_v33  ;;  %5876 = vrot.lane.b32.xlu1 %v8959_v2, %s9051_s3  ;;  %v4940_v2 = vmul.f32 %v15057_v58, %v16905_v16  ;;  %v16910_v16 = vld [vmem:[#allocation49_spill] sm:$0xff] }
 0x507   :  { %16899 = vst [vmem:[#allocation25_spill] sm:$0xff] %v15402_v39  ;;  %8970 = vtanh.f32 %v15402_v39  ;;  %v5503_v49 = vpop.permute.xlu0 %5502 }
 0x508   :  { %v8961_v47 = vpop.eup %8960  ;;  %v15411_v22 = vadd.f32 %v5503_v49, %v4938_v30  ;;  %v5509_v53 = vpop.permute.xlu1 %5508  ;;  %v4943_v30 = vmul.f32 %v15060_v28, %v16906_v59  ;;  %v16911_v59 = vld [vmem:[#allocation65_spill] sm:$0xff] }
 0x509   :  { %v8963_v12 = vpop.eup %8962  ;;  %5874 = vrot.lane.b32.xlu0 %v8961_v47, %s9051_s3  ;;  %v15414_v4 = vadd.f32 %v5509_v53, %v4941_v38  ;;  %v16909_v38 = vld [vmem:[#allocation113_spill] sm:$0xff] }
 0x50a   :  { %16903 = vst [vmem:[#allocation50_spill] sm:$0xff] %v15411_v22  ;;  %8972 = vtanh.f32 %v15411_v22  ;;  %5880 = vrot.lane.b32.xlu1 %v8963_v12, %s9051_s3  ;;  %v4942_v12 = vmul.f32 %v16910_v16, %v16909_v38 }
 0x50b   :  { %16904 = vst [vmem:[#allocation33_spill] sm:$0xff] %v15414_v4  ;;  %8974 = vtanh.f32 %v15414_v4  ;;  %v5507_v60 = vpop.permute.xlu0 %5506 }
 0x50c   :  { %v8965_v49 = vpop.eup %8964  ;;  %v15423_v39 = vadd.f32 %v5507_v60, %v4940_v2  ;;  %v5513_v33 = vpop.permute.xlu1 %5512  ;;  %v4945_v2 = vmul.f32 %v15069_v35, %v16911_v59  ;;  %v16915_v59 = vld [vmem:[#allocation69_spill] sm:$0xff] }
 0x50d   :  { %v8967_v47 = vpop.eup %8966  ;;  %5878 = vrot.lane.b32.xlu0 %v8965_v49, %s9051_s3  ;;  %v15426_v53 = vadd.f32 %v5513_v33, %v4943_v30  ;;  %v16914_v30 = vld [vmem:[#allocation118_spill] sm:$0xff] }
 0x50e   :  { %16907 = vst [vmem:[#allocation46_spill] sm:$0xff] %v15423_v39  ;;  %8976 = vtanh.f32 %v15423_v39  ;;  %5884 = vrot.lane.b32.xlu1 %v8967_v47, %s9051_s3  ;;  %v4944_v47 = vmul.f32 %v15078_v57, %v16914_v30 }
 0x50f   :  { %16908 = vst [vmem:[#allocation73_spill] sm:$0xff] %v15426_v53  ;;  %8978 = vtanh.f32 %v15426_v53  ;;  %v5511_v4 = vpop.permute.xlu0 %5510 }
 0x510   :  { %v8969_v60 = vpop.eup %8968  ;;  %v15435_v22 = vadd.f32 %v5511_v4, %v4942_v12  ;;  %v5517_v28 = vpop.permute.xlu1 %5516  ;;  %v4947_v4 = vmul.f32 %v15083_v19, %v16915_v59  ;;  %v16919_v59 = vld [vmem:[#allocation92_spill] sm:$0xff] }
 0x511   :  { %v8971_v49 = vpop.eup %8970  ;;  %5882 = vrot.lane.b32.xlu0 %v8969_v60, %s9051_s3  ;;  %v15438_v33 = vadd.f32 %v5517_v28, %v4945_v2  ;;  %v16918_v2 = vld [vmem:[#allocation19_spill] sm:$0xff] }
 0x512   :  { %16912 = vst [vmem:[#allocation55_spill] sm:$0xff] %v15435_v22  ;;  %8980 = vtanh.f32 %v15435_v22  ;;  %5888 = vrot.lane.b32.xlu1 %v8971_v49, %s9051_s3  ;;  %v4946_v49 = vmul.f32 %v15095_v46, %v16918_v2 }
 0x513   :  { %16913 = vst [vmem:[#allocation53_spill] sm:$0xff] %v15438_v33  ;;  %8982 = vtanh.f32 %v15438_v33  ;;  %v5515_v38 = vpop.permute.xlu0 %5514 }
 0x514   :  { %v8973_v12 = vpop.eup %8972  ;;  %v15447_v53 = vadd.f32 %v5515_v38, %v4944_v47  ;;  %v5521_v39 = vpop.permute.xlu1 %5520  ;;  %v4949_v47 = vmul.f32 %v15101_v24, %v16919_v59 }
 0x515   :  { %v8975_v60 = vpop.eup %8974  ;;  %5886 = vrot.lane.b32.xlu0 %v8973_v12, %s9051_s3  ;;  %v15450_v28 = vadd.f32 %v5521_v39, %v4947_v4  ;;  %v16922_v4 = vld [vmem:[#allocation67_spill] sm:$0xff] }
 0x516   :  { %16916 = vst [vmem:[#allocation72_spill] sm:$0xff] %v15447_v53  ;;  %8984 = vtanh.f32 %v15447_v53  ;;  %5892 = vrot.lane.b32.xlu1 %v8975_v60, %s9051_s3  ;;  %v4948_v60 = vmul.f32 %v15113_v32, %v16922_v4 }
 0x517   :  { %16917 = vst [vmem:[#allocation28_spill] sm:$0xff] %v15450_v28  ;;  %8986 = vtanh.f32 %v15450_v28  ;;  %v5519_v30 = vpop.permute.xlu0 %5518 }
 0x518   :  { %v8977_v38 = vpop.eup %8976  ;;  %v15459_v33 = vadd.f32 %v5519_v30, %v4946_v49  ;;  %v5525_v22 = vpop.permute.xlu1 %5524 }
 0x519   :  { %v8979_v12 = vpop.eup %8978  ;;  %5890 = vrot.lane.b32.xlu0 %v8977_v38, %s9051_s3  ;;  %v15462_v39 = vadd.f32 %v5525_v22, %v4949_v47 }
 0x51a   :  { %16920 = vst [vmem:[#allocation58_spill] sm:$0xff] %v15459_v33  ;;  %8988 = vtanh.f32 %v15459_v33  ;;  %5896 = vrot.lane.b32.xlu1 %v8979_v12, %s9051_s3 }
 0x51b   :  { %16921 = vst [vmem:[#allocation75_spill] sm:$0xff] %v15462_v39  ;;  %8990 = vtanh.f32 %v15462_v39  ;;  %v5523_v2 = vpop.permute.xlu0 %5522 }
 0x51c   :  { %v8981_v59 = vpop.eup %8980  ;;  %v15469_v28 = vadd.f32 %v5523_v2, %v4948_v60  ;;  %v5785_v49 = vpop.permute.xlu1 %5784 }
 0x51d   :  { %v8983_v30 = vpop.eup %8982  ;;  %5894 = vrot.lane.b32.xlu0 %v8981_v59, %s9051_s3 }
 0x51e   :  { %16923 = vst [vmem:[#allocation107_spill] sm:$0xff] %v15469_v28  ;;  %8992 = vtanh.f32 %v15469_v28  ;;  %5900 = vrot.lane.b32.xlu1 %v8983_v30, %s9051_s3  ;;  %v5975_v30 = vmul.f32 %v14663_v11, %v5785_v49 }
 0x51f   :  { %v5783_v22 = vpop.permute.xlu0 %5782 }
 0x520   :  { %v8985_v47 = vpop.eup %8984  ;;  %v5789_v38 = vpop.permute.xlu1 %5788 }
 0x521   :  { %v8987_v4 = vpop.eup %8986  ;;  %5898 = vrot.lane.b32.xlu0 %v8985_v47, %s9051_s3  ;;  %v16924_v47 = vld [vmem:[#allocation101_spill] sm:$0xff]  ;;  %v5977_v32 = vmul.f32 %v14683_v31, %v5789_v38 }
 0x522   :  { %5904 = vrot.lane.b32.xlu1 %v8987_v4, %s9051_s3  ;;  %v5974_v53 = vmul.f32 %v16924_v47, %v5783_v22 }
 0x523   :  { %v5787_v12 = vpop.permute.xlu0 %5786 }
 0x524   :  { %v8989_v39 = vpop.eup %8988  ;;  %v5793_v60 = vpop.permute.xlu1 %5792 }
 0x525   :  { %v8991_v2 = vpop.eup %8990  ;;  %5902 = vrot.lane.b32.xlu0 %v8989_v39, %s9051_s3  ;;  %v5976_v39 = vmul.f32 %v14686_v34, %v5787_v12  ;;  %v5979_v11 = vmul.f32 %v14695_v1, %v5793_v60 }
 0x526   :  { %5908 = vrot.lane.b32.xlu1 %v8991_v2, %s9051_s3 }
 0x527   :  { %v5791_v59 = vpop.permute.xlu0 %5790 }
 0x528   :  { %v8993_v28 = vpop.eup %8992  ;;  %v5797_v33 = vpop.permute.xlu1 %5796 }
 0x529   :  { %5906 = vrot.lane.b32.xlu0 %v8993_v28, %s9051_s3  ;;  %v5978_v28 = vmul.f32 %v14705_v43, %v5791_v59  ;;  %v5981_v31 = vmul.f32 %v14710_v55, %v5797_v33 }
 0x52a   :  { %6104 = vrot.lane.b32.xlu1 %v5975_v30, %s9050_s21 }
 0x52b   :  { %v5795_v4 = vpop.permute.xlu0 %5794 }
 0x52c   :  { %v5801_v24 = vpop.permute.xlu1 %5800  ;;  %v5980_v34 = vmul.f32 %v14719_v14, %v5795_v4 }
 0x52d   :  { %6102 = vrot.lane.b32.xlu0 %v5974_v53, %s9050_s21  ;;  %v5983_v1 = vmul.f32 %v14724_v8, %v5801_v24 }
 0x52e   :  { %6108 = vrot.lane.b32.xlu1 %v5977_v32, %s9050_s21 }
 0x52f   :  { %v5799_v2 = vpop.permute.xlu0 %5798 }
 0x530   :  { %v5805_v49 = vpop.permute.xlu1 %5804  ;;  %v5982_v43 = vmul.f32 %v14733_v27, %v5799_v2 }
 0x531   :  { %6106 = vrot.lane.b32.xlu0 %v5976_v39, %s9050_s21  ;;  %v5985_v55 = vmul.f32 %v14740_v36, %v5805_v49 }
 0x532   :  { %6112 = vrot.lane.b32.xlu1 %v5979_v11, %s9050_s21 }
 0x533   :  { %v5803_v22 = vpop.permute.xlu0 %5802 }
 0x534   :  { %v5809_v38 = vpop.permute.xlu1 %5808  ;;  %v5984_v14 = vmul.f32 %v14752_v6, %v5803_v22 }
 0x535   :  { %6110 = vrot.lane.b32.xlu0 %v5978_v28, %s9050_s21  ;;  %v5987_v24 = vmul.f32 %v14758_v23, %v5809_v38 }
 0x536   :  { %6116 = vrot.lane.b32.xlu1 %v5981_v31, %s9050_s21 }
 0x537   :  { %v5807_v32 = vpop.permute.xlu0 %5806 }
 0x538   :  { %v5813_v53 = vpop.permute.xlu1 %5812  ;;  %v5986_v27 = vmul.f32 %v14762_v10, %v5807_v32 }
 0x539   :  { %6114 = vrot.lane.b32.xlu0 %v5980_v34, %s9050_s21  ;;  %v5989_v36 = vmul.f32 %v14772_v18, %v5813_v53  ;;  %v16925_v53 = vld [vmem:[#allocation29_spill] sm:$0xff] }
 0x53a   :  { %6120 = vrot.lane.b32.xlu1 %v5983_v1, %s9050_s21 }
 0x53b   :  { %v5811_v12 = vpop.permute.xlu0 %5810 }
 0x53c   :  { %v5817_v33 = vpop.permute.xlu1 %5816  ;;  %v5988_v6 = vmul.f32 %v14777_v61, %v5811_v12 }
 0x53d   :  { %6118 = vrot.lane.b32.xlu0 %v5982_v43, %s9050_s21  ;;  %v5991_v23 = vmul.f32 %v14786_v20, %v5817_v33 }
 0x53e   :  { %6124 = vrot.lane.b32.xlu1 %v5985_v55, %s9050_s21  ;;  %v16926_v55 = vld [vmem:[#allocation10_spill] sm:$0xff] }
 0x53f   :  { %v5815_v60 = vpop.permute.xlu0 %5814 }
 0x540   :  { %v5821_v8 = vpop.permute.xlu1 %5820  ;;  %v5990_v10 = vmul.f32 %v14793_v7, %v5815_v60  ;;  %v16927_v60 = vld [vmem:[#allocation95_spill] sm:$0xff] }
 0x541   :  { %6122 = vrot.lane.b32.xlu0 %v5984_v14, %s9050_s21  ;;  %v5993_v18 = vmul.f32 %v14802_v21, %v5821_v8 }
 0x542   :  { %6128 = vrot.lane.b32.xlu1 %v5987_v24, %s9050_s21 }
 0x543   :  { %v5819_v59 = vpop.permute.xlu0 %5818 }
 0x544   :  { %v5825_v30 = vpop.permute.xlu1 %5824  ;;  %v5992_v61 = vmul.f32 %v14807_v25, %v5819_v59  ;;  %v16928_v59 = vld [vmem:[#allocation86_spill] sm:$0xff] }
 0x545   :  { %6126 = vrot.lane.b32.xlu0 %v5986_v27, %s9050_s21  ;;  %v5995_v20 = vmul.f32 %v14811_v52, %v5825_v30 }
 0x546   :  { %6132 = vrot.lane.b32.xlu1 %v5989_v36, %s9050_s21 }
 0x547   :  { %v5823_v47 = vpop.permute.xlu0 %5822 }
 0x548   :  { %v5829_v4 = vpop.permute.xlu1 %5828  ;;  %v5994_v7 = vmul.f32 %v14818_v62, %v5823_v47  ;;  %v16929_v47 = vld [vmem:[#allocation103_spill] sm:$0xff] }
 0x549   :  { %6130 = vrot.lane.b32.xlu0 %v5988_v6, %s9050_s21  ;;  %v5997_v21 = vmul.f32 %v14829_v37, %v5829_v4 }
 0x54a   :  { %6136 = vrot.lane.b32.xlu1 %v5991_v23, %s9050_s21 }
 0x54b   :  { %v5827_v39 = vpop.permute.xlu0 %5826 }
 0x54c   :  { %v5833_v2 = vpop.permute.xlu1 %5832  ;;  %v5996_v25 = vmul.f32 %v14833_v17, %v5827_v39 }
 0x54d   :  { %6134 = vrot.lane.b32.xlu0 %v5990_v10, %s9050_s21  ;;  %v5999_v52 = vmul.f32 %v14843_v41, %v5833_v2  ;;  %v16930_v10 = vld [vmem:[#allocation39_spill] sm:$0xff] }
 0x54e   :  { %6140 = vrot.lane.b32.xlu1 %v5993_v18, %s9050_s21  ;;  %v16931_v18 = vld [vmem:[#allocation38_spill] sm:$0xff] }
 0x54f   :  { %v5831_v11 = vpop.permute.xlu0 %5830 }
 0x550   :  { %v5837_v49 = vpop.permute.xlu1 %5836  ;;  %v5998_v62 = vmul.f32 %v14849_v15, %v5831_v11  ;;  %v16932_v11 = vld [vmem:[#allocation13_spill] sm:$0xff] }
 0x551   :  { %6138 = vrot.lane.b32.xlu0 %v5992_v61, %s9050_s21  ;;  %v6001_v37 = vmul.f32 %v14859_v13, %v5837_v49  ;;  %v16933_v49 = vld [vmem:[#allocation94_spill] sm:$0xff] }
 0x552   :  { %6144 = vrot.lane.b32.xlu1 %v5995_v20, %s9050_s21 }
 0x553   :  { %v5835_v28 = vpop.permute.xlu0 %5834 }
 0x554   :  { %v5841_v22 = vpop.permute.xlu1 %5840  ;;  %v6000_v17 = vmul.f32 %v14863_v0, %v5835_v28 }
 0x555   :  { %6142 = vrot.lane.b32.xlu0 %v5994_v7, %s9050_s21  ;;  %v6003_v41 = vmul.f32 %v16925_v53, %v5841_v22  ;;  %v16935_v53 = vld [vmem:[#allocation23_spill] sm:$0xff] }
 0x556   :  { %6148 = vrot.lane.b32.xlu1 %v5997_v21, %s9050_s21 }
 0x557   :  { %v5839_v31 = vpop.permute.xlu0 %5838 }
 0x558   :  { %v5845_v38 = vpop.permute.xlu1 %5844  ;;  %v6002_v15 = vmul.f32 %v14883_v9, %v5839_v31 }
 0x559   :  { %6146 = vrot.lane.b32.xlu0 %v5996_v25, %s9050_s21  ;;  %v6005_v13 = vmul.f32 %v16926_v55, %v5845_v38 }
 0x55a   :  { %6152 = vrot.lane.b32.xlu1 %v5999_v52, %s9050_s21 }
 0x55b   :  { %v5843_v34 = vpop.permute.xlu0 %5842 }
 0x55c   :  { %v5849_v32 = vpop.permute.xlu1 %5848  ;;  %v6004_v0 = vmul.f32 %v14897_v54, %v5843_v34 }
 0x55d   :  { %6150 = vrot.lane.b32.xlu0 %v5998_v62, %s9050_s21  ;;  %v6007_v24 = vmul.f32 %v16927_v60, %v5849_v32  ;;  %v16934_v62 = vld [vmem:[#allocation21_spill] sm:$0xff] }
 0x55e   :  { %6156 = vrot.lane.b32.xlu1 %v6001_v37, %s9050_s21 }
 0x55f   :  { %v5847_v1 = vpop.permute.xlu0 %5846 }
 0x560   :  { %v5853_v43 = vpop.permute.xlu1 %5852  ;;  %v6006_v9 = vmul.f32 %v14913_v48, %v5847_v1 }
 0x561   :  { %6154 = vrot.lane.b32.xlu0 %v6000_v17, %s9050_s21  ;;  %v6009_v36 = vmul.f32 %v16928_v59, %v5853_v43 }
 0x562   :  { %6160 = vrot.lane.b32.xlu1 %v6003_v41, %s9050_s21 }
 0x563   :  { %v5851_v12 = vpop.permute.xlu0 %5850 }
 0x564   :  { %v5857_v33 = vpop.permute.xlu1 %5856  ;;  %v6008_v54 = vmul.f32 %v14927_v42, %v5851_v12 }
 0x565   :  { %6158 = vrot.lane.b32.xlu0 %v6002_v15, %s9050_s21  ;;  %v6011_v23 = vmul.f32 %v16929_v47, %v5857_v33  ;;  %v16938_v47 = vld [vmem:[#allocation52_spill] sm:$0xff] }
 0x566   :  { %6164 = vrot.lane.b32.xlu1 %v6005_v13, %s9050_s21  ;;  %v16936_v13 = vld [vmem:[#allocation44_spill] sm:$0xff] }
 0x567   :  { %v5855_v14 = vpop.permute.xlu0 %5854 }
 0x568   :  { %v5861_v8 = vpop.permute.xlu1 %5860  ;;  %v6010_v48 = vmul.f32 %v16930_v10, %v5855_v14 }
 0x569   :  { %6162 = vrot.lane.b32.xlu0 %v6004_v0, %s9050_s21  ;;  %v6013_v2 = vmul.f32 %v16931_v18, %v5861_v8  ;;  %v16937_v8 = vld [vmem:[#allocation32_spill] sm:$0xff] }
 0x56a   :  { %6168 = vrot.lane.b32.xlu1 %v6007_v24, %s9050_s21 }
 0x56b   :  { %v5859_v27 = vpop.permute.xlu0 %5858 }
 0x56c   :  { %v5865_v30 = vpop.permute.xlu1 %5864  ;;  %v6012_v42 = vmul.f32 %v16932_v11, %v5859_v27 }
 0x56d   :  { %6166 = vrot.lane.b32.xlu0 %v6006_v9, %s9050_s21  ;;  %v6015_v7 = vmul.f32 %v16933_v49, %v5865_v30  ;;  %v16944_v49 = vld [vmem:[#allocation122_spill] sm:$0xff] }
 0x56e   :  { %6172 = vrot.lane.b32.xlu1 %v6009_v36, %s9050_s21 }
 0x56f   :  { %v5863_v6 = vpop.permute.xlu0 %5862 }
 0x570   :  { %v5869_v4 = vpop.permute.xlu1 %5868  ;;  %v6014_v21 = vmul.f32 %v16873_v40, %v5863_v6 }
 0x571   :  { %6170 = vrot.lane.b32.xlu0 %v6008_v54, %s9050_s21  ;;  %v6017_v25 = vmul.f32 %v16875_v5, %v5869_v4 }
 0x572   :  { %6176 = vrot.lane.b32.xlu1 %v6011_v23, %s9050_s21 }
 0x573   :  { %v5867_v39 = vpop.permute.xlu0 %5866 }
 0x574   :  { %v5873_v61 = vpop.permute.xlu1 %5872  ;;  %v6016_v52 = vmul.f32 %v14982_v50, %v5867_v39 }
 0x575   :  { %6174 = vrot.lane.b32.xlu0 %v6010_v48, %s9050_s21  ;;  %v6019_v34 = vmul.f32 %v16934_v62, %v5873_v61  ;;  %v16942_v61 = vld [vmem:[#allocation74_spill] sm:$0xff] }
 0x576   :  { %6180 = vrot.lane.b32.xlu1 %v6013_v2, %s9050_s21  ;;  %v16941_v2 = vld [vmem:[#allocation54_spill] sm:$0xff] }
 0x577   :  { %v5871_v20 = vpop.permute.xlu0 %5870 }
 0x578   :  { %v5877_v28 = vpop.permute.xlu1 %5876  ;;  %v6018_v40 = vmul.f32 %v16883_v56, %v5871_v20  ;;  %v16943_v20 = vld [vmem:[#allocation71_spill] sm:$0xff] }
 0x579   :  { %6178 = vrot.lane.b32.xlu0 %v6012_v42, %s9050_s21  ;;  %v6021_v5 = vmul.f32 %v15005_v63, %v5877_v28 }
 0x57a   :  { %6184 = vrot.lane.b32.xlu1 %v6015_v7, %s9050_s21 }
 0x57b   :  { %v5875_v22 = vpop.permute.xlu0 %5874 }
 0x57c   :  { %v5881_v31 = vpop.permute.xlu1 %5880  ;;  %v6020_v50 = vmul.f32 %v15012_v29, %v5875_v22  ;;  %v16946_v22 = vld [vmem:[#allocation81_spill] sm:$0xff] }
 0x57d   :  { %6182 = vrot.lane.b32.xlu0 %v6014_v21, %s9050_s21  ;;  %v6023_v41 = vmul.f32 %v16935_v53, %v5881_v31  ;;  %v16945_v21 = vld [vmem:[#allocation123_spill] sm:$0xff] }
 0x57e   :  { %6188 = vrot.lane.b32.xlu1 %v6017_v25, %s9050_s21 }
 0x57f   :  { %v5879_v38 = vpop.permute.xlu0 %5878 }
 0x580   :  { %v5885_v37 = vpop.permute.xlu1 %5884  ;;  %v6022_v56 = vmul.f32 %v15024_v3, %v5879_v38  ;;  %v16948_v38 = vld [vmem:[#allocation60_spill] sm:$0xff] }
 0x581   :  { %6186 = vrot.lane.b32.xlu0 %v6016_v52, %s9050_s21  ;;  %v6025_v63 = vmul.f32 %v16893_v44, %v5885_v37  ;;  %v16947_v52 = vld [vmem:[#allocation108_spill] sm:$0xff]  ;;  %v16949_v37 = vld [vmem:[#allocation77_spill] sm:$0xff] }
 0x582   :  { %6192 = vrot.lane.b32.xlu1 %v6019_v34, %s9050_s21 }
 0x583   :  { %v5883_v32 = vpop.permute.xlu0 %5882 }
 0x584   :  { %v5889_v17 = vpop.permute.xlu1 %5888  ;;  %v6024_v29 = vmul.f32 %v15034_v45, %v5883_v32 }
 0x585   :  { %6190 = vrot.lane.b32.xlu0 %v6018_v40, %s9050_s21  ;;  %v6027_v33 = vmul.f32 %v16936_v13, %v5889_v17  ;;  %v16950_v40 = vld [vmem:[#allocation79_spill] sm:$0xff]  ;;  %v16951_v17 = vld [vmem:[#allocation61_spill] sm:$0xff]  ;;  %v16957_v13 = vld [vmem:[#allocation112_spill] sm:$0xff] }
 0x586   :  { %6196 = vrot.lane.b32.xlu1 %v6021_v5, %s9050_s21 }
 0x587   :  { %v5887_v1 = vpop.permute.xlu0 %5886 }
 0x588   :  { %v5893_v43 = vpop.permute.xlu1 %5892  ;;  %v6026_v3 = vmul.f32 %v15044_v51, %v5887_v1 }
 0x589   :  { %6194 = vrot.lane.b32.xlu0 %v6020_v50, %s9050_s21  ;;  %v6029_v44 = vmul.f32 %v16902_v26, %v5893_v43  ;;  %v16952_v50 = vld [vmem:[#allocation114_spill] sm:$0xff] }
 0x58a   :  { %6200 = vrot.lane.b32.xlu1 %v6023_v41, %s9050_s21  ;;  %v16953_v41 = vld [vmem:[#allocation121_spill] sm:$0xff]  ;;  %v16954_v43 = vld [vmem:[#allocation66_spill] sm:$0xff] }
 0x58b   :  { %v5891_v15 = vpop.permute.xlu0 %5890 }
 0x58c   :  { %v5897_v12 = vpop.permute.xlu1 %5896  ;;  %v6028_v45 = vmul.f32 %v15057_v58, %v5891_v15 }
 0x58d   :  { %6198 = vrot.lane.b32.xlu0 %v6022_v56, %s9050_s21  ;;  %v6031_v9 = vmul.f32 %v16937_v8, %v5897_v12  ;;  %v16956_v12 = vld [vmem:[#allocation16_spill] sm:$0xff] }
 0x58e   :  { %6204 = vrot.lane.b32.xlu1 %v6025_v63, %s9050_s21  ;;  %v16955_v63 = vld [vmem:[#allocation115_spill] sm:$0xff]  ;;  %v16962_v8 = vld [vmem:[#allocation20_spill] sm:$0xff] }
 0x58f   :  { %v5895_v55 = vpop.permute.xlu0 %5894 }
 0x590   :  { %v5901_v0 = vpop.permute.xlu1 %5900  ;;  %v6030_v51 = vmul.f32 %v16910_v16, %v5895_v55 }
 0x591   :  { %6202 = vrot.lane.b32.xlu0 %v6024_v29, %s9050_s21  ;;  %v6033_v26 = vmul.f32 %v15069_v35, %v5901_v0 }
 0x592   :  { %6208 = vrot.lane.b32.xlu1 %v6027_v33, %s9050_s21  ;;  %v16958_v33 = vld [vmem:[#allocation93_spill] sm:$0xff] }
 0x593   :  { %v5899_v14 = vpop.permute.xlu0 %5898 }
 0x594   :  { %v5905_v60 = vpop.permute.xlu1 %5904  ;;  %v6032_v58 = vmul.f32 %v15078_v57, %v5899_v14  ;;  %v16959_v14 = vld [vmem:[#allocation64_spill] sm:$0xff] }
 0x595   :  { %6206 = vrot.lane.b32.xlu0 %v6026_v3, %s9050_s21  ;;  %v6035_v54 = vmul.f32 %v15083_v19, %v5905_v60  ;;  %v16939_v19 = vld [vmem:[#allocation111_spill] sm:$0xff] }
 0x596   :  { %6212 = vrot.lane.b32.xlu1 %v6029_v44, %s9050_s21  ;;  %v16960_v44 = vld [vmem:[#allocation84_spill] sm:$0xff] }
 0x597   :  { %v5903_v24 = vpop.permute.xlu0 %5902 }
 0x598   :  { %v5909_v27 = vpop.permute.xlu1 %5908  ;;  %v6034_v35 = vmul.f32 %v15095_v46, %v5903_v24  ;;  %v16940_v46 = vld [vmem:[#allocation31_spill] sm:$0xff]  ;;  %v16961_v24 = vld [vmem:[#allocation8_spill] sm:$0xff] }
 0x599   :  { %6210 = vrot.lane.b32.xlu0 %v6028_v45, %s9050_s21  ;;  %v6037_v23 = vmul.f32 %v16938_v47, %v5909_v27 }
 0x59a   :  { %6216 = vrot.lane.b32.xlu1 %v6031_v9, %s9050_s21 }
 0x59b   :  { %v5907_v59 = vpop.permute.xlu0 %5906 }
 0x59c   :  { %v6105_v36 = vpop.permute.xlu1 %6104  ;;  %v6036_v4 = vmul.f32 %v16939_v19, %v5907_v59  ;;  %v16964_v59 = vld [vmem:[#allocation119_spill] sm:$0xff]  ;;  %v16970_v19 = vld [vmem:[#allocation12_spill] sm:$0xff] }
 0x59d   :  { %6214 = vrot.lane.b32.xlu0 %v6030_v51, %s9050_s21  ;;  %6295 = vst.msk [vmem:[#allocation2 + $0x8] sm:$0xff] %vm3102_vm8, %v6105_v36  ;;  %v16963_v51 = vld [vmem:[#allocation83_spill] sm:$0xff] }
 0x59e   :  { %6220 = vrot.lane.b32.xlu1 %v6033_v26, %s9050_s21 }
 0x59f   :  { %v6103_v30 = vpop.permute.xlu0 %6102 }
 0x5a0   :  { %6294 = vst.msk [vmem:[#allocation2] sm:$0xff] %vm3102_vm8, %v6103_v30  ;;  %v6109_v6 = vpop.permute.xlu1 %6108  ;;  %v16966_v30 = vld [vmem:[#allocation70_spill] sm:$0xff] }
 0x5a1   :  { %6218 = vrot.lane.b32.xlu0 %v6032_v58, %s9050_s21  ;;  %6297 = vst.msk [vmem:[#allocation2 + $0x18] sm:$0xff] %vm3102_vm8, %v6109_v6  ;;  %v16965_v58 = vld [vmem:[#allocation30_spill] sm:$0xff] }
 0x5a2   :  { %6224 = vrot.lane.b32.xlu1 %v6035_v54, %s9050_s21 }
 0x5a3   :  { %v6107_v16 = vpop.permute.xlu0 %6106 }
 0x5a4   :  { %6296 = vst.msk [vmem:[#allocation2 + $0x10] sm:$0xff] %vm3102_vm8, %v6107_v16  ;;  %v6113_v57 = vpop.permute.xlu1 %6112  ;;  %v16968_v16 = vld [vmem:[#allocation117_spill] sm:$0xff] }
 0x5a5   :  { %6222 = vrot.lane.b32.xlu0 %v6034_v35, %s9050_s21  ;;  %6299 = vst.msk [vmem:[#allocation2 + $0x28] sm:$0xff] %vm3102_vm8, %v6113_v57  ;;  %v16967_v35 = vld [vmem:[#allocation116_spill] sm:$0xff] }
 0x5a6   :  { %6228 = vrot.lane.b32.xlu1 %v6037_v23, %s9050_s21  ;;  %v16969_v57 = vld [vmem:[#allocation68_spill] sm:$0xff] }
 0x5a7   :  { %v6111_v10 = vpop.permute.xlu0 %6110 }
 0x5a8   :  { %6298 = vst.msk [vmem:[#allocation2 + $0x20] sm:$0xff] %vm3102_vm8, %v6111_v10  ;;  %v6117_v48 = vpop.permute.xlu1 %6116 }
 0x5a9   :  { %6226 = vrot.lane.b32.xlu0 %v6036_v4, %s9050_s21  ;;  %6301 = vst.msk [vmem:[#allocation2 + $0x38] sm:$0xff] %vm3102_vm8, %v6117_v48  ;;  %v16971_v48 = vld [vmem:[#allocation35_spill] sm:$0xff]  ;;  %s9053_s21 = smov [#allocation2]  }
 0x5aa   :  { %6424 = vrot.lane.b32.xlu1 %v16940_v46, %s9052_s8  ;;  %v16972_v46 = vld [vmem:[#allocation88_spill] sm:$0xff]  ;;  %s6683_s10 = sshll.u32 %s9053_s21, 4  ;;  %s6684_s10 = int_to_ptr.vmem [resolvable:$true] %s6683_s10 }
 0x5ab   :  { %v6115_v39 = vpop.permute.xlu0 %6114  ;;  %s8994_s11 = scalar_lea.vmem %s6684_s10, 8192  ;;  %p8999_p1 = scmp.lt.s32.totalorder %s6684_s10, %s6684_s10 }
 0x5ac   :  { %6300 = vst.msk [vmem:[#allocation2 + $0x30] sm:$0xff] %vm3102_vm8, %v6115_v39  ;;  %v6121_v18 = vpop.permute.xlu1 %6120  ;;  %p8995_p0 = scmp.ne.s32.totalorder %s6684_s10, %s8994_s11  ;;  %p9000_p2 = scmp.lt.s32.totalorder %s8994_s11, %s8994_s11 }
 0x5ad   :  { %6422 = vrot.lane.b32.xlu0 %v16941_v2, %s9052_s8  ;;  %6303 = vst.msk [vmem:[#allocation2 + $0x48] sm:$0xff] %vm3102_vm8, %v6121_v18  ;;  %v16973_v2 = vld [vmem:[#allocation97_spill] sm:$0xff] }
 0x5ae   :  { %6428 = vrot.lane.b32.xlu1 %v16942_v61, %s9052_s8  ;;  %v16974_v61 = vld [vmem:[#allocation41_spill] sm:$0xff]  ;;  %p9001_p3 = por %p9000_p2, %p8999_p1 }
 0x5af   :  { %v6119_v11 = vpop.permute.xlu0 %6118 }
 0x5b0   :  { %6302 = vst.msk [vmem:[#allocation2 + $0x40] sm:$0xff] %vm3102_vm8, %v6119_v11  ;;  %v6125_v42 = vpop.permute.xlu1 %6124  ;;  %p9002_p4 = pnand %p9001_p3, %p8995_p0 }
 0x5b1   :  { %6426 = vrot.lane.b32.xlu0 %v16943_v20, %s9052_s8  ;;  %6305 = vst.msk [vmem:[#allocation2 + $0x58] sm:$0xff] %vm3102_vm8, %v6125_v42  ;;  %v16975_v20 = vld [vmem:[#allocation105_spill] sm:$0xff] }
 0x5b2   :  { %6432 = vrot.lane.b32.xlu1 %v16944_v49, %s9052_s8  ;;  %v16976_v49 = vld [vmem:[#allocation15_spill] sm:$0xff] }
 0x5b3   :  { %v6123_v7 = vpop.permute.xlu0 %6122 }
 0x5b4   :  { %6304 = vst.msk [vmem:[#allocation2 + $0x50] sm:$0xff] %vm3102_vm8, %v6123_v7  ;;  %v6129_v28 = vpop.permute.xlu1 %6128 }
 0x5b5   :  { %6430 = vrot.lane.b32.xlu0 %v16945_v21, %s9052_s8  ;;  %6307 = vst.msk [vmem:[#allocation2 + $0x68] sm:$0xff] %vm3102_vm8, %v6129_v28  ;;  %v16977_v21 = vld [vmem:[#allocation48_spill] sm:$0xff] }
 0x5b6   :  { %6436 = vrot.lane.b32.xlu1 %v16946_v22, %s9052_s8  ;;  %v16978_v22 = vld [vmem:[#allocation87_spill] sm:$0xff] }
 0x5b7   :  { %v6127_v25 = vpop.permute.xlu0 %6126 }
 0x5b8   :  { %6306 = vst.msk [vmem:[#allocation2 + $0x60] sm:$0xff] %vm3102_vm8, %v6127_v25  ;;  %v6133_v31 = vpop.permute.xlu1 %6132 }
 0x5b9   :  { %6434 = vrot.lane.b32.xlu0 %v16947_v52, %s9052_s8  ;;  %6309 = vst.msk [vmem:[#allocation2 + $0x78] sm:$0xff] %vm3102_vm8, %v6133_v31  ;;  %v16979_v52 = vld [vmem:[#allocation96_spill] sm:$0xff] }
 0x5ba   :  { %6440 = vrot.lane.b32.xlu1 %v16948_v38, %s9052_s8  ;;  %v16980_v38 = vld [vmem:[#allocation22_spill] sm:$0xff] }
 0x5bb   :  { %v6131_v62 = vpop.permute.xlu0 %6130 }
 0x5bc   :  { %6308 = vst.msk [vmem:[#allocation2 + $0x70] sm:$0xff] %vm3102_vm8, %v6131_v62  ;;  %v6137_v34 = vpop.permute.xlu1 %6136 }
 0x5bd   :  { %6438 = vrot.lane.b32.xlu0 %v16949_v37, %s9052_s8  ;;  %6311 = vst.msk [vmem:[#allocation2 + $0x88] sm:$0xff] %vm3102_vm8, %v6137_v34  ;;  %v16981_v37 = vld [vmem:[#allocation104_spill] sm:$0xff] }
 0x5be   :  { %6444 = vrot.lane.b32.xlu1 %v16950_v40, %s9052_s8  ;;  %v16982_v40 = vld [vmem:[#allocation14_spill] sm:$0xff] }
 0x5bf   :  { %v6135_v32 = vpop.permute.xlu0 %6134 }
 0x5c0   :  { %6310 = vst.msk [vmem:[#allocation2 + $0x80] sm:$0xff] %vm3102_vm8, %v6135_v32  ;;  %v6141_v5 = vpop.permute.xlu1 %6140 }
 0x5c1   :  { %6442 = vrot.lane.b32.xlu0 %v16951_v17, %s9052_s8  ;;  %6313 = vst.msk [vmem:[#allocation2 + $0x98] sm:$0xff] %vm3102_vm8, %v6141_v5  ;;  %v16983_v17 = vld [vmem:[#allocation45_spill] sm:$0xff] }
 0x5c2   :  { %6448 = vrot.lane.b32.xlu1 %v16952_v50, %s9052_s8  ;;  %v16984_v50 = vld [vmem:[#allocation89_spill] sm:$0xff] }
 0x5c3   :  { %v6139_v1 = vpop.permute.xlu0 %6138 }
 0x5c4   :  { %6312 = vst.msk [vmem:[#allocation2 + $0x90] sm:$0xff] %vm3102_vm8, %v6139_v1  ;;  %v6145_v53 = vpop.permute.xlu1 %6144 }
 0x5c5   :  { %6446 = vrot.lane.b32.xlu0 %v16953_v41, %s9052_s8  ;;  %6315 = vst.msk [vmem:[#allocation2 + $0xa8] sm:$0xff] %vm3102_vm8, %v6145_v53  ;;  %v16985_v41 = vld [vmem:[#allocation98_spill] sm:$0xff] }
 0x5c6   :  { %6452 = vrot.lane.b32.xlu1 %v16954_v43, %s9052_s8  ;;  %v16986_v43 = vld [vmem:[#allocation106_spill] sm:$0xff] }
 0x5c7   :  { %v6143_v56 = vpop.permute.xlu0 %6142 }
 0x5c8   :  { %6314 = vst.msk [vmem:[#allocation2 + $0xa0] sm:$0xff] %vm3102_vm8, %v6143_v56  ;;  %v6149_v15 = vpop.permute.xlu1 %6148 }
 0x5c9   :  { %6450 = vrot.lane.b32.xlu0 %v16955_v63, %s9052_s8  ;;  %6317 = vst.msk [vmem:[#allocation2 + $0xb8] sm:$0xff] %vm3102_vm8, %v6149_v15  ;;  %v16987_v63 = vld [vmem:[#allocation40_spill] sm:$0xff] }
 0x5ca   :  { %6456 = vrot.lane.b32.xlu1 %v16956_v12, %s9052_s8  ;;  %v16988_v12 = vld [vmem:[#allocation43_spill] sm:$0xff] }
 0x5cb   :  { %v6147_v29 = vpop.permute.xlu0 %6146 }
 0x5cc   :  { %6316 = vst.msk [vmem:[#allocation2 + $0xb0] sm:$0xff] %vm3102_vm8, %v6147_v29  ;;  %v6153_v55 = vpop.permute.xlu1 %6152 }
 0x5cd   :  { %6454 = vrot.lane.b32.xlu0 %v16957_v13, %s9052_s8  ;;  %6319 = vst.msk [vmem:[#allocation2 + $0xc8] sm:$0xff] %vm3102_vm8, %v6153_v55  ;;  %v16989_v13 = vld [vmem:[#allocation42_spill] sm:$0xff] }
 0x5ce   :  { %6460 = vrot.lane.b32.xlu1 %v16958_v33, %s9052_s8  ;;  %v16990_v33 = vld [vmem:[#allocation24_spill] sm:$0xff] }
 0x5cf   :  { %v6151_v0 = vpop.permute.xlu0 %6150 }
 0x5d0   :  { %6318 = vst.msk [vmem:[#allocation2 + $0xc0] sm:$0xff] %vm3102_vm8, %v6151_v0  ;;  %v6157_v3 = vpop.permute.xlu1 %6156 }
 0x5d1   :  { %6458 = vrot.lane.b32.xlu0 %v16959_v14, %s9052_s8  ;;  %6321 = vst.msk [vmem:[#allocation2 + $0xd8] sm:$0xff] %vm3102_vm8, %v6157_v3  ;;  %v16991_v14 = vld [vmem:[#allocation26_spill] sm:$0xff] }
 0x5d2   :  { %6464 = vrot.lane.b32.xlu1 %v16960_v44, %s9052_s8  ;;  %v16992_v44 = vld [vmem:[#allocation25_spill] sm:$0xff] }
 0x5d3   :  { %v6155_v60 = vpop.permute.xlu0 %6154 }
 0x5d4   :  { %6320 = vst.msk [vmem:[#allocation2 + $0xd0] sm:$0xff] %vm3102_vm8, %v6155_v60  ;;  %v6161_v45 = vpop.permute.xlu1 %6160 }
 0x5d5   :  { %6462 = vrot.lane.b32.xlu0 %v16961_v24, %s9052_s8  ;;  %6323 = vst.msk [vmem:[#allocation2 + $0xe8] sm:$0xff] %vm3102_vm8, %v6161_v45  ;;  %v16993_v24 = vld [vmem:[#allocation50_spill] sm:$0xff] }
 0x5d6   :  { %6468 = vrot.lane.b32.xlu1 %v16962_v8, %s9052_s8  ;;  %v16994_v8 = vld [vmem:[#allocation33_spill] sm:$0xff] }
 0x5d7   :  { %v6159_v9 = vpop.permute.xlu0 %6158 }
 0x5d8   :  { %6322 = vst.msk [vmem:[#allocation2 + $0xe0] sm:$0xff] %vm3102_vm8, %v6159_v9  ;;  %v6165_v27 = vpop.permute.xlu1 %6164 }
 0x5d9   :  { %6466 = vrot.lane.b32.xlu0 %v16963_v51, %s9052_s8  ;;  %6325 = vst.msk [vmem:[#allocation2 + $0xf8] sm:$0xff] %vm3102_vm8, %v6165_v27  ;;  %v16995_v51 = vld [vmem:[#allocation46_spill] sm:$0xff] }
 0x5da   :  { %6472 = vrot.lane.b32.xlu1 %v16964_v59, %s9052_s8  ;;  %v16996_v59 = vld [vmem:[#allocation73_spill] sm:$0xff] }
 0x5db   :  { %v6163_v26 = vpop.permute.xlu0 %6162 }
 0x5dc   :  { %6324 = vst.msk [vmem:[#allocation2 + $0xf0] sm:$0xff] %vm3102_vm8, %v6163_v26  ;;  %v6169_v36 = vpop.permute.xlu1 %6168 }
 0x5dd   :  { %6470 = vrot.lane.b32.xlu0 %v16965_v58, %s9052_s8  ;;  %6327 = vst.msk [vmem:[#allocation2 + $0x108] sm:$0xff] %vm3102_vm8, %v6169_v36  ;;  %v16997_v58 = vld [vmem:[#allocation55_spill] sm:$0xff] }
 0x5de   :  { %6476 = vrot.lane.b32.xlu1 %v16966_v30, %s9052_s8  ;;  %v16998_v30 = vld [vmem:[#allocation53_spill] sm:$0xff] }
 0x5df   :  { %v6167_v54 = vpop.permute.xlu0 %6166 }
 0x5e0   :  { %6326 = vst.msk [vmem:[#allocation2 + $0x100] sm:$0xff] %vm3102_vm8, %v6167_v54  ;;  %v6173_v6 = vpop.permute.xlu1 %6172 }
 0x5e1   :  { %6474 = vrot.lane.b32.xlu0 %v16967_v35, %s9052_s8  ;;  %6329 = vst.msk [vmem:[#allocation2 + $0x118] sm:$0xff] %vm3102_vm8, %v6173_v6 }
 0x5e2   :  { %6480 = vrot.lane.b32.xlu1 %v16968_v16, %s9052_s8 }
 0x5e3   :  { %v6171_v47 = vpop.permute.xlu0 %6170 }
 0x5e4   :  { %6328 = vst.msk [vmem:[#allocation2 + $0x110] sm:$0xff] %vm3102_vm8, %v6171_v47  ;;  %v6177_v23 = vpop.permute.xlu1 %6176 }
 0x5e5   :  { %6478 = vrot.lane.b32.xlu0 %v16969_v57, %s9052_s8  ;;  %6331 = vst.msk [vmem:[#allocation2 + $0x128] sm:$0xff] %vm3102_vm8, %v6177_v23 }
 0x5e6   :  { %6484 = vrot.lane.b32.xlu1 %v16970_v19, %s9052_s8 }
 0x5e7   :  { %v6175_v4 = vpop.permute.xlu0 %6174 }
 0x5e8   :  { %6330 = vst.msk [vmem:[#allocation2 + $0x120] sm:$0xff] %vm3102_vm8, %v6175_v4  ;;  %v6181_v10 = vpop.permute.xlu1 %6180 }
 0x5e9   :  { %6482 = vrot.lane.b32.xlu0 %v16971_v48, %s9052_s8  ;;  %6333 = vst.msk [vmem:[#allocation2 + $0x138] sm:$0xff] %vm3102_vm8, %v6181_v10 }
 0x5ea   :  { %6488 = vrot.lane.b32.xlu1 %v16972_v46, %s9052_s8 }
 0x5eb   :  { %v6179_v39 = vpop.permute.xlu0 %6178 }
 0x5ec   :  { %6332 = vst.msk [vmem:[#allocation2 + $0x130] sm:$0xff] %vm3102_vm8, %v6179_v39  ;;  %v6185_v18 = vpop.permute.xlu1 %6184 }
 0x5ed   :  { %6486 = vrot.lane.b32.xlu0 %v16973_v2, %s9052_s8  ;;  %6335 = vst.msk [vmem:[#allocation2 + $0x148] sm:$0xff] %vm3102_vm8, %v6185_v18 }
 0x5ee   :  { %6492 = vrot.lane.b32.xlu1 %v16974_v61, %s9052_s8 }
 0x5ef   :  { %v6183_v11 = vpop.permute.xlu0 %6182 }
 0x5f0   :  { %6334 = vst.msk [vmem:[#allocation2 + $0x140] sm:$0xff] %vm3102_vm8, %v6183_v11  ;;  %v6189_v42 = vpop.permute.xlu1 %6188 }
 0x5f1   :  { %6490 = vrot.lane.b32.xlu0 %v16975_v20, %s9052_s8  ;;  %6337 = vst.msk [vmem:[#allocation2 + $0x158] sm:$0xff] %vm3102_vm8, %v6189_v42 }
 0x5f2   :  { %6496 = vrot.lane.b32.xlu1 %v16976_v49, %s9052_s8 }
 0x5f3   :  { %v6187_v7 = vpop.permute.xlu0 %6186 }
 0x5f4   :  { %6336 = vst.msk [vmem:[#allocation2 + $0x150] sm:$0xff] %vm3102_vm8, %v6187_v7  ;;  %v6193_v28 = vpop.permute.xlu1 %6192 }
 0x5f5   :  { %6494 = vrot.lane.b32.xlu0 %v16977_v21, %s9052_s8  ;;  %6339 = vst.msk [vmem:[#allocation2 + $0x168] sm:$0xff] %vm3102_vm8, %v6193_v28 }
 0x5f6   :  { %6500 = vrot.lane.b32.xlu1 %v16978_v22, %s9052_s8 }
 0x5f7   :  { %v6191_v25 = vpop.permute.xlu0 %6190 }
 0x5f8   :  { %6338 = vst.msk [vmem:[#allocation2 + $0x160] sm:$0xff] %vm3102_vm8, %v6191_v25  ;;  %v6197_v31 = vpop.permute.xlu1 %6196 }
 0x5f9   :  { %6498 = vrot.lane.b32.xlu0 %v16979_v52, %s9052_s8  ;;  %6341 = vst.msk [vmem:[#allocation2 + $0x178] sm:$0xff] %vm3102_vm8, %v6197_v31 }
 0x5fa   :  { %6504 = vrot.lane.b32.xlu1 %v16980_v38, %s9052_s8 }
 0x5fb   :  { %v6195_v62 = vpop.permute.xlu0 %6194 }
 0x5fc   :  { %6340 = vst.msk [vmem:[#allocation2 + $0x170] sm:$0xff] %vm3102_vm8, %v6195_v62  ;;  %v6201_v34 = vpop.permute.xlu1 %6200 }
 0x5fd   :  { %6502 = vrot.lane.b32.xlu0 %v16981_v37, %s9052_s8  ;;  %6343 = vst.msk [vmem:[#allocation2 + $0x188] sm:$0xff] %vm3102_vm8, %v6201_v34 }
 0x5fe   :  { %6508 = vrot.lane.b32.xlu1 %v16982_v40, %s9052_s8 }
 0x5ff   :  { %v6199_v32 = vpop.permute.xlu0 %6198 }
 0x600   :  { %6342 = vst.msk [vmem:[#allocation2 + $0x180] sm:$0xff] %vm3102_vm8, %v6199_v32  ;;  %v6205_v5 = vpop.permute.xlu1 %6204 }
 0x601   :  { %6506 = vrot.lane.b32.xlu0 %v16983_v17, %s9052_s8  ;;  %6345 = vst.msk [vmem:[#allocation2 + $0x198] sm:$0xff] %vm3102_vm8, %v6205_v5 }
 0x602   :  { %6512 = vrot.lane.b32.xlu1 %v16984_v50, %s9052_s8 }
 0x603   :  { %v6203_v1 = vpop.permute.xlu0 %6202 }
 0x604   :  { %6344 = vst.msk [vmem:[#allocation2 + $0x190] sm:$0xff] %vm3102_vm8, %v6203_v1  ;;  %v6209_v53 = vpop.permute.xlu1 %6208 }
 0x605   :  { %6510 = vrot.lane.b32.xlu0 %v16985_v41, %s9052_s8  ;;  %6347 = vst.msk [vmem:[#allocation2 + $0x1a8] sm:$0xff] %vm3102_vm8, %v6209_v53 }
 0x606   :  { %6516 = vrot.lane.b32.xlu1 %v16986_v43, %s9052_s8 }
 0x607   :  { %v6207_v56 = vpop.permute.xlu0 %6206 }
 0x608   :  { %6346 = vst.msk [vmem:[#allocation2 + $0x1a0] sm:$0xff] %vm3102_vm8, %v6207_v56  ;;  %v6213_v15 = vpop.permute.xlu1 %6212 }
 0x609   :  { %6514 = vrot.lane.b32.xlu0 %v16987_v63, %s9052_s8  ;;  %6349 = vst.msk [vmem:[#allocation2 + $0x1b8] sm:$0xff] %vm3102_vm8, %v6213_v15 }
 0x60a   :  { %6520 = vrot.lane.b32.xlu1 %v16988_v12, %s9052_s8 }
 0x60b   :  { %v6211_v29 = vpop.permute.xlu0 %6210 }
 0x60c   :  { %6348 = vst.msk [vmem:[#allocation2 + $0x1b0] sm:$0xff] %vm3102_vm8, %v6211_v29  ;;  %v6217_v55 = vpop.permute.xlu1 %6216 }
 0x60d   :  { %6518 = vrot.lane.b32.xlu0 %v16989_v13, %s9052_s8  ;;  %6351 = vst.msk [vmem:[#allocation2 + $0x1c8] sm:$0xff] %vm3102_vm8, %v6217_v55 }
 0x60e   :  { %6524 = vrot.lane.b32.xlu1 %v16990_v33, %s9052_s8 }
 0x60f   :  { %v6215_v0 = vpop.permute.xlu0 %6214 }
 0x610   :  { %6350 = vst.msk [vmem:[#allocation2 + $0x1c0] sm:$0xff] %vm3102_vm8, %v6215_v0  ;;  %v6221_v3 = vpop.permute.xlu1 %6220 }
 0x611   :  { %6522 = vrot.lane.b32.xlu0 %v16991_v14, %s9052_s8  ;;  %6353 = vst.msk [vmem:[#allocation2 + $0x1d8] sm:$0xff] %vm3102_vm8, %v6221_v3 }
 0x612   :  { %6528 = vrot.lane.b32.xlu1 %v16992_v44, %s9052_s8 }
 0x613   :  { %v6219_v60 = vpop.permute.xlu0 %6218 }
 0x614   :  { %6352 = vst.msk [vmem:[#allocation2 + $0x1d0] sm:$0xff] %vm3102_vm8, %v6219_v60  ;;  %v6225_v45 = vpop.permute.xlu1 %6224 }
 0x615   :  { %6526 = vrot.lane.b32.xlu0 %v16993_v24, %s9052_s8  ;;  %6355 = vst.msk [vmem:[#allocation2 + $0x1e8] sm:$0xff] %vm3102_vm8, %v6225_v45 }
 0x616   :  { %6532 = vrot.lane.b32.xlu1 %v16994_v8, %s9052_s8 }
 0x617   :  { %v6223_v9 = vpop.permute.xlu0 %6222 }
 0x618   :  { %6354 = vst.msk [vmem:[#allocation2 + $0x1e0] sm:$0xff] %vm3102_vm8, %v6223_v9  ;;  %v6229_v27 = vpop.permute.xlu1 %6228 }
 0x619   :  { %6530 = vrot.lane.b32.xlu0 %v16995_v51, %s9052_s8  ;;  %6357 = vst.msk [vmem:[#allocation2 + $0x1f8] sm:$0xff] %vm3102_vm8, %v6229_v27 }
 0x61a   :  { %6536 = vrot.lane.b32.xlu1 %v16996_v59, %s9052_s8 }
 0x61b   :  { %v6227_v26 = vpop.permute.xlu0 %6226 }
 0x61c   :  { %6356 = vst.msk [vmem:[#allocation2 + $0x1f0] sm:$0xff] %vm3102_vm8, %v6227_v26  ;;  %v6425_v36 = vpop.permute.xlu1 %6424 }
 0x61d   :  { %6534 = vrot.lane.b32.xlu0 %v16997_v58, %s9052_s8  ;;  %6615 = vst.msk [vmem:[#allocation4 + $0x8] sm:$0xff] %vm3102_vm8, %v6425_v36 }
 0x61e   :  { %6540 = vrot.lane.b32.xlu1 %v16998_v30, %s9052_s8 }
 0x61f   :  { %v6423_v54 = vpop.permute.xlu0 %6422 }
 0x620   :  { %9005 = shalt.err (!%p9002_p4)
}
 0x621   :  { %s9006_s2 = scalar_lea.hbm %s15897_s4, 8192 }
 0x622   :  { %p9007_p5 = scmp.ne.s32.totalorder %s15897_s4, %s9006_s2  ;;  %p9010_p6 = scmp.lt.u32.totalorder %s9006_s2, %s15897_s4 }
 0x624   :  { %p9012_p7 = pnand %p9010_p6, %p9007_p5 }
 0x626   :  { %9015 = shalt.err (!%p9012_p7)
}
 0x627   :  { %s9054_s9 = smov 128   ;;  %s9055_s19 = smov 8   ;;  %6614 = vst.msk [vmem:[#allocation4] sm:$0xff] %vm3102_vm8, %v6423_v54  ;;  %v6429_v6 = vpop.permute.xlu1 %6428  ;;  %v16999_v35 = vld [vmem:[#allocation72_spill] sm:$0xff]  ;;  %v6427_v47 = vpop.permute.xlu0 %6426  ;;  %v17001_v57 = vld [vmem:[#allocation58_spill] sm:$0xff]  ;;  %v17002_v19 = vld [vmem:[#allocation75_spill] sm:$0xff] }
 0x628   :  { %6689 = dma.vmem_to_hbm [thread:$0]  %s6684_s10, 8192, %s15897_s4, [#allocation3], %s9054_s9, %s9054_s9, %s9055_s19   ;;  %6617 = vst.msk [vmem:[#allocation4 + $0x18] sm:$0xff] %vm3102_vm8, %v6429_v6  ;;  %v17000_v16 = vld [vmem:[#allocation28_spill] sm:$0xff]  ;;  %6616 = vst.msk [vmem:[#allocation4 + $0x10] sm:$0xff] %vm3102_vm8, %v6427_v47  ;;  %v17003_v48 = vld [vmem:[#allocation107_spill] sm:$0xff] }
 0x629   :  { %6538 = vrot.lane.b32.xlu0 %v16999_v35, %s9052_s8  ;;  %6544 = vrot.lane.b32.xlu1 %v17000_v16, %s9052_s8  ;;  %s9056_s4 = smov [#allocation4]  }
 0x62a   :  { %s6695_s20 = sshll.u32 %s9056_s4, 4  ;;  %s6696_s20 = int_to_ptr.vmem [resolvable:$true] %s6695_s20 }
 0x62b   :  { %v6433_v23 = vpop.permute.xlu1 %6432  ;;  %v6431_v4 = vpop.permute.xlu0 %6430  ;;  %s9016_s22 = scalar_lea.vmem %s6696_s20, 8192  ;;  %p9021_p9 = scmp.lt.s32.totalorder %s6696_s20, %s6696_s20 }
 0x62c   :  { %6619 = vst.msk [vmem:[#allocation4 + $0x28] sm:$0xff] %vm3102_vm8, %v6433_v23  ;;  %6618 = vst.msk [vmem:[#allocation4 + $0x20] sm:$0xff] %vm3102_vm8, %v6431_v4  ;;  %p9017_p8 = scmp.ne.s32.totalorder %s6696_s20, %s9016_s22  ;;  %p9022_p10 = scmp.lt.s32.totalorder %s9016_s22, %s9016_s22 }
 0x62d   :  { %6542 = vrot.lane.b32.xlu0 %v17001_v57, %s9052_s8  ;;  %6548 = vrot.lane.b32.xlu1 %v17002_v19, %s9052_s8 }
 0x62e   :  { %p9023_p11 = por %p9022_p10, %p9021_p9 }
 0x62f   :  { %v6437_v10 = vpop.permute.xlu1 %6436  ;;  %v6435_v46 = vpop.permute.xlu0 %6434 }
 0x630   :  { %6621 = vst.msk [vmem:[#allocation4 + $0x38] sm:$0xff] %vm3102_vm8, %v6437_v10  ;;  %6620 = vst.msk [vmem:[#allocation4 + $0x30] sm:$0xff] %vm3102_vm8, %v6435_v46  ;;  %p9024_p12 = pnand %p9023_p11, %p9017_p8 }
 0x631   :  { %6546 = vrot.lane.b32.xlu0 %v17003_v48, %s9052_s8 }
 0x633   :  { %v6441_v39 = vpop.permute.xlu1 %6440  ;;  %v6439_v18 = vpop.permute.xlu0 %6438 }
 0x634   :  { %6623 = vst.msk [vmem:[#allocation4 + $0x48] sm:$0xff] %vm3102_vm8, %v6441_v39  ;;  %6622 = vst.msk [vmem:[#allocation4 + $0x40] sm:$0xff] %vm3102_vm8, %v6439_v18 }
 0x637   :  { %v6445_v2 = vpop.permute.xlu1 %6444  ;;  %v6443_v61 = vpop.permute.xlu0 %6442 }
 0x638   :  { %6625 = vst.msk [vmem:[#allocation4 + $0x58] sm:$0xff] %vm3102_vm8, %v6445_v2  ;;  %6624 = vst.msk [vmem:[#allocation4 + $0x50] sm:$0xff] %vm3102_vm8, %v6443_v61 }
 0x63b   :  { %v6449_v11 = vpop.permute.xlu1 %6448  ;;  %v6447_v42 = vpop.permute.xlu0 %6446 }
 0x63c   :  { %6627 = vst.msk [vmem:[#allocation4 + $0x68] sm:$0xff] %vm3102_vm8, %v6449_v11  ;;  %6626 = vst.msk [vmem:[#allocation4 + $0x60] sm:$0xff] %vm3102_vm8, %v6447_v42 }
 0x63f   :  { %v6453_v20 = vpop.permute.xlu1 %6452  ;;  %v6451_v49 = vpop.permute.xlu0 %6450 }
 0x640   :  { %6629 = vst.msk [vmem:[#allocation4 + $0x78] sm:$0xff] %vm3102_vm8, %v6453_v20  ;;  %6628 = vst.msk [vmem:[#allocation4 + $0x70] sm:$0xff] %vm3102_vm8, %v6451_v49 }
 0x643   :  { %v6457_v7 = vpop.permute.xlu1 %6456  ;;  %v6455_v28 = vpop.permute.xlu0 %6454 }
 0x644   :  { %6631 = vst.msk [vmem:[#allocation4 + $0x88] sm:$0xff] %vm3102_vm8, %v6457_v7  ;;  %6630 = vst.msk [vmem:[#allocation4 + $0x80] sm:$0xff] %vm3102_vm8, %v6455_v28 }
 0x647   :  { %v6461_v21 = vpop.permute.xlu1 %6460  ;;  %v6459_v22 = vpop.permute.xlu0 %6458 }
 0x648   :  { %6633 = vst.msk [vmem:[#allocation4 + $0x98] sm:$0xff] %vm3102_vm8, %v6461_v21  ;;  %6632 = vst.msk [vmem:[#allocation4 + $0x90] sm:$0xff] %vm3102_vm8, %v6459_v22 }
 0x64b   :  { %v6465_v25 = vpop.permute.xlu1 %6464  ;;  %v6463_v31 = vpop.permute.xlu0 %6462 }
 0x64c   :  { %6635 = vst.msk [vmem:[#allocation4 + $0xa8] sm:$0xff] %vm3102_vm8, %v6465_v25  ;;  %6634 = vst.msk [vmem:[#allocation4 + $0xa0] sm:$0xff] %vm3102_vm8, %v6463_v31 }
 0x64f   :  { %v6469_v52 = vpop.permute.xlu1 %6468  ;;  %v6467_v38 = vpop.permute.xlu0 %6466 }
 0x650   :  { %6637 = vst.msk [vmem:[#allocation4 + $0xb8] sm:$0xff] %vm3102_vm8, %v6469_v52  ;;  %6636 = vst.msk [vmem:[#allocation4 + $0xb0] sm:$0xff] %vm3102_vm8, %v6467_v38 }
 0x653   :  { %v6473_v62 = vpop.permute.xlu1 %6472  ;;  %v6471_v34 = vpop.permute.xlu0 %6470 }
 0x654   :  { %6639 = vst.msk [vmem:[#allocation4 + $0xc8] sm:$0xff] %vm3102_vm8, %v6473_v62  ;;  %6638 = vst.msk [vmem:[#allocation4 + $0xc0] sm:$0xff] %vm3102_vm8, %v6471_v34 }
 0x657   :  { %v6477_v37 = vpop.permute.xlu1 %6476  ;;  %v6475_v40 = vpop.permute.xlu0 %6474 }
 0x658   :  { %6641 = vst.msk [vmem:[#allocation4 + $0xd8] sm:$0xff] %vm3102_vm8, %v6477_v37  ;;  %6640 = vst.msk [vmem:[#allocation4 + $0xd0] sm:$0xff] %vm3102_vm8, %v6475_v40 }
 0x65b   :  { %v6481_v32 = vpop.permute.xlu1 %6480  ;;  %v6479_v5 = vpop.permute.xlu0 %6478 }
 0x65c   :  { %6643 = vst.msk [vmem:[#allocation4 + $0xe8] sm:$0xff] %vm3102_vm8, %v6481_v32  ;;  %6642 = vst.msk [vmem:[#allocation4 + $0xe0] sm:$0xff] %vm3102_vm8, %v6479_v5 }
 0x65f   :  { %v6485_v17 = vpop.permute.xlu1 %6484  ;;  %v6483_v50 = vpop.permute.xlu0 %6482 }
 0x660   :  { %6645 = vst.msk [vmem:[#allocation4 + $0xf8] sm:$0xff] %vm3102_vm8, %v6485_v17  ;;  %6644 = vst.msk [vmem:[#allocation4 + $0xf0] sm:$0xff] %vm3102_vm8, %v6483_v50 }
 0x663   :  { %v6489_v1 = vpop.permute.xlu1 %6488  ;;  %v6487_v53 = vpop.permute.xlu0 %6486 }
 0x664   :  { %6647 = vst.msk [vmem:[#allocation4 + $0x108] sm:$0xff] %vm3102_vm8, %v6489_v1  ;;  %6646 = vst.msk [vmem:[#allocation4 + $0x100] sm:$0xff] %vm3102_vm8, %v6487_v53 }
 0x667   :  { %v6493_v41 = vpop.permute.xlu1 %6492  ;;  %v6491_v43 = vpop.permute.xlu0 %6490 }
 0x668   :  { %6649 = vst.msk [vmem:[#allocation4 + $0x118] sm:$0xff] %vm3102_vm8, %v6493_v41  ;;  %6648 = vst.msk [vmem:[#allocation4 + $0x110] sm:$0xff] %vm3102_vm8, %v6491_v43 }
 0x66b   :  { %v6497_v56 = vpop.permute.xlu1 %6496  ;;  %v6495_v15 = vpop.permute.xlu0 %6494 }
 0x66c   :  { %6651 = vst.msk [vmem:[#allocation4 + $0x128] sm:$0xff] %vm3102_vm8, %v6497_v56  ;;  %6650 = vst.msk [vmem:[#allocation4 + $0x120] sm:$0xff] %vm3102_vm8, %v6495_v15 }
 0x66f   :  { %v6501_v63 = vpop.permute.xlu1 %6500  ;;  %v6499_v12 = vpop.permute.xlu0 %6498 }
 0x670   :  { %6653 = vst.msk [vmem:[#allocation4 + $0x138] sm:$0xff] %vm3102_vm8, %v6501_v63  ;;  %6652 = vst.msk [vmem:[#allocation4 + $0x130] sm:$0xff] %vm3102_vm8, %v6499_v12 }
 0x673   :  { %v6505_v29 = vpop.permute.xlu1 %6504  ;;  %v6503_v55 = vpop.permute.xlu0 %6502 }
 0x674   :  { %6655 = vst.msk [vmem:[#allocation4 + $0x148] sm:$0xff] %vm3102_vm8, %v6505_v29  ;;  %6654 = vst.msk [vmem:[#allocation4 + $0x140] sm:$0xff] %vm3102_vm8, %v6503_v55 }
 0x677   :  { %v6509_v13 = vpop.permute.xlu1 %6508  ;;  %v6507_v33 = vpop.permute.xlu0 %6506 }
 0x678   :  { %6657 = vst.msk [vmem:[#allocation4 + $0x158] sm:$0xff] %vm3102_vm8, %v6509_v13  ;;  %6656 = vst.msk [vmem:[#allocation4 + $0x150] sm:$0xff] %vm3102_vm8, %v6507_v33 }
 0x67b   :  { %v6513_v0 = vpop.permute.xlu1 %6512  ;;  %v6511_v3 = vpop.permute.xlu0 %6510 }
 0x67c   :  { %6659 = vst.msk [vmem:[#allocation4 + $0x168] sm:$0xff] %vm3102_vm8, %v6513_v0  ;;  %6658 = vst.msk [vmem:[#allocation4 + $0x160] sm:$0xff] %vm3102_vm8, %v6511_v3 }
 0x67f   :  { %v6517_v14 = vpop.permute.xlu1 %6516  ;;  %v6515_v44 = vpop.permute.xlu0 %6514 }
 0x680   :  { %6661 = vst.msk [vmem:[#allocation4 + $0x178] sm:$0xff] %vm3102_vm8, %v6517_v14  ;;  %6660 = vst.msk [vmem:[#allocation4 + $0x170] sm:$0xff] %vm3102_vm8, %v6515_v44 }
 0x683   :  { %v6521_v60 = vpop.permute.xlu1 %6520  ;;  %v6519_v45 = vpop.permute.xlu0 %6518 }
 0x684   :  { %6663 = vst.msk [vmem:[#allocation4 + $0x188] sm:$0xff] %vm3102_vm8, %v6521_v60  ;;  %6662 = vst.msk [vmem:[#allocation4 + $0x180] sm:$0xff] %vm3102_vm8, %v6519_v45 }
 0x687   :  { %v6525_v24 = vpop.permute.xlu1 %6524  ;;  %v6523_v8 = vpop.permute.xlu0 %6522 }
 0x688   :  { %6665 = vst.msk [vmem:[#allocation4 + $0x198] sm:$0xff] %vm3102_vm8, %v6525_v24  ;;  %6664 = vst.msk [vmem:[#allocation4 + $0x190] sm:$0xff] %vm3102_vm8, %v6523_v8 }
 0x68b   :  { %v6529_v9 = vpop.permute.xlu1 %6528  ;;  %v6527_v27 = vpop.permute.xlu0 %6526 }
 0x68c   :  { %6667 = vst.msk [vmem:[#allocation4 + $0x1a8] sm:$0xff] %vm3102_vm8, %v6529_v9  ;;  %6666 = vst.msk [vmem:[#allocation4 + $0x1a0] sm:$0xff] %vm3102_vm8, %v6527_v27 }
 0x68f   :  { %v6533_v51 = vpop.permute.xlu1 %6532  ;;  %v6531_v59 = vpop.permute.xlu0 %6530 }
 0x690   :  { %6669 = vst.msk [vmem:[#allocation4 + $0x1b8] sm:$0xff] %vm3102_vm8, %v6533_v51  ;;  %6668 = vst.msk [vmem:[#allocation4 + $0x1b0] sm:$0xff] %vm3102_vm8, %v6531_v59 }
 0x693   :  { %v6537_v26 = vpop.permute.xlu1 %6536  ;;  %v6535_v36 = vpop.permute.xlu0 %6534 }
 0x694   :  { %6671 = vst.msk [vmem:[#allocation4 + $0x1c8] sm:$0xff] %vm3102_vm8, %v6537_v26  ;;  %6670 = vst.msk [vmem:[#allocation4 + $0x1c0] sm:$0xff] %vm3102_vm8, %v6535_v36 }
 0x697   :  { %v6541_v58 = vpop.permute.xlu1 %6540 }
 0x698   :  { %6673 = vst.msk [vmem:[#allocation4 + $0x1d8] sm:$0xff] %vm3102_vm8, %v6541_v58 }
 0x69b   :  { %v6539_v30 = vpop.permute.xlu0 %6538  ;;  %v6545_v54 = vpop.permute.xlu1 %6544 }
 0x69c   :  { %6672 = vst.msk [vmem:[#allocation4 + $0x1d0] sm:$0xff] %vm3102_vm8, %v6539_v30  ;;  %6675 = vst.msk [vmem:[#allocation4 + $0x1e8] sm:$0xff] %vm3102_vm8, %v6545_v54 }
 0x69f   :  { %v6543_v6 = vpop.permute.xlu0 %6542  ;;  %v6549_v35 = vpop.permute.xlu1 %6548 }
 0x6a0   :  { %6674 = vst.msk [vmem:[#allocation4 + $0x1e0] sm:$0xff] %vm3102_vm8, %v6543_v6  ;;  %6677 = vst.msk [vmem:[#allocation4 + $0x1f8] sm:$0xff] %vm3102_vm8, %v6549_v35 }
 0x6a3   :  { %v6547_v16 = vpop.permute.xlu0 %6546 }
 0x6a4   :  { %6676 = vst.msk [vmem:[#allocation4 + $0x1f0] sm:$0xff] %vm3102_vm8, %v6547_v16 }
 0x6a5   :  { %9027 = shalt.err (!%p9024_p12)
}
 0x6a6   :  { %s9028_s25 = scalar_lea.hbm %s15898_s5, 8192 }
 0x6a7   :  { %p9029_p13 = scmp.ne.s32.totalorder %s15898_s5, %s9028_s25  ;;  %p9032_p0 = scmp.lt.u32.totalorder %s9028_s25, %s15898_s5 }
 0x6a9   :  { %p9034_p1 = pnand %p9032_p0, %p9029_p13 }
 0x6ab   :  { %9037 = shalt.err (!%p9034_p1)
}
 0x6ac   :  { %6701 = dma.vmem_to_hbm [thread:$0]  %s6696_s20, 8192, %s15898_s5, [#allocation5], %s9054_s9, %s9054_s9, %s9055_s19  }
 0x6ad   :  { %9038 = dma.done.wait [#allocation3], 8192  }
 0x6ae   :  { %9039 = vsyncadd [#allocation3], 4294959104 }
 0x6af   :  { %9040 = dma.done.wait [#allocation5], 8192  }
 0x6b0   :  { %9041 = vsyncadd [#allocation5], 4294959104 }
 0x6b1   :  { %6708 = vsyncpa [#allocation3], 1 }
 0x6b2   :  { %6709 = vsyncpa [#allocation5], 1 }

</bundles_post_ra>
